<compile_context>
chip_gen: v7x
topology: tpu7x:2x2x1
jax: 0.10.0
libtpu: 0.0.40
codegen_flags: <defaults>
</compile_context>

<pallas_src>
import functools

import jax
import jax.numpy as jnp
from jax.experimental import pallas as pl
from jax.experimental.pallas import tpu as pltpu

IN_DIM = 512
H1 = 1024
H2 = 2048


def _round_up(x, m):
    return ((x + m - 1) // m) * m


def _cdiv(a, b):
    return (a + b - 1) // b


def _tile_plan():
    """Per-TPU-generation caps: (tm_cap, tn_cap, vmem_cap_bytes)."""
    try:
        kind = jax.devices()[0].device_kind.lower()
    except Exception:  # defensive: fall back to the most conservative plan
        kind = ""
    if "v7" in kind:
        return 512, 1024, 64 << 20       # 64 MiB VMEM per TensorCore
    if "v5 lite" in kind or "v5e" in kind or "v5lite" in kind:
        return 384, 2048, 128 << 20      # v5e crossover ~TM 256-384
    return 768, 2048, 128 << 20          # v6e / default: crossover ~TM 650


# ------------------------------ kernels --------------------------------------


def _h2_kernel(x_ref, w1_ref, b1_ref, w2_ref, b2_ref, h2_ref):
    """Layers 1-2: h2 = relu(relu(x @ W1 + b1) @ W2 + b2) -> bf16.

    Grid = (batch_tiles,). W1/W2/b1/b2 use constant index_maps and stay
    resident in VMEM across all batch tiles.
    """
    h1 = jnp.dot(x_ref[...], w1_ref[...], preferred_element_type=jnp.float32)
    h1 = jnp.maximum(h1 + b1_ref[...], 0.0).astype(jnp.bfloat16)
    h2 = jnp.dot(h1, w2_ref[...], preferred_element_type=jnp.float32)
    h2_ref[...] = jnp.maximum(h2 + b2_ref[...], 0.0).astype(h2_ref.dtype)


def _layer3_kernel(h2_ref, w3_ref, b3_ref, o_ref):
    """Layer 3: out = h2 @ W3 + b3.

    Grid = (out_tiles, batch_tiles): output-feature axis OUTER so each W3 tile
    is streamed from HBM exactly once and revisited across every batch tile.
    K = 2048 fits in a single tile, so there is no reduction axis / scratch.
    """
    acc = jnp.dot(h2_ref[...], w3_ref[...], preferred_element_type=jnp.float32)
    o_ref[...] = (acc + b3_ref[...]).astype(o_ref.dtype)


# ------------------------------ wrapper ---------------------------------------


def prepare_params(params, vert_size):
    """One-time param prep (do this OUTSIDE the per-call path).

    Casts weights to bf16 and pads W3/b3 to a multiple of 128 output lanes.
    Input params (f32, weights stored [in, out]):
      w1[512,1024], b1[1,1024], w2[1024,2048], b2[1,2048],
      w3[2048, vert_size*3], b3[1, vert_size*3]
    """
    w1, b1, w2, b2, w3, b3 = params
    out_dim = vert_size * 3
    n_pad = _round_up(out_dim, 128)
    w3p = jnp.pad(w3, ((0, 0), (0, n_pad - out_dim))).astype(jnp.bfloat16)
    b3p = jnp.pad(b3, ((0, 0), (0, n_pad - out_dim)))
    return (w1.astype(jnp.bfloat16), b1, w2.astype(jnp.bfloat16), b2, w3p, b3p)


@functools.partial(jax.jit, static_argnames=("vert_size",))
def mesh_decoder_forward(feats, prep_params, vert_size):
    """feats: [B, 512] f32; prep_params from prepare_params().

    Returns meshes: [B, vert_size, 3] float32.
    """
    w1, b1, w2, b2, w3, b3 = prep_params
    B = feats.shape[0]
    out_dim = vert_size * 3
    n_pad = w3.shape[1]                         # already padded to 128 lanes

    tm_cap, tn_cap, vmem_cap = _tile_plan()

    # ---- batch tiling: balanced tiles, padding bounded by 15 rows ----------
    n_btiles = _cdiv(B, tm_cap)
    TM = _round_up(_cdiv(B, n_btiles), 16)      # 16 = bf16 sublane pack
    B_pad = TM * n_btiles

    # ---- output tiling: largest multiple of 128 <= cap that divides n_pad --
    TN = min(tn_cap, n_pad)
    while n_pad % TN != 0:
        TN -= 128
    n_otiles = n_pad // TN

    # ---- per-call input prep (only feats is touched) ------------------------
    x = feats.astype(jnp.bfloat16)
    if B_pad != B:
        x = jnp.pad(x, ((0, B_pad - B), (0, 0)))

    # ---- kernel 1: h2 = relu(relu(x W1 + b1) W2 + b2) -----------------------
    # Resident W1/W2 are double-buffered by default (~5 MiB extra); total VMEM
    # here is well under every chip's limit, so single-buffering them is not
    # needed.
    vmem_a = (2 * TM * IN_DIM * 2                    # x tiles (bf16, 2x)
              + 2 * (IN_DIM * H1 + H1 * H2) * 2      # resident bf16 W1/W2
              + 2 * (H1 + H2) * 4                    # resident f32 b1/b2
              + 2 * TM * H2 * 2)                     # h2 out tiles (bf16, 2x)
    h2 = pl.pallas_call(
        _h2_kernel,
        out_shape=jax.ShapeDtypeStruct((B_pad, H2), jnp.bfloat16),
        grid=(n_btiles,),
        in_specs=[
            pl.BlockSpec((TM, IN_DIM), lambda i: (i, 0)),   # x  (batch-tiled)
            pl.BlockSpec((IN_DIM, H1), lambda i: (0, 0)),   # W1 (resident)
            pl.BlockSpec((1, H1), lambda i: (0, 0)),        # b1 (resident)
            pl.BlockSpec((H1, H2), lambda i: (0, 0)),       # W2 (resident)
            pl.BlockSpec((1, H2), lambda i: (0, 0)),        # b2 (resident)
        ],
        out_specs=pl.BlockSpec((TM, H2), lambda i: (i, 0)),
        compiler_params=pltpu.CompilerParams(
            dimension_semantics=("parallel",),
            vmem_limit_bytes=min(int(vmem_a + (16 << 20)), vmem_cap),
        ),
    )(x, w1, b1, w2, b2)

    # ---- kernel 2: out = h2 @ W3 + b3 (W3 streamed exactly once) ------------
    vmem_b = (2 * TM * H2 * 2                        # h2 tiles (bf16, 2x)
              + 2 * H2 * TN * 2                      # W3 tiles (bf16, 2x)
              + 2 * TN * 4                           # b3 tiles
              + 2 * TM * TN * 4)                     # out tiles (f32, 2x)
    flat = pl.pallas_call(
        _layer3_kernel,
        out_shape=jax.ShapeDtypeStruct((B_pad, n_pad), jnp.float32),
        grid=(n_otiles, n_btiles),                   # output-feature axis OUTER
        in_specs=[
            pl.BlockSpec((TM, H2), lambda j, i: (i, 0)),    # h2
            pl.BlockSpec((H2, TN), lambda j, i: (0, j)),    # W3 (1x traffic)
            pl.BlockSpec((1, TN), lambda j, i: (0, j)),     # b3
        ],
        out_specs=pl.BlockSpec((TM, TN), lambda j, i: (i, j)),
        compiler_params=pltpu.CompilerParams(
            dimension_semantics=("parallel", "parallel"),
            vmem_limit_bytes=min(int(vmem_b + (16 << 20)), vmem_cap),
        ),
    )(h2, w3, b3)

    # Strip padding only when it exists (slicing a padded buffer costs a copy).
    if B_pad != B or n_pad != out_dim:
        flat = flat[:B, :out_dim]
    # Matches PyTorch: meshes.view(-1, vert_size, 3)
    return flat.reshape(-1, vert_size, 3)


def init_params(key, vert_size):
    """Deterministic init mimicking nn.Linear's U(-1/sqrt(fan_in), +1/sqrt(fan_in)).

    Weights stored as [in, out] (transpose of PyTorch layout), biases [1, out]."""
    dims = [(IN_DIM, H1), (H1, H2), (H2, vert_size * 3)]
    params = []
    for (fan_in, fan_out) in dims:
        key, kw, kb = jax.random.split(key, 3)
        bound = 1.0 / jnp.sqrt(fan_in)
        w = jax.random.uniform(kw, (fan_in, fan_out), jnp.float32,
                               minval=-bound, maxval=bound)
        b = jax.random.uniform(kb, (1, fan_out), jnp.float32,
                               minval=-bound, maxval=bound)
        params.extend([w, b])
    return tuple(params)


if __name__ == "__main__":
    vert_size = 16          # small synthetic mesh: 16 vertices -> out dim 48
    batch = 2

    key = jax.random.PRNGKey(0)
    key, k_feats = jax.random.split(key)
    feats = jax.random.normal(k_feats, (batch, IN_DIM), jnp.float32)
    params = init_params(key, vert_size)

    # One-time param prep (bf16 cast + lane padding) outside the per-call path.
    prep = prepare_params(params, vert_size)
    prep = jax.block_until_ready(prep)

    meshes = mesh_decoder_forward(feats, prep, vert_size)
    meshes = jax.block_until_ready(meshes)

    # Pure-JAX f32 reference (kernel uses bf16 operands + f32 accumulation,
    # hence the loosened tolerance).
    w1, b1, w2, b2, w3, b3 = params
    ref = jnp.maximum(feats @ w1 + b1, 0.0)
    ref = jnp.maximum(ref @ w2 + b2, 0.0)
    ref = (ref @ w3 + b3).reshape(-1, vert_size, 3)

    assert meshes.shape == (batch, vert_size, 3), meshes.shape
    max_err = float(jnp.max(jnp.abs(meshes - ref)))
    assert jnp.allclose(meshes, ref, atol=2e-2, rtol=2e-2), max_err

    print("KERNEL_OK")
</pallas_src>

<mosaic_0001>
module attributes {stable_mosaic.version = 11 : i64} {
  func.func @_layer3_kernel(%arg0: i32, %arg1: i32, %arg2: memref<16x2048xbf16, #tpu.memory_space<vmem>>, %arg3: memref<2048x128xbf16, #tpu.memory_space<vmem>>, %arg4: memref<1x128xf32, #tpu.memory_space<vmem>>, %arg5: memref<16x128xf32, #tpu.memory_space<vmem>>) attributes {dimension_semantics = [#tpu.dimension_semantics<parallel>, #tpu.dimension_semantics<parallel>], iteration_bounds = array<i64: 1, 1>, scalar_prefetch = 0 : i64, scratch_operands = 0 : i64, tpu.core_type = #tpu.core_type<tc>, window_params = [{transform_indices = @transform_0, window_bounds = array<i64: 16, 2048>}, {transform_indices = @transform_1, window_bounds = array<i64: 2048, 128>}, {transform_indices = @transform_2, window_bounds = array<i64: 1, 128>}, {transform_indices = @transform_3, window_bounds = array<i64: 16, 128>}]} {
    %c0 = arith.constant 0 : index
    %c0_0 = arith.constant 0 : index
    %0 = vector.load %arg2[%c0, %c0_0] : memref<16x2048xbf16, #tpu.memory_space<vmem>>, vector<16x2048xbf16>
    %c0_1 = arith.constant 0 : index
    %c0_2 = arith.constant 0 : index
    %1 = vector.load %arg3[%c0_1, %c0_2] : memref<2048x128xbf16, #tpu.memory_space<vmem>>, vector<2048x128xbf16>
    %cst = arith.constant dense<0.000000e+00> : vector<16x128xf32>
    %2 = tpu.matmul %0, %1, %cst {dimension_numbers = #tpu.dot_dimension_numbers<[1], [0], [0], [1], [0, 0, 1, 1], [], []>} : vector<16x2048xbf16>, vector<2048x128xbf16>, vector<16x128xf32> -> vector<16x128xf32>
    %c0_3 = arith.constant 0 : index
    %c0_4 = arith.constant 0 : index
    %3 = vector.load %arg4[%c0_3, %c0_4] : memref<1x128xf32, #tpu.memory_space<vmem>>, vector<1x128xf32>
    %4 = vector.broadcast %3 : vector<1x128xf32> to vector<16x128xf32>
    %5 = arith.addf %2, %4 : vector<16x128xf32>
    %c0_5 = arith.constant 0 : index
    %c0_6 = arith.constant 0 : index
    %6 = vector.load %arg5[%c0_5, %c0_6] : memref<16x128xf32, #tpu.memory_space<vmem>>, vector<16x128xf32>
    tpu.vector_store %arg5[%c0_5, %c0_6], %5 {strides = array<i32>} : memref<16x128xf32, #tpu.memory_space<vmem>>, vector<16x128xf32>,
    return
  }
  func.func @transform_0(%arg0: i32, %arg1: i32) -> (i32, i32) {
    %c0_i32 = arith.constant 0 : i32
    %c0_i32_0 = arith.constant 0 : i32
    return %arg1, %c0_i32 : i32, i32
  }
  func.func @transform_1(%arg0: i32, %arg1: i32) -> (i32, i32) {
    %c0_i32 = arith.constant 0 : i32
    %c0_i32_0 = arith.constant 0 : i32
    return %c0_i32, %arg0 : i32, i32
  }
  func.func @transform_2(%arg0: i32, %arg1: i32) -> (i32, i32) {
    %c0_i32 = arith.constant 0 : i32
    %c0_i32_0 = arith.constant 0 : i32
    return %c0_i32, %arg0 : i32, i32
  }
  func.func @transform_3(%arg0: i32, %arg1: i32) -> (i32, i32) {
    %c0_i32 = arith.constant 0 : i32
    return %arg1, %arg0 : i32, i32
  }
}

module attributes {stable_mosaic.version = 11 : i64} {
  func.func @_h2_kernel(%arg0: i32, %arg1: memref<16x512xbf16, #tpu.memory_space<vmem>>, %arg2: memref<512x1024xbf16, #tpu.memory_space<vmem>>, %arg3: memref<1x1024xf32, #tpu.memory_space<vmem>>, %arg4: memref<1024x2048xbf16, #tpu.memory_space<vmem>>, %arg5: memref<1x2048xf32, #tpu.memory_space<vmem>>, %arg6: memref<16x2048xbf16, #tpu.memory_space<vmem>>) attributes {dimension_semantics = [#tpu.dimension_semantics<parallel>], iteration_bounds = array<i64: 1>, scalar_prefetch = 0 : i64, scratch_operands = 0 : i64, tpu.core_type = #tpu.core_type<tc>, window_params = [{transform_indices = @transform_0, window_bounds = array<i64: 16, 512>}, {pipeline_mode = #tpu.pipeline_mode<synchronous>, transform_indices = @transform_1, window_bounds = array<i64: 512, 1024>}, {pipeline_mode = #tpu.pipeline_mode<synchronous>, transform_indices = @transform_2, window_bounds = array<i64: 1, 1024>}, {pipeline_mode = #tpu.pipeline_mode<synchronous>, transform_indices = @transform_3, window_bounds = array<i64: 1024, 2048>}, {pipeline_mode = #tpu.pipeline_mode<synchronous>, transform_indices = @transform_4, window_bounds = array<i64: 1, 2048>}, {transform_indices = @transform_5, window_bounds = array<i64: 16, 2048>}]} {
    %c0 = arith.constant 0 : index
    %c0_0 = arith.constant 0 : index
    %0 = vector.load %arg1[%c0, %c0_0] : memref<16x512xbf16, #tpu.memory_space<vmem>>, vector<16x512xbf16>
    %c0_1 = arith.constant 0 : index
    %c0_2 = arith.constant 0 : index
    %1 = vector.load %arg2[%c0_1, %c0_2] : memref<512x1024xbf16, #tpu.memory_space<vmem>>, vector<512x1024xbf16>
    %cst = arith.constant dense<0.000000e+00> : vector<16x1024xf32>
    %2 = tpu.matmul %0, %1, %cst {dimension_numbers = #tpu.dot_dimension_numbers<[1], [0], [0], [1], [0, 0, 1, 1], [], []>} : vector<16x512xbf16>, vector<512x1024xbf16>, vector<16x1024xf32> -> vector<16x1024xf32>
    %c0_3 = arith.constant 0 : index
    %c0_4 = arith.constant 0 : index
    %3 = vector.load %arg3[%c0_3, %c0_4] : memref<1x1024xf32, #tpu.memory_space<vmem>>, vector<1x1024xf32>
    %4 = vector.broadcast %3 : vector<1x1024xf32> to vector<16x1024xf32>
    %5 = arith.addf %2, %4 : vector<16x1024xf32>
    %cst_5 = arith.constant 0.000000e+00 : f32
    %6 = vector.broadcast %cst_5 : f32 to vector<16x1024xf32>
    %7 = arith.maximumf %5, %6 : vector<16x1024xf32>
    %8 = arith.truncf %7 : vector<16x1024xf32> to vector<16x1024xbf16>
    %c0_6 = arith.constant 0 : index
    %c0_7 = arith.constant 0 : index
    %9 = vector.load %arg4[%c0_6, %c0_7] : memref<1024x2048xbf16, #tpu.memory_space<vmem>>, vector<1024x2048xbf16>
    %cst_8 = arith.constant dense<0.000000e+00> : vector<16x2048xf32>
    %10 = tpu.matmul %8, %9, %cst_8 {dimension_numbers = #tpu.dot_dimension_numbers<[1], [0], [0], [1], [0, 0, 1, 1], [], []>} : vector<16x1024xbf16>, vector<1024x2048xbf16>, vector<16x2048xf32> -> vector<16x2048xf32>
    %c0_9 = arith.constant 0 : index
    %c0_10 = arith.constant 0 : index
    %11 = vector.load %arg5[%c0_9, %c0_10] : memref<1x2048xf32, #tpu.memory_space<vmem>>, vector<1x2048xf32>
    %12 = vector.broadcast %11 : vector<1x2048xf32> to vector<16x2048xf32>
    %13 = arith.addf %10, %12 : vector<16x2048xf32>
    %cst_11 = arith.constant 0.000000e+00 : f32
    %14 = vector.broadcast %cst_11 : f32 to vector<16x2048xf32>
    %15 = arith.maximumf %13, %14 : vector<16x2048xf32>
    %16 = arith.truncf %15 : vector<16x2048xf32> to vector<16x2048xbf16>
    %c0_12 = arith.constant 0 : index
    %c0_13 = arith.constant 0 : index
    %17 = vector.load %arg6[%c0_12, %c0_13] : memref<16x2048xbf16, #tpu.memory_space<vmem>>, vector<16x2048xbf16>
    tpu.vector_store %arg6[%c0_12, %c0_13], %16 {strides = array<i32>} : memref<16x2048xbf16, #tpu.memory_space<vmem>>, vector<16x2048xbf16>,
    return
  }
  func.func @transform_0(%arg0: i32) -> (i32, i32) {
    %c0_i32 = arith.constant 0 : i32
    %c0_i32_0 = arith.constant 0 : i32
    return %arg0, %c0_i32 : i32, i32
  }
  func.func @transform_1(%arg0: i32) -> (i32, i32) {
    %c0_i32 = arith.constant 0 : i32
    %c0_i32_0 = arith.constant 0 : i32
    %c0_i32_1 = arith.constant 0 : i32
    return %c0_i32, %c0_i32_0 : i32, i32
  }
  func.func @transform_2(%arg0: i32) -> (i32, i32) {
    %c0_i32 = arith.constant 0 : i32
    %c0_i32_0 = arith.constant 0 : i32
    %c0_i32_1 = arith.constant 0 : i32
    return %c0_i32, %c0_i32_0 : i32, i32
  }
  func.func @transform_3(%arg0: i32) -> (i32, i32) {
    %c0_i32 = arith.constant 0 : i32
    %c0_i32_0 = arith.constant 0 : i32
    %c0_i32_1 = arith.constant 0 : i32
    return %c0_i32, %c0_i32_0 : i32, i32
  }
  func.func @transform_4(%arg0: i32) -> (i32, i32) {
    %c0_i32 = arith.constant 0 : i32
    %c0_i32_0 = arith.constant 0 : i32
    %c0_i32_1 = arith.constant 0 : i32
    return %c0_i32, %c0_i32_0 : i32, i32
  }
  func.func @transform_5(%arg0: i32) -> (i32, i32) {
    %c0_i32 = arith.constant 0 : i32
    %c0_i32_0 = arith.constant 0 : i32
    return %arg0, %c0_i32 : i32, i32
  }
}

</mosaic_0001>

<bundles_post_ra>
// kernel: mesh_decoder_forward.3
= control target key start
LH: loop header
LB: loop body
LE: loop exit
PB: predicated region body
PF: predicated region fallthrough
CT: control target
= control target key end

     0   :  { %s2386_s1 = inlined_call_operand.vmem [shape: bf16[2048,128], index: 1, kind: input, shape index: {}]   ;;  %s2387_s0 = inlined_call_operand.vmem [shape: bf16[16,2048], index: 0, kind: input, shape index: {}]   ;;  %s2388_s2 = inlined_call_operand.vmem [shape: f32[1,128], index: 2, kind: input, shape index: {}]   ;;  %s2389_s3 = inlined_call_operand.vmem [shape: f32[16,128], index: 3, kind: output, shape index: {}]  }
   0x1   :  { %v1797_v0 = vld [vmem:[%s2386_s1 + $0x40] sm:$0xff]   ;;  %v1801_v4 = vld [vmem:[%s2386_s1 + $0x48] sm:$0xff]   ;;  %v1805_v8 = vld [vmem:[%s2386_s1 + $0x50] sm:$0xff]  }
   0x2   :  { %v1798_v1 = vld [vmem:[%s2386_s1 + $0xc0] sm:$0xff]   ;;  %1621 = vmatprep.subr.bf16.mxu0 %v1797_v0  ;;  %v1802_v5 = vld [vmem:[%s2386_s1 + $0xc8] sm:$0xff]   ;;  %v1806_v9 = vld [vmem:[%s2386_s1 + $0xd0] sm:$0xff]  }
   0x3   :  { %v1799_v2 = vld [vmem:[%s2386_s1] sm:$0xff]   ;;  %1643 = vmatprep.subr.bf16.mxu1 %v1798_v1  ;;  %v1803_v6 = vld [vmem:[%s2386_s1 + $0x8] sm:$0xff]   ;;  %v1807_v10 = vld [vmem:[%s2386_s1 + $0x10] sm:$0xff]  }
   0x4   :  { %v1800_v3 = vld [vmem:[%s2386_s1 + $0x80] sm:$0xff]   ;;  %1622 = vmatpush3.bf16.msra.mxu0 %v1799_v2  ;;  %v1804_v7 = vld [vmem:[%s2386_s1 + $0x88] sm:$0xff]   ;;  %v1808_v11 = vld [vmem:[%s2386_s1 + $0x90] sm:$0xff]  }
   0x5   :  { %1644 = vmatpush3.bf16.msra.mxu1 %v1800_v3  ;;  %1623 = vmatprep.subr.bf16.mxu0 %v1801_v4  ;;  %v1809_v12 = vld [vmem:[%s2386_s1 + $0x58] sm:$0xff]   ;;  %v1813_v16 = vld [vmem:[%s2386_s1 + $0x60] sm:$0xff]   ;;  %v1817_v20 = vld [vmem:[%s2386_s1 + $0x68] sm:$0xff]  }
   0x6   :  { %1645 = vmatprep.subr.bf16.mxu1 %v1802_v5  ;;  %v1810_v13 = vld [vmem:[%s2386_s1 + $0xd8] sm:$0xff]   ;;  %v1814_v17 = vld [vmem:[%s2386_s1 + $0xe0] sm:$0xff]   ;;  %v1818_v21 = vld [vmem:[%s2386_s1 + $0xe8] sm:$0xff]  }
   0x7   :  { %v1811_v14 = vld [vmem:[%s2386_s1 + $0x18] sm:$0xff]   ;;  %v1815_v18 = vld [vmem:[%s2386_s1 + $0x20] sm:$0xff]   ;;  %v1819_v22 = vld [vmem:[%s2386_s1 + $0x28] sm:$0xff]  }
   0x8   :  { %1624 = vmatpush3.bf16.msra.mxu0 %v1803_v6  ;;  %v1812_v15 = vld [vmem:[%s2386_s1 + $0x98] sm:$0xff]   ;;  %v1816_v19 = vld [vmem:[%s2386_s1 + $0xa0] sm:$0xff]   ;;  %v1820_v23 = vld [vmem:[%s2386_s1 + $0xa8] sm:$0xff]  }
   0x9   :  { %1646 = vmatpush3.bf16.msra.mxu1 %v1804_v7  ;;  %1625 = vmatprep.subr.bf16.mxu0 %v1805_v8  ;;  %v1821_v24 = vld [vmem:[%s2386_s1 + $0x70] sm:$0xff]   ;;  %v1825_v28 = vld [vmem:[%s2386_s1 + $0x78] sm:$0xff]   ;;  %v15_v32 = vld [vmem:[%s2387_s0] sm:$0xff] }
   0xa   :  { %1647 = vmatprep.subr.bf16.mxu1 %v1806_v9  ;;  %v1822_v25 = vld [vmem:[%s2386_s1 + $0xf0] sm:$0xff]   ;;  %v1826_v29 = vld [vmem:[%s2386_s1 + $0xf8] sm:$0xff]   ;;  %v23_v33 = vld [vmem:[%s2387_s0 + $0x40] sm:$0xff] }
   0xb   :  { %v1823_v26 = vld [vmem:[%s2386_s1 + $0x30] sm:$0xff]   ;;  %v1827_v30 = vld [vmem:[%s2386_s1 + $0x38] sm:$0xff]   ;;  %v16_v34 = vld [vmem:[%s2387_s0 + $0x8] sm:$0xff]  ;;  %v1477_v35 = vcombine.low %v15_v32, %v23_v33  ;;  %v1478_v36 = vcombine.high %v15_v32, %v23_v33 }
   0xc   :  { %1626 = vmatpush3.bf16.msra.mxu0 %v1807_v10  ;;  %v1824_v27 = vld [vmem:[%s2386_s1 + $0xb0] sm:$0xff]   ;;  %v1828_v31 = vld [vmem:[%s2386_s1 + $0xb8] sm:$0xff]   ;;  %v24_v37 = vld [vmem:[%s2387_s0 + $0x48] sm:$0xff] }
   0xd   :  { %1648 = vmatpush3.bf16.msra.mxu1 %v1808_v11  ;;  %1627 = vmatprep.subr.bf16.mxu0 %v1809_v12  ;;  %v1479_v38 = vcombine.low %v16_v34, %v24_v37  ;;  %v1480_v39 = vcombine.high %v16_v34, %v24_v37  ;;  %v1829_v40 = vld [vmem:[%s2386_s1 + $0x140] sm:$0xff]   ;;  %v1833_v44 = vld [vmem:[%s2386_s1 + $0x148] sm:$0xff]   ;;  %v1837_v48 = vld [vmem:[%s2386_s1 + $0x150] sm:$0xff]  }
   0xe   :  { %1649 = vmatprep.subr.bf16.mxu1 %v1810_v13  ;;  %1174 = vmatprep.mubr.bf16.mxu0 %v1478_v36  ;;  %v1830_v41 = vld [vmem:[%s2386_s1 + $0x1c0] sm:$0xff]   ;;  %v1834_v45 = vld [vmem:[%s2386_s1 + $0x1c8] sm:$0xff]   ;;  %v1838_v49 = vld [vmem:[%s2386_s1 + $0x1d0] sm:$0xff]  }
   0xf   :  { %1215 = vmatprep.mubr.bf16.mxu1 %v1480_v39  ;;  %v1831_v42 = vld [vmem:[%s2386_s1 + $0x100] sm:$0xff]   ;;  %v1835_v46 = vld [vmem:[%s2386_s1 + $0x108] sm:$0xff]   ;;  %v1839_v50 = vld [vmem:[%s2386_s1 + $0x110] sm:$0xff]  }
  0x10   :  { %1628 = vmatpush3.bf16.msra.mxu0 %v1811_v14  ;;  %v1832_v43 = vld [vmem:[%s2386_s1 + $0x180] sm:$0xff]   ;;  %v1836_v47 = vld [vmem:[%s2386_s1 + $0x188] sm:$0xff]   ;;  %v1840_v51 = vld [vmem:[%s2386_s1 + $0x190] sm:$0xff]  }
  0x11   :  { %1650 = vmatpush3.bf16.msra.mxu1 %v1812_v15  ;;  %1629 = vmatprep.subr.bf16.mxu0 %v1813_v16  ;;  %v1841_v52 = vld [vmem:[%s2386_s1 + $0x158] sm:$0xff]   ;;  %v1845_v56 = vld [vmem:[%s2386_s1 + $0x160] sm:$0xff]   ;;  %v1849_v60 = vld [vmem:[%s2386_s1 + $0x168] sm:$0xff]  }
  0x12   :  { %1651 = vmatprep.subr.bf16.mxu1 %v1814_v17  ;;  %v1842_v53 = vld [vmem:[%s2386_s1 + $0x1d8] sm:$0xff]   ;;  %v1846_v57 = vld [vmem:[%s2386_s1 + $0x1e0] sm:$0xff]   ;;  %v1850_v61 = vld [vmem:[%s2386_s1 + $0x1e8] sm:$0xff]  }
  0x13   :  { %v1843_v54 = vld [vmem:[%s2386_s1 + $0x118] sm:$0xff]   ;;  %v1847_v58 = vld [vmem:[%s2386_s1 + $0x120] sm:$0xff]   ;;  %v1851_v62 = vld [vmem:[%s2386_s1 + $0x128] sm:$0xff]  }
  0x14   :  { %1630 = vmatpush3.bf16.msra.mxu0 %v1815_v18  ;;  %v1844_v55 = vld [vmem:[%s2386_s1 + $0x198] sm:$0xff]   ;;  %v1848_v59 = vld [vmem:[%s2386_s1 + $0x1a0] sm:$0xff]   ;;  %v1852_v63 = vld [vmem:[%s2386_s1 + $0x1a8] sm:$0xff]  }
  0x15   :  { %1652 = vmatpush3.bf16.msra.mxu1 %v1816_v19  ;;  %1631 = vmatprep.subr.bf16.mxu0 %v1817_v20  ;;  %v1853_v0 = vld [vmem:[%s2386_s1 + $0x170] sm:$0xff]   ;;  %v1857_v4 = vld [vmem:[%s2386_s1 + $0x178] sm:$0xff]   ;;  %v1861_v16 = vld [vmem:[%s2386_s1 + $0x240] sm:$0xff]  }
  0x16   :  { %1653 = vmatprep.subr.bf16.mxu1 %v1818_v21  ;;  %v1854_v1 = vld [vmem:[%s2386_s1 + $0x1f0] sm:$0xff]   ;;  %v1858_v5 = vld [vmem:[%s2386_s1 + $0x1f8] sm:$0xff]   ;;  %v1862_v17 = vld [vmem:[%s2386_s1 + $0x2c0] sm:$0xff]  }
  0x17   :  { %v1855_v2 = vld [vmem:[%s2386_s1 + $0x130] sm:$0xff]   ;;  %v1859_v6 = vld [vmem:[%s2386_s1 + $0x138] sm:$0xff]   ;;  %v1863_v18 = vld [vmem:[%s2386_s1 + $0x200] sm:$0xff]  }
  0x18   :  { %1632 = vmatpush3.bf16.msra.mxu0 %v1819_v22  ;;  %v1856_v3 = vld [vmem:[%s2386_s1 + $0x1b0] sm:$0xff]   ;;  %v1860_v7 = vld [vmem:[%s2386_s1 + $0x1b8] sm:$0xff]   ;;  %v1864_v19 = vld [vmem:[%s2386_s1 + $0x280] sm:$0xff]  }
  0x19   :  { %1654 = vmatpush3.bf16.msra.mxu1 %v1820_v23  ;;  %1633 = vmatprep.subr.bf16.mxu0 %v1821_v24  ;;  %v17_v8 = vld [vmem:[%s2387_s0 + $0x10] sm:$0xff]  ;;  %v18_v12 = vld [vmem:[%s2387_s0 + $0x18] sm:$0xff]  ;;  %v1865_v20 = vld [vmem:[%s2386_s1 + $0x248] sm:$0xff]  }
  0x1a   :  { %1655 = vmatprep.subr.bf16.mxu1 %v1822_v25  ;;  %v25_v9 = vld [vmem:[%s2387_s0 + $0x50] sm:$0xff]  ;;  %v26_v13 = vld [vmem:[%s2387_s0 + $0x58] sm:$0xff]  ;;  %v1866_v21 = vld [vmem:[%s2386_s1 + $0x2c8] sm:$0xff]  }
  0x1b   :  { %v1481_v10 = vcombine.low %v17_v8, %v25_v9  ;;  %v1482_v11 = vcombine.high %v17_v8, %v25_v9  ;;  %v1483_v14 = vcombine.low %v18_v12, %v26_v13  ;;  %v1484_v15 = vcombine.high %v18_v12, %v26_v13  ;;  %v1867_v22 = vld [vmem:[%s2386_s1 + $0x208] sm:$0xff]   ;;  %v1869_v24 = vld [vmem:[%s2386_s1 + $0x250] sm:$0xff]   ;;  %v1877_v32 = vld [vmem:[%s2386_s1 + $0x260] sm:$0xff]  }
  0x1c   :  { %1634 = vmatpush3.bf16.msra.mxu0 %v1823_v26  ;;  %v1868_v23 = vld [vmem:[%s2386_s1 + $0x288] sm:$0xff]   ;;  %v1870_v25 = vld [vmem:[%s2386_s1 + $0x2d0] sm:$0xff]   ;;  %v1878_v33 = vld [vmem:[%s2386_s1 + $0x2e0] sm:$0xff]  }
  0x1d   :  { %1656 = vmatpush3.bf16.msra.mxu1 %v1824_v27  ;;  %1635 = vmatprep.subr.bf16.mxu0 %v1825_v28  ;;  %v1871_v26 = vld [vmem:[%s2386_s1 + $0x210] sm:$0xff]   ;;  %v1873_v28 = vld [vmem:[%s2386_s1 + $0x258] sm:$0xff]   ;;  %v1879_v34 = vld [vmem:[%s2386_s1 + $0x220] sm:$0xff]  }
  0x1e   :  { %1657 = vmatprep.subr.bf16.mxu1 %v1826_v29  ;;  %v1872_v27 = vld [vmem:[%s2386_s1 + $0x290] sm:$0xff]   ;;  %v1874_v29 = vld [vmem:[%s2386_s1 + $0x2d8] sm:$0xff]   ;;  %v1881_v36 = vld [vmem:[%s2386_s1 + $0x268] sm:$0xff]  }
  0x1f   :  { %v1882_v37 = vld [vmem:[%s2386_s1 + $0x2e8] sm:$0xff]   ;;  %v1909_v8 = vld [vmem:[%s2386_s1 + $0x360] sm:$0xff]  }
  0x20   :  { %1636 = vmatpush3.bf16.msra.mxu0 %v1827_v30  ;;  %v1875_v30 = vld [vmem:[%s2386_s1 + $0x218] sm:$0xff]   ;;  %v1884_v39 = vld [vmem:[%s2386_s1 + $0x2a8] sm:$0xff]   ;;  %v1910_v9 = vld [vmem:[%s2386_s1 + $0x3e0] sm:$0xff]  }
  0x21   :  { %1658 = vmatpush3.bf16.msra.mxu1 %v1828_v31  ;;  %1665 = vmatprep.subr.bf16.mxu0 %v1829_v40  ;;  %v1876_v31 = vld [vmem:[%s2386_s1 + $0x298] sm:$0xff]   ;;  %v1885_v40 = vld [vmem:[%s2386_s1 + $0x270] sm:$0xff]   ;;  %v1913_v12 = vld [vmem:[%s2386_s1 + $0x368] sm:$0xff]  }
  0x22   :  { %1687 = vmatprep.subr.bf16.mxu1 %v1830_v41  ;;  %v1886_v41 = vld [vmem:[%s2386_s1 + $0x2f0] sm:$0xff]   ;;  %v1914_v13 = vld [vmem:[%s2386_s1 + $0x3e8] sm:$0xff]  }
  0x23   :  { %1175 = vmatmul.mubr.bf16.vlgmr.msra.gmra.mrb[0].mxu0 %v1477_v35  ;;  %v1880_v35 = vld [vmem:[%s2386_s1 + $0x2a0] sm:$0xff]  }
  0x24   :  { %1216 = vmatmul.mubr.bf16.vlgmr.msra.gmra.mrb[0].mxu1 %v1479_v38  ;;  %1666 = vmatpush3.bf16.msra.mxu0 %v1831_v42  ;;  %v1883_v38 = vld [vmem:[%s2386_s1 + $0x228] sm:$0xff]   ;;  %v1887_v42 = vld [vmem:[%s2386_s1 + $0x230] sm:$0xff]  }
  0x25   :  { %1688 = vmatpush3.bf16.msra.mxu1 %v1832_v43  ;;  %1667 = vmatprep.subr.bf16.mxu0 %v1833_v44  ;;  %v1888_v43 = vld [vmem:[%s2386_s1 + $0x2b0] sm:$0xff]   ;;  %v1889_v44 = vld [vmem:[%s2386_s1 + $0x278] sm:$0xff]  }
  0x26   :  { %1689 = vmatprep.subr.bf16.mxu1 %v1834_v45  ;;  %1256 = vmatprep.mubr.bf16.mxu0 %v1482_v11  ;;  %v1890_v45 = vld [vmem:[%s2386_s1 + $0x2f8] sm:$0xff]   ;;  %v1912_v11 = vld [vmem:[%s2386_s1 + $0x3a0] sm:$0xff]  }
  0x27   :  { %1297 = vmatprep.mubr.bf16.mxu1 %v1484_v15  ;;  %v1916_v15 = vld [vmem:[%s2386_s1 + $0x3a8] sm:$0xff]  }
  0x28   :  { %1668 = vmatpush3.bf16.msra.mxu0 %v1835_v46  ;;  %v1891_v46 = vld [vmem:[%s2386_s1 + $0x238] sm:$0xff]  }
  0x29   :  { %1690 = vmatpush3.bf16.msra.mxu1 %v1836_v47  ;;  %1669 = vmatprep.subr.bf16.mxu0 %v1837_v48  ;;  %v1892_v47 = vld [vmem:[%s2386_s1 + $0x2b8] sm:$0xff]   ;;  %v19_v48 = vld [vmem:[%s2387_s0 + $0x20] sm:$0xff] }
  0x2a   :  { %1691 = vmatprep.subr.bf16.mxu1 %v1838_v49  ;;  %v27_v49 = vld [vmem:[%s2387_s0 + $0x60] sm:$0xff] }
  0x2c   :  { %1670 = vmatpush3.bf16.msra.mxu0 %v1839_v50  ;;  %v20_v50 = vld [vmem:[%s2387_s0 + $0x28] sm:$0xff] }
  0x2d   :  { %1692 = vmatpush3.bf16.msra.mxu1 %v1840_v51  ;;  %1671 = vmatprep.subr.bf16.mxu0 %v1841_v52  ;;  %v28_v51 = vld [vmem:[%s2387_s0 + $0x68] sm:$0xff]  ;;  %v1485_v52 = vcombine.low %v19_v48, %v27_v49 }
  0x2e   :  { %1693 = vmatprep.subr.bf16.mxu1 %v1842_v53  ;;  %v1486_v53 = vcombine.high %v19_v48, %v27_v49 }
  0x30   :  { %1672 = vmatpush3.bf16.msra.mxu0 %v1843_v54  ;;  %v1487_v54 = vcombine.low %v20_v50, %v28_v51 }
  0x31   :  { %1694 = vmatpush3.bf16.msra.mxu1 %v1844_v55  ;;  %1673 = vmatprep.subr.bf16.mxu0 %v1845_v56  ;;  %v1488_v55 = vcombine.high %v20_v50, %v28_v51  ;;  %v1893_v56 = vld [vmem:[%s2386_s1 + $0x340] sm:$0xff]  }
  0x32   :  { %1695 = vmatprep.subr.bf16.mxu1 %v1846_v57  ;;  %v1894_v57 = vld [vmem:[%s2386_s1 + $0x3c0] sm:$0xff]  }
  0x34   :  { %1674 = vmatpush3.bf16.msra.mxu0 %v1847_v58  ;;  %v1895_v58 = vld [vmem:[%s2386_s1 + $0x300] sm:$0xff]  }
  0x35   :  { %1696 = vmatpush3.bf16.msra.mxu1 %v1848_v59  ;;  %1675 = vmatprep.subr.bf16.mxu0 %v1849_v60  ;;  %v1896_v59 = vld [vmem:[%s2386_s1 + $0x380] sm:$0xff]   ;;  %v1897_v60 = vld [vmem:[%s2386_s1 + $0x348] sm:$0xff]  }
  0x36   :  { %1697 = vmatprep.subr.bf16.mxu1 %v1850_v61  ;;  %v1898_v61 = vld [vmem:[%s2386_s1 + $0x3c8] sm:$0xff]  }
  0x38   :  { %1676 = vmatpush3.bf16.msra.mxu0 %v1851_v62  ;;  %v1899_v62 = vld [vmem:[%s2386_s1 + $0x308] sm:$0xff]  }
  0x39   :  { %1698 = vmatpush3.bf16.msra.mxu1 %v1852_v63  ;;  %1677 = vmatprep.subr.bf16.mxu0 %v1853_v0  ;;  %v1900_v63 = vld [vmem:[%s2386_s1 + $0x388] sm:$0xff]   ;;  %v1901_v0 = vld [vmem:[%s2386_s1 + $0x350] sm:$0xff]  }
  0x3a   :  { %1699 = vmatprep.subr.bf16.mxu1 %v1854_v1  ;;  %v1902_v1 = vld [vmem:[%s2386_s1 + $0x3d0] sm:$0xff]  }
  0x3c   :  { %1678 = vmatpush3.bf16.msra.mxu0 %v1855_v2  ;;  %v1903_v2 = vld [vmem:[%s2386_s1 + $0x310] sm:$0xff]  }
  0x3d   :  { %1700 = vmatpush3.bf16.msra.mxu1 %v1856_v3  ;;  %1679 = vmatprep.subr.bf16.mxu0 %v1857_v4  ;;  %v1904_v3 = vld [vmem:[%s2386_s1 + $0x390] sm:$0xff]   ;;  %v1905_v4 = vld [vmem:[%s2386_s1 + $0x358] sm:$0xff]  }
  0x3e   :  { %1701 = vmatprep.subr.bf16.mxu1 %v1858_v5  ;;  %v1906_v5 = vld [vmem:[%s2386_s1 + $0x3d8] sm:$0xff]  }
  0x40   :  { %1680 = vmatpush3.bf16.msra.mxu0 %v1859_v6  ;;  %v1907_v6 = vld [vmem:[%s2386_s1 + $0x318] sm:$0xff]  }
  0x41   :  { %1702 = vmatpush3.bf16.msra.mxu1 %v1860_v7  ;;  %1709 = vmatprep.subr.bf16.mxu0 %v1861_v16  ;;  %v1908_v7 = vld [vmem:[%s2386_s1 + $0x398] sm:$0xff]   ;;  %v1917_v16 = vld [vmem:[%s2386_s1 + $0x370] sm:$0xff]  }
  0x42   :  { %1731 = vmatprep.subr.bf16.mxu1 %v1862_v17  ;;  %v1918_v17 = vld [vmem:[%s2386_s1 + $0x3f0] sm:$0xff]  }
  0x43   :  { %1257 = vmatmul.mubr.bf16.vlgmr.msra.gmra.mrb[4].mxu0 %v1481_v10  ;;  %v1911_v10 = vld [vmem:[%s2386_s1 + $0x320] sm:$0xff]  }
  0x44   :  { %1298 = vmatmul.mubr.bf16.vlgmr.msra.gmra.mrb[4].mxu1 %v1483_v14  ;;  %1710 = vmatpush3.bf16.msra.mxu0 %v1863_v18  ;;  %v1915_v14 = vld [vmem:[%s2386_s1 + $0x328] sm:$0xff]   ;;  %v1919_v18 = vld [vmem:[%s2386_s1 + $0x330] sm:$0xff]  }
  0x45   :  { %1732 = vmatpush3.bf16.msra.mxu1 %v1864_v19  ;;  %1711 = vmatprep.subr.bf16.mxu0 %v1865_v20  ;;  %v1920_v19 = vld [vmem:[%s2386_s1 + $0x3b0] sm:$0xff]   ;;  %v1921_v20 = vld [vmem:[%s2386_s1 + $0x378] sm:$0xff]  }
  0x46   :  { %1733 = vmatprep.subr.bf16.mxu1 %v1866_v21  ;;  %1338 = vmatprep.mubr.bf16.mxu0 %v1486_v53  ;;  %v1922_v21 = vld [vmem:[%s2386_s1 + $0x3f8] sm:$0xff]  }
  0x47   :  { %1379 = vmatprep.mubr.bf16.mxu1 %v1488_v55 }
  0x48   :  { %1712 = vmatpush3.bf16.msra.mxu0 %v1867_v22  ;;  %v1923_v22 = vld [vmem:[%s2386_s1 + $0x338] sm:$0xff]  }
  0x49   :  { %1734 = vmatpush3.bf16.msra.mxu1 %v1868_v23  ;;  %1713 = vmatprep.subr.bf16.mxu0 %v1869_v24  ;;  %v1924_v23 = vld [vmem:[%s2386_s1 + $0x3b8] sm:$0xff]   ;;  %v21_v24 = vld [vmem:[%s2387_s0 + $0x30] sm:$0xff] }
  0x4a   :  { %1735 = vmatprep.subr.bf16.mxu1 %v1870_v25  ;;  %v29_v25 = vld [vmem:[%s2387_s0 + $0x70] sm:$0xff] }
  0x4c   :  { %1714 = vmatpush3.bf16.msra.mxu0 %v1871_v26  ;;  %v22_v26 = vld [vmem:[%s2387_s0 + $0x38] sm:$0xff] }
  0x4d   :  { %1736 = vmatpush3.bf16.msra.mxu1 %v1872_v27  ;;  %1715 = vmatprep.subr.bf16.mxu0 %v1873_v28  ;;  %v1489_v27 = vcombine.low %v21_v24, %v29_v25  ;;  %v1490_v28 = vcombine.high %v21_v24, %v29_v25 }
  0x4e   :  { %1737 = vmatprep.subr.bf16.mxu1 %v1874_v29  ;;  %v30_v29 = vld [vmem:[%s2387_s0 + $0x78] sm:$0xff] }
  0x50   :  { %1716 = vmatpush3.bf16.msra.mxu0 %v1875_v30  ;;  %v1491_v30 = vcombine.low %v22_v26, %v30_v29 }
  0x51   :  { %1738 = vmatpush3.bf16.msra.mxu1 %v1876_v31  ;;  %1717 = vmatprep.subr.bf16.mxu0 %v1877_v32  ;;  %v1492_v31 = vcombine.high %v22_v26, %v30_v29 }
  0x52   :  { %1739 = vmatprep.subr.bf16.mxu1 %v1878_v33 }
  0x54   :  { %1718 = vmatpush3.bf16.msra.mxu0 %v1879_v34  ;;  %v1476_v34 = vld [vmem:[%s2388_s2] ss:$0 sm:$0xff] }
  0x55   :  { %1740 = vmatpush3.bf16.msra.mxu1 %v1880_v35  ;;  %1719 = vmatprep.subr.bf16.mxu0 %v1881_v36 }
  0x56   :  { %1741 = vmatprep.subr.bf16.mxu1 %v1882_v37 }
  0x58   :  { %1720 = vmatpush3.bf16.msra.mxu0 %v1883_v38 }
  0x59   :  { %1742 = vmatpush3.bf16.msra.mxu1 %v1884_v39  ;;  %1721 = vmatprep.subr.bf16.mxu0 %v1885_v40 }
  0x5a   :  { %1743 = vmatprep.subr.bf16.mxu1 %v1886_v41 }
  0x5c   :  { %1722 = vmatpush3.bf16.msra.mxu0 %v1887_v42 }
  0x5d   :  { %1744 = vmatpush3.bf16.msra.mxu1 %v1888_v43  ;;  %1723 = vmatprep.subr.bf16.mxu0 %v1889_v44 }
  0x5e   :  { %1745 = vmatprep.subr.bf16.mxu1 %v1890_v45 }
  0x60   :  { %1724 = vmatpush3.bf16.msra.mxu0 %v1891_v46 }
  0x61   :  { %1746 = vmatpush3.bf16.msra.mxu1 %v1892_v47  ;;  %1753 = vmatprep.subr.bf16.mxu0 %v1893_v56 }
  0x62   :  { %1775 = vmatprep.subr.bf16.mxu1 %v1894_v57 }
  0x63   :  { %1339 = vmatmul.mubr.bf16.vlgmr.msra.gmra.mrb[8].mxu0 %v1485_v52 }
  0x64   :  { %1380 = vmatmul.mubr.bf16.vlgmr.msra.gmra.mrb[8].mxu1 %v1487_v54  ;;  %1754 = vmatpush3.bf16.msra.mxu0 %v1895_v58 }
  0x65   :  { %1776 = vmatpush3.bf16.msra.mxu1 %v1896_v59  ;;  %1755 = vmatprep.subr.bf16.mxu0 %v1897_v60 }
  0x66   :  { %1777 = vmatprep.subr.bf16.mxu1 %v1898_v61  ;;  %1420 = vmatprep.mubr.bf16.mxu0 %v1490_v28 }
  0x67   :  { %1461 = vmatprep.mubr.bf16.mxu1 %v1492_v31 }
  0x68   :  { %1756 = vmatpush3.bf16.msra.mxu0 %v1899_v62 }
  0x69   :  { %1778 = vmatpush3.bf16.msra.mxu1 %v1900_v63  ;;  %1757 = vmatprep.subr.bf16.mxu0 %v1901_v0 }
  0x6a   :  { %1779 = vmatprep.subr.bf16.mxu1 %v1902_v1 }
  0x6c   :  { %1758 = vmatpush3.bf16.msra.mxu0 %v1903_v2 }
  0x6d   :  { %1780 = vmatpush3.bf16.msra.mxu1 %v1904_v3  ;;  %1759 = vmatprep.subr.bf16.mxu0 %v1905_v4 }
  0x6e   :  { %1781 = vmatprep.subr.bf16.mxu1 %v1906_v5 }
  0x70   :  { %1760 = vmatpush3.bf16.msra.mxu0 %v1907_v6 }
  0x71   :  { %1782 = vmatpush3.bf16.msra.mxu1 %v1908_v7  ;;  %1761 = vmatprep.subr.bf16.mxu0 %v1909_v8 }
  0x72   :  { %1783 = vmatprep.subr.bf16.mxu1 %v1910_v9 }
  0x74   :  { %1762 = vmatpush3.bf16.msra.mxu0 %v1911_v10 }
  0x75   :  { %1784 = vmatpush3.bf16.msra.mxu1 %v1912_v11  ;;  %1763 = vmatprep.subr.bf16.mxu0 %v1913_v12 }
  0x76   :  { %1785 = vmatprep.subr.bf16.mxu1 %v1914_v13 }
  0x78   :  { %1764 = vmatpush3.bf16.msra.mxu0 %v1915_v14 }
  0x79   :  { %1786 = vmatpush3.bf16.msra.mxu1 %v1916_v15  ;;  %1765 = vmatprep.subr.bf16.mxu0 %v1917_v16 }
  0x7a   :  { %1787 = vmatprep.subr.bf16.mxu1 %v1918_v17 }
  0x7c   :  { %1766 = vmatpush3.bf16.msra.mxu0 %v1919_v18 }
  0x7d   :  { %1788 = vmatpush3.bf16.msra.mxu1 %v1920_v19  ;;  %1767 = vmatprep.subr.bf16.mxu0 %v1921_v20 }
  0x7e   :  { %1789 = vmatprep.subr.bf16.mxu1 %v1922_v21 }
  0x80   :  { %1768 = vmatpush3.bf16.msra.mxu0 %v1923_v22 }
  0x81   :  { %1790 = vmatpush3.bf16.msra.mxu1 %v1924_v23 }
  0x83   :  { %1421 = vmatmul.mubr.bf16.vlgmr.msra.gmra.mrb[12].mxu0 %v1489_v27 }
  0x84   :  { %1462 = vmatmul.mubr.bf16.vlgmr.msra.gmra.mrb[12].mxu1 %v1491_v30 }
  0xf6   :  { %v1637_v32 = vpop.f32.mrb[0].mxu0 }
  0xf7   :  { %v1659_v33 = vpop.f32.mrb[0].mxu1  ;;  %v1638_v35 = vpop.f32.mrb[1].mxu0 }
  0xf8   :  { %v1639_v36 = vadd.f32 %v1638_v35, %v1637_v32  ;;  %v1660_v37 = vpop.f32.mrb[1].mxu1  ;;  %v1640_v38 = vpop.f32.mrb[2].mxu0 }
  0xf9   :  { %v1661_v39 = vadd.f32 %v1660_v37, %v1659_v33  ;;  %v1662_v40 = vpop.f32.mrb[2].mxu1  ;;  %v1641_v41 = vpop.f32.mrb[3].mxu0 }
  0xfa   :  { %v1177_v42 = vadd.f32 %v1639_v36, %v1476_v34  ;;  %v1642_v43 = vadd.f32 %v1641_v41, %v1640_v38  ;;  %v1663_v44 = vpop.f32.mrb[3].mxu1 }
  0xfb   :  { %v1664_v45 = vadd.f32 %v1663_v44, %v1662_v40 }
  0xfc   :  { %v1218_v46 = vadd.f32 %v1661_v39, %v1177_v42  ;;  %v1180_v47 = vadd.f32 %v1642_v43, %v1476_v34 }
  0xfe   :  { %v1221_v48 = vadd.f32 %v1664_v45, %v1180_v47 }
 0x116   :  { %v1681_v49 = vpop.f32.mrb[4].mxu0 }
 0x117   :  { %v1703_v50 = vpop.f32.mrb[4].mxu1  ;;  %v1682_v51 = vpop.f32.mrb[5].mxu0 }
 0x118   :  { %v1683_v52 = vadd.f32 %v1682_v51, %v1681_v49  ;;  %v1704_v53 = vpop.f32.mrb[5].mxu1  ;;  %v1684_v54 = vpop.f32.mrb[6].mxu0 }
 0x119   :  { %v1705_v55 = vadd.f32 %v1704_v53, %v1703_v50  ;;  %v1706_v56 = vpop.f32.mrb[6].mxu1  ;;  %v1685_v57 = vpop.f32.mrb[7].mxu0 }
 0x11a   :  { %v1259_v58 = vadd.f32 %v1683_v52, %v1218_v46  ;;  %v1686_v59 = vadd.f32 %v1685_v57, %v1684_v54  ;;  %v1707_v60 = vpop.f32.mrb[7].mxu1 }
 0x11b   :  { %v1708_v61 = vadd.f32 %v1707_v60, %v1706_v56 }
 0x11c   :  { %v1300_v62 = vadd.f32 %v1705_v55, %v1259_v58  ;;  %v1262_v63 = vadd.f32 %v1686_v59, %v1221_v48 }
 0x11e   :  { %v1303_v0 = vadd.f32 %v1708_v61, %v1262_v63 }
 0x136   :  { %v1725_v1 = vpop.f32.mrb[8].mxu0 }
 0x137   :  { %v1747_v2 = vpop.f32.mrb[8].mxu1  ;;  %v1726_v3 = vpop.f32.mrb[9].mxu0 }
 0x138   :  { %v1748_v4 = vpop.f32.mrb[9].mxu1  ;;  %v1727_v5 = vadd.f32 %v1726_v3, %v1725_v1  ;;  %v1728_v7 = vpop.f32.mrb[10].mxu0 }
 0x139   :  { %v1749_v6 = vadd.f32 %v1748_v4, %v1747_v2  ;;  %v1750_v8 = vpop.f32.mrb[10].mxu1  ;;  %v1729_v9 = vpop.f32.mrb[11].mxu0 }
 0x13a   :  { %v1751_v10 = vpop.f32.mrb[11].mxu1  ;;  %v1341_v11 = vadd.f32 %v1727_v5, %v1300_v62  ;;  %v1730_v12 = vadd.f32 %v1729_v9, %v1728_v7 }
 0x13b   :  { %v1752_v13 = vadd.f32 %v1751_v10, %v1750_v8 }
 0x13c   :  { %v1382_v14 = vadd.f32 %v1749_v6, %v1341_v11  ;;  %v1344_v15 = vadd.f32 %v1730_v12, %v1303_v0 }
 0x13e   :  { %v1385_v16 = vadd.f32 %v1752_v13, %v1344_v15 }
 0x156   :  { %v1769_v17 = vpop.f32.mrb[12].mxu0 }
 0x157   :  { %v1791_v18 = vpop.f32.mrb[12].mxu1  ;;  %v1770_v19 = vpop.f32.mrb[13].mxu0 }
 0x158   :  { %v1771_v20 = vadd.f32 %v1770_v19, %v1769_v17  ;;  %v1792_v21 = vpop.f32.mrb[13].mxu1  ;;  %v1772_v22 = vpop.f32.mrb[14].mxu0 }
 0x159   :  { %v1793_v23 = vadd.f32 %v1792_v21, %v1791_v18  ;;  %v1794_v24 = vpop.f32.mrb[14].mxu1  ;;  %v1773_v25 = vpop.f32.mrb[15].mxu0 }
 0x15a   :  { %v1423_v26 = vadd.f32 %v1771_v20, %v1382_v14  ;;  %v1774_v27 = vadd.f32 %v1773_v25, %v1772_v22  ;;  %v1795_v28 = vpop.f32.mrb[15].mxu1 }
 0x15b   :  { %v1796_v29 = vadd.f32 %v1795_v28, %v1794_v24 }
 0x15c   :  { %v1464_v30 = vadd.f32 %v1793_v23, %v1423_v26  ;;  %v1426_v31 = vadd.f32 %v1774_v27, %v1385_v16 }
 0x15e   :  { %1470 = vst [vmem:[%s2389_s3] sm:$0xff] %v1464_v30  ;;  %v1467_v32 = vadd.f32 %v1796_v29, %v1426_v31 }
 0x160   :  { %1471 = vst [vmem:[%s2389_s3 + $0x8] sm:$0xff] %v1467_v32 }

// kernel: mesh_decoder_forward.2
= control target key start
LH: loop header
LB: loop body
LE: loop exit
PB: predicated region body
PF: predicated region fallthrough
CT: control target
= control target key end

     0   :  { %10 = vsyncpa [#allocation3], 0  ;;  %s11728_s0 = inlined_call_operand.vmem [shape: bf16[16,512], index: 0, kind: input, shape index: {}]   ;;  %s11729_s1 = inlined_call_operand.hbm [shape: bf16[512,1024], index: 1, kind: input, shape index: {}]   ;;  %s11730_s2 = inlined_call_operand.hbm [shape: f32[1,1024], index: 2, kind: input, shape index: {}]   ;;  %s11731_s3 = inlined_call_operand.hbm [shape: bf16[1024,2048], index: 3, kind: input, shape index: {}]   ;;  %s11732_s4 = inlined_call_operand.hbm [shape: f32[1,2048], index: 4, kind: input, shape index: {}]   ;;  %s11733_s5 = inlined_call_operand.vmem [shape: bf16[16,2048], index: 5, kind: output, shape index: {}]  }
   0x1   :  { %11 = vsyncpa [#allocation5], 0 }
   0x2   :  { %12 = vsyncpa [#allocation8], 0  ;;  %s11381_s18 = smov [#allocation4]   ;;  %s11382_s20 = smov [#allocation2]  }
   0x3   :  { %s33_s19 = sshll.u32 %s11381_s18, 4  ;;  %s20_s21 = sshll.u32 %s11382_s20, 4  ;;  %s34_s19 = int_to_ptr.vmem [resolvable:$true] %s33_s19  ;;  %s11419_s21 = int_to_ptr.vmem [resolvable:$true] %s20_s21 }
   0x4   :  { %s11287_s24 = scalar_lea.hbm %s11730_s2, 128 }
   0x5   :  { %p11288_p0 = scmp.ne.s32.totalorder %s11730_s2, %s11287_s24  ;;  %p11291_p1 = scmp.lt.u32.totalorder %s11287_s24, %s11730_s2 }
   0x7   :  { %p11293_p2 = pnand %p11291_p1, %p11288_p0 }
   0x9   :  { %11296 = shalt.err (!%p11293_p2)
}
   0xa   :  { %s11297_s29 = scalar_lea.vmem %s34_s19, 128  ;;  %p11302_p4 = scmp.lt.s32.totalorder %s34_s19, %s34_s19 }
   0xb   :  { %p11298_p3 = scmp.ne.s32.totalorder %s34_s19, %s11297_s29  ;;  %p11303_p5 = scmp.lt.s32.totalorder %s11297_s29, %s11297_s29 }
   0xd   :  { %p11304_p6 = por %p11303_p5, %p11302_p4 }
   0xf   :  { %p11305_p7 = pnand %p11304_p6, %p11298_p3 }
  0x11   :  { %11308 = shalt.err (!%p11305_p7)
}
  0x12   :  { %36 = dma.hbm_to_vmem [thread:$0]  %s11730_s2, 128, %s34_s19, [#allocation5]  }
  0x13   :  { %s11309_s9 = scalar_lea.hbm %s11729_s1, 32768 }
  0x14   :  { %p11310_p8 = scmp.ne.s32.totalorder %s11729_s1, %s11309_s9  ;;  %p11313_p9 = scmp.lt.u32.totalorder %s11309_s9, %s11729_s1 }
  0x16   :  { %p11315_p10 = pnand %p11313_p9, %p11310_p8 }
  0x18   :  { %11318 = shalt.err (!%p11315_p10)
}
  0x19   :  { %s11319_s14 = scalar_lea.vmem %s11419_s21, 32768  ;;  %p11324_p12 = scmp.lt.s32.totalorder %s11419_s21, %s11419_s21 }
  0x1a   :  { %p11320_p11 = scmp.ne.s32.totalorder %s11419_s21, %s11319_s14  ;;  %p11325_p13 = scmp.lt.s32.totalorder %s11319_s14, %s11319_s14 }
  0x1c   :  { %p11326_p0 = por %p11325_p13, %p11324_p12 }
  0x1e   :  { %p11327_p1 = pnand %p11326_p0, %p11320_p11 }
  0x20   :  { %11330 = shalt.err (!%p11327_p1)
}
  0x21   :  { %s11383_s2 = smov 512   ;;  %s11384_s15 = smov 32  }
  0x22   :  { %26 = dma.hbm_to_vmem [thread:$0]  %s11729_s1, 32768, %s11419_s21, [#allocation3], %s11383_s2, %s11383_s2, %s11384_s15  }
  0x23   :  { %s11385_s18 = smov [#allocation6]   ;;  %s11331_s23 = scalar_lea.hbm %s11731_s3, 131072 }
  0x24   :  { %s42_s19 = sshll.u32 %s11385_s18, 4  ;;  %p11332_p2 = scmp.ne.s32.totalorder %s11731_s3, %s11331_s23  ;;  %s43_s19 = int_to_ptr.vmem [resolvable:$true] %s42_s19 }
  0x25   :  { %p11335_p3 = scmp.lt.u32.totalorder %s11331_s23, %s11731_s3 }
  0x27   :  { %p11337_p4 = pnand %p11335_p3, %p11332_p2 }
  0x29   :  { %11340 = shalt.err (!%p11337_p4)
}
  0x2a   :  { %s11341_s28 = scalar_lea.vmem %s43_s19, 131072  ;;  %p11346_p6 = scmp.lt.s32.totalorder %s43_s19, %s43_s19 }
  0x2b   :  { %p11342_p5 = scmp.ne.s32.totalorder %s43_s19, %s11341_s28  ;;  %p11347_p7 = scmp.lt.s32.totalorder %s11341_s28, %s11341_s28 }
  0x2d   :  { %p11348_p8 = por %p11347_p7, %p11346_p6 }
  0x2f   :  { %p11349_p9 = pnand %p11348_p8, %p11342_p5 }
  0x31   :  { %11352 = shalt.err (!%p11349_p9)
}
  0x32   :  { %s11386_s1 = smov 1024   ;;  %s11387_s21 = smov 64  }
  0x33   :  { %48 = dma.hbm_to_vmem [thread:$0]  %s11731_s3, 131072, %s43_s19, [#allocation5], %s11386_s1, %s11386_s1, %s11387_s21  }
  0x34   :  { %s11388_s6 = smov [#allocation7]   ;;  %s11353_s10 = scalar_lea.hbm %s11732_s4, 256 }
  0x35   :  { %s55_s7 = sshll.u32 %s11388_s6, 4  ;;  %p11354_p10 = scmp.ne.s32.totalorder %s11732_s4, %s11353_s10  ;;  %s56_s7 = int_to_ptr.vmem [resolvable:$true] %s55_s7 }
  0x36   :  { %p11357_p11 = scmp.lt.u32.totalorder %s11353_s10, %s11732_s4 }
  0x38   :  { %p11359_p12 = pnand %p11357_p11, %p11354_p10 }
  0x3a   :  { %11362 = shalt.err (!%p11359_p12)
}
  0x3b   :  { %s11363_s2 = scalar_lea.vmem %s56_s7, 256  ;;  %p11368_p0 = scmp.lt.s32.totalorder %s56_s7, %s56_s7 }
  0x3c   :  { %p11364_p13 = scmp.ne.s32.totalorder %s56_s7, %s11363_s2  ;;  %p11369_p1 = scmp.lt.s32.totalorder %s11363_s2, %s11363_s2 }
  0x3e   :  { %p11370_p2 = por %p11369_p1, %p11368_p0 }
  0x40   :  { %p11371_p3 = pnand %p11370_p2, %p11364_p13 }
  0x42   :  { %11374 = shalt.err (!%p11371_p3)
}
  0x43   :  { %58 = dma.hbm_to_vmem [thread:$0]  %s11732_s4, 256, %s56_s7, [#allocation8]  }
  0x44   :  { %11375 = dma.done.wait [#allocation3], 32768  }
  0x45   :  { %11376 = vsyncadd [#allocation3], 4294934528 }
  0x46   :  { %11377 = dma.done.wait [#allocation5], 131200  }
  0x47   :  { %11378 = vsyncadd [#allocation5], 4294836096 }
  0x48   :  { %11379 = dma.done.wait [#allocation8], 256  }
  0x49   :  { %11380 = vsyncadd [#allocation8], 4294967040  ;;  %v75_v0 = vld [vmem:[#allocation2] sm:$0xff]  ;;  %v76_v2 = vld [vmem:[#allocation2 + $0x8] sm:$0xff] }
  0x4a   :  { %v79_v1 = vld [vmem:[#allocation2 + $0x20] sm:$0xff]  ;;  %v80_v4 = vld [vmem:[#allocation2 + $0x28] sm:$0xff] }
  0x4b   :  { %v9801_v3 = vcombine.high %v75_v0, %v79_v1  ;;  %v9800_v5 = vcombine.low %v75_v0, %v79_v1  ;;  %v83_v6 = vld [vmem:[#allocation2 + $0x40] sm:$0xff]  ;;  %v9803_v8 = vcombine.high %v76_v2, %v80_v4  ;;  %v9802_v9 = vcombine.low %v76_v2, %v80_v4  ;;  %v84_v11 = vld [vmem:[#allocation2 + $0x48] sm:$0xff] }
  0x4c   :  { %v87_v7 = vld [vmem:[#allocation2 + $0x60] sm:$0xff]  ;;  %v88_v12 = vld [vmem:[#allocation2 + $0x68] sm:$0xff] }
  0x4d   :  { %v9809_v10 = vcombine.high %v83_v6, %v87_v7  ;;  %v91_v13 = vld [vmem:[#allocation2 + $0x80] sm:$0xff]  ;;  %1673 = vmatprep.subr.bf16.mxu0 %v9801_v3  ;;  %v9811_v14 = vcombine.high %v84_v11, %v88_v12  ;;  %v92_v16 = vld [vmem:[#allocation2 + $0x88] sm:$0xff]  ;;  %1759 = vmatprep.subr.bf16.mxu1 %v9803_v8  ;;  %v9808_v18 = vcombine.low %v83_v6, %v87_v7 }
  0x4e   :  { %v95_v15 = vld [vmem:[#allocation2 + $0xa0] sm:$0xff]  ;;  %v96_v17 = vld [vmem:[#allocation2 + $0xa8] sm:$0xff]  ;;  %1674 = vmatpush1.bf16.msra.mxu0 %v9800_v5  ;;  %1760 = vmatpush1.bf16.msra.mxu1 %v9802_v9  ;;  %v9810_v19 = vcombine.low %v84_v11, %v88_v12 }
  0x4f   :  { %1675 = vmatprep.subr.bf16.mxu0 %v9809_v10  ;;  %v9817_v20 = vcombine.high %v91_v13, %v95_v15  ;;  %1761 = vmatprep.subr.bf16.mxu1 %v9811_v14  ;;  %v9819_v21 = vcombine.high %v92_v16, %v96_v17  ;;  %v99_v22 = vld [vmem:[#allocation2 + $0xc0] sm:$0xff]  ;;  %v100_v24 = vld [vmem:[#allocation2 + $0xc8] sm:$0xff]  ;;  %v9816_v26 = vcombine.low %v91_v13, %v95_v15 }
  0x50   :  { %v103_v23 = vld [vmem:[#allocation2 + $0xe0] sm:$0xff]  ;;  %v104_v25 = vld [vmem:[#allocation2 + $0xe8] sm:$0xff]  ;;  %v9818_v27 = vcombine.low %v92_v16, %v96_v17 }
  0x51   :  { %v9825_v28 = vcombine.high %v99_v22, %v103_v23  ;;  %v9827_v29 = vcombine.high %v100_v24, %v104_v25  ;;  %v107_v30 = vld [vmem:[#allocation2 + $0x100] sm:$0xff]  ;;  %v108_v32 = vld [vmem:[#allocation2 + $0x108] sm:$0xff]  ;;  %v9824_v34 = vcombine.low %v99_v22, %v103_v23  ;;  %v9826_v35 = vcombine.low %v100_v24, %v104_v25 }
  0x52   :  { %1676 = vmatpush1.bf16.msra.mxu0 %v9808_v18  ;;  %1762 = vmatpush1.bf16.msra.mxu1 %v9810_v19  ;;  %v111_v31 = vld [vmem:[#allocation2 + $0x120] sm:$0xff]  ;;  %v112_v33 = vld [vmem:[#allocation2 + $0x128] sm:$0xff] }
  0x53   :  { %1677 = vmatprep.subr.bf16.mxu0 %v9817_v20  ;;  %1763 = vmatprep.subr.bf16.mxu1 %v9819_v21  ;;  %v9833_v36 = vcombine.high %v107_v30, %v111_v31  ;;  %v9835_v37 = vcombine.high %v108_v32, %v112_v33  ;;  %v115_v38 = vld [vmem:[#allocation2 + $0x140] sm:$0xff]  ;;  %v116_v40 = vld [vmem:[#allocation2 + $0x148] sm:$0xff]  ;;  %v9832_v42 = vcombine.low %v107_v30, %v111_v31 }
  0x54   :  { %v119_v39 = vld [vmem:[#allocation2 + $0x160] sm:$0xff]  ;;  %v120_v41 = vld [vmem:[#allocation2 + $0x168] sm:$0xff]  ;;  %v9834_v43 = vcombine.low %v108_v32, %v112_v33 }
  0x55   :  { %v9841_v44 = vcombine.high %v115_v38, %v119_v39  ;;  %v9843_v45 = vcombine.high %v116_v40, %v120_v41  ;;  %v123_v46 = vld [vmem:[#allocation2 + $0x180] sm:$0xff]  ;;  %v124_v48 = vld [vmem:[#allocation2 + $0x188] sm:$0xff]  ;;  %v9840_v50 = vcombine.low %v115_v38, %v119_v39  ;;  %v9842_v51 = vcombine.low %v116_v40, %v120_v41 }
  0x56   :  { %1678 = vmatpush1.bf16.msra.mxu0 %v9816_v26  ;;  %1764 = vmatpush1.bf16.msra.mxu1 %v9818_v27  ;;  %v127_v47 = vld [vmem:[#allocation2 + $0x1a0] sm:$0xff]  ;;  %v128_v49 = vld [vmem:[#allocation2 + $0x1a8] sm:$0xff] }
  0x57   :  { %1679 = vmatprep.subr.bf16.mxu0 %v9825_v28  ;;  %1765 = vmatprep.subr.bf16.mxu1 %v9827_v29  ;;  %v9849_v52 = vcombine.high %v123_v46, %v127_v47  ;;  %v9851_v53 = vcombine.high %v124_v48, %v128_v49  ;;  %v131_v54 = vld [vmem:[#allocation2 + $0x1c0] sm:$0xff]  ;;  %v132_v57 = vld [vmem:[#allocation2 + $0x1c8] sm:$0xff]  ;;  %v9848_v59 = vcombine.low %v123_v46, %v127_v47 }
  0x58   :  { %v135_v55 = vld [vmem:[#allocation2 + $0x1e0] sm:$0xff]  ;;  %v136_v58 = vld [vmem:[#allocation2 + $0x1e8] sm:$0xff]  ;;  %v9850_v60 = vcombine.low %v124_v48, %v128_v49 }
  0x59   :  { %v11477_v56 = vld [vmem:[%s11728_s0 + $0x4] ss:$16 sps:$4 sm:$0xff]   ;;  %v9857_v61 = vcombine.high %v131_v54, %v135_v55  ;;  %v9859_v62 = vcombine.high %v132_v57, %v136_v58  ;;  %v140_v1 = vld [vmem:[#allocation2 + $0x208] sm:$0xff]  ;;  %v9856_v3 = vcombine.low %v131_v54, %v135_v55  ;;  %v9858_v4 = vcombine.low %v132_v57, %v136_v58 }
  0x5a   :  { %1680 = vmatpush1.bf16.msra.mxu0 %v9824_v34  ;;  %1766 = vmatpush1.bf16.msra.mxu1 %v9826_v35  ;;  %v139_v63 = vld [vmem:[#allocation2 + $0x200] sm:$0xff]  ;;  %v144_v2 = vld [vmem:[#allocation2 + $0x228] sm:$0xff] }
  0x5b   :  { %1681 = vmatprep.subr.bf16.mxu0 %v9833_v36  ;;  %1767 = vmatprep.subr.bf16.mxu1 %v9835_v37  ;;  %v143_v0 = vld [vmem:[#allocation2 + $0x220] sm:$0xff]  ;;  %v9867_v6 = vcombine.high %v140_v1, %v144_v2  ;;  %v148_v9 = vld [vmem:[#allocation2 + $0x248] sm:$0xff]  ;;  %v9866_v12 = vcombine.low %v140_v1, %v144_v2 }
  0x5c   :  { %1705 = vmatprep.mubr.bf16.mxu0 %v11477_v56  ;;  %1791 = vmatprep.mubr.bf16.mxu1 %v11477_v56  ;;  %v9865_v5 = vcombine.high %v139_v63, %v143_v0  ;;  %v147_v7 = vld [vmem:[#allocation2 + $0x240] sm:$0xff]  ;;  %v152_v10 = vld [vmem:[#allocation2 + $0x268] sm:$0xff]  ;;  %v9864_v11 = vcombine.low %v139_v63, %v143_v0 }
  0x5d   :  { %v151_v8 = vld [vmem:[#allocation2 + $0x260] sm:$0xff]  ;;  %v9875_v14 = vcombine.high %v148_v9, %v152_v10  ;;  %v156_v17 = vld [vmem:[#allocation2 + $0x288] sm:$0xff]  ;;  %v9874_v20 = vcombine.low %v148_v9, %v152_v10 }
  0x5e   :  { %1682 = vmatpush1.bf16.msra.mxu0 %v9832_v42  ;;  %1768 = vmatpush1.bf16.msra.mxu1 %v9834_v43  ;;  %v9873_v13 = vcombine.high %v147_v7, %v151_v8  ;;  %v155_v15 = vld [vmem:[#allocation2 + $0x280] sm:$0xff]  ;;  %v160_v18 = vld [vmem:[#allocation2 + $0x2a8] sm:$0xff]  ;;  %v9872_v19 = vcombine.low %v147_v7, %v151_v8 }
  0x5f   :  { %1683 = vmatprep.subr.bf16.mxu0 %v9841_v44  ;;  %1769 = vmatprep.subr.bf16.mxu1 %v9843_v45  ;;  %v159_v16 = vld [vmem:[#allocation2 + $0x2a0] sm:$0xff]  ;;  %v9883_v22 = vcombine.high %v156_v17, %v160_v18  ;;  %v164_v25 = vld [vmem:[#allocation2 + $0x2c8] sm:$0xff]  ;;  %v9882_v28 = vcombine.low %v156_v17, %v160_v18 }
  0x60   :  { %v9881_v21 = vcombine.high %v155_v15, %v159_v16  ;;  %v163_v23 = vld [vmem:[#allocation2 + $0x2c0] sm:$0xff]  ;;  %v168_v26 = vld [vmem:[#allocation2 + $0x2e8] sm:$0xff]  ;;  %v9880_v27 = vcombine.low %v155_v15, %v159_v16 }
  0x61   :  { %v167_v24 = vld [vmem:[#allocation2 + $0x2e0] sm:$0xff]  ;;  %v9891_v30 = vcombine.high %v164_v25, %v168_v26  ;;  %v172_v33 = vld [vmem:[#allocation2 + $0x308] sm:$0xff]  ;;  %v9890_v36 = vcombine.low %v164_v25, %v168_v26 }
  0x62   :  { %1684 = vmatpush1.bf16.msra.mxu0 %v9840_v50  ;;  %1770 = vmatpush1.bf16.msra.mxu1 %v9842_v51  ;;  %v9889_v29 = vcombine.high %v163_v23, %v167_v24  ;;  %v171_v31 = vld [vmem:[#allocation2 + $0x300] sm:$0xff]  ;;  %v176_v34 = vld [vmem:[#allocation2 + $0x328] sm:$0xff]  ;;  %v9888_v35 = vcombine.low %v163_v23, %v167_v24 }
  0x63   :  { %1685 = vmatprep.subr.bf16.mxu0 %v9849_v52  ;;  %1771 = vmatprep.subr.bf16.mxu1 %v9851_v53  ;;  %v175_v32 = vld [vmem:[#allocation2 + $0x320] sm:$0xff]  ;;  %v9899_v38 = vcombine.high %v172_v33, %v176_v34  ;;  %v180_v41 = vld [vmem:[#allocation2 + $0x348] sm:$0xff]  ;;  %v9898_v44 = vcombine.low %v172_v33, %v176_v34 }
  0x64   :  { %v9897_v37 = vcombine.high %v171_v31, %v175_v32  ;;  %v179_v39 = vld [vmem:[#allocation2 + $0x340] sm:$0xff]  ;;  %v184_v42 = vld [vmem:[#allocation2 + $0x368] sm:$0xff]  ;;  %v9896_v43 = vcombine.low %v171_v31, %v175_v32 }
  0x65   :  { %v183_v40 = vld [vmem:[#allocation2 + $0x360] sm:$0xff]  ;;  %v9907_v46 = vcombine.high %v180_v41, %v184_v42  ;;  %v188_v49 = vld [vmem:[#allocation2 + $0x388] sm:$0xff]  ;;  %v9906_v52 = vcombine.low %v180_v41, %v184_v42 }
  0x66   :  { %1686 = vmatpush1.bf16.msra.mxu0 %v9848_v59  ;;  %1772 = vmatpush1.bf16.msra.mxu1 %v9850_v60  ;;  %v9905_v45 = vcombine.high %v179_v39, %v183_v40  ;;  %v187_v47 = vld [vmem:[#allocation2 + $0x380] sm:$0xff]  ;;  %v192_v50 = vld [vmem:[#allocation2 + $0x3a8] sm:$0xff]  ;;  %v9904_v51 = vcombine.low %v179_v39, %v183_v40 }
  0x67   :  { %1687 = vmatprep.subr.bf16.mxu0 %v9857_v61  ;;  %1773 = vmatprep.subr.bf16.mxu1 %v9859_v62  ;;  %v191_v48 = vld [vmem:[#allocation2 + $0x3a0] sm:$0xff]  ;;  %v9915_v54 = vcombine.high %v188_v49, %v192_v50  ;;  %v196_v58 = vld [vmem:[#allocation2 + $0x3c8] sm:$0xff]  ;;  %v9914_v61 = vcombine.low %v188_v49, %v192_v50 }
  0x68   :  { %v9913_v53 = vcombine.high %v187_v47, %v191_v48  ;;  %v195_v55 = vld [vmem:[#allocation2 + $0x3c0] sm:$0xff]  ;;  %v200_v59 = vld [vmem:[#allocation2 + $0x3e8] sm:$0xff]  ;;  %v9912_v60 = vcombine.low %v187_v47, %v191_v48 }
  0x69   :  { %v199_v57 = vld [vmem:[#allocation2 + $0x3e0] sm:$0xff]  ;;  %v9923_v63 = vcombine.high %v196_v58, %v200_v59  ;;  %v204_v2 = vld [vmem:[#allocation2 + $0x408] sm:$0xff] }
  0x6a   :  { %1688 = vmatpush1.bf16.msra.mxu0 %v9856_v3  ;;  %1774 = vmatpush1.bf16.msra.mxu1 %v9858_v4  ;;  %v9921_v62 = vcombine.high %v195_v55, %v199_v57  ;;  %v203_v0 = vld [vmem:[#allocation2 + $0x400] sm:$0xff]  ;;  %v208_v3 = vld [vmem:[#allocation2 + $0x428] sm:$0xff]  ;;  %v9920_v4 = vcombine.low %v195_v55, %v199_v57 }
  0x6b   :  { %1689 = vmatprep.subr.bf16.mxu0 %v9865_v5  ;;  %1775 = vmatprep.subr.bf16.mxu1 %v9867_v6  ;;  %v207_v1 = vld [vmem:[#allocation2 + $0x420] sm:$0xff]  ;;  %v9922_v5 = vcombine.low %v196_v58, %v200_v59  ;;  %v9931_v7 = vcombine.high %v204_v2, %v208_v3 }
  0x6c   :  { %v9929_v6 = vcombine.high %v203_v0, %v207_v1  ;;  %v211_v8 = vld [vmem:[#allocation2 + $0x440] sm:$0xff] }
  0x6d   :  { %v215_v9 = vld [vmem:[#allocation2 + $0x460] sm:$0xff] }
  0x6e   :  { %1690 = vmatpush1.bf16.msra.mxu0 %v9864_v11  ;;  %1776 = vmatpush1.bf16.msra.mxu1 %v9866_v12  ;;  %v11484_v10 = vld [vmem:[%s11728_s0] ss:$16 sps:$4 sm:$0xff]   ;;  %v212_v11 = vld [vmem:[#allocation2 + $0x448] sm:$0xff]  ;;  %v9937_v15 = vcombine.high %v211_v8, %v215_v9 }
  0x6f   :  { %1691 = vmatprep.subr.bf16.mxu0 %v9873_v13  ;;  %1777 = vmatprep.subr.bf16.mxu1 %v9875_v14  ;;  %v216_v12 = vld [vmem:[#allocation2 + $0x468] sm:$0xff]  ;;  %v9928_v13 = vcombine.low %v203_v0, %v207_v1  ;;  %v9930_v14 = vcombine.low %v204_v2, %v208_v3  ;;  %v219_v17 = vld [vmem:[#allocation2 + $0x480] sm:$0xff] }
  0x70   :  { %v9939_v16 = vcombine.high %v212_v11, %v216_v12  ;;  %v223_v18 = vld [vmem:[#allocation2 + $0x4a0] sm:$0xff]  ;;  %v9938_v23 = vcombine.low %v212_v11, %v216_v12 }
  0x71   :  { %v9945_v24 = vcombine.high %v219_v17, %v223_v18  ;;  %v227_v26 = vld [vmem:[#allocation2 + $0x4c0] sm:$0xff] }
  0x72   :  { %1692 = vmatpush1.bf16.msra.mxu0 %v9872_v19  ;;  %1778 = vmatpush1.bf16.msra.mxu1 %v9874_v20  ;;  %v11489_v19 = vld [vmem:[%s11728_s0 + $0xc] ss:$16 sps:$4 sm:$0xff]   ;;  %v235_v34 = vld [vmem:[#allocation2 + $0x500] sm:$0xff] }
  0x73   :  { %1693 = vmatprep.subr.bf16.mxu0 %v9881_v21  ;;  %1779 = vmatprep.subr.bf16.mxu1 %v9883_v22  ;;  %v220_v20 = vld [vmem:[#allocation2 + $0x488] sm:$0xff]  ;;  %v9936_v22 = vcombine.low %v211_v8, %v215_v9  ;;  %v243_v42 = vld [vmem:[#allocation2 + $0x540] sm:$0xff] }
  0x74   :  { %v224_v21 = vld [vmem:[#allocation2 + $0x4a8] sm:$0xff]  ;;  %v251_v50 = vld [vmem:[#allocation2 + $0x580] sm:$0xff] }
  0x75   :  { %v9947_v25 = vcombine.high %v220_v20, %v224_v21  ;;  %v9946_v31 = vcombine.low %v220_v20, %v224_v21  ;;  %v259_v59 = vld [vmem:[#allocation2 + $0x5c0] sm:$0xff] }
  0x76   :  { %1694 = vmatpush1.bf16.msra.mxu0 %v9880_v27  ;;  %1780 = vmatpush1.bf16.msra.mxu1 %v9882_v28  ;;  %v231_v27 = vld [vmem:[#allocation2 + $0x4e0] sm:$0xff]  ;;  %v228_v28 = vld [vmem:[#allocation2 + $0x4c8] sm:$0xff] }
  0x77   :  { %1695 = vmatprep.subr.bf16.mxu0 %v9889_v29  ;;  %1781 = vmatprep.subr.bf16.mxu1 %v9891_v30  ;;  %v232_v29 = vld [vmem:[#allocation2 + $0x4e8] sm:$0xff]  ;;  %v9944_v30 = vcombine.low %v219_v17, %v223_v18  ;;  %v9953_v32 = vcombine.high %v227_v26, %v231_v27  ;;  %v267_v3 = vld [vmem:[#allocation2 + $0x600] sm:$0xff] }
  0x78   :  { %v9955_v33 = vcombine.high %v228_v28, %v232_v29  ;;  %v9954_v39 = vcombine.low %v228_v28, %v232_v29  ;;  %v275_v12 = vld [vmem:[#allocation2 + $0x640] sm:$0xff] }
  0x79   :  { %v283_v21 = vld [vmem:[#allocation2 + $0x680] sm:$0xff] }
  0x7a   :  { %1696 = vmatpush1.bf16.msra.mxu0 %v9888_v35  ;;  %1782 = vmatpush1.bf16.msra.mxu1 %v9890_v36  ;;  %v239_v35 = vld [vmem:[#allocation2 + $0x520] sm:$0xff]  ;;  %v236_v36 = vld [vmem:[#allocation2 + $0x508] sm:$0xff] }
  0x7b   :  { %1697 = vmatprep.subr.bf16.mxu0 %v9897_v37  ;;  %1783 = vmatprep.subr.bf16.mxu1 %v9899_v38  ;;  %v240_v37 = vld [vmem:[#allocation2 + $0x528] sm:$0xff]  ;;  %v9952_v38 = vcombine.low %v227_v26, %v231_v27  ;;  %v9961_v40 = vcombine.high %v235_v34, %v239_v35  ;;  %v291_v29 = vld [vmem:[#allocation2 + $0x6c0] sm:$0xff] }
  0x7c   :  { %v9963_v41 = vcombine.high %v236_v36, %v240_v37  ;;  %v9962_v47 = vcombine.low %v236_v36, %v240_v37  ;;  %v299_v37 = vld [vmem:[#allocation2 + $0x700] sm:$0xff] }
  0x7e   :  { %1698 = vmatpush1.bf16.msra.mxu0 %v9896_v43  ;;  %1784 = vmatpush1.bf16.msra.mxu1 %v9898_v44  ;;  %v247_v43 = vld [vmem:[#allocation2 + $0x560] sm:$0xff]  ;;  %v244_v44 = vld [vmem:[#allocation2 + $0x548] sm:$0xff] }
  0x7f   :  { %1699 = vmatprep.subr.bf16.mxu0 %v9905_v45  ;;  %1785 = vmatprep.subr.bf16.mxu1 %v9907_v46  ;;  %v248_v45 = vld [vmem:[#allocation2 + $0x568] sm:$0xff]  ;;  %v9960_v46 = vcombine.low %v235_v34, %v239_v35  ;;  %v9969_v48 = vcombine.high %v243_v42, %v247_v43 }
  0x80   :  { %v9971_v49 = vcombine.high %v244_v44, %v248_v45  ;;  %v9970_v55 = vcombine.low %v244_v44, %v248_v45  ;;  %v307_v45 = vld [vmem:[#allocation2 + $0x740] sm:$0xff] }
  0x82   :  { %1700 = vmatpush1.bf16.msra.mxu0 %v9904_v51  ;;  %1786 = vmatpush1.bf16.msra.mxu1 %v9906_v52  ;;  %v255_v51 = vld [vmem:[#allocation2 + $0x5a0] sm:$0xff]  ;;  %v252_v52 = vld [vmem:[#allocation2 + $0x588] sm:$0xff] }
  0x83   :  { %1701 = vmatprep.subr.bf16.mxu0 %v9913_v53  ;;  %1787 = vmatprep.subr.bf16.mxu1 %v9915_v54  ;;  %v256_v53 = vld [vmem:[#allocation2 + $0x5a8] sm:$0xff]  ;;  %v9968_v54 = vcombine.low %v243_v42, %v247_v43  ;;  %v9977_v57 = vcombine.high %v251_v50, %v255_v51 }
  0x84   :  { %v9979_v58 = vcombine.high %v252_v52, %v256_v53  ;;  %v9978_v0 = vcombine.low %v252_v52, %v256_v53  ;;  %v315_v53 = vld [vmem:[#allocation2 + $0x780] sm:$0xff] }
  0x86   :  { %1702 = vmatpush1.bf16.msra.mxu0 %v9912_v60  ;;  %1788 = vmatpush1.bf16.msra.mxu1 %v9914_v61  ;;  %v263_v60 = vld [vmem:[#allocation2 + $0x5e0] sm:$0xff]  ;;  %v260_v61 = vld [vmem:[#allocation2 + $0x5c8] sm:$0xff] }
  0x87   :  { %1703 = vmatprep.subr.bf16.mxu0 %v9921_v62  ;;  %1789 = vmatprep.subr.bf16.mxu1 %v9923_v63  ;;  %v264_v62 = vld [vmem:[#allocation2 + $0x5e8] sm:$0xff]  ;;  %v9976_v63 = vcombine.low %v251_v50, %v255_v51  ;;  %v9985_v1 = vcombine.high %v259_v59, %v263_v60 }
  0x88   :  { %v9987_v2 = vcombine.high %v260_v61, %v264_v62  ;;  %v9986_v8 = vcombine.low %v260_v61, %v264_v62  ;;  %v323_v62 = vld [vmem:[#allocation2 + $0x7c0] sm:$0xff] }
  0x8a   :  { %1704 = vmatpush1.bf16.msra.mxu0 %v9920_v4  ;;  %1790 = vmatpush1.bf16.msra.mxu1 %v9922_v5  ;;  %v271_v4 = vld [vmem:[#allocation2 + $0x620] sm:$0xff]  ;;  %v268_v5 = vld [vmem:[#allocation2 + $0x608] sm:$0xff] }
  0x8b   :  { %1716 = vmatprep.subr.bf16.mxu0 %v9929_v6  ;;  %1802 = vmatprep.subr.bf16.mxu1 %v9931_v7  ;;  %v272_v6 = vld [vmem:[#allocation2 + $0x628] sm:$0xff]  ;;  %v9984_v7 = vcombine.low %v259_v59, %v263_v60  ;;  %v9993_v9 = vcombine.high %v267_v3, %v271_v4 }
  0x8c   :  { %v9995_v11 = vcombine.high %v268_v5, %v272_v6  ;;  %v9994_v17 = vcombine.low %v268_v5, %v272_v6  ;;  %v77_v6 = vld [vmem:[#allocation2 + $0x10] sm:$0xff] }
  0x8d   :  { %1706 = vmatmul.mubr.bf16.vlgmr.msra.gmra.mrb[0].mxu0 %v11484_v10  ;;  %1792 = vmatmul.mubr.bf16.vlgmr.msra.gmra.mrb[0].mxu1 %v11484_v10 }
  0x8e   :  { %1717 = vmatpush1.bf16.msra.mxu0 %v9928_v13  ;;  %1803 = vmatpush1.bf16.msra.mxu1 %v9930_v14  ;;  %v279_v13 = vld [vmem:[#allocation2 + $0x660] sm:$0xff]  ;;  %v276_v14 = vld [vmem:[#allocation2 + $0x648] sm:$0xff] }
  0x8f   :  { %1718 = vmatprep.subr.bf16.mxu0 %v9937_v15  ;;  %1804 = vmatprep.subr.bf16.mxu1 %v9939_v16  ;;  %v280_v15 = vld [vmem:[#allocation2 + $0x668] sm:$0xff]  ;;  %v9992_v16 = vcombine.low %v267_v3, %v271_v4  ;;  %v10001_v18 = vcombine.high %v275_v12, %v279_v13 }
  0x90   :  { %1748 = vmatprep.mubr.bf16.mxu0 %v11489_v19  ;;  %1834 = vmatprep.mubr.bf16.mxu1 %v11489_v19  ;;  %v10003_v20 = vcombine.high %v276_v14, %v280_v15  ;;  %v10002_v26 = vcombine.low %v276_v14, %v280_v15  ;;  %v85_v15 = vld [vmem:[#allocation2 + $0x50] sm:$0xff] }
  0x92   :  { %1719 = vmatpush1.bf16.msra.mxu0 %v9936_v22  ;;  %1805 = vmatpush1.bf16.msra.mxu1 %v9938_v23  ;;  %v287_v22 = vld [vmem:[#allocation2 + $0x6a0] sm:$0xff]  ;;  %v284_v23 = vld [vmem:[#allocation2 + $0x688] sm:$0xff] }
  0x93   :  { %1720 = vmatprep.subr.bf16.mxu0 %v9945_v24  ;;  %1806 = vmatprep.subr.bf16.mxu1 %v9947_v25  ;;  %v288_v24 = vld [vmem:[#allocation2 + $0x6a8] sm:$0xff]  ;;  %v10000_v25 = vcombine.low %v275_v12, %v279_v13  ;;  %v10009_v27 = vcombine.high %v283_v21, %v287_v22 }
  0x94   :  { %v10011_v28 = vcombine.high %v284_v23, %v288_v24  ;;  %v10010_v34 = vcombine.low %v284_v23, %v288_v24 }
  0x96   :  { %1721 = vmatpush1.bf16.msra.mxu0 %v9944_v30  ;;  %1807 = vmatpush1.bf16.msra.mxu1 %v9946_v31  ;;  %v295_v30 = vld [vmem:[#allocation2 + $0x6e0] sm:$0xff]  ;;  %v292_v31 = vld [vmem:[#allocation2 + $0x6c8] sm:$0xff] }
  0x97   :  { %1722 = vmatprep.subr.bf16.mxu0 %v9953_v32  ;;  %1808 = vmatprep.subr.bf16.mxu1 %v9955_v33  ;;  %v296_v32 = vld [vmem:[#allocation2 + $0x6e8] sm:$0xff]  ;;  %v10008_v33 = vcombine.low %v283_v21, %v287_v22  ;;  %v10017_v35 = vcombine.high %v291_v29, %v295_v30 }
  0x98   :  { %v10019_v36 = vcombine.high %v292_v31, %v296_v32  ;;  %v10018_v42 = vcombine.low %v292_v31, %v296_v32 }
  0x9a   :  { %1723 = vmatpush1.bf16.msra.mxu0 %v9952_v38  ;;  %1809 = vmatpush1.bf16.msra.mxu1 %v9954_v39  ;;  %v303_v38 = vld [vmem:[#allocation2 + $0x720] sm:$0xff]  ;;  %v300_v39 = vld [vmem:[#allocation2 + $0x708] sm:$0xff] }
  0x9b   :  { %1724 = vmatprep.subr.bf16.mxu0 %v9961_v40  ;;  %1810 = vmatprep.subr.bf16.mxu1 %v9963_v41  ;;  %v304_v40 = vld [vmem:[#allocation2 + $0x728] sm:$0xff]  ;;  %v10016_v41 = vcombine.low %v291_v29, %v295_v30  ;;  %v10025_v43 = vcombine.high %v299_v37, %v303_v38 }
  0x9c   :  { %v10027_v44 = vcombine.high %v300_v39, %v304_v40  ;;  %v10026_v50 = vcombine.low %v300_v39, %v304_v40 }
  0x9e   :  { %1725 = vmatpush1.bf16.msra.mxu0 %v9960_v46  ;;  %1811 = vmatpush1.bf16.msra.mxu1 %v9962_v47  ;;  %v311_v46 = vld [vmem:[#allocation2 + $0x760] sm:$0xff]  ;;  %v308_v47 = vld [vmem:[#allocation2 + $0x748] sm:$0xff] }
  0x9f   :  { %1726 = vmatprep.subr.bf16.mxu0 %v9969_v48  ;;  %1812 = vmatprep.subr.bf16.mxu1 %v9971_v49  ;;  %v312_v48 = vld [vmem:[#allocation2 + $0x768] sm:$0xff]  ;;  %v10024_v49 = vcombine.low %v299_v37, %v303_v38  ;;  %v10033_v51 = vcombine.high %v307_v45, %v311_v46 }
  0xa0   :  { %v10035_v52 = vcombine.high %v308_v47, %v312_v48  ;;  %v10034_v59 = vcombine.low %v308_v47, %v312_v48  ;;  %v117_v48 = vld [vmem:[#allocation2 + $0x150] sm:$0xff] }
  0xa2   :  { %1727 = vmatpush1.bf16.msra.mxu0 %v9968_v54  ;;  %1813 = vmatpush1.bf16.msra.mxu1 %v9970_v55  ;;  %v319_v54 = vld [vmem:[#allocation2 + $0x7a0] sm:$0xff]  ;;  %v316_v55 = vld [vmem:[#allocation2 + $0x788] sm:$0xff] }
  0xa3   :  { %1728 = vmatprep.subr.bf16.mxu0 %v9977_v57  ;;  %1814 = vmatprep.subr.bf16.mxu1 %v9979_v58  ;;  %v320_v57 = vld [vmem:[#allocation2 + $0x7a8] sm:$0xff]  ;;  %v10032_v58 = vcombine.low %v307_v45, %v311_v46  ;;  %v10041_v60 = vcombine.high %v315_v53, %v319_v54 }
  0xa4   :  { %v10043_v61 = vcombine.high %v316_v55, %v320_v57  ;;  %v10042_v3 = vcombine.low %v316_v55, %v320_v57  ;;  %v125_v57 = vld [vmem:[#allocation2 + $0x190] sm:$0xff] }
  0xa6   :  { %1729 = vmatpush1.bf16.msra.mxu0 %v9976_v63  ;;  %1815 = vmatpush1.bf16.msra.mxu1 %v9978_v0  ;;  %v327_v63 = vld [vmem:[#allocation2 + $0x7e0] sm:$0xff]  ;;  %v324_v0 = vld [vmem:[#allocation2 + $0x7c8] sm:$0xff] }
  0xa7   :  { %1730 = vmatprep.subr.bf16.mxu0 %v9985_v1  ;;  %1816 = vmatprep.subr.bf16.mxu1 %v9987_v2  ;;  %v328_v1 = vld [vmem:[#allocation2 + $0x7e8] sm:$0xff]  ;;  %v10040_v2 = vcombine.low %v315_v53, %v319_v54  ;;  %v10049_v4 = vcombine.high %v323_v62, %v327_v63 }
  0xa8   :  { %v10051_v5 = vcombine.high %v324_v0, %v328_v1  ;;  %v10050_v12 = vcombine.low %v324_v0, %v328_v1  ;;  %v133_v1 = vld [vmem:[#allocation2 + $0x1d0] sm:$0xff] }
  0xaa   :  { %1731 = vmatpush1.bf16.msra.mxu0 %v9984_v7  ;;  %1817 = vmatpush1.bf16.msra.mxu1 %v9986_v8  ;;  %v81_v7 = vld [vmem:[#allocation2 + $0x30] sm:$0xff]  ;;  %v78_v8 = vld [vmem:[#allocation2 + $0x18] sm:$0xff] }
  0xab   :  { %1732 = vmatprep.subr.bf16.mxu0 %v9993_v9  ;;  %1818 = vmatprep.subr.bf16.mxu1 %v9995_v11  ;;  %v82_v9 = vld [vmem:[#allocation2 + $0x38] sm:$0xff]  ;;  %v10048_v11 = vcombine.low %v323_v62, %v327_v63  ;;  %v9805_v13 = vcombine.high %v77_v6, %v81_v7  ;;  %v9804_v21 = vcombine.low %v77_v6, %v81_v7 }
  0xac   :  { %v9807_v14 = vcombine.high %v78_v8, %v82_v9  ;;  %v9806_v22 = vcombine.low %v78_v8, %v82_v9  ;;  %v141_v9 = vld [vmem:[#allocation2 + $0x210] sm:$0xff] }
  0xae   :  { %1733 = vmatpush1.bf16.msra.mxu0 %v9992_v16  ;;  %1819 = vmatpush1.bf16.msra.mxu1 %v9994_v17  ;;  %v89_v16 = vld [vmem:[#allocation2 + $0x70] sm:$0xff]  ;;  %v11498_v17 = vld [vmem:[%s11728_s0 + $0x8] ss:$16 sps:$4 sm:$0xff]  }
  0xaf   :  { %1734 = vmatprep.subr.bf16.mxu0 %v10001_v18  ;;  %1820 = vmatprep.subr.bf16.mxu1 %v10003_v20  ;;  %v86_v18 = vld [vmem:[#allocation2 + $0x58] sm:$0xff]  ;;  %v9813_v23 = vcombine.high %v85_v15, %v89_v16  ;;  %v9812_v29 = vcombine.low %v85_v15, %v89_v16 }
  0xb0   :  { %v90_v20 = vld [vmem:[#allocation2 + $0x78] sm:$0xff] }
  0xb1   :  { %v9815_v24 = vcombine.high %v86_v18, %v90_v20  ;;  %v9814_v30 = vcombine.low %v86_v18, %v90_v20  ;;  %v149_v20 = vld [vmem:[#allocation2 + $0x250] sm:$0xff] }
  0xb2   :  { %1735 = vmatpush1.bf16.msra.mxu0 %v10000_v25  ;;  %1821 = vmatpush1.bf16.msra.mxu1 %v10002_v26  ;;  %v93_v25 = vld [vmem:[#allocation2 + $0x90] sm:$0xff] }
  0xb3   :  { %1736 = vmatprep.subr.bf16.mxu0 %v10009_v27  ;;  %1822 = vmatprep.subr.bf16.mxu1 %v10011_v28  ;;  %v97_v26 = vld [vmem:[#allocation2 + $0xb0] sm:$0xff]  ;;  %v94_v27 = vld [vmem:[#allocation2 + $0x98] sm:$0xff] }
  0xb4   :  { %v98_v28 = vld [vmem:[#allocation2 + $0xb8] sm:$0xff]  ;;  %v9821_v31 = vcombine.high %v93_v25, %v97_v26  ;;  %v9820_v37 = vcombine.low %v93_v25, %v97_v26 }
  0xb5   :  { %v9823_v32 = vcombine.high %v94_v27, %v98_v28  ;;  %v9822_v38 = vcombine.low %v94_v27, %v98_v28  ;;  %v157_v28 = vld [vmem:[#allocation2 + $0x290] sm:$0xff] }
  0xb6   :  { %1737 = vmatpush1.bf16.msra.mxu0 %v10008_v33  ;;  %1823 = vmatpush1.bf16.msra.mxu1 %v10010_v34  ;;  %v101_v33 = vld [vmem:[#allocation2 + $0xd0] sm:$0xff] }
  0xb7   :  { %1738 = vmatprep.subr.bf16.mxu0 %v10017_v35  ;;  %1824 = vmatprep.subr.bf16.mxu1 %v10019_v36  ;;  %v105_v34 = vld [vmem:[#allocation2 + $0xf0] sm:$0xff]  ;;  %v102_v35 = vld [vmem:[#allocation2 + $0xd8] sm:$0xff] }
  0xb8   :  { %v106_v36 = vld [vmem:[#allocation2 + $0xf8] sm:$0xff]  ;;  %v9829_v39 = vcombine.high %v101_v33, %v105_v34  ;;  %v9828_v45 = vcombine.low %v101_v33, %v105_v34 }
  0xb9   :  { %v9831_v40 = vcombine.high %v102_v35, %v106_v36  ;;  %v9830_v46 = vcombine.low %v102_v35, %v106_v36  ;;  %v165_v36 = vld [vmem:[#allocation2 + $0x2d0] sm:$0xff] }
  0xba   :  { %1739 = vmatpush1.bf16.msra.mxu0 %v10016_v41  ;;  %1825 = vmatpush1.bf16.msra.mxu1 %v10018_v42  ;;  %v109_v41 = vld [vmem:[#allocation2 + $0x110] sm:$0xff] }
  0xbb   :  { %1740 = vmatprep.subr.bf16.mxu0 %v10025_v43  ;;  %1826 = vmatprep.subr.bf16.mxu1 %v10027_v44  ;;  %v113_v42 = vld [vmem:[#allocation2 + $0x130] sm:$0xff]  ;;  %v110_v43 = vld [vmem:[#allocation2 + $0x118] sm:$0xff] }
  0xbc   :  { %v114_v44 = vld [vmem:[#allocation2 + $0x138] sm:$0xff]  ;;  %v9837_v47 = vcombine.high %v109_v41, %v113_v42 }
  0xbd   :  { %v9838_v53 = vcombine.low %v110_v43, %v114_v44 }
  0xbe   :  { %1741 = vmatpush1.bf16.msra.mxu0 %v10024_v49  ;;  %1827 = vmatpush1.bf16.msra.mxu1 %v10026_v50  ;;  %v121_v49 = vld [vmem:[#allocation2 + $0x170] sm:$0xff]  ;;  %v118_v50 = vld [vmem:[#allocation2 + $0x158] sm:$0xff] }
  0xbf   :  { %1742 = vmatprep.subr.bf16.mxu0 %v10033_v51  ;;  %1828 = vmatprep.subr.bf16.mxu1 %v10035_v52  ;;  %v122_v51 = vld [vmem:[#allocation2 + $0x178] sm:$0xff]  ;;  %v9836_v52 = vcombine.low %v109_v41, %v113_v42  ;;  %v9845_v54 = vcombine.high %v117_v48, %v121_v49 }
  0xc0   :  { %v9847_v55 = vcombine.high %v118_v50, %v122_v51  ;;  %v9846_v62 = vcombine.low %v118_v50, %v122_v51  ;;  %v181_v51 = vld [vmem:[#allocation2 + $0x350] sm:$0xff] }
  0xc2   :  { %1743 = vmatpush1.bf16.msra.mxu0 %v10032_v58  ;;  %1829 = vmatpush1.bf16.msra.mxu1 %v10034_v59  ;;  %v129_v58 = vld [vmem:[#allocation2 + $0x1b0] sm:$0xff]  ;;  %v126_v59 = vld [vmem:[#allocation2 + $0x198] sm:$0xff] }
  0xc3   :  { %1744 = vmatprep.subr.bf16.mxu0 %v10041_v60  ;;  %1830 = vmatprep.subr.bf16.mxu1 %v10043_v61  ;;  %v130_v60 = vld [vmem:[#allocation2 + $0x1b8] sm:$0xff]  ;;  %v9844_v61 = vcombine.low %v117_v48, %v121_v49  ;;  %v9853_v63 = vcombine.high %v125_v57, %v129_v58 }
  0xc4   :  { %v9855_v0 = vcombine.high %v126_v59, %v130_v60  ;;  %v9854_v6 = vcombine.low %v126_v59, %v130_v60  ;;  %v189_v60 = vld [vmem:[#allocation2 + $0x390] sm:$0xff] }
  0xc6   :  { %1745 = vmatpush1.bf16.msra.mxu0 %v10040_v2  ;;  %1831 = vmatpush1.bf16.msra.mxu1 %v10042_v3  ;;  %v137_v2 = vld [vmem:[#allocation2 + $0x1f0] sm:$0xff]  ;;  %v134_v3 = vld [vmem:[#allocation2 + $0x1d8] sm:$0xff] }
  0xc7   :  { %1746 = vmatprep.subr.bf16.mxu0 %v10049_v4  ;;  %1832 = vmatprep.subr.bf16.mxu1 %v10051_v5  ;;  %v138_v4 = vld [vmem:[#allocation2 + $0x1f8] sm:$0xff]  ;;  %v9852_v5 = vcombine.low %v125_v57, %v129_v58  ;;  %v9861_v7 = vcombine.high %v133_v1, %v137_v2 }
  0xc8   :  { %v9863_v8 = vcombine.high %v134_v3, %v138_v4  ;;  %v9862_v15 = vcombine.low %v134_v3, %v138_v4  ;;  %v197_v4 = vld [vmem:[#allocation2 + $0x3d0] sm:$0xff] }
  0xca   :  { %1747 = vmatpush1.bf16.msra.mxu0 %v10048_v11  ;;  %1833 = vmatpush1.bf16.msra.mxu1 %v10050_v12  ;;  %v145_v11 = vld [vmem:[#allocation2 + $0x230] sm:$0xff]  ;;  %v142_v12 = vld [vmem:[#allocation2 + $0x218] sm:$0xff] }
  0xcb   :  { %1845 = vmatprep.subr.bf16.mxu0 %v9805_v13  ;;  %1931 = vmatprep.subr.bf16.mxu1 %v9807_v14  ;;  %v146_v13 = vld [vmem:[#allocation2 + $0x238] sm:$0xff]  ;;  %v9860_v14 = vcombine.low %v133_v1, %v137_v2  ;;  %v9869_v16 = vcombine.high %v141_v9, %v145_v11 }
  0xcc   :  { %v9871_v18 = vcombine.high %v142_v12, %v146_v13  ;;  %v9870_v25 = vcombine.low %v142_v12, %v146_v13  ;;  %v205_v13 = vld [vmem:[#allocation2 + $0x410] sm:$0xff] }
  0xcd   :  { %1749 = vmatmul.mubr.bf16.vlgmr.msra.gmra.mrb[0].mxu0 %v11498_v17  ;;  %1835 = vmatmul.mubr.bf16.vlgmr.msra.gmra.mrb[0].mxu1 %v11498_v17 }
  0xce   :  { %1846 = vmatpush1.bf16.msra.mxu0 %v9804_v21  ;;  %1932 = vmatpush1.bf16.msra.mxu1 %v9806_v22  ;;  %v153_v21 = vld [vmem:[#allocation2 + $0x270] sm:$0xff]  ;;  %v150_v22 = vld [vmem:[#allocation2 + $0x258] sm:$0xff] }
  0xcf   :  { %1847 = vmatprep.subr.bf16.mxu0 %v9813_v23  ;;  %1933 = vmatprep.subr.bf16.mxu1 %v9815_v24  ;;  %v154_v23 = vld [vmem:[#allocation2 + $0x278] sm:$0xff]  ;;  %v9868_v24 = vcombine.low %v141_v9, %v145_v11  ;;  %v9877_v26 = vcombine.high %v149_v20, %v153_v21 }
  0xd0   :  { %1877 = vmatprep.mubr.bf16.mxu0 %v11477_v56  ;;  %1963 = vmatprep.mubr.bf16.mxu1 %v11477_v56  ;;  %v9839_v56 = vcombine.high %v110_v43, %v114_v44  ;;  %v9879_v27 = vcombine.high %v150_v22, %v154_v23  ;;  %v9878_v33 = vcombine.low %v150_v22, %v154_v23  ;;  %v173_v44 = vld [vmem:[#allocation2 + $0x310] sm:$0xff] }
  0xd1   :  { %v213_v23 = vld [vmem:[#allocation2 + $0x450] sm:$0xff] }
  0xd2   :  { %1848 = vmatpush1.bf16.msra.mxu0 %v9812_v29  ;;  %1934 = vmatpush1.bf16.msra.mxu1 %v9814_v30  ;;  %v161_v29 = vld [vmem:[#allocation2 + $0x2b0] sm:$0xff]  ;;  %v158_v30 = vld [vmem:[#allocation2 + $0x298] sm:$0xff] }
  0xd3   :  { %1849 = vmatprep.subr.bf16.mxu0 %v9821_v31  ;;  %1935 = vmatprep.subr.bf16.mxu1 %v9823_v32  ;;  %v162_v31 = vld [vmem:[#allocation2 + $0x2b8] sm:$0xff]  ;;  %v9876_v32 = vcombine.low %v149_v20, %v153_v21  ;;  %v9885_v34 = vcombine.high %v157_v28, %v161_v29 }
  0xd4   :  { %v9887_v35 = vcombine.high %v158_v30, %v162_v31  ;;  %v9886_v41 = vcombine.low %v158_v30, %v162_v31  ;;  %v221_v31 = vld [vmem:[#allocation2 + $0x490] sm:$0xff] }
  0xd6   :  { %1850 = vmatpush1.bf16.msra.mxu0 %v9820_v37  ;;  %1936 = vmatpush1.bf16.msra.mxu1 %v9822_v38  ;;  %v169_v37 = vld [vmem:[#allocation2 + $0x2f0] sm:$0xff]  ;;  %v166_v38 = vld [vmem:[#allocation2 + $0x2d8] sm:$0xff] }
  0xd7   :  { %1851 = vmatprep.subr.bf16.mxu0 %v9829_v39  ;;  %1937 = vmatprep.subr.bf16.mxu1 %v9831_v40  ;;  %v170_v39 = vld [vmem:[#allocation2 + $0x2f8] sm:$0xff]  ;;  %v9884_v40 = vcombine.low %v157_v28, %v161_v29  ;;  %v9893_v42 = vcombine.high %v165_v36, %v169_v37 }
  0xd8   :  { %v9895_v43 = vcombine.high %v166_v38, %v170_v39  ;;  %v9894_v48 = vcombine.low %v166_v38, %v170_v39  ;;  %v229_v39 = vld [vmem:[#allocation2 + $0x4d0] sm:$0xff] }
  0xda   :  { %1852 = vmatpush1.bf16.msra.mxu0 %v9828_v45  ;;  %1938 = vmatpush1.bf16.msra.mxu1 %v9830_v46  ;;  %v177_v45 = vld [vmem:[#allocation2 + $0x330] sm:$0xff]  ;;  %v174_v46 = vld [vmem:[#allocation2 + $0x318] sm:$0xff] }
  0xdb   :  { %1853 = vmatprep.subr.bf16.mxu0 %v9837_v47  ;;  %1939 = vmatprep.subr.bf16.mxu1 %v9839_v56  ;;  %v178_v47 = vld [vmem:[#allocation2 + $0x338] sm:$0xff]  ;;  %v9892_v56 = vcombine.low %v165_v36, %v169_v37  ;;  %v9901_v49 = vcombine.high %v173_v44, %v177_v45 }
  0xdc   :  { %v9903_v50 = vcombine.high %v174_v46, %v178_v47  ;;  %v9902_v57 = vcombine.low %v174_v46, %v178_v47  ;;  %v237_v46 = vld [vmem:[#allocation2 + $0x510] sm:$0xff] }
  0xdd   :  { %v241_v47 = vld [vmem:[#allocation2 + $0x530] sm:$0xff] }
  0xde   :  { %1854 = vmatpush1.bf16.msra.mxu0 %v9836_v52  ;;  %1940 = vmatpush1.bf16.msra.mxu1 %v9838_v53  ;;  %v185_v52 = vld [vmem:[#allocation2 + $0x370] sm:$0xff]  ;;  %v182_v53 = vld [vmem:[#allocation2 + $0x358] sm:$0xff] }
  0xdf   :  { %1855 = vmatprep.subr.bf16.mxu0 %v9845_v54  ;;  %1941 = vmatprep.subr.bf16.mxu1 %v9847_v55  ;;  %v186_v54 = vld [vmem:[#allocation2 + $0x378] sm:$0xff]  ;;  %v9900_v55 = vcombine.low %v173_v44, %v177_v45  ;;  %v9909_v58 = vcombine.high %v181_v51, %v185_v52 }
  0xe0   :  { %v9911_v59 = vcombine.high %v182_v53, %v186_v54  ;;  %v9910_v1 = vcombine.low %v182_v53, %v186_v54  ;;  %v249_v53 = vld [vmem:[#allocation2 + $0x570] sm:$0xff]  ;;  %v246_v54 = vld [vmem:[#allocation2 + $0x558] sm:$0xff] }
  0xe2   :  { %1856 = vmatpush1.bf16.msra.mxu0 %v9844_v61  ;;  %1942 = vmatpush1.bf16.msra.mxu1 %v9846_v62  ;;  %v193_v61 = vld [vmem:[#allocation2 + $0x3b0] sm:$0xff]  ;;  %v190_v62 = vld [vmem:[#allocation2 + $0x398] sm:$0xff] }
  0xe3   :  { %1857 = vmatprep.subr.bf16.mxu0 %v9853_v63  ;;  %1943 = vmatprep.subr.bf16.mxu1 %v9855_v0  ;;  %v194_v63 = vld [vmem:[#allocation2 + $0x3b8] sm:$0xff]  ;;  %v9908_v0 = vcombine.low %v181_v51, %v185_v52  ;;  %v9917_v2 = vcombine.high %v189_v60, %v193_v61  ;;  %v9965_v51 = vcombine.high %v237_v46, %v241_v47  ;;  %v245_v52 = vld [vmem:[#allocation2 + $0x550] sm:$0xff] }
  0xe4   :  { %v9919_v3 = vcombine.high %v190_v62, %v194_v63  ;;  %v9918_v9 = vcombine.low %v190_v62, %v194_v63  ;;  %v257_v62 = vld [vmem:[#allocation2 + $0x5b0] sm:$0xff]  ;;  %v254_v63 = vld [vmem:[#allocation2 + $0x598] sm:$0xff] }
  0xe6   :  { %1858 = vmatpush1.bf16.msra.mxu0 %v9852_v5  ;;  %1944 = vmatpush1.bf16.msra.mxu1 %v9854_v6  ;;  %v201_v5 = vld [vmem:[#allocation2 + $0x3f0] sm:$0xff]  ;;  %v198_v6 = vld [vmem:[#allocation2 + $0x3d8] sm:$0xff] }
  0xe7   :  { %1859 = vmatprep.subr.bf16.mxu0 %v9861_v7  ;;  %1945 = vmatprep.subr.bf16.mxu1 %v9863_v8  ;;  %v202_v7 = vld [vmem:[#allocation2 + $0x3f8] sm:$0xff]  ;;  %v9916_v8 = vcombine.low %v189_v60, %v193_v61  ;;  %v9925_v11 = vcombine.high %v197_v4, %v201_v5  ;;  %v253_v61 = vld [vmem:[#allocation2 + $0x590] sm:$0xff] }
  0xe8   :  { %v9927_v12 = vcombine.high %v198_v6, %v202_v7  ;;  %v9926_v20 = vcombine.low %v198_v6, %v202_v7  ;;  %v265_v6 = vld [vmem:[#allocation2 + $0x5f0] sm:$0xff]  ;;  %v262_v7 = vld [vmem:[#allocation2 + $0x5d8] sm:$0xff] }
  0xea   :  { %1860 = vmatpush1.bf16.msra.mxu0 %v9860_v14  ;;  %1946 = vmatpush1.bf16.msra.mxu1 %v9862_v15  ;;  %v209_v14 = vld [vmem:[#allocation2 + $0x430] sm:$0xff]  ;;  %v206_v15 = vld [vmem:[#allocation2 + $0x418] sm:$0xff] }
  0xeb   :  { %1861 = vmatprep.subr.bf16.mxu0 %v9869_v16  ;;  %1947 = vmatprep.subr.bf16.mxu1 %v9871_v18  ;;  %v210_v16 = vld [vmem:[#allocation2 + $0x438] sm:$0xff]  ;;  %v9924_v18 = vcombine.low %v197_v4, %v201_v5  ;;  %v9933_v21 = vcombine.high %v205_v13, %v209_v14  ;;  %v261_v5 = vld [vmem:[#allocation2 + $0x5d0] sm:$0xff] }
  0xec   :  { %v9935_v22 = vcombine.high %v206_v15, %v210_v16  ;;  %v9934_v28 = vcombine.low %v206_v15, %v210_v16  ;;  %v273_v15 = vld [vmem:[#allocation2 + $0x630] sm:$0xff]  ;;  %v270_v16 = vld [vmem:[#allocation2 + $0x618] sm:$0xff] }
  0xee   :  { %1862 = vmatpush1.bf16.msra.mxu0 %v9868_v24  ;;  %1948 = vmatpush1.bf16.msra.mxu1 %v9870_v25  ;;  %v217_v24 = vld [vmem:[#allocation2 + $0x470] sm:$0xff]  ;;  %v214_v25 = vld [vmem:[#allocation2 + $0x458] sm:$0xff] }
  0xef   :  { %1863 = vmatprep.subr.bf16.mxu0 %v9877_v26  ;;  %1949 = vmatprep.subr.bf16.mxu1 %v9879_v27  ;;  %v218_v26 = vld [vmem:[#allocation2 + $0x478] sm:$0xff]  ;;  %v9932_v27 = vcombine.low %v205_v13, %v209_v14  ;;  %v9941_v29 = vcombine.high %v213_v23, %v217_v24  ;;  %v269_v14 = vld [vmem:[#allocation2 + $0x610] sm:$0xff] }
  0xf0   :  { %v9943_v30 = vcombine.high %v214_v25, %v218_v26  ;;  %v9942_v36 = vcombine.low %v214_v25, %v218_v26  ;;  %v281_v25 = vld [vmem:[#allocation2 + $0x670] sm:$0xff]  ;;  %v278_v26 = vld [vmem:[#allocation2 + $0x658] sm:$0xff] }
  0xf2   :  { %1864 = vmatpush1.bf16.msra.mxu0 %v9876_v32  ;;  %1950 = vmatpush1.bf16.msra.mxu1 %v9878_v33  ;;  %v225_v32 = vld [vmem:[#allocation2 + $0x4b0] sm:$0xff]  ;;  %v222_v33 = vld [vmem:[#allocation2 + $0x498] sm:$0xff] }
  0xf3   :  { %1865 = vmatprep.subr.bf16.mxu0 %v9885_v34  ;;  %1951 = vmatprep.subr.bf16.mxu1 %v9887_v35  ;;  %v226_v34 = vld [vmem:[#allocation2 + $0x4b8] sm:$0xff]  ;;  %v9940_v35 = vcombine.low %v213_v23, %v217_v24  ;;  %v9949_v37 = vcombine.high %v221_v31, %v225_v32  ;;  %v277_v24 = vld [vmem:[#allocation2 + $0x650] sm:$0xff] }
  0xf4   :  { %v9951_v38 = vcombine.high %v222_v33, %v226_v34 }
  0xf6   :  { %1866 = vmatpush1.bf16.msra.mxu0 %v9884_v40  ;;  %1952 = vmatpush1.bf16.msra.mxu1 %v9886_v41  ;;  %v233_v40 = vld [vmem:[#allocation2 + $0x4f0] sm:$0xff]  ;;  %v230_v41 = vld [vmem:[#allocation2 + $0x4d8] sm:$0xff] }
  0xf7   :  { %1867 = vmatprep.subr.bf16.mxu0 %v9893_v42  ;;  %1953 = vmatprep.subr.bf16.mxu1 %v9895_v43  ;;  %v234_v42 = vld [vmem:[#allocation2 + $0x4f8] sm:$0xff]  ;;  %v9948_v43 = vcombine.low %v221_v31, %v225_v32  ;;  %v9957_v44 = vcombine.high %v229_v39, %v233_v40  ;;  %v285_v32 = vld [vmem:[#allocation2 + $0x690] sm:$0xff] }
  0xf8   :  { %v9959_v45 = vcombine.high %v230_v41, %v234_v42 }
  0xfa   :  { %1868 = vmatpush1.bf16.msra.mxu0 %v9892_v56  ;;  %1954 = vmatpush1.bf16.msra.mxu1 %v9894_v48  ;;  %v238_v56 = vld [vmem:[#allocation2 + $0x518] sm:$0xff] }
  0xfb   :  { %1869 = vmatprep.subr.bf16.mxu0 %v9901_v49  ;;  %1955 = vmatprep.subr.bf16.mxu1 %v9903_v50  ;;  %v242_v48 = vld [vmem:[#allocation2 + $0x538] sm:$0xff]  ;;  %v9956_v49 = vcombine.low %v229_v39, %v233_v40  ;;  %v9958_v50 = vcombine.low %v230_v41, %v234_v42  ;;  %v293_v40 = vld [vmem:[#allocation2 + $0x6d0] sm:$0xff] }
  0xfc   :  { %v297_v41 = vld [vmem:[#allocation2 + $0x6f0] sm:$0xff]  ;;  %v294_v42 = vld [vmem:[#allocation2 + $0x6d8] sm:$0xff] }
  0xfe   :  { %1870 = vmatpush1.bf16.msra.mxu0 %v9900_v55  ;;  %1956 = vmatpush1.bf16.msra.mxu1 %v9902_v57  ;;  %v250_v55 = vld [vmem:[#allocation2 + $0x578] sm:$0xff]  ;;  %v9964_v57 = vcombine.low %v237_v46, %v241_v47  ;;  %v301_v47 = vld [vmem:[#allocation2 + $0x710] sm:$0xff] }
  0xff   :  { %1871 = vmatprep.subr.bf16.mxu0 %v9909_v58  ;;  %1957 = vmatprep.subr.bf16.mxu1 %v9911_v59  ;;  %v9966_v58 = vcombine.low %v238_v56, %v242_v48  ;;  %v9973_v59 = vcombine.high %v245_v52, %v249_v53  ;;  %v9975_v60 = vcombine.high %v246_v54, %v250_v55 }
 0x102   :  { %1872 = vmatpush1.bf16.msra.mxu0 %v9908_v0  ;;  %1958 = vmatpush1.bf16.msra.mxu1 %v9910_v1  ;;  %v258_v0 = vld [vmem:[#allocation2 + $0x5b8] sm:$0xff]  ;;  %v9972_v1 = vcombine.low %v245_v52, %v249_v53  ;;  %v309_v53 = vld [vmem:[#allocation2 + $0x750] sm:$0xff] }
 0x103   :  { %1873 = vmatprep.subr.bf16.mxu0 %v9917_v2  ;;  %1959 = vmatprep.subr.bf16.mxu1 %v9919_v3  ;;  %v9974_v2 = vcombine.low %v246_v54, %v250_v55  ;;  %v9981_v3 = vcombine.high %v253_v61, %v257_v62  ;;  %v9983_v4 = vcombine.high %v254_v63, %v258_v0  ;;  %v313_v54 = vld [vmem:[#allocation2 + $0x770] sm:$0xff]  ;;  %v310_v55 = vld [vmem:[#allocation2 + $0x758] sm:$0xff] }
 0x106   :  { %1874 = vmatpush1.bf16.msra.mxu0 %v9916_v8  ;;  %1960 = vmatpush1.bf16.msra.mxu1 %v9918_v9  ;;  %v266_v8 = vld [vmem:[#allocation2 + $0x5f8] sm:$0xff]  ;;  %v9980_v9 = vcombine.low %v253_v61, %v257_v62  ;;  %v317_v62 = vld [vmem:[#allocation2 + $0x790] sm:$0xff] }
 0x107   :  { %1875 = vmatprep.subr.bf16.mxu0 %v9925_v11  ;;  %1961 = vmatprep.subr.bf16.mxu1 %v9927_v12  ;;  %v9982_v11 = vcombine.low %v254_v63, %v258_v0  ;;  %v9989_v12 = vcombine.high %v261_v5, %v265_v6  ;;  %v9991_v13 = vcombine.high %v262_v7, %v266_v8  ;;  %v321_v63 = vld [vmem:[#allocation2 + $0x7b0] sm:$0xff]  ;;  %v318_v0 = vld [vmem:[#allocation2 + $0x798] sm:$0xff] }
 0x10a   :  { %1876 = vmatpush1.bf16.msra.mxu0 %v9924_v18  ;;  %1962 = vmatpush1.bf16.msra.mxu1 %v9926_v20  ;;  %v274_v18 = vld [vmem:[#allocation2 + $0x638] sm:$0xff]  ;;  %v9988_v20 = vcombine.low %v261_v5, %v265_v6  ;;  %v325_v6 = vld [vmem:[#allocation2 + $0x7d0] sm:$0xff] }
 0x10b   :  { %1888 = vmatprep.subr.bf16.mxu0 %v9933_v21  ;;  %1974 = vmatprep.subr.bf16.mxu1 %v9935_v22  ;;  %v9990_v21 = vcombine.low %v262_v7, %v266_v8  ;;  %v9997_v22 = vcombine.high %v269_v14, %v273_v15  ;;  %v9999_v23 = vcombine.high %v270_v16, %v274_v18  ;;  %v329_v7 = vld [vmem:[#allocation2 + $0x7f0] sm:$0xff]  ;;  %v326_v8 = vld [vmem:[#allocation2 + $0x7d8] sm:$0xff] }
 0x10d   :  { %1878 = vmatmul.mubr.bf16.vlgmr.msra.gmra.mrb[4].mxu0 %v11484_v10  ;;  %1964 = vmatmul.mubr.bf16.vlgmr.msra.gmra.mrb[4].mxu1 %v11484_v10  ;;  %v9950_v10 = vcombine.low %v222_v33, %v226_v34  ;;  %v289_v33 = vld [vmem:[#allocation2 + $0x6b0] sm:$0xff]  ;;  %v286_v34 = vld [vmem:[#allocation2 + $0x698] sm:$0xff] }
 0x10e   :  { %1889 = vmatpush1.bf16.msra.mxu0 %v9932_v27  ;;  %1975 = vmatpush1.bf16.msra.mxu1 %v9934_v28  ;;  %v282_v27 = vld [vmem:[#allocation2 + $0x678] sm:$0xff]  ;;  %v9996_v28 = vcombine.low %v269_v14, %v273_v15  ;;  %v2041_v15 = vld [vmem:[#allocation6] sm:$0xff] }
 0x10f   :  { %1890 = vmatprep.subr.bf16.mxu0 %v9941_v29  ;;  %1976 = vmatprep.subr.bf16.mxu1 %v9943_v30  ;;  %v9998_v29 = vcombine.low %v270_v16, %v274_v18  ;;  %v10005_v30 = vcombine.high %v277_v24, %v281_v25  ;;  %v10007_v31 = vcombine.high %v278_v26, %v282_v27  ;;  %v2049_v16 = vld [vmem:[#allocation6 + $0x40] sm:$0xff]  ;;  %v2042_v18 = vld [vmem:[#allocation6 + $0x8] sm:$0xff] }
 0x110   :  { %1920 = vmatprep.mubr.bf16.mxu0 %v11489_v19  ;;  %2006 = vmatprep.mubr.bf16.mxu1 %v11489_v19  ;;  %v9967_v19 = vcombine.high %v238_v56, %v242_v48  ;;  %v305_v56 = vld [vmem:[#allocation2 + $0x730] sm:$0xff]  ;;  %v302_v48 = vld [vmem:[#allocation2 + $0x718] sm:$0xff] }
 0x112   :  { %1891 = vmatpush1.bf16.msra.mxu0 %v9940_v35  ;;  %1977 = vmatpush1.bf16.msra.mxu1 %v9942_v36  ;;  %v290_v35 = vld [vmem:[#allocation2 + $0x6b8] sm:$0xff]  ;;  %v10004_v36 = vcombine.low %v277_v24, %v281_v25  ;;  %v2057_v25 = vld [vmem:[#allocation6 + $0x80] sm:$0xff] }
 0x113   :  { %1892 = vmatprep.subr.bf16.mxu0 %v9949_v37  ;;  %1978 = vmatprep.subr.bf16.mxu1 %v9951_v38  ;;  %v10006_v37 = vcombine.low %v278_v26, %v282_v27  ;;  %v10013_v38 = vcombine.high %v285_v32, %v289_v33  ;;  %v10015_v39 = vcombine.high %v286_v34, %v290_v35  ;;  %v2065_v26 = vld [vmem:[#allocation6 + $0xc0] sm:$0xff]  ;;  %v2058_v27 = vld [vmem:[#allocation6 + $0x88] sm:$0xff] }
 0x116   :  { %1893 = vmatpush1.bf16.msra.mxu0 %v9948_v43  ;;  %1979 = vmatpush1.bf16.msra.mxu1 %v9950_v10  ;;  %v298_v43 = vld [vmem:[#allocation2 + $0x6f8] sm:$0xff]  ;;  %v10012_v10 = vcombine.low %v285_v32, %v289_v33  ;;  %v2073_v33 = vld [vmem:[#allocation6 + $0x100] sm:$0xff] }
 0x117   :  { %1894 = vmatprep.subr.bf16.mxu0 %v9957_v44  ;;  %1980 = vmatprep.subr.bf16.mxu1 %v9959_v45  ;;  %v10014_v44 = vcombine.low %v286_v34, %v290_v35  ;;  %v10021_v45 = vcombine.high %v293_v40, %v297_v41  ;;  %v10023_v46 = vcombine.high %v294_v42, %v298_v43  ;;  %v2081_v34 = vld [vmem:[#allocation6 + $0x140] sm:$0xff]  ;;  %v2074_v35 = vld [vmem:[#allocation6 + $0x108] sm:$0xff] }
 0x11a   :  { %1895 = vmatpush1.bf16.msra.mxu0 %v9956_v49  ;;  %1981 = vmatpush1.bf16.msra.mxu1 %v9958_v50  ;;  %v306_v49 = vld [vmem:[#allocation2 + $0x738] sm:$0xff]  ;;  %v10020_v50 = vcombine.low %v293_v40, %v297_v41  ;;  %v2089_v41 = vld [vmem:[#allocation6 + $0x180] sm:$0xff] }
 0x11b   :  { %1896 = vmatprep.subr.bf16.mxu0 %v9965_v51  ;;  %1982 = vmatprep.subr.bf16.mxu1 %v9967_v19  ;;  %v10022_v51 = vcombine.low %v294_v42, %v298_v43  ;;  %v10029_v19 = vcombine.high %v301_v47, %v305_v56  ;;  %v10031_v52 = vcombine.high %v302_v48, %v306_v49  ;;  %v2097_v42 = vld [vmem:[#allocation6 + $0x1c0] sm:$0xff]  ;;  %v2090_v43 = vld [vmem:[#allocation6 + $0x188] sm:$0xff] }
 0x11e   :  { %1897 = vmatpush1.bf16.msra.mxu0 %v9964_v57  ;;  %1983 = vmatpush1.bf16.msra.mxu1 %v9966_v58  ;;  %v314_v57 = vld [vmem:[#allocation2 + $0x778] sm:$0xff]  ;;  %v10028_v58 = vcombine.low %v301_v47, %v305_v56  ;;  %v2105_v47 = vld [vmem:[#allocation6 + $0x200] sm:$0xff] }
 0x11f   :  { %1898 = vmatprep.subr.bf16.mxu0 %v9973_v59  ;;  %1984 = vmatprep.subr.bf16.mxu1 %v9975_v60  ;;  %v10030_v59 = vcombine.low %v302_v48, %v306_v49  ;;  %v10037_v60 = vcombine.high %v309_v53, %v313_v54  ;;  %v10039_v61 = vcombine.high %v310_v55, %v314_v57  ;;  %v2113_v56 = vld [vmem:[#allocation6 + $0x240] sm:$0xff]  ;;  %v2106_v48 = vld [vmem:[#allocation6 + $0x208] sm:$0xff] }
 0x120   :  { %v2114_v49 = vld [vmem:[#allocation6 + $0x248] sm:$0xff] }
 0x122   :  { %1899 = vmatpush1.bf16.msra.mxu0 %v9972_v1  ;;  %1985 = vmatpush1.bf16.msra.mxu1 %v9974_v2  ;;  %v322_v1 = vld [vmem:[#allocation2 + $0x7b8] sm:$0xff]  ;;  %v10036_v2 = vcombine.low %v309_v53, %v313_v54  ;;  %v2121_v53 = vld [vmem:[#allocation6 + $0x280] sm:$0xff] }
 0x123   :  { %1900 = vmatprep.subr.bf16.mxu0 %v9981_v3  ;;  %1986 = vmatprep.subr.bf16.mxu1 %v9983_v4  ;;  %v10038_v3 = vcombine.low %v310_v55, %v314_v57  ;;  %v10045_v4 = vcombine.high %v317_v62, %v321_v63  ;;  %v10047_v5 = vcombine.high %v318_v0, %v322_v1  ;;  %v2129_v54 = vld [vmem:[#allocation6 + $0x2c0] sm:$0xff]  ;;  %v2122_v55 = vld [vmem:[#allocation6 + $0x288] sm:$0xff] }
 0x124   :  { %v2130_v57 = vld [vmem:[#allocation6 + $0x2c8] sm:$0xff] }
 0x126   :  { %1901 = vmatpush1.bf16.msra.mxu0 %v9980_v9  ;;  %1987 = vmatpush1.bf16.msra.mxu1 %v9982_v11  ;;  %v330_v9 = vld [vmem:[#allocation2 + $0x7f8] sm:$0xff]  ;;  %v10044_v11 = vcombine.low %v317_v62, %v321_v63  ;;  %v2137_v62 = vld [vmem:[#allocation6 + $0x300] sm:$0xff] }
 0x127   :  { %1902 = vmatprep.subr.bf16.mxu0 %v9989_v12  ;;  %1988 = vmatprep.subr.bf16.mxu1 %v9991_v13  ;;  %v10046_v12 = vcombine.low %v318_v0, %v322_v1  ;;  %v10053_v13 = vcombine.high %v325_v6, %v329_v7  ;;  %v10055_v14 = vcombine.high %v326_v8, %v330_v9  ;;  %v2145_v63 = vld [vmem:[#allocation6 + $0x340] sm:$0xff]  ;;  %v2138_v0 = vld [vmem:[#allocation6 + $0x308] sm:$0xff] }
 0x128   :  { %v2146_v1 = vld [vmem:[#allocation6 + $0x348] sm:$0xff] }
 0x12a   :  { %1903 = vmatpush1.bf16.msra.mxu0 %v9988_v20  ;;  %1989 = vmatpush1.bf16.msra.mxu1 %v9990_v21  ;;  %v2050_v20 = vld [vmem:[#allocation6 + $0x48] sm:$0xff]  ;;  %v10052_v21 = vcombine.low %v325_v6, %v329_v7  ;;  %v2153_v6 = vld [vmem:[#allocation6 + $0x380] sm:$0xff] }
 0x12b   :  { %1904 = vmatprep.subr.bf16.mxu0 %v9997_v22  ;;  %1990 = vmatprep.subr.bf16.mxu1 %v9999_v23  ;;  %v10054_v22 = vcombine.low %v326_v8, %v330_v9  ;;  %v10057_v23 = vcombine.high %v2041_v15, %v2049_v16  ;;  %v10059_v24 = vcombine.high %v2042_v18, %v2050_v20  ;;  %v2161_v7 = vld [vmem:[#allocation6 + $0x3c0] sm:$0xff]  ;;  %v2154_v8 = vld [vmem:[#allocation6 + $0x388] sm:$0xff] }
 0x12c   :  { %v2162_v9 = vld [vmem:[#allocation6 + $0x3c8] sm:$0xff] }
 0x12e   :  { %1905 = vmatpush1.bf16.msra.mxu0 %v9996_v28  ;;  %1991 = vmatpush1.bf16.msra.mxu1 %v9998_v29  ;;  %v2066_v28 = vld [vmem:[#allocation6 + $0xc8] sm:$0xff]  ;;  %v10056_v29 = vcombine.low %v2041_v15, %v2049_v16  ;;  %v2169_v15 = vld [vmem:[#allocation6 + $0x400] sm:$0xff] }
 0x12f   :  { %1906 = vmatprep.subr.bf16.mxu0 %v10005_v30  ;;  %1992 = vmatprep.subr.bf16.mxu1 %v10007_v31  ;;  %v10058_v30 = vcombine.low %v2042_v18, %v2050_v20  ;;  %v10073_v31 = vcombine.high %v2057_v25, %v2065_v26  ;;  %v10075_v32 = vcombine.high %v2058_v27, %v2066_v28  ;;  %v2177_v16 = vld [vmem:[#allocation6 + $0x440] sm:$0xff]  ;;  %v2170_v18 = vld [vmem:[#allocation6 + $0x408] sm:$0xff] }
 0x130   :  { %v2178_v20 = vld [vmem:[#allocation6 + $0x448] sm:$0xff] }
 0x132   :  { %1907 = vmatpush1.bf16.msra.mxu0 %v10004_v36  ;;  %1993 = vmatpush1.bf16.msra.mxu1 %v10006_v37  ;;  %v2082_v36 = vld [vmem:[#allocation6 + $0x148] sm:$0xff]  ;;  %v10072_v37 = vcombine.low %v2057_v25, %v2065_v26  ;;  %v2185_v25 = vld [vmem:[#allocation6 + $0x480] sm:$0xff] }
 0x133   :  { %1908 = vmatprep.subr.bf16.mxu0 %v10013_v38  ;;  %1994 = vmatprep.subr.bf16.mxu1 %v10015_v39  ;;  %v10074_v38 = vcombine.low %v2058_v27, %v2066_v28  ;;  %v10089_v39 = vcombine.high %v2073_v33, %v2081_v34  ;;  %v10091_v40 = vcombine.high %v2074_v35, %v2082_v36  ;;  %v2193_v26 = vld [vmem:[#allocation6 + $0x4c0] sm:$0xff]  ;;  %v2186_v27 = vld [vmem:[#allocation6 + $0x488] sm:$0xff] }
 0x134   :  { %v2194_v28 = vld [vmem:[#allocation6 + $0x4c8] sm:$0xff] }
 0x136   :  { %1909 = vmatpush1.bf16.msra.mxu0 %v10012_v10  ;;  %1995 = vmatpush1.bf16.msra.mxu1 %v10014_v44  ;;  %v2098_v10 = vld [vmem:[#allocation6 + $0x1c8] sm:$0xff]  ;;  %v10088_v44 = vcombine.low %v2073_v33, %v2081_v34  ;;  %v2201_v33 = vld [vmem:[#allocation6 + $0x500] sm:$0xff] }
 0x137   :  { %1910 = vmatprep.subr.bf16.mxu0 %v10021_v45  ;;  %1996 = vmatprep.subr.bf16.mxu1 %v10023_v46  ;;  %v10090_v45 = vcombine.low %v2074_v35, %v2082_v36  ;;  %v10105_v46 = vcombine.high %v2089_v41, %v2097_v42  ;;  %v2209_v34 = vld [vmem:[#allocation6 + $0x540] sm:$0xff]  ;;  %v2202_v35 = vld [vmem:[#allocation6 + $0x508] sm:$0xff] }
 0x138   :  { %v2210_v36 = vld [vmem:[#allocation6 + $0x548] sm:$0xff] }
 0x13a   :  { %1911 = vmatpush1.bf16.msra.mxu0 %v10020_v50  ;;  %1997 = vmatpush1.bf16.msra.mxu1 %v10022_v51  ;;  %v10104_v50 = vcombine.low %v2089_v41, %v2097_v42  ;;  %v10106_v51 = vcombine.low %v2090_v43, %v2098_v10  ;;  %v2217_v41 = vld [vmem:[#allocation6 + $0x580] sm:$0xff] }
 0x13b   :  { %1912 = vmatprep.subr.bf16.mxu0 %v10029_v19  ;;  %1998 = vmatprep.subr.bf16.mxu1 %v10031_v52  ;;  %v10121_v19 = vcombine.high %v2105_v47, %v2113_v56  ;;  %v10123_v52 = vcombine.high %v2106_v48, %v2114_v49  ;;  %v2225_v42 = vld [vmem:[#allocation6 + $0x5c0] sm:$0xff] }
 0x13e   :  { %1913 = vmatpush1.bf16.msra.mxu0 %v10028_v58  ;;  %1999 = vmatpush1.bf16.msra.mxu1 %v10030_v59  ;;  %v10120_v58 = vcombine.low %v2105_v47, %v2113_v56  ;;  %v10122_v59 = vcombine.low %v2106_v48, %v2114_v49  ;;  %v2233_v47 = vld [vmem:[#allocation6 + $0x600] sm:$0xff]  ;;  %v2234_v48 = vld [vmem:[#allocation6 + $0x608] sm:$0xff] }
 0x13f   :  { %1914 = vmatprep.subr.bf16.mxu0 %v10037_v60  ;;  %2000 = vmatprep.subr.bf16.mxu1 %v10039_v61  ;;  %v10137_v60 = vcombine.high %v2121_v53, %v2129_v54  ;;  %v10139_v61 = vcombine.high %v2122_v55, %v2130_v57  ;;  %v2241_v56 = vld [vmem:[#allocation6 + $0x640] sm:$0xff]  ;;  %v2242_v49 = vld [vmem:[#allocation6 + $0x648] sm:$0xff] }
 0x142   :  { %1915 = vmatpush1.bf16.msra.mxu0 %v10036_v2  ;;  %2001 = vmatpush1.bf16.msra.mxu1 %v10038_v3  ;;  %v10136_v2 = vcombine.low %v2121_v53, %v2129_v54  ;;  %v10138_v3 = vcombine.low %v2122_v55, %v2130_v57  ;;  %v2249_v53 = vld [vmem:[#allocation6 + $0x680] sm:$0xff]  ;;  %v2250_v55 = vld [vmem:[#allocation6 + $0x688] sm:$0xff] }
 0x143   :  { %1916 = vmatprep.subr.bf16.mxu0 %v10045_v4  ;;  %2002 = vmatprep.subr.bf16.mxu1 %v10047_v5  ;;  %v10153_v4 = vcombine.high %v2137_v62, %v2145_v63  ;;  %v10155_v5 = vcombine.high %v2138_v0, %v2146_v1  ;;  %v2257_v54 = vld [vmem:[#allocation6 + $0x6c0] sm:$0xff]  ;;  %v2258_v57 = vld [vmem:[#allocation6 + $0x6c8] sm:$0xff] }
 0x146   :  { %1917 = vmatpush1.bf16.msra.mxu0 %v10044_v11  ;;  %2003 = vmatpush1.bf16.msra.mxu1 %v10046_v12  ;;  %v10152_v11 = vcombine.low %v2137_v62, %v2145_v63  ;;  %v10154_v12 = vcombine.low %v2138_v0, %v2146_v1  ;;  %v2265_v62 = vld [vmem:[#allocation6 + $0x700] sm:$0xff]  ;;  %v2266_v0 = vld [vmem:[#allocation6 + $0x708] sm:$0xff] }
 0x147   :  { %1918 = vmatprep.subr.bf16.mxu0 %v10053_v13  ;;  %2004 = vmatprep.subr.bf16.mxu1 %v10055_v14  ;;  %v10169_v13 = vcombine.high %v2153_v6, %v2161_v7  ;;  %v10171_v14 = vcombine.high %v2154_v8, %v2162_v9  ;;  %v2273_v63 = vld [vmem:[#allocation6 + $0x740] sm:$0xff]  ;;  %v2274_v1 = vld [vmem:[#allocation6 + $0x748] sm:$0xff] }
 0x14a   :  { %1919 = vmatpush1.bf16.msra.mxu0 %v10052_v21  ;;  %2005 = vmatpush1.bf16.msra.mxu1 %v10054_v22  ;;  %v10168_v21 = vcombine.low %v2153_v6, %v2161_v7  ;;  %v10170_v22 = vcombine.low %v2154_v8, %v2162_v9  ;;  %v2281_v6 = vld [vmem:[#allocation6 + $0x780] sm:$0xff]  ;;  %v2282_v8 = vld [vmem:[#allocation6 + $0x788] sm:$0xff] }
 0x14b   :  { %8269 = vmatprep.subr.bf16.mxu0 %v10057_v23  ;;  %8441 = vmatprep.subr.bf16.mxu1 %v10059_v24  ;;  %v10185_v23 = vcombine.high %v2169_v15, %v2177_v16  ;;  %v10187_v24 = vcombine.high %v2170_v18, %v2178_v20  ;;  %v2289_v7 = vld [vmem:[#allocation6 + $0x7c0] sm:$0xff]  ;;  %v2290_v9 = vld [vmem:[#allocation6 + $0x7c8] sm:$0xff] }
 0x14d   :  { %1921 = vmatmul.mubr.bf16.vlgmr.msra.gmra.mrb[4].mxu0 %v11498_v17  ;;  %2007 = vmatmul.mubr.bf16.vlgmr.msra.gmra.mrb[4].mxu1 %v11498_v17  ;;  %v10107_v17 = vcombine.high %v2090_v43, %v2098_v10  ;;  %v2218_v43 = vld [vmem:[#allocation6 + $0x588] sm:$0xff] }
 0x14e   :  { %8270 = vmatpush1.bf16.msra.mxu0 %v10056_v29  ;;  %8442 = vmatpush1.bf16.msra.mxu1 %v10058_v30  ;;  %v10184_v29 = vcombine.low %v2169_v15, %v2177_v16  ;;  %v10186_v30 = vcombine.low %v2170_v18, %v2178_v20  ;;  %v2226_v10 = vld [vmem:[#allocation6 + $0x5c8] sm:$0xff]  ;;  %v11510_v15 = vld [vmem:[#allocation6 + $0x800] sm:$0xff] }
 0x14f   :  { %8271 = vmatprep.subr.bf16.mxu0 %v10073_v31  ;;  %8443 = vmatprep.subr.bf16.mxu1 %v10075_v32  ;;  %v10201_v31 = vcombine.high %v2185_v25, %v2193_v26  ;;  %v10203_v32 = vcombine.high %v2186_v27, %v2194_v28  ;;  %v11512_v16 = vld [vmem:[#allocation6 + $0x840] sm:$0xff]  ;;  %v11514_v18 = vld [vmem:[#allocation6 + $0x808] sm:$0xff] }
 0x150   :  { %v11516_v20 = vld [vmem:[#allocation6 + $0x848] sm:$0xff] }
 0x152   :  { %8272 = vmatpush1.bf16.msra.mxu0 %v10072_v37  ;;  %8444 = vmatpush1.bf16.msra.mxu1 %v10074_v38  ;;  %v10200_v37 = vcombine.low %v2185_v25, %v2193_v26  ;;  %v10202_v38 = vcombine.low %v2186_v27, %v2194_v28  ;;  %v333_v25 = vlaneseq  ;;  %v11527_v28 = vld [vmem:[#allocation4] sm:$0xff] }
 0x153   :  { %8273 = vmatprep.subr.bf16.mxu0 %v10089_v39  ;;  %8445 = vmatprep.subr.bf16.mxu1 %v10091_v40  ;;  %v10217_v39 = vcombine.high %v2201_v33, %v2209_v34  ;;  %v10219_v40 = vcombine.high %v2202_v35, %v2210_v36 }
 0x154   :  { %v11522_v26 = vshrl.u32 %v333_v25, 7  ;;  %v2369_v25 = vld [vmem:[#allocation6 + $0xa40] sm:$0xff] }
 0x156   :  { %8274 = vmatpush1.bf16.msra.mxu0 %v10088_v44  ;;  %8446 = vmatpush1.bf16.msra.mxu1 %v10090_v45  ;;  %v10216_v44 = vcombine.low %v2201_v33, %v2209_v34  ;;  %v10218_v45 = vcombine.low %v2202_v35, %v2210_v36  ;;  %v11525_v27 = vsub.s32 0, %v11522_v26 }
 0x157   :  { %8275 = vmatprep.subr.bf16.mxu0 %v10105_v46  ;;  %8447 = vmatprep.subr.bf16.mxu1 %v10107_v17  ;;  %v10233_v46 = vcombine.high %v2217_v41, %v2225_v42  ;;  %v10235_v17 = vcombine.high %v2218_v43, %v2226_v10 }
 0x15a   :  { %8276 = vmatpush1.bf16.msra.mxu0 %v10104_v50  ;;  %8448 = vmatpush1.bf16.msra.mxu1 %v10106_v51  ;;  %v10232_v50 = vcombine.low %v2217_v41, %v2225_v42  ;;  %v10234_v51 = vcombine.low %v2218_v43, %v2226_v10 }
 0x15b   :  { %8277 = vmatprep.subr.bf16.mxu0 %v10121_v19  ;;  %8449 = vmatprep.subr.bf16.mxu1 %v10123_v52  ;;  %v10249_v19 = vcombine.high %v2233_v47, %v2241_v56  ;;  %v10251_v52 = vcombine.high %v2234_v48, %v2242_v49 }
 0x15e   :  { %8278 = vmatpush1.bf16.msra.mxu0 %v10120_v58  ;;  %8450 = vmatpush1.bf16.msra.mxu1 %v10122_v59  ;;  %v10248_v58 = vcombine.low %v2233_v47, %v2241_v56  ;;  %v10250_v59 = vcombine.low %v2234_v48, %v2242_v49 }
 0x15f   :  { %8279 = vmatprep.subr.bf16.mxu0 %v10137_v60  ;;  %8451 = vmatprep.subr.bf16.mxu1 %v10139_v61  ;;  %v10265_v60 = vcombine.high %v2249_v53, %v2257_v54  ;;  %v10267_v61 = vcombine.high %v2250_v55, %v2258_v57 }
 0x162   :  { %8280 = vmatpush1.bf16.msra.mxu0 %v10136_v2  ;;  %8452 = vmatpush1.bf16.msra.mxu1 %v10138_v3  ;;  %v10264_v2 = vcombine.low %v2249_v53, %v2257_v54  ;;  %v10266_v3 = vcombine.low %v2250_v55, %v2258_v57  ;;  %v2313_v54 = vld [vmem:[#allocation6 + $0x880] sm:$0xff] }
 0x163   :  { %8281 = vmatprep.subr.bf16.mxu0 %v10153_v4  ;;  %8453 = vmatprep.subr.bf16.mxu1 %v10155_v5  ;;  %v10281_v4 = vcombine.high %v2265_v62, %v2273_v63  ;;  %v10283_v5 = vcombine.high %v2266_v0, %v2274_v1 }
 0x166   :  { %8282 = vmatpush1.bf16.msra.mxu0 %v10152_v11  ;;  %8454 = vmatpush1.bf16.msra.mxu1 %v10154_v12  ;;  %v10280_v11 = vcombine.low %v2265_v62, %v2273_v63  ;;  %v10282_v12 = vcombine.low %v2266_v0, %v2274_v1  ;;  %v10312_v0 = vcombine.low %v11510_v15, %v11512_v16 }
 0x167   :  { %8283 = vmatprep.subr.bf16.mxu0 %v10169_v13  ;;  %8455 = vmatprep.subr.bf16.mxu1 %v10171_v14  ;;  %v10297_v13 = vcombine.high %v2281_v6, %v2289_v7  ;;  %v10299_v14 = vcombine.high %v2282_v8, %v2290_v9  ;;  %v10314_v1 = vcombine.low %v11514_v18, %v11516_v20 }
 0x16a   :  { %8284 = vmatpush1.bf16.msra.mxu0 %v10168_v21  ;;  %8456 = vmatpush1.bf16.msra.mxu1 %v10170_v22  ;;  %v10296_v21 = vcombine.low %v2281_v6, %v2289_v7  ;;  %v10298_v22 = vcombine.low %v2282_v8, %v2290_v9  ;;  %v2337_v6 = vld [vmem:[#allocation6 + $0x940] sm:$0xff]  ;;  %v2330_v7 = vld [vmem:[#allocation6 + $0x908] sm:$0xff] }
 0x16b   :  { %8285 = vmatprep.subr.bf16.mxu0 %v10185_v23  ;;  %8457 = vmatprep.subr.bf16.mxu1 %v10187_v24  ;;  %v10313_v23 = vcombine.high %v11510_v15, %v11512_v16  ;;  %v10315_v24 = vcombine.high %v11514_v18, %v11516_v20  ;;  %v2338_v8 = vld [vmem:[#allocation6 + $0x948] sm:$0xff]  ;;  %v2353_v15 = vld [vmem:[#allocation6 + $0x9c0] sm:$0xff] }
 0x16c   :  { %v2346_v16 = vld [vmem:[#allocation6 + $0x988] sm:$0xff] }
 0x16d   :  { %v2354_v18 = vld [vmem:[#allocation6 + $0x9c8] sm:$0xff] }
 0x16e   :  { %8286 = vmatpush1.bf16.msra.mxu0 %v10184_v29  ;;  %8458 = vmatpush1.bf16.msra.mxu1 %v10186_v30  ;;  %v11530_v29 = vsub.s32 2, %v11522_v26  ;;  %v11533_v30 = vsub.s32 1, %v11522_v26 }
 0x16f   :  { %8287 = vmatprep.subr.bf16.mxu0 %v10201_v31  ;;  %8459 = vmatprep.subr.bf16.mxu1 %v10203_v32  ;;  %v11536_v31 = vsub.s32 3, %v11522_v26  ;;  %v336_v32 = vrot.slane %v11527_v28, %v11525_v27 }
 0x170   :  { %v344_v33 = vrot.slane %v11527_v28, %v11530_v29  ;;  %v340_v34 = vrot.slane %v11527_v28, %v11533_v30 }
 0x171   :  { %v348_v35 = vrot.slane %v11527_v28, %v11536_v31 }
 0x172   :  { %8288 = vmatpush1.bf16.msra.mxu0 %v10200_v37  ;;  %8460 = vmatpush1.bf16.msra.mxu1 %v10202_v38 }
 0x173   :  { %8289 = vmatprep.subr.bf16.mxu0 %v10217_v39  ;;  %8461 = vmatprep.subr.bf16.mxu1 %v10219_v40 }
 0x176   :  { %8290 = vmatpush1.bf16.msra.mxu0 %v10216_v44  ;;  %8462 = vmatpush1.bf16.msra.mxu1 %v10218_v45 }
 0x177   :  { %8291 = vmatprep.subr.bf16.mxu0 %v10233_v46  ;;  %8463 = vmatprep.subr.bf16.mxu1 %v10235_v17 }
 0x17a   :  { %8292 = vmatpush1.bf16.msra.mxu0 %v10232_v50  ;;  %8464 = vmatpush1.bf16.msra.mxu1 %v10234_v51 }
 0x17b   :  { %8293 = vmatprep.subr.bf16.mxu0 %v10249_v19  ;;  %8465 = vmatprep.subr.bf16.mxu1 %v10251_v52 }
 0x17e   :  { %8294 = vmatpush1.bf16.msra.mxu0 %v10248_v58  ;;  %8466 = vmatpush1.bf16.msra.mxu1 %v10250_v59  ;;  %v2321_v59 = vld [vmem:[#allocation6 + $0x8c0] sm:$0xff] }
 0x17f   :  { %8295 = vmatprep.subr.bf16.mxu0 %v10265_v60  ;;  %8467 = vmatprep.subr.bf16.mxu1 %v10267_v61  ;;  %v2314_v60 = vld [vmem:[#allocation6 + $0x888] sm:$0xff]  ;;  %v10328_v9 = vcombine.low %v2313_v54, %v2321_v59 }
 0x180   :  { %v2322_v61 = vld [vmem:[#allocation6 + $0x8c8] sm:$0xff] }
 0x182   :  { %8296 = vmatpush1.bf16.msra.mxu0 %v10264_v2  ;;  %8468 = vmatpush1.bf16.msra.mxu1 %v10266_v3  ;;  %v2329_v3 = vld [vmem:[#allocation6 + $0x900] sm:$0xff] }
 0x183   :  { %8297 = vmatprep.subr.bf16.mxu0 %v10281_v4  ;;  %8469 = vmatprep.subr.bf16.mxu1 %v10283_v5  ;;  %v10329_v4 = vcombine.high %v2313_v54, %v2321_v59  ;;  %v10331_v5 = vcombine.high %v2314_v60, %v2322_v61  ;;  %v10344_v20 = vcombine.low %v2329_v3, %v2337_v6 }
 0x186   :  { %8298 = vmatpush1.bf16.msra.mxu0 %v10280_v11  ;;  %8470 = vmatpush1.bf16.msra.mxu1 %v10282_v12  ;;  %v10330_v11 = vcombine.low %v2314_v60, %v2322_v61  ;;  %v10345_v12 = vcombine.high %v2329_v3, %v2337_v6  ;;  %v2425_v60 = vld [vmem:[#allocation6 + $0xc00] sm:$0xff] }
 0x187   :  { %8299 = vmatprep.subr.bf16.mxu0 %v10297_v13  ;;  %8471 = vmatprep.subr.bf16.mxu1 %v10299_v14  ;;  %v10347_v13 = vcombine.high %v2330_v7, %v2338_v8  ;;  %v2345_v14 = vld [vmem:[#allocation6 + $0x980] sm:$0xff] }
 0x188   :  { %v2433_v61 = vld [vmem:[#allocation6 + $0xc40] sm:$0xff] }
 0x18a   :  { %8300 = vmatpush1.bf16.msra.mxu0 %v10296_v21  ;;  %8472 = vmatpush1.bf16.msra.mxu1 %v10298_v22  ;;  %v10346_v21 = vcombine.low %v2330_v7, %v2338_v8  ;;  %v10361_v22 = vcombine.high %v2345_v14, %v2353_v15  ;;  %v2441_v7 = vld [vmem:[#allocation6 + $0xc80] sm:$0xff] }
 0x18b   :  { %8312 = vmatprep.subr.bf16.mxu0 %v10313_v23  ;;  %8484 = vmatprep.subr.bf16.mxu1 %v10315_v24  ;;  %v10363_v23 = vcombine.high %v2346_v16, %v2354_v18  ;;  %v2361_v24 = vld [vmem:[#allocation6 + $0xa00] sm:$0xff] }
 0x18c   :  { %v2449_v8 = vld [vmem:[#allocation6 + $0xcc0] sm:$0xff] }
 0x1a0   :  { %v1750_v36 = vpop.f32.mrb[0].mxu0  ;;  %v1836_v38 = vpop.f32.mrb[0].mxu1 }
 0x1a1   :  { %v11112_v37 = vadd.f32 %v1750_v36, %v336_v32  ;;  %v1752_v39 = vpop.f32.mrb[1].mxu0  ;;  %v11116_v40 = vadd.f32 %v1836_v38, %v344_v33  ;;  %v1838_v42 = vpop.f32.mrb[1].mxu1  ;;  %v10377_v36 = vcombine.high %v2361_v24, %v2369_v25  ;;  %v2377_v38 = vld [vmem:[#allocation6 + $0xa80] sm:$0xff] }
 0x1a2   :  { %v11113_v41 = vadd.f32 %v1752_v39, %v340_v34  ;;  %v1754_v43 = vpop.f32.mrb[2].mxu0  ;;  %v11117_v10 = vadd.f32 %v1838_v42, %v348_v35  ;;  %v1840_v45 = vpop.f32.mrb[2].mxu1  ;;  %v2385_v39 = vld [vmem:[#allocation6 + $0xac0] sm:$0xff]  ;;  %v10376_v42 = vcombine.low %v2361_v24, %v2369_v25 }
 0x1a3   :  { %v11114_v44 = vadd.f32 %v1754_v43, %v336_v32  ;;  %v1756_v46 = vpop.f32.mrb[3].mxu0  ;;  %v11118_v17 = vadd.f32 %v1840_v45, %v344_v33  ;;  %v1842_v56 = vpop.f32.mrb[3].mxu1  ;;  %v2017_v48 = vmax.f32 %v11112_v37, 0.0  ;;  %v2019_v51 = vmax.f32 %v11116_v40, 0.0  ;;  %v2362_v32 = vld [vmem:[#allocation6 + $0xa08] sm:$0xff]  ;;  %v2393_v45 = vld [vmem:[#allocation6 + $0xb00] sm:$0xff] }
 0x1a4   :  { %v11115_v47 = vadd.f32 %v1756_v46, %v340_v34  ;;  %v11119_v50 = vadd.f32 %v1842_v56, %v348_v35  ;;  %v2018_v19 = vmax.f32 %v11113_v41, 0.0  ;;  %v2020_v55 = vmax.f32 %v11117_v10, 0.0  ;;  %v2370_v33 = vld [vmem:[#allocation6 + $0xa48] sm:$0xff]  ;;  %v2401_v46 = vld [vmem:[#allocation6 + $0xb40] sm:$0xff] }
 0x1a5   :  { %v2025_v49 = vmax.f32 %v11114_v44, 0.0  ;;  %v2027_v52 = vmax.f32 %v11118_v17, 0.0  ;;  %v10360_v34 = vcombine.low %v2345_v14, %v2353_v15  ;;  %v10362_v35 = vcombine.low %v2346_v16, %v2354_v18  ;;  %v2378_v40 = vld [vmem:[#allocation6 + $0xa88] sm:$0xff]  ;;  %v2457_v16 = vld [vmem:[#allocation6 + $0xd00] sm:$0xff] }
 0x1a6   :  { %v2026_v53 = vmax.f32 %v11115_v47, 0.0  ;;  %v2028_v58 = vmax.f32 %v11119_v50, 0.0  ;;  %v10379_v37 = vcombine.high %v2362_v32, %v2370_v33  ;;  %v2386_v41 = vld [vmem:[#allocation6 + $0xac8] sm:$0xff]  ;;  %v10378_v43 = vcombine.low %v2362_v32, %v2370_v33  ;;  %v2465_v18 = vld [vmem:[#allocation6 + $0xd40] sm:$0xff] }
 0x1a7   :  { %v11546_v57 = vpack.c.bf16 %v2025_v49, %v2017_v48  ;;  %v11548_v62 = vpack.c.bf16 %v2027_v52, %v2019_v51  ;;  %v10393_v10 = vcombine.high %v2377_v38, %v2385_v39  ;;  %v10395_v44 = vcombine.high %v2378_v40, %v2386_v41  ;;  %v2394_v17 = vld [vmem:[#allocation6 + $0xb08] sm:$0xff]  ;;  %v2409_v51 = vld [vmem:[#allocation6 + $0xb80] sm:$0xff] }
 0x1a8   :  { %v11550_v63 = vpack.c.bf16 %v2026_v53, %v2018_v19  ;;  %v11556_v2 = vpack.c.bf16 %v2028_v58, %v2020_v55  ;;  %v2402_v47 = vld [vmem:[#allocation6 + $0xb48] sm:$0xff]  ;;  %v10392_v56 = vcombine.low %v2377_v38, %v2385_v39  ;;  %v10394_v48 = vcombine.low %v2378_v40, %v2386_v41  ;;  %v2417_v19 = vld [vmem:[#allocation6 + $0xbc0] sm:$0xff] }
 0x1a9   :  { %v10409_v49 = vcombine.high %v2393_v45, %v2401_v46  ;;  %v10411_v50 = vcombine.high %v2394_v17, %v2402_v47  ;;  %v2410_v52 = vld [vmem:[#allocation6 + $0xb88] sm:$0xff]  ;;  %v10408_v54 = vcombine.low %v2393_v45, %v2401_v46  ;;  %v10410_v55 = vcombine.low %v2394_v17, %v2402_v47  ;;  %v2473_v32 = vld [vmem:[#allocation6 + $0xd80] sm:$0xff] }
 0x1aa   :  { %8301 = vmatprep.mubr.bf16.mxu0 %v11550_v63  ;;  %8473 = vmatprep.mubr.bf16.mxu1 %v11550_v63  ;;  %v2418_v53 = vld [vmem:[#allocation6 + $0xbc8] sm:$0xff]  ;;  %v10425_v58 = vcombine.high %v2409_v51, %v2417_v19  ;;  %v10424_v3 = vcombine.low %v2409_v51, %v2417_v19  ;;  %v10457_v14 = vcombine.high %v2441_v7, %v2449_v8  ;;  %v2481_v33 = vld [vmem:[#allocation6 + $0xdc0] sm:$0xff] }
 0x1ab   :  { %8302 = vmatmul.mubr.bf16.vlgmr.msra.gmra.mrb[8].mxu0 %v11546_v57  ;;  %8474 = vmatmul.mubr.bf16.vlgmr.msra.gmra.mrb[8].mxu1 %v11546_v57  ;;  %v10427_v59 = vcombine.high %v2410_v52, %v2418_v53  ;;  %v10473_v24 = vcombine.high %v2457_v16, %v2465_v18  ;;  %v10489_v38 = vcombine.high %v2473_v32, %v2481_v33  ;;  %v2489_v40 = vld [vmem:[#allocation6 + $0xe00] sm:$0xff] }
 0x1ac   :  { %8313 = vmatpush1.bf16.msra.mxu0 %v10312_v0  ;;  %8485 = vmatpush1.bf16.msra.mxu1 %v10314_v1  ;;  %v2426_v0 = vld [vmem:[#allocation6 + $0xc08] sm:$0xff]  ;;  %v2497_v41 = vld [vmem:[#allocation6 + $0xe40] sm:$0xff] }
 0x1ad   :  { %8344 = vmatprep.mubr.bf16.mxu0 %v11556_v2  ;;  %8516 = vmatprep.mubr.bf16.mxu1 %v11556_v2  ;;  %v2434_v1 = vld [vmem:[#allocation6 + $0xc48] sm:$0xff]  ;;  %v10505_v45 = vcombine.high %v2489_v40, %v2497_v41  ;;  %v2505_v17 = vld [vmem:[#allocation6 + $0xe80] sm:$0xff] }
 0x1ae   :  { %8314 = vmatprep.subr.bf16.mxu0 %v10329_v4  ;;  %8486 = vmatprep.subr.bf16.mxu1 %v10331_v5  ;;  %v10426_v4 = vcombine.low %v2410_v52, %v2418_v53  ;;  %v10441_v5 = vcombine.high %v2425_v60, %v2433_v61  ;;  %v10443_v6 = vcombine.high %v2426_v0, %v2434_v1  ;;  %v2513_v47 = vld [vmem:[#allocation6 + $0xec0] sm:$0xff] }
 0x1af   :  { %v10521_v51 = vcombine.high %v2505_v17, %v2513_v47  ;;  %v2521_v52 = vld [vmem:[#allocation6 + $0xf00] sm:$0xff] }
 0x1b0   :  { %8315 = vmatpush1.bf16.msra.mxu0 %v10328_v9  ;;  %8487 = vmatpush1.bf16.msra.mxu1 %v10330_v11  ;;  %v2442_v9 = vld [vmem:[#allocation6 + $0xc88] sm:$0xff]  ;;  %v2529_v53 = vld [vmem:[#allocation6 + $0xf40] sm:$0xff] }
 0x1b1   :  { %8316 = vmatprep.subr.bf16.mxu0 %v10345_v12  ;;  %8488 = vmatprep.subr.bf16.mxu1 %v10347_v13  ;;  %v2450_v11 = vld [vmem:[#allocation6 + $0xcc8] sm:$0xff]  ;;  %v10440_v12 = vcombine.low %v2425_v60, %v2433_v61  ;;  %v10442_v13 = vcombine.low %v2426_v0, %v2434_v1  ;;  %v10537_v60 = vcombine.high %v2521_v52, %v2529_v53  ;;  %v2537_v0 = vld [vmem:[#allocation6 + $0xf80] sm:$0xff] }
 0x1b2   :  { %v10459_v15 = vcombine.high %v2442_v9, %v2450_v11  ;;  %v2545_v1 = vld [vmem:[#allocation6 + $0xfc0] sm:$0xff] }
 0x1b4   :  { %8317 = vmatpush1.bf16.msra.mxu0 %v10344_v20  ;;  %8489 = vmatpush1.bf16.msra.mxu1 %v10346_v21  ;;  %v2458_v20 = vld [vmem:[#allocation6 + $0xd08] sm:$0xff] }
 0x1b5   :  { %8318 = vmatprep.subr.bf16.mxu0 %v10361_v22  ;;  %8490 = vmatprep.subr.bf16.mxu1 %v10363_v23  ;;  %v2466_v21 = vld [vmem:[#allocation6 + $0xd48] sm:$0xff]  ;;  %v10456_v22 = vcombine.low %v2441_v7, %v2449_v8  ;;  %v10458_v23 = vcombine.low %v2442_v9, %v2450_v11  ;;  %v10553_v7 = vcombine.high %v2537_v0, %v2545_v1  ;;  %v2553_v9 = vld [vmem:[#allocation6 + $0x1000] sm:$0xff] }
 0x1b6   :  { %v10475_v25 = vcombine.high %v2458_v20, %v2466_v21  ;;  %v2561_v11 = vld [vmem:[#allocation6 + $0x1040] sm:$0xff] }
 0x1b8   :  { %8319 = vmatpush1.bf16.msra.mxu0 %v10360_v34  ;;  %8491 = vmatpush1.bf16.msra.mxu1 %v10362_v35  ;;  %v2474_v34 = vld [vmem:[#allocation6 + $0xd88] sm:$0xff] }
 0x1b9   :  { %8320 = vmatprep.subr.bf16.mxu0 %v10377_v36  ;;  %8492 = vmatprep.subr.bf16.mxu1 %v10379_v37  ;;  %v2482_v35 = vld [vmem:[#allocation6 + $0xdc8] sm:$0xff]  ;;  %v10472_v36 = vcombine.low %v2457_v16, %v2465_v18  ;;  %v10474_v37 = vcombine.low %v2458_v20, %v2466_v21  ;;  %v10569_v16 = vcombine.high %v2553_v9, %v2561_v11  ;;  %v2569_v20 = vld [vmem:[#allocation6 + $0x1080] sm:$0xff] }
 0x1ba   :  { %v10491_v39 = vcombine.high %v2474_v34, %v2482_v35  ;;  %v2577_v21 = vld [vmem:[#allocation6 + $0x10c0] sm:$0xff] }
 0x1bc   :  { %8321 = vmatpush1.bf16.msra.mxu0 %v10376_v42  ;;  %8493 = vmatpush1.bf16.msra.mxu1 %v10378_v43  ;;  %v2490_v42 = vld [vmem:[#allocation6 + $0xe08] sm:$0xff] }
 0x1bd   :  { %8322 = vmatprep.subr.bf16.mxu0 %v10393_v10  ;;  %8494 = vmatprep.subr.bf16.mxu1 %v10395_v44  ;;  %v2498_v43 = vld [vmem:[#allocation6 + $0xe48] sm:$0xff]  ;;  %v10488_v10 = vcombine.low %v2473_v32, %v2481_v33  ;;  %v10490_v44 = vcombine.low %v2474_v34, %v2482_v35  ;;  %v10585_v32 = vcombine.high %v2569_v20, %v2577_v21  ;;  %v2585_v34 = vld [vmem:[#allocation6 + $0x1100] sm:$0xff] }
 0x1be   :  { %v10507_v46 = vcombine.high %v2490_v42, %v2498_v43  ;;  %v2593_v35 = vld [vmem:[#allocation6 + $0x1140] sm:$0xff] }
 0x1c0   :  { %8323 = vmatpush1.bf16.msra.mxu0 %v10392_v56  ;;  %8495 = vmatpush1.bf16.msra.mxu1 %v10394_v48  ;;  %v2506_v56 = vld [vmem:[#allocation6 + $0xe88] sm:$0xff] }
 0x1c1   :  { %8324 = vmatprep.subr.bf16.mxu0 %v10409_v49  ;;  %8496 = vmatprep.subr.bf16.mxu1 %v10411_v50  ;;  %v2514_v48 = vld [vmem:[#allocation6 + $0xec8] sm:$0xff]  ;;  %v10504_v49 = vcombine.low %v2489_v40, %v2497_v41  ;;  %v10506_v50 = vcombine.low %v2490_v42, %v2498_v43  ;;  %v10601_v40 = vcombine.high %v2585_v34, %v2593_v35  ;;  %v2601_v42 = vld [vmem:[#allocation6 + $0x1180] sm:$0xff] }
 0x1c2   :  { %v10523_v19 = vcombine.high %v2506_v56, %v2514_v48  ;;  %v2609_v43 = vld [vmem:[#allocation6 + $0x11c0] sm:$0xff] }
 0x1c4   :  { %8325 = vmatpush1.bf16.msra.mxu0 %v10408_v54  ;;  %8497 = vmatpush1.bf16.msra.mxu1 %v10410_v55  ;;  %v2522_v54 = vld [vmem:[#allocation6 + $0xf08] sm:$0xff] }
 0x1c5   :  { %8326 = vmatprep.subr.bf16.mxu0 %v10425_v58  ;;  %8498 = vmatprep.subr.bf16.mxu1 %v10427_v59  ;;  %v2530_v55 = vld [vmem:[#allocation6 + $0xf48] sm:$0xff]  ;;  %v10520_v58 = vcombine.low %v2505_v17, %v2513_v47  ;;  %v10522_v59 = vcombine.low %v2506_v56, %v2514_v48  ;;  %v10617_v17 = vcombine.high %v2601_v42, %v2609_v43  ;;  %v2617_v56 = vld [vmem:[#allocation6 + $0x1200] sm:$0xff] }
 0x1c6   :  { %v10539_v61 = vcombine.high %v2522_v54, %v2530_v55  ;;  %v2625_v48 = vld [vmem:[#allocation6 + $0x1240] sm:$0xff] }
 0x1c8   :  { %8327 = vmatpush1.bf16.msra.mxu0 %v10424_v3  ;;  %8499 = vmatpush1.bf16.msra.mxu1 %v10426_v4  ;;  %v2538_v3 = vld [vmem:[#allocation6 + $0xf88] sm:$0xff] }
 0x1c9   :  { %8328 = vmatprep.subr.bf16.mxu0 %v10441_v5  ;;  %8500 = vmatprep.subr.bf16.mxu1 %v10443_v6  ;;  %v2546_v4 = vld [vmem:[#allocation6 + $0xfc8] sm:$0xff]  ;;  %v10536_v5 = vcombine.low %v2521_v52, %v2529_v53  ;;  %v10538_v6 = vcombine.low %v2522_v54, %v2530_v55  ;;  %v10633_v52 = vcombine.high %v2617_v56, %v2625_v48  ;;  %v2633_v54 = vld [vmem:[#allocation6 + $0x1280] sm:$0xff] }
 0x1ca   :  { %v10555_v8 = vcombine.high %v2538_v3, %v2546_v4  ;;  %v2641_v55 = vld [vmem:[#allocation6 + $0x12c0] sm:$0xff] }
 0x1cc   :  { %8329 = vmatpush1.bf16.msra.mxu0 %v10440_v12  ;;  %8501 = vmatpush1.bf16.msra.mxu1 %v10442_v13  ;;  %v2554_v12 = vld [vmem:[#allocation6 + $0x1008] sm:$0xff] }
 0x1cd   :  { %8330 = vmatprep.subr.bf16.mxu0 %v10457_v14  ;;  %8502 = vmatprep.subr.bf16.mxu1 %v10459_v15  ;;  %v2562_v13 = vld [vmem:[#allocation6 + $0x1048] sm:$0xff]  ;;  %v10552_v14 = vcombine.low %v2537_v0, %v2545_v1  ;;  %v10554_v15 = vcombine.low %v2538_v3, %v2546_v4  ;;  %v10649_v0 = vcombine.high %v2633_v54, %v2641_v55  ;;  %v2649_v3 = vld [vmem:[#allocation6 + $0x1300] sm:$0xff] }
 0x1ce   :  { %v10571_v18 = vcombine.high %v2554_v12, %v2562_v13  ;;  %v2657_v4 = vld [vmem:[#allocation6 + $0x1340] sm:$0xff] }
 0x1d0   :  { %8331 = vmatpush1.bf16.msra.mxu0 %v10456_v22  ;;  %8503 = vmatpush1.bf16.msra.mxu1 %v10458_v23  ;;  %v2570_v22 = vld [vmem:[#allocation6 + $0x1088] sm:$0xff] }
 0x1d1   :  { %8332 = vmatprep.subr.bf16.mxu0 %v10473_v24  ;;  %8504 = vmatprep.subr.bf16.mxu1 %v10475_v25  ;;  %v2578_v23 = vld [vmem:[#allocation6 + $0x10c8] sm:$0xff]  ;;  %v10568_v24 = vcombine.low %v2553_v9, %v2561_v11  ;;  %v10570_v25 = vcombine.low %v2554_v12, %v2562_v13  ;;  %v10665_v9 = vcombine.high %v2649_v3, %v2657_v4  ;;  %v2665_v12 = vld [vmem:[#allocation6 + $0x1380] sm:$0xff] }
 0x1d2   :  { %v10587_v33 = vcombine.high %v2570_v22, %v2578_v23  ;;  %v2673_v13 = vld [vmem:[#allocation6 + $0x13c0] sm:$0xff] }
 0x1d4   :  { %8333 = vmatpush1.bf16.msra.mxu0 %v10472_v36  ;;  %8505 = vmatpush1.bf16.msra.mxu1 %v10474_v37  ;;  %v2586_v36 = vld [vmem:[#allocation6 + $0x1108] sm:$0xff] }
 0x1d5   :  { %8334 = vmatprep.subr.bf16.mxu0 %v10489_v38  ;;  %8506 = vmatprep.subr.bf16.mxu1 %v10491_v39  ;;  %v2594_v37 = vld [vmem:[#allocation6 + $0x1148] sm:$0xff]  ;;  %v10584_v38 = vcombine.low %v2569_v20, %v2577_v21  ;;  %v10586_v39 = vcombine.low %v2570_v22, %v2578_v23  ;;  %v10681_v20 = vcombine.high %v2665_v12, %v2673_v13  ;;  %v2681_v22 = vld [vmem:[#allocation6 + $0x1400] sm:$0xff] }
 0x1d6   :  { %v10603_v41 = vcombine.high %v2586_v36, %v2594_v37  ;;  %v2689_v23 = vld [vmem:[#allocation6 + $0x1440] sm:$0xff] }
 0x1d8   :  { %8335 = vmatpush1.bf16.msra.mxu0 %v10488_v10  ;;  %8507 = vmatpush1.bf16.msra.mxu1 %v10490_v44  ;;  %v2602_v10 = vld [vmem:[#allocation6 + $0x1188] sm:$0xff] }
 0x1d9   :  { %8336 = vmatprep.subr.bf16.mxu0 %v10505_v45  ;;  %8508 = vmatprep.subr.bf16.mxu1 %v10507_v46  ;;  %v2610_v44 = vld [vmem:[#allocation6 + $0x11c8] sm:$0xff]  ;;  %v10600_v45 = vcombine.low %v2585_v34, %v2593_v35  ;;  %v10602_v46 = vcombine.low %v2586_v36, %v2594_v37  ;;  %v10697_v34 = vcombine.high %v2681_v22, %v2689_v23  ;;  %v2697_v36 = vld [vmem:[#allocation6 + $0x1480] sm:$0xff] }
 0x1da   :  { %v10619_v47 = vcombine.high %v2602_v10, %v2610_v44  ;;  %v2705_v37 = vld [vmem:[#allocation6 + $0x14c0] sm:$0xff] }
 0x1dc   :  { %8337 = vmatpush1.bf16.msra.mxu0 %v10504_v49  ;;  %8509 = vmatpush1.bf16.msra.mxu1 %v10506_v50  ;;  %v2618_v49 = vld [vmem:[#allocation6 + $0x1208] sm:$0xff] }
 0x1dd   :  { %8338 = vmatprep.subr.bf16.mxu0 %v10521_v51  ;;  %8510 = vmatprep.subr.bf16.mxu1 %v10523_v19  ;;  %v2626_v50 = vld [vmem:[#allocation6 + $0x1248] sm:$0xff]  ;;  %v10616_v51 = vcombine.low %v2601_v42, %v2609_v43  ;;  %v10618_v19 = vcombine.low %v2602_v10, %v2610_v44  ;;  %v10713_v42 = vcombine.high %v2697_v36, %v2705_v37  ;;  %v2713_v10 = vld [vmem:[#allocation6 + $0x1500] sm:$0xff] }
 0x1de   :  { %v10635_v53 = vcombine.high %v2618_v49, %v2626_v50  ;;  %v2721_v44 = vld [vmem:[#allocation6 + $0x1540] sm:$0xff] }
 0x1e0   :  { %8339 = vmatpush1.bf16.msra.mxu0 %v10520_v58  ;;  %8511 = vmatpush1.bf16.msra.mxu1 %v10522_v59  ;;  %v2634_v58 = vld [vmem:[#allocation6 + $0x1288] sm:$0xff] }
 0x1e1   :  { %8340 = vmatprep.subr.bf16.mxu0 %v10537_v60  ;;  %8512 = vmatprep.subr.bf16.mxu1 %v10539_v61  ;;  %v2642_v59 = vld [vmem:[#allocation6 + $0x12c8] sm:$0xff]  ;;  %v10632_v60 = vcombine.low %v2617_v56, %v2625_v48  ;;  %v10634_v61 = vcombine.low %v2618_v49, %v2626_v50  ;;  %v10729_v56 = vcombine.high %v2713_v10, %v2721_v44  ;;  %v2729_v49 = vld [vmem:[#allocation6 + $0x1580] sm:$0xff] }
 0x1e2   :  { %v10651_v1 = vcombine.high %v2634_v58, %v2642_v59  ;;  %v2737_v50 = vld [vmem:[#allocation6 + $0x15c0] sm:$0xff] }
 0x1e4   :  { %8341 = vmatpush1.bf16.msra.mxu0 %v10536_v5  ;;  %8513 = vmatpush1.bf16.msra.mxu1 %v10538_v6  ;;  %v2650_v5 = vld [vmem:[#allocation6 + $0x1308] sm:$0xff] }
 0x1e5   :  { %8342 = vmatprep.subr.bf16.mxu0 %v10553_v7  ;;  %8514 = vmatprep.subr.bf16.mxu1 %v10555_v8  ;;  %v2658_v6 = vld [vmem:[#allocation6 + $0x1348] sm:$0xff]  ;;  %v10648_v7 = vcombine.low %v2633_v54, %v2641_v55  ;;  %v10650_v8 = vcombine.low %v2634_v58, %v2642_v59  ;;  %v10745_v54 = vcombine.high %v2729_v49, %v2737_v50  ;;  %v2745_v58 = vld [vmem:[#allocation6 + $0x1600] sm:$0xff] }
 0x1e6   :  { %v10667_v11 = vcombine.high %v2650_v5, %v2658_v6  ;;  %v2753_v59 = vld [vmem:[#allocation6 + $0x1640] sm:$0xff] }
 0x1e8   :  { %8343 = vmatpush1.bf16.msra.mxu0 %v10552_v14  ;;  %8515 = vmatpush1.bf16.msra.mxu1 %v10554_v15  ;;  %v2666_v14 = vld [vmem:[#allocation6 + $0x1388] sm:$0xff] }
 0x1e9   :  { %8355 = vmatprep.subr.bf16.mxu0 %v10569_v16  ;;  %8527 = vmatprep.subr.bf16.mxu1 %v10571_v18  ;;  %v2674_v15 = vld [vmem:[#allocation6 + $0x13c8] sm:$0xff]  ;;  %v10664_v16 = vcombine.low %v2649_v3, %v2657_v4  ;;  %v10666_v18 = vcombine.low %v2650_v5, %v2658_v6  ;;  %v10761_v3 = vcombine.high %v2745_v58, %v2753_v59  ;;  %v2761_v5 = vld [vmem:[#allocation6 + $0x1680] sm:$0xff] }
 0x1ea   :  { %v10683_v21 = vcombine.high %v2666_v14, %v2674_v15  ;;  %v2769_v6 = vld [vmem:[#allocation6 + $0x16c0] sm:$0xff] }
 0x1eb   :  { %8345 = vmatmul.mubr.bf16.vlgmr.msra.gmra.mrb[8].mxu0 %v11548_v62  ;;  %8517 = vmatmul.mubr.bf16.vlgmr.msra.gmra.mrb[8].mxu1 %v11548_v62 }
 0x1ec   :  { %8356 = vmatpush1.bf16.msra.mxu0 %v10568_v24  ;;  %8528 = vmatpush1.bf16.msra.mxu1 %v10570_v25  ;;  %v2682_v24 = vld [vmem:[#allocation6 + $0x1408] sm:$0xff] }
 0x1ed   :  { %8357 = vmatprep.subr.bf16.mxu0 %v10585_v32  ;;  %8529 = vmatprep.subr.bf16.mxu1 %v10587_v33  ;;  %v2690_v25 = vld [vmem:[#allocation6 + $0x1448] sm:$0xff]  ;;  %v10680_v32 = vcombine.low %v2665_v12, %v2673_v13  ;;  %v10682_v33 = vcombine.low %v2666_v14, %v2674_v15  ;;  %v10777_v12 = vcombine.high %v2761_v5, %v2769_v6  ;;  %v11567_v14 = vsub.s32 4, %v11522_v26  ;;  %v2777_v15 = vld [vmem:[#allocation6 + $0x1700] sm:$0xff] }
 0x1ee   :  { %v10699_v35 = vcombine.high %v2682_v24, %v2690_v25 }
 0x1f0   :  { %8358 = vmatpush1.bf16.msra.mxu0 %v10584_v38  ;;  %8530 = vmatpush1.bf16.msra.mxu1 %v10586_v39  ;;  %v2698_v38 = vld [vmem:[#allocation6 + $0x1488] sm:$0xff] }
 0x1f1   :  { %8359 = vmatprep.subr.bf16.mxu0 %v10601_v40  ;;  %8531 = vmatprep.subr.bf16.mxu1 %v10603_v41  ;;  %v2706_v39 = vld [vmem:[#allocation6 + $0x14c8] sm:$0xff]  ;;  %v10696_v40 = vcombine.low %v2681_v22, %v2689_v23  ;;  %v10698_v41 = vcombine.low %v2682_v24, %v2690_v25  ;;  %v11576_v23 = vsub.s32 7, %v11522_v26  ;;  %v10776_v24 = vcombine.low %v2761_v5, %v2769_v6 }
 0x1f2   :  { %v10715_v43 = vcombine.high %v2698_v38, %v2706_v39  ;;  %v2786_v22 = vld [vmem:[#allocation6 + $0x1748] sm:$0xff] }
 0x1f4   :  { %8360 = vmatpush1.bf16.msra.mxu0 %v10600_v45  ;;  %8532 = vmatpush1.bf16.msra.mxu1 %v10602_v46  ;;  %v2714_v45 = vld [vmem:[#allocation6 + $0x1508] sm:$0xff] }
 0x1f5   :  { %8361 = vmatprep.subr.bf16.mxu0 %v10617_v17  ;;  %8533 = vmatprep.subr.bf16.mxu1 %v10619_v47  ;;  %v2722_v46 = vld [vmem:[#allocation6 + $0x1548] sm:$0xff]  ;;  %v10712_v17 = vcombine.low %v2697_v36, %v2705_v37  ;;  %v10714_v47 = vcombine.low %v2698_v38, %v2706_v39 }
 0x1f6   :  { %v10731_v48 = vcombine.high %v2714_v45, %v2722_v46  ;;  %v2794_v38 = vld [vmem:[#allocation6 + $0x1788] sm:$0xff] }
 0x1f7   :  { %v2802_v39 = vld [vmem:[#allocation6 + $0x17c8] sm:$0xff] }
 0x1f8   :  { %8362 = vmatpush1.bf16.msra.mxu0 %v10616_v51  ;;  %8534 = vmatpush1.bf16.msra.mxu1 %v10618_v19  ;;  %v2730_v51 = vld [vmem:[#allocation6 + $0x1588] sm:$0xff] }
 0x1f9   :  { %8363 = vmatprep.subr.bf16.mxu0 %v10633_v52  ;;  %8535 = vmatprep.subr.bf16.mxu1 %v10635_v53  ;;  %v2738_v19 = vld [vmem:[#allocation6 + $0x15c8] sm:$0xff]  ;;  %v10728_v52 = vcombine.low %v2713_v10, %v2721_v44  ;;  %v10730_v53 = vcombine.low %v2714_v45, %v2722_v46 }
 0x1fa   :  { %v10747_v55 = vcombine.high %v2730_v51, %v2738_v19 }
 0x1fc   :  { %8364 = vmatpush1.bf16.msra.mxu0 %v10632_v60  ;;  %8536 = vmatpush1.bf16.msra.mxu1 %v10634_v61  ;;  %v2746_v60 = vld [vmem:[#allocation6 + $0x1608] sm:$0xff] }
 0x1fd   :  { %8365 = vmatprep.subr.bf16.mxu0 %v10649_v0  ;;  %8537 = vmatprep.subr.bf16.mxu1 %v10651_v1  ;;  %v2754_v61 = vld [vmem:[#allocation6 + $0x1648] sm:$0xff]  ;;  %v10744_v0 = vcombine.low %v2729_v49, %v2737_v50  ;;  %v10746_v1 = vcombine.low %v2730_v51, %v2738_v19 }
 0x1fe   :  { %v10763_v4 = vcombine.high %v2746_v60, %v2754_v61  ;;  %v2810_v19 = vld [vmem:[#allocation6 + $0x1808] sm:$0xff] }
 0x200   :  { %8366 = vmatpush1.bf16.msra.mxu0 %v10648_v7  ;;  %8538 = vmatpush1.bf16.msra.mxu1 %v10650_v8  ;;  %v2762_v7 = vld [vmem:[#allocation6 + $0x1688] sm:$0xff] }
 0x201   :  { %8367 = vmatprep.subr.bf16.mxu0 %v10665_v9  ;;  %8539 = vmatprep.subr.bf16.mxu1 %v10667_v11  ;;  %v2770_v8 = vld [vmem:[#allocation6 + $0x16c8] sm:$0xff]  ;;  %v10760_v9 = vcombine.low %v2745_v58, %v2753_v59  ;;  %v10762_v11 = vcombine.low %v2746_v60, %v2754_v61  ;;  %v10810_v59 = vcombine.low %v2794_v38, %v2802_v39 }
 0x202   :  { %v10779_v13 = vcombine.high %v2762_v7, %v2770_v8  ;;  %v10778_v25 = vcombine.low %v2762_v7, %v2770_v8 }
 0x204   :  { %8368 = vmatpush1.bf16.msra.mxu0 %v10664_v16  ;;  %8540 = vmatpush1.bf16.msra.mxu1 %v10666_v18  ;;  %v11570_v16 = vsub.s32 6, %v11522_v26  ;;  %v11573_v18 = vsub.s32 5, %v11522_v26  ;;  %v2801_v26 = vld [vmem:[#allocation6 + $0x17c0] sm:$0xff] }
 0x205   :  { %8369 = vmatprep.subr.bf16.mxu0 %v10681_v20  ;;  %8541 = vmatprep.subr.bf16.mxu1 %v10683_v21  ;;  %v2785_v20 = vld [vmem:[#allocation6 + $0x1740] sm:$0xff]  ;;  %v2778_v21 = vld [vmem:[#allocation6 + $0x1708] sm:$0xff] }
 0x206   :  { %v360_v36 = vrot.slane %v11527_v28, %v11570_v16  ;;  %v356_v37 = vrot.slane %v11527_v28, %v11573_v18 }
 0x208   :  { %8370 = vmatpush1.bf16.msra.mxu0 %v10680_v32  ;;  %8542 = vmatpush1.bf16.msra.mxu1 %v10682_v33  ;;  %v352_v32 = vrot.slane %v11527_v28, %v11567_v14  ;;  %v10793_v33 = vcombine.high %v2777_v15, %v2785_v20 }
 0x209   :  { %8371 = vmatprep.subr.bf16.mxu0 %v10697_v34  ;;  %8543 = vmatprep.subr.bf16.mxu1 %v10699_v35  ;;  %v10795_v34 = vcombine.high %v2778_v21, %v2786_v22  ;;  %v2793_v35 = vld [vmem:[#allocation6 + $0x1780] sm:$0xff] }
 0x20a   :  { %v10809_v46 = vcombine.high %v2793_v35, %v2801_v26  ;;  %v10808_v58 = vcombine.low %v2793_v35, %v2801_v26 }
 0x20c   :  { %8372 = vmatpush1.bf16.msra.mxu0 %v10696_v40  ;;  %8544 = vmatpush1.bf16.msra.mxu1 %v10698_v41  ;;  %v364_v40 = vrot.slane %v11527_v28, %v11576_v23  ;;  %v2818_v28 = vld [vmem:[#allocation6 + $0x1848] sm:$0xff] }
 0x20d   :  { %8373 = vmatprep.subr.bf16.mxu0 %v10713_v42  ;;  %8545 = vmatprep.subr.bf16.mxu1 %v10715_v43  ;;  %v10792_v42 = vcombine.low %v2777_v15, %v2785_v20  ;;  %v10794_v43 = vcombine.low %v2778_v21, %v2786_v22  ;;  %v10827_v6 = vcombine.high %v2810_v19, %v2818_v28  ;;  %v2833_v22 = vld [vmem:[#allocation6 + $0x18c0] sm:$0xff] }
 0x210   :  { %8374 = vmatpush1.bf16.msra.mxu0 %v10712_v17  ;;  %8546 = vmatpush1.bf16.msra.mxu1 %v10714_v47  ;;  %v10811_v17 = vcombine.high %v2794_v38, %v2802_v39  ;;  %v2809_v47 = vld [vmem:[#allocation6 + $0x1800] sm:$0xff]  ;;  %v2842_v39 = vld [vmem:[#allocation6 + $0x1908] sm:$0xff] }
 0x211   :  { %8375 = vmatprep.subr.bf16.mxu0 %v10729_v56  ;;  %8547 = vmatprep.subr.bf16.mxu1 %v10731_v48  ;;  %v2817_v56 = vld [vmem:[#allocation6 + $0x1840] sm:$0xff] }
 0x212   :  { %v10824_v21 = vcombine.low %v2809_v47, %v2817_v56  ;;  %v2849_v38 = vld [vmem:[#allocation6 + $0x1940] sm:$0xff] }
 0x214   :  { %8376 = vmatpush1.bf16.msra.mxu0 %v10728_v52  ;;  %8548 = vmatpush1.bf16.msra.mxu1 %v10730_v53 }
 0x215   :  { %8377 = vmatprep.subr.bf16.mxu0 %v10745_v54  ;;  %8549 = vmatprep.subr.bf16.mxu1 %v10747_v55 }
 0x218   :  { %8378 = vmatpush1.bf16.msra.mxu0 %v10744_v0  ;;  %8550 = vmatpush1.bf16.msra.mxu1 %v10746_v1  ;;  %v10825_v1 = vcombine.high %v2809_v47, %v2817_v56 }
 0x219   :  { %8379 = vmatprep.subr.bf16.mxu0 %v10761_v3  ;;  %8551 = vmatprep.subr.bf16.mxu1 %v10763_v4 }
 0x21c   :  { %8380 = vmatpush1.bf16.msra.mxu0 %v10760_v9  ;;  %8552 = vmatpush1.bf16.msra.mxu1 %v10762_v11 }
 0x21d   :  { %8381 = vmatprep.subr.bf16.mxu0 %v10777_v12  ;;  %8553 = vmatprep.subr.bf16.mxu1 %v10779_v13  ;;  %v2825_v12 = vld [vmem:[#allocation6 + $0x1880] sm:$0xff] }
 0x220   :  { %8382 = vmatpush1.bf16.msra.mxu0 %v10776_v24  ;;  %8554 = vmatpush1.bf16.msra.mxu1 %v10778_v25  ;;  %v1922_v41 = vpop.f32.mrb[4].mxu0  ;;  %v2008_v44 = vpop.f32.mrb[4].mxu1  ;;  %v2826_v24 = vld [vmem:[#allocation6 + $0x1888] sm:$0xff] }
 0x221   :  { %v11120_v10 = vadd.f32 %v1922_v41, %v352_v32  ;;  %v1924_v45 = vpop.f32.mrb[5].mxu0  ;;  %8383 = vmatprep.subr.bf16.mxu0 %v10793_v33  ;;  %8555 = vmatprep.subr.bf16.mxu1 %v10795_v34  ;;  %v11124_v48 = vadd.f32 %v2008_v44, %v360_v36  ;;  %v2010_v50 = vpop.f32.mrb[5].mxu1  ;;  %v2834_v25 = vld [vmem:[#allocation6 + $0x18c8] sm:$0xff]  ;;  %v10826_v34 = vcombine.low %v2810_v19, %v2818_v28  ;;  %v2857_v44 = vld [vmem:[#allocation6 + $0x1980] sm:$0xff] }
 0x222   :  { %v11121_v49 = vadd.f32 %v1924_v45, %v356_v37  ;;  %v1926_v51 = vpop.f32.mrb[6].mxu0  ;;  %v11125_v52 = vadd.f32 %v2010_v50, %v364_v40  ;;  %v2012_v54 = vpop.f32.mrb[6].mxu1  ;;  %v10843_v26 = vcombine.high %v2826_v24, %v2834_v25  ;;  %v10840_v41 = vcombine.low %v2825_v12, %v2833_v22  ;;  %v2865_v45 = vld [vmem:[#allocation6 + $0x19c0] sm:$0xff]  ;;  %v2874_v19 = vld [vmem:[#allocation6 + $0x1a08] sm:$0xff] }
 0x223   :  { %v11122_v53 = vadd.f32 %v1926_v51, %v352_v32  ;;  %v1928_v55 = vpop.f32.mrb[7].mxu0  ;;  %v11126_v60 = vadd.f32 %v2012_v54, %v360_v36  ;;  %v2014_v0 = vpop.f32.mrb[7].mxu1  ;;  %v2021_v3 = vmax.f32 %v11120_v10, 0.0  ;;  %v2023_v7 = vmax.f32 %v11124_v48, 0.0  ;;  %v2841_v36 = vld [vmem:[#allocation6 + $0x1900] sm:$0xff]  ;;  %v2882_v28 = vld [vmem:[#allocation6 + $0x1a48] sm:$0xff] }
 0x224   :  { %v11123_v61 = vadd.f32 %v1928_v55, %v356_v37  ;;  %8384 = vmatpush1.bf16.msra.mxu0 %v10792_v42  ;;  %8556 = vmatpush1.bf16.msra.mxu1 %v10794_v43  ;;  %v11127_v5 = vadd.f32 %v2014_v0, %v364_v40  ;;  %v2022_v8 = vmax.f32 %v11121_v49, 0.0  ;;  %v2024_v13 = vmax.f32 %v11125_v52, 0.0  ;;  %v2850_v40 = vld [vmem:[#allocation6 + $0x1948] sm:$0xff]  ;;  %v2873_v50 = vld [vmem:[#allocation6 + $0x1a00] sm:$0xff] }
 0x225   :  { %v2029_v4 = vmax.f32 %v11122_v53, 0.0  ;;  %8385 = vmatprep.subr.bf16.mxu0 %v10809_v46  ;;  %8557 = vmatprep.subr.bf16.mxu1 %v10811_v17  ;;  %v2031_v9 = vmax.f32 %v11126_v60, 0.0  ;;  %v10841_v37 = vcombine.high %v2825_v12, %v2833_v22  ;;  %v10842_v42 = vcombine.low %v2826_v24, %v2834_v25  ;;  %v2858_v46 = vld [vmem:[#allocation6 + $0x1988] sm:$0xff]  ;;  %v2881_v51 = vld [vmem:[#allocation6 + $0x1a40] sm:$0xff] }
 0x226   :  { %v2030_v11 = vmax.f32 %v11123_v61, 0.0  ;;  %v2032_v20 = vmax.f32 %v11127_v5, 0.0  ;;  %v10857_v43 = vcombine.high %v2841_v36, %v2849_v38  ;;  %v10859_v10 = vcombine.high %v2842_v39, %v2850_v40  ;;  %v2866_v17 = vld [vmem:[#allocation6 + $0x19c8] sm:$0xff]  ;;  %v2905_v5 = vld [vmem:[#allocation6 + $0x1b00] sm:$0xff] }
 0x227   :  { %v11586_v15 = vpack.c.bf16 %v2029_v4, %v2021_v3  ;;  %v11588_v32 = vpack.c.bf16 %v2031_v9, %v2023_v7  ;;  %v10856_v47 = vcombine.low %v2841_v36, %v2849_v38  ;;  %v10858_v56 = vcombine.low %v2842_v39, %v2850_v40  ;;  %v2890_v60 = vld [vmem:[#allocation6 + $0x1a88] sm:$0xff]  ;;  %v2945_v38 = vld [vmem:[#allocation6 + $0x1c40] sm:$0xff] }
 0x228   :  { %v11590_v33 = vpack.c.bf16 %v2030_v11, %v2022_v8  ;;  %8386 = vmatpush1.bf16.msra.mxu0 %v10808_v58  ;;  %8558 = vmatpush1.bf16.msra.mxu1 %v10810_v59  ;;  %v11592_v35 = vpack.c.bf16 %v2032_v20, %v2024_v13  ;;  %v10873_v48 = vcombine.high %v2857_v44, %v2865_v45  ;;  %v2889_v58 = vld [vmem:[#allocation6 + $0x1a80] sm:$0xff]  ;;  %v2898_v61 = vld [vmem:[#allocation6 + $0x1ac8] sm:$0xff] }
 0x229   :  { %8398 = vmatprep.subr.bf16.mxu0 %v10825_v1  ;;  %8570 = vmatprep.subr.bf16.mxu1 %v10827_v6  ;;  %v10875_v49 = vcombine.high %v2858_v46, %v2866_v17  ;;  %v10872_v52 = vcombine.low %v2857_v44, %v2865_v45  ;;  %v10874_v53 = vcombine.low %v2858_v46, %v2866_v17  ;;  %v2897_v59 = vld [vmem:[#allocation6 + $0x1ac0] sm:$0xff]  ;;  %v2906_v7 = vld [vmem:[#allocation6 + $0x1b08] sm:$0xff] }
 0x22a   :  { %8387 = vmatprep.mubr.bf16.mxu0 %v11590_v33  ;;  %8559 = vmatprep.mubr.bf16.mxu1 %v11590_v33  ;;  %v10889_v54 = vcombine.high %v2873_v50, %v2881_v51  ;;  %v10891_v55 = vcombine.high %v2874_v19, %v2882_v28  ;;  %v10888_v0 = vcombine.low %v2873_v50, %v2881_v51  ;;  %v2913_v6 = vld [vmem:[#allocation6 + $0x1b40] sm:$0xff]  ;;  %v2914_v8 = vld [vmem:[#allocation6 + $0x1b48] sm:$0xff] }
 0x22b   :  { %8388 = vmatmul.mubr.bf16.vlgmr.msra.gmra.mrb[8].mxu0 %v11586_v15  ;;  %8560 = vmatmul.mubr.bf16.vlgmr.msra.gmra.mrb[8].mxu1 %v11586_v15  ;;  %v10890_v1 = vcombine.low %v2874_v19, %v2882_v28  ;;  %v10905_v3 = vcombine.high %v2889_v58, %v2897_v59  ;;  %v10907_v4 = vcombine.high %v2890_v60, %v2898_v61  ;;  %v2921_v20 = vld [vmem:[#allocation6 + $0x1b80] sm:$0xff]  ;;  %v2922_v22 = vld [vmem:[#allocation6 + $0x1b88] sm:$0xff] }
 0x22c   :  { %8399 = vmatpush1.bf16.msra.mxu0 %v10824_v21  ;;  %8571 = vmatpush1.bf16.msra.mxu1 %v10826_v34  ;;  %v10904_v9 = vcombine.low %v2889_v58, %v2897_v59  ;;  %v10906_v11 = vcombine.low %v2890_v60, %v2898_v61  ;;  %v10921_v12 = vcombine.high %v2905_v5, %v2913_v6  ;;  %v2929_v21 = vld [vmem:[#allocation6 + $0x1bc0] sm:$0xff]  ;;  %v2930_v24 = vld [vmem:[#allocation6 + $0x1bc8] sm:$0xff] }
 0x22d   :  { %8430 = vmatprep.mubr.bf16.mxu0 %v11592_v35  ;;  %8602 = vmatprep.mubr.bf16.mxu1 %v11592_v35  ;;  %v10923_v13 = vcombine.high %v2906_v7, %v2914_v8  ;;  %v10920_v25 = vcombine.low %v2905_v5, %v2913_v6  ;;  %v10922_v34 = vcombine.low %v2906_v7, %v2914_v8  ;;  %v2938_v39 = vld [vmem:[#allocation6 + $0x1c08] sm:$0xff]  ;;  %v2953_v44 = vld [vmem:[#allocation6 + $0x1c80] sm:$0xff] }
 0x22e   :  { %8400 = vmatprep.subr.bf16.mxu0 %v10841_v37  ;;  %8572 = vmatprep.subr.bf16.mxu1 %v10843_v26  ;;  %v10937_v36 = vcombine.high %v2921_v20, %v2929_v21  ;;  %v10939_v37 = vcombine.high %v2922_v22, %v2930_v24  ;;  %v2937_v26 = vld [vmem:[#allocation6 + $0x1c00] sm:$0xff]  ;;  %v2946_v40 = vld [vmem:[#allocation6 + $0x1c48] sm:$0xff] }
 0x22f   :  { %v2961_v45 = vld [vmem:[#allocation6 + $0x1cc0] sm:$0xff]  ;;  %v2954_v46 = vld [vmem:[#allocation6 + $0x1c88] sm:$0xff] }
 0x230   :  { %8401 = vmatpush1.bf16.msra.mxu0 %v10840_v41  ;;  %8573 = vmatpush1.bf16.msra.mxu1 %v10842_v42  ;;  %v10936_v41 = vcombine.low %v2921_v20, %v2929_v21  ;;  %v10938_v42 = vcombine.low %v2922_v22, %v2930_v24  ;;  %v2962_v17 = vld [vmem:[#allocation6 + $0x1cc8] sm:$0xff]  ;;  %v2969_v50 = vld [vmem:[#allocation6 + $0x1d00] sm:$0xff] }
 0x231   :  { %8402 = vmatprep.subr.bf16.mxu0 %v10857_v43  ;;  %8574 = vmatprep.subr.bf16.mxu1 %v10859_v10  ;;  %v10953_v43 = vcombine.high %v2937_v26, %v2945_v38  ;;  %v10955_v10 = vcombine.high %v2938_v39, %v2946_v40  ;;  %v2977_v51 = vld [vmem:[#allocation6 + $0x1d40] sm:$0xff]  ;;  %v2970_v19 = vld [vmem:[#allocation6 + $0x1d08] sm:$0xff] }
 0x232   :  { %v2978_v28 = vld [vmem:[#allocation6 + $0x1d48] sm:$0xff]  ;;  %v2985_v58 = vld [vmem:[#allocation6 + $0x1d80] sm:$0xff] }
 0x233   :  { %v2993_v59 = vld [vmem:[#allocation6 + $0x1dc0] sm:$0xff]  ;;  %v2986_v60 = vld [vmem:[#allocation6 + $0x1d88] sm:$0xff] }
 0x234   :  { %8403 = vmatpush1.bf16.msra.mxu0 %v10856_v47  ;;  %8575 = vmatpush1.bf16.msra.mxu1 %v10858_v56  ;;  %v10952_v47 = vcombine.low %v2937_v26, %v2945_v38  ;;  %v10954_v56 = vcombine.low %v2938_v39, %v2946_v40  ;;  %v2994_v61 = vld [vmem:[#allocation6 + $0x1dc8] sm:$0xff]  ;;  %v3001_v5 = vld [vmem:[#allocation6 + $0x1e00] sm:$0xff] }
 0x235   :  { %8404 = vmatprep.subr.bf16.mxu0 %v10873_v48  ;;  %8576 = vmatprep.subr.bf16.mxu1 %v10875_v49  ;;  %v10969_v48 = vcombine.high %v2953_v44, %v2961_v45  ;;  %v10971_v49 = vcombine.high %v2954_v46, %v2962_v17  ;;  %v3009_v6 = vld [vmem:[#allocation6 + $0x1e40] sm:$0xff]  ;;  %v3002_v7 = vld [vmem:[#allocation6 + $0x1e08] sm:$0xff] }
 0x236   :  { %v3010_v8 = vld [vmem:[#allocation6 + $0x1e48] sm:$0xff]  ;;  %v3017_v20 = vld [vmem:[#allocation6 + $0x1e80] sm:$0xff] }
 0x237   :  { %v3025_v21 = vld [vmem:[#allocation6 + $0x1ec0] sm:$0xff]  ;;  %v3018_v22 = vld [vmem:[#allocation6 + $0x1e88] sm:$0xff] }
 0x238   :  { %8405 = vmatpush1.bf16.msra.mxu0 %v10872_v52  ;;  %8577 = vmatpush1.bf16.msra.mxu1 %v10874_v53  ;;  %v10968_v52 = vcombine.low %v2953_v44, %v2961_v45  ;;  %v10970_v53 = vcombine.low %v2954_v46, %v2962_v17  ;;  %v3026_v24 = vld [vmem:[#allocation6 + $0x1ec8] sm:$0xff]  ;;  %v3033_v26 = vld [vmem:[#allocation6 + $0x1f00] sm:$0xff] }
 0x239   :  { %8406 = vmatprep.subr.bf16.mxu0 %v10889_v54  ;;  %8578 = vmatprep.subr.bf16.mxu1 %v10891_v55  ;;  %v10985_v54 = vcombine.high %v2969_v50, %v2977_v51  ;;  %v10987_v55 = vcombine.high %v2970_v19, %v2978_v28  ;;  %v3041_v38 = vld [vmem:[#allocation6 + $0x1f40] sm:$0xff]  ;;  %v3034_v39 = vld [vmem:[#allocation6 + $0x1f08] sm:$0xff] }
 0x23a   :  { %v3042_v40 = vld [vmem:[#allocation6 + $0x1f48] sm:$0xff]  ;;  %v3049_v44 = vld [vmem:[#allocation6 + $0x1f80] sm:$0xff] }
 0x23b   :  { %v3057_v45 = vld [vmem:[#allocation6 + $0x1fc0] sm:$0xff]  ;;  %v3050_v46 = vld [vmem:[#allocation6 + $0x1f88] sm:$0xff] }
 0x23c   :  { %8407 = vmatpush1.bf16.msra.mxu0 %v10888_v0  ;;  %8579 = vmatpush1.bf16.msra.mxu1 %v10890_v1  ;;  %v10984_v0 = vcombine.low %v2969_v50, %v2977_v51  ;;  %v10986_v1 = vcombine.low %v2970_v19, %v2978_v28  ;;  %v3058_v17 = vld [vmem:[#allocation6 + $0x1fc8] sm:$0xff]  ;;  %v2043_v50 = vld [vmem:[#allocation6 + $0x10] sm:$0xff]  ;;  %v2044_v19 = vld [vmem:[#allocation6 + $0x18] sm:$0xff] }
 0x23d   :  { %8408 = vmatprep.subr.bf16.mxu0 %v10905_v3  ;;  %8580 = vmatprep.subr.bf16.mxu1 %v10907_v4  ;;  %v11001_v3 = vcombine.high %v2985_v58, %v2993_v59  ;;  %v11003_v4 = vcombine.high %v2986_v60, %v2994_v61  ;;  %v2051_v51 = vld [vmem:[#allocation6 + $0x50] sm:$0xff]  ;;  %v2052_v28 = vld [vmem:[#allocation6 + $0x58] sm:$0xff] }
 0x240   :  { %8409 = vmatpush1.bf16.msra.mxu0 %v10904_v9  ;;  %8581 = vmatpush1.bf16.msra.mxu1 %v10906_v11  ;;  %v11000_v9 = vcombine.low %v2985_v58, %v2993_v59  ;;  %v11002_v11 = vcombine.low %v2986_v60, %v2994_v61  ;;  %v2059_v58 = vld [vmem:[#allocation6 + $0x90] sm:$0xff]  ;;  %v2060_v60 = vld [vmem:[#allocation6 + $0x98] sm:$0xff] }
 0x241   :  { %8410 = vmatprep.subr.bf16.mxu0 %v10921_v12  ;;  %8582 = vmatprep.subr.bf16.mxu1 %v10923_v13  ;;  %v11017_v12 = vcombine.high %v3001_v5, %v3009_v6  ;;  %v11019_v13 = vcombine.high %v3002_v7, %v3010_v8  ;;  %v2067_v59 = vld [vmem:[#allocation6 + $0xd0] sm:$0xff]  ;;  %v2068_v61 = vld [vmem:[#allocation6 + $0xd8] sm:$0xff] }
 0x244   :  { %8411 = vmatpush1.bf16.msra.mxu0 %v10920_v25  ;;  %8583 = vmatpush1.bf16.msra.mxu1 %v10922_v34  ;;  %v11016_v25 = vcombine.low %v3001_v5, %v3009_v6  ;;  %v11018_v34 = vcombine.low %v3002_v7, %v3010_v8  ;;  %v2075_v5 = vld [vmem:[#allocation6 + $0x110] sm:$0xff]  ;;  %v2076_v7 = vld [vmem:[#allocation6 + $0x118] sm:$0xff] }
 0x245   :  { %8412 = vmatprep.subr.bf16.mxu0 %v10937_v36  ;;  %8584 = vmatprep.subr.bf16.mxu1 %v10939_v37  ;;  %v11033_v36 = vcombine.high %v3017_v20, %v3025_v21  ;;  %v11035_v37 = vcombine.high %v3018_v22, %v3026_v24  ;;  %v2083_v6 = vld [vmem:[#allocation6 + $0x150] sm:$0xff]  ;;  %v2084_v8 = vld [vmem:[#allocation6 + $0x158] sm:$0xff] }
 0x248   :  { %8413 = vmatpush1.bf16.msra.mxu0 %v10936_v41  ;;  %8585 = vmatpush1.bf16.msra.mxu1 %v10938_v42  ;;  %v11032_v41 = vcombine.low %v3017_v20, %v3025_v21  ;;  %v11034_v42 = vcombine.low %v3018_v22, %v3026_v24  ;;  %v2091_v20 = vld [vmem:[#allocation6 + $0x190] sm:$0xff]  ;;  %v2092_v22 = vld [vmem:[#allocation6 + $0x198] sm:$0xff] }
 0x249   :  { %8414 = vmatprep.subr.bf16.mxu0 %v10953_v43  ;;  %8586 = vmatprep.subr.bf16.mxu1 %v10955_v10  ;;  %v11049_v43 = vcombine.high %v3033_v26, %v3041_v38  ;;  %v11051_v10 = vcombine.high %v3034_v39, %v3042_v40  ;;  %v2099_v21 = vld [vmem:[#allocation6 + $0x1d0] sm:$0xff]  ;;  %v2100_v24 = vld [vmem:[#allocation6 + $0x1d8] sm:$0xff] }
 0x24c   :  { %8415 = vmatpush1.bf16.msra.mxu0 %v10952_v47  ;;  %8587 = vmatpush1.bf16.msra.mxu1 %v10954_v56  ;;  %v11048_v47 = vcombine.low %v3033_v26, %v3041_v38  ;;  %v11050_v56 = vcombine.low %v3034_v39, %v3042_v40  ;;  %v2107_v26 = vld [vmem:[#allocation6 + $0x210] sm:$0xff]  ;;  %v2108_v39 = vld [vmem:[#allocation6 + $0x218] sm:$0xff] }
 0x24d   :  { %8416 = vmatprep.subr.bf16.mxu0 %v10969_v48  ;;  %8588 = vmatprep.subr.bf16.mxu1 %v10971_v49  ;;  %v11065_v48 = vcombine.high %v3049_v44, %v3057_v45  ;;  %v11067_v49 = vcombine.high %v3050_v46, %v3058_v17  ;;  %v2115_v38 = vld [vmem:[#allocation6 + $0x250] sm:$0xff]  ;;  %v2116_v40 = vld [vmem:[#allocation6 + $0x258] sm:$0xff] }
 0x250   :  { %8417 = vmatpush1.bf16.msra.mxu0 %v10968_v52  ;;  %8589 = vmatpush1.bf16.msra.mxu1 %v10970_v53  ;;  %v11064_v52 = vcombine.low %v3049_v44, %v3057_v45  ;;  %v11066_v53 = vcombine.low %v3050_v46, %v3058_v17  ;;  %v2123_v44 = vld [vmem:[#allocation6 + $0x290] sm:$0xff]  ;;  %v2124_v46 = vld [vmem:[#allocation6 + $0x298] sm:$0xff] }
 0x251   :  { %8418 = vmatprep.subr.bf16.mxu0 %v10985_v54  ;;  %8590 = vmatprep.subr.bf16.mxu1 %v10987_v55  ;;  %v10061_v54 = vcombine.high %v2043_v50, %v2051_v51  ;;  %v10063_v55 = vcombine.high %v2044_v19, %v2052_v28  ;;  %v2131_v45 = vld [vmem:[#allocation6 + $0x2d0] sm:$0xff]  ;;  %v2132_v17 = vld [vmem:[#allocation6 + $0x2d8] sm:$0xff] }
 0x254   :  { %8419 = vmatpush1.bf16.msra.mxu0 %v10984_v0  ;;  %8591 = vmatpush1.bf16.msra.mxu1 %v10986_v1  ;;  %v10060_v0 = vcombine.low %v2043_v50, %v2051_v51  ;;  %v10062_v1 = vcombine.low %v2044_v19, %v2052_v28  ;;  %v2139_v50 = vld [vmem:[#allocation6 + $0x310] sm:$0xff]  ;;  %v2140_v19 = vld [vmem:[#allocation6 + $0x318] sm:$0xff] }
 0x255   :  { %8420 = vmatprep.subr.bf16.mxu0 %v11001_v3  ;;  %8592 = vmatprep.subr.bf16.mxu1 %v11003_v4  ;;  %v10077_v3 = vcombine.high %v2059_v58, %v2067_v59  ;;  %v10079_v4 = vcombine.high %v2060_v60, %v2068_v61  ;;  %v2147_v51 = vld [vmem:[#allocation6 + $0x350] sm:$0xff]  ;;  %v2148_v28 = vld [vmem:[#allocation6 + $0x358] sm:$0xff] }
 0x258   :  { %8421 = vmatpush1.bf16.msra.mxu0 %v11000_v9  ;;  %8593 = vmatpush1.bf16.msra.mxu1 %v11002_v11  ;;  %v10076_v9 = vcombine.low %v2059_v58, %v2067_v59  ;;  %v10078_v11 = vcombine.low %v2060_v60, %v2068_v61  ;;  %v2155_v58 = vld [vmem:[#allocation6 + $0x390] sm:$0xff]  ;;  %v2156_v60 = vld [vmem:[#allocation6 + $0x398] sm:$0xff] }
 0x259   :  { %8422 = vmatprep.subr.bf16.mxu0 %v11017_v12  ;;  %8594 = vmatprep.subr.bf16.mxu1 %v11019_v13  ;;  %v10093_v12 = vcombine.high %v2075_v5, %v2083_v6  ;;  %v10095_v13 = vcombine.high %v2076_v7, %v2084_v8  ;;  %v2163_v59 = vld [vmem:[#allocation6 + $0x3d0] sm:$0xff]  ;;  %v2164_v61 = vld [vmem:[#allocation6 + $0x3d8] sm:$0xff] }
 0x25c   :  { %8423 = vmatpush1.bf16.msra.mxu0 %v11016_v25  ;;  %8595 = vmatpush1.bf16.msra.mxu1 %v11018_v34  ;;  %v10092_v25 = vcombine.low %v2075_v5, %v2083_v6  ;;  %v10094_v34 = vcombine.low %v2076_v7, %v2084_v8  ;;  %v2171_v5 = vld [vmem:[#allocation6 + $0x410] sm:$0xff]  ;;  %v2172_v7 = vld [vmem:[#allocation6 + $0x418] sm:$0xff] }
 0x25d   :  { %8424 = vmatprep.subr.bf16.mxu0 %v11033_v36  ;;  %8596 = vmatprep.subr.bf16.mxu1 %v11035_v37  ;;  %v10109_v36 = vcombine.high %v2091_v20, %v2099_v21  ;;  %v10111_v37 = vcombine.high %v2092_v22, %v2100_v24  ;;  %v2179_v6 = vld [vmem:[#allocation6 + $0x450] sm:$0xff]  ;;  %v2180_v8 = vld [vmem:[#allocation6 + $0x458] sm:$0xff] }
 0x260   :  { %8425 = vmatpush1.bf16.msra.mxu0 %v11032_v41  ;;  %8597 = vmatpush1.bf16.msra.mxu1 %v11034_v42  ;;  %v10108_v41 = vcombine.low %v2091_v20, %v2099_v21  ;;  %v10110_v42 = vcombine.low %v2092_v22, %v2100_v24  ;;  %v2187_v20 = vld [vmem:[#allocation6 + $0x490] sm:$0xff]  ;;  %v2188_v22 = vld [vmem:[#allocation6 + $0x498] sm:$0xff] }
 0x261   :  { %8426 = vmatprep.subr.bf16.mxu0 %v11049_v43  ;;  %8598 = vmatprep.subr.bf16.mxu1 %v11051_v10  ;;  %v10125_v43 = vcombine.high %v2107_v26, %v2115_v38  ;;  %v10127_v10 = vcombine.high %v2108_v39, %v2116_v40  ;;  %v2195_v21 = vld [vmem:[#allocation6 + $0x4d0] sm:$0xff]  ;;  %v2196_v24 = vld [vmem:[#allocation6 + $0x4d8] sm:$0xff] }
 0x264   :  { %8427 = vmatpush1.bf16.msra.mxu0 %v11048_v47  ;;  %8599 = vmatpush1.bf16.msra.mxu1 %v11050_v56  ;;  %v10124_v47 = vcombine.low %v2107_v26, %v2115_v38  ;;  %v10126_v56 = vcombine.low %v2108_v39, %v2116_v40  ;;  %v2203_v26 = vld [vmem:[#allocation6 + $0x510] sm:$0xff]  ;;  %v2204_v39 = vld [vmem:[#allocation6 + $0x518] sm:$0xff] }
 0x265   :  { %8428 = vmatprep.subr.bf16.mxu0 %v11065_v48  ;;  %8600 = vmatprep.subr.bf16.mxu1 %v11067_v49  ;;  %v10141_v48 = vcombine.high %v2123_v44, %v2131_v45  ;;  %v10143_v49 = vcombine.high %v2124_v46, %v2132_v17  ;;  %v2211_v38 = vld [vmem:[#allocation6 + $0x550] sm:$0xff]  ;;  %v2212_v40 = vld [vmem:[#allocation6 + $0x558] sm:$0xff] }
 0x268   :  { %8429 = vmatpush1.bf16.msra.mxu0 %v11064_v52  ;;  %8601 = vmatpush1.bf16.msra.mxu1 %v11066_v53  ;;  %v10140_v52 = vcombine.low %v2123_v44, %v2131_v45  ;;  %v10142_v53 = vcombine.low %v2124_v46, %v2132_v17  ;;  %v2219_v44 = vld [vmem:[#allocation6 + $0x590] sm:$0xff]  ;;  %v2220_v46 = vld [vmem:[#allocation6 + $0x598] sm:$0xff] }
 0x269   :  { %8613 = vmatprep.subr.bf16.mxu0 %v10061_v54  ;;  %8785 = vmatprep.subr.bf16.mxu1 %v10063_v55  ;;  %v10157_v54 = vcombine.high %v2139_v50, %v2147_v51  ;;  %v10159_v55 = vcombine.high %v2140_v19, %v2148_v28  ;;  %v2227_v45 = vld [vmem:[#allocation6 + $0x5d0] sm:$0xff]  ;;  %v2228_v17 = vld [vmem:[#allocation6 + $0x5d8] sm:$0xff] }
 0x26b   :  { %8431 = vmatmul.mubr.bf16.vlgmr.msra.gmra.mrb[8].mxu0 %v11588_v32  ;;  %8603 = vmatmul.mubr.bf16.vlgmr.msra.gmra.mrb[8].mxu1 %v11588_v32 }
 0x26c   :  { %8614 = vmatpush1.bf16.msra.mxu0 %v10060_v0  ;;  %8645 = vmatprep.mubr.bf16.mxu0 %v11550_v63  ;;  %v10156_v0 = vcombine.low %v2139_v50, %v2147_v51  ;;  %v2235_v50 = vld [vmem:[#allocation6 + $0x610] sm:$0xff] }
 0x26d   :  { %8786 = vmatpush1.bf16.msra.mxu1 %v10062_v1  ;;  %8817 = vmatprep.mubr.bf16.mxu1 %v11550_v63  ;;  %v10158_v1 = vcombine.low %v2140_v19, %v2148_v28  ;;  %v2243_v51 = vld [vmem:[#allocation6 + $0x650] sm:$0xff]  ;;  %v2236_v19 = vld [vmem:[#allocation6 + $0x618] sm:$0xff] }
 0x26e   :  { %8615 = vmatprep.subr.bf16.mxu0 %v10077_v3  ;;  %8787 = vmatprep.subr.bf16.mxu1 %v10079_v4  ;;  %v10173_v3 = vcombine.high %v2155_v58, %v2163_v59  ;;  %v10175_v4 = vcombine.high %v2156_v60, %v2164_v61  ;;  %v2244_v28 = vld [vmem:[#allocation6 + $0x658] sm:$0xff] }
 0x270   :  { %8616 = vmatpush1.bf16.msra.mxu0 %v10076_v9  ;;  %v10172_v9 = vcombine.low %v2155_v58, %v2163_v59  ;;  %v2251_v58 = vld [vmem:[#allocation6 + $0x690] sm:$0xff] }
 0x271   :  { %8788 = vmatpush1.bf16.msra.mxu1 %v10078_v11  ;;  %8617 = vmatprep.subr.bf16.mxu0 %v10093_v12  ;;  %v10174_v11 = vcombine.low %v2156_v60, %v2164_v61  ;;  %v10189_v12 = vcombine.high %v2171_v5, %v2179_v6  ;;  %v2259_v59 = vld [vmem:[#allocation6 + $0x6d0] sm:$0xff]  ;;  %v2252_v60 = vld [vmem:[#allocation6 + $0x698] sm:$0xff] }
 0x272   :  { %8789 = vmatprep.subr.bf16.mxu1 %v10095_v13  ;;  %v10191_v13 = vcombine.high %v2172_v7, %v2180_v8  ;;  %v2260_v61 = vld [vmem:[#allocation6 + $0x6d8] sm:$0xff] }
 0x274   :  { %8618 = vmatpush1.bf16.msra.mxu0 %v10092_v25  ;;  %v10188_v25 = vcombine.low %v2171_v5, %v2179_v6  ;;  %v2267_v5 = vld [vmem:[#allocation6 + $0x710] sm:$0xff] }
 0x275   :  { %8790 = vmatpush1.bf16.msra.mxu1 %v10094_v34  ;;  %8619 = vmatprep.subr.bf16.mxu0 %v10109_v36  ;;  %v10190_v34 = vcombine.low %v2172_v7, %v2180_v8  ;;  %v10205_v36 = vcombine.high %v2187_v20, %v2195_v21  ;;  %v2275_v6 = vld [vmem:[#allocation6 + $0x750] sm:$0xff]  ;;  %v2268_v7 = vld [vmem:[#allocation6 + $0x718] sm:$0xff] }
 0x276   :  { %8791 = vmatprep.subr.bf16.mxu1 %v10111_v37  ;;  %v10207_v37 = vcombine.high %v2188_v22, %v2196_v24  ;;  %v2276_v8 = vld [vmem:[#allocation6 + $0x758] sm:$0xff] }
 0x278   :  { %8620 = vmatpush1.bf16.msra.mxu0 %v10108_v41  ;;  %v10204_v41 = vcombine.low %v2187_v20, %v2195_v21  ;;  %v2283_v20 = vld [vmem:[#allocation6 + $0x790] sm:$0xff] }
 0x279   :  { %8792 = vmatpush1.bf16.msra.mxu1 %v10110_v42  ;;  %8621 = vmatprep.subr.bf16.mxu0 %v10125_v43  ;;  %v10206_v42 = vcombine.low %v2188_v22, %v2196_v24  ;;  %v10221_v43 = vcombine.high %v2203_v26, %v2211_v38  ;;  %v2291_v21 = vld [vmem:[#allocation6 + $0x7d0] sm:$0xff]  ;;  %v2284_v22 = vld [vmem:[#allocation6 + $0x798] sm:$0xff] }
 0x27a   :  { %8793 = vmatprep.subr.bf16.mxu1 %v10127_v10  ;;  %v10223_v10 = vcombine.high %v2204_v39, %v2212_v40  ;;  %v2292_v24 = vld [vmem:[#allocation6 + $0x7d8] sm:$0xff] }
 0x27c   :  { %8622 = vmatpush1.bf16.msra.mxu0 %v10124_v47  ;;  %v10220_v47 = vcombine.low %v2203_v26, %v2211_v38  ;;  %v2299_v26 = vld [vmem:[#allocation6 + $0x810] sm:$0xff] }
 0x27d   :  { %8794 = vmatpush1.bf16.msra.mxu1 %v10126_v56  ;;  %8623 = vmatprep.subr.bf16.mxu0 %v10141_v48  ;;  %v10222_v56 = vcombine.low %v2204_v39, %v2212_v40  ;;  %v10237_v48 = vcombine.high %v2219_v44, %v2227_v45  ;;  %v2307_v38 = vld [vmem:[#allocation6 + $0x850] sm:$0xff]  ;;  %v2300_v39 = vld [vmem:[#allocation6 + $0x818] sm:$0xff] }
 0x27e   :  { %8795 = vmatprep.subr.bf16.mxu1 %v10143_v49  ;;  %v10239_v49 = vcombine.high %v2220_v46, %v2228_v17  ;;  %v2308_v40 = vld [vmem:[#allocation6 + $0x858] sm:$0xff] }
 0x280   :  { %8624 = vmatpush1.bf16.msra.mxu0 %v10140_v52  ;;  %v10236_v52 = vcombine.low %v2219_v44, %v2227_v45  ;;  %v2315_v44 = vld [vmem:[#allocation6 + $0x890] sm:$0xff] }
 0x281   :  { %8796 = vmatpush1.bf16.msra.mxu1 %v10142_v53  ;;  %8625 = vmatprep.subr.bf16.mxu0 %v10157_v54  ;;  %v10238_v53 = vcombine.low %v2220_v46, %v2228_v17  ;;  %v10253_v54 = vcombine.high %v2235_v50, %v2243_v51  ;;  %v2323_v45 = vld [vmem:[#allocation6 + $0x8d0] sm:$0xff]  ;;  %v10316_v46 = vcombine.low %v2299_v26, %v2307_v38  ;;  %v2316_v17 = vld [vmem:[#allocation6 + $0x898] sm:$0xff] }
 0x282   :  { %8797 = vmatprep.subr.bf16.mxu1 %v10159_v55  ;;  %v10255_v55 = vcombine.high %v2236_v19, %v2244_v28 }
 0x284   :  { %8626 = vmatpush1.bf16.msra.mxu0 %v10156_v0  ;;  %v10252_v0 = vcombine.low %v2235_v50, %v2243_v51  ;;  %v2339_v50 = vld [vmem:[#allocation6 + $0x950] sm:$0xff] }
 0x285   :  { %8798 = vmatpush1.bf16.msra.mxu1 %v10158_v1  ;;  %8627 = vmatprep.subr.bf16.mxu0 %v10173_v3  ;;  %v10254_v1 = vcombine.low %v2236_v19, %v2244_v28  ;;  %v10269_v3 = vcombine.high %v2251_v58, %v2259_v59  ;;  %v2332_v19 = vld [vmem:[#allocation6 + $0x918] sm:$0xff] }
 0x286   :  { %8799 = vmatprep.subr.bf16.mxu1 %v10175_v4  ;;  %v10271_v4 = vcombine.high %v2252_v60, %v2260_v61  ;;  %v2340_v28 = vld [vmem:[#allocation6 + $0x958] sm:$0xff] }
 0x288   :  { %8628 = vmatpush1.bf16.msra.mxu0 %v10172_v9  ;;  %v10268_v9 = vcombine.low %v2251_v58, %v2259_v59  ;;  %v2347_v58 = vld [vmem:[#allocation6 + $0x990] sm:$0xff] }
 0x289   :  { %8800 = vmatpush1.bf16.msra.mxu1 %v10174_v11  ;;  %8629 = vmatprep.subr.bf16.mxu0 %v10189_v12  ;;  %v10270_v11 = vcombine.low %v2252_v60, %v2260_v61  ;;  %v10285_v12 = vcombine.high %v2267_v5, %v2275_v6  ;;  %v2355_v59 = vld [vmem:[#allocation6 + $0x9d0] sm:$0xff]  ;;  %v2348_v60 = vld [vmem:[#allocation6 + $0x998] sm:$0xff] }
 0x28a   :  { %8801 = vmatprep.subr.bf16.mxu1 %v10191_v13  ;;  %v10287_v13 = vcombine.high %v2268_v7, %v2276_v8  ;;  %v2356_v61 = vld [vmem:[#allocation6 + $0x9d8] sm:$0xff] }
 0x28c   :  { %8630 = vmatpush1.bf16.msra.mxu0 %v10188_v25  ;;  %v10284_v25 = vcombine.low %v2267_v5, %v2275_v6  ;;  %v2363_v5 = vld [vmem:[#allocation6 + $0xa10] sm:$0xff] }
 0x28d   :  { %8802 = vmatpush1.bf16.msra.mxu1 %v10190_v34  ;;  %8631 = vmatprep.subr.bf16.mxu0 %v10205_v36  ;;  %v10286_v34 = vcombine.low %v2268_v7, %v2276_v8  ;;  %v10301_v36 = vcombine.high %v2283_v20, %v2291_v21  ;;  %v2371_v6 = vld [vmem:[#allocation6 + $0xa50] sm:$0xff]  ;;  %v2364_v7 = vld [vmem:[#allocation6 + $0xa18] sm:$0xff] }
 0x28e   :  { %8803 = vmatprep.subr.bf16.mxu1 %v10207_v37  ;;  %v10303_v37 = vcombine.high %v2284_v22, %v2292_v24  ;;  %v2372_v8 = vld [vmem:[#allocation6 + $0xa58] sm:$0xff] }
 0x290   :  { %8632 = vmatpush1.bf16.msra.mxu0 %v10204_v41  ;;  %v10300_v41 = vcombine.low %v2283_v20, %v2291_v21  ;;  %v2379_v20 = vld [vmem:[#allocation6 + $0xa90] sm:$0xff] }
 0x291   :  { %8804 = vmatpush1.bf16.msra.mxu1 %v10206_v42  ;;  %8633 = vmatprep.subr.bf16.mxu0 %v10221_v43  ;;  %v10302_v42 = vcombine.low %v2284_v22, %v2292_v24  ;;  %v10317_v43 = vcombine.high %v2299_v26, %v2307_v38  ;;  %v2387_v21 = vld [vmem:[#allocation6 + $0xad0] sm:$0xff]  ;;  %v2380_v22 = vld [vmem:[#allocation6 + $0xa98] sm:$0xff] }
 0x292   :  { %8805 = vmatprep.subr.bf16.mxu1 %v10223_v10  ;;  %v10319_v10 = vcombine.high %v2300_v39, %v2308_v40  ;;  %v2388_v24 = vld [vmem:[#allocation6 + $0xad8] sm:$0xff]  ;;  %v2395_v26 = vld [vmem:[#allocation6 + $0xb10] sm:$0xff] }
 0x293   :  { %v2403_v38 = vld [vmem:[#allocation6 + $0xb50] sm:$0xff] }
 0x294   :  { %8634 = vmatpush1.bf16.msra.mxu0 %v10220_v47  ;;  %v2324_v47 = vld [vmem:[#allocation6 + $0x8d8] sm:$0xff] }
 0x295   :  { %8806 = vmatpush1.bf16.msra.mxu1 %v10222_v56  ;;  %8635 = vmatprep.subr.bf16.mxu0 %v10237_v48  ;;  %v10318_v56 = vcombine.low %v2300_v39, %v2308_v40  ;;  %v10333_v48 = vcombine.high %v2315_v44, %v2323_v45  ;;  %v10335_v51 = vcombine.high %v2316_v17, %v2324_v47  ;;  %v2396_v39 = vld [vmem:[#allocation6 + $0xb18] sm:$0xff] }
 0x296   :  { %8807 = vmatprep.subr.bf16.mxu1 %v10239_v49  ;;  %v2331_v49 = vld [vmem:[#allocation6 + $0x910] sm:$0xff]  ;;  %v2404_v40 = vld [vmem:[#allocation6 + $0xb58] sm:$0xff] }
 0x298   :  { %8636 = vmatpush1.bf16.msra.mxu0 %v10236_v52  ;;  %v10332_v52 = vcombine.low %v2315_v44, %v2323_v45  ;;  %v2411_v44 = vld [vmem:[#allocation6 + $0xb90] sm:$0xff] }
 0x299   :  { %8808 = vmatpush1.bf16.msra.mxu1 %v10238_v53  ;;  %8637 = vmatprep.subr.bf16.mxu0 %v10253_v54  ;;  %v10334_v53 = vcombine.low %v2316_v17, %v2324_v47  ;;  %v10349_v54 = vcombine.high %v2331_v49, %v2339_v50  ;;  %v2419_v45 = vld [vmem:[#allocation6 + $0xbd0] sm:$0xff]  ;;  %v2420_v17 = vld [vmem:[#allocation6 + $0xbd8] sm:$0xff]  ;;  %v10412_v47 = vcombine.low %v2395_v26, %v2403_v38 }
 0x29a   :  { %8809 = vmatprep.subr.bf16.mxu1 %v10255_v55  ;;  %v10351_v55 = vcombine.high %v2332_v19, %v2340_v28 }
 0x29c   :  { %8638 = vmatpush1.bf16.msra.mxu0 %v10252_v0  ;;  %v10348_v0 = vcombine.low %v2331_v49, %v2339_v50  ;;  %v2427_v50 = vld [vmem:[#allocation6 + $0xc10] sm:$0xff] }
 0x29d   :  { %8810 = vmatpush1.bf16.msra.mxu1 %v10254_v1  ;;  %8639 = vmatprep.subr.bf16.mxu0 %v10269_v3  ;;  %v10350_v1 = vcombine.low %v2332_v19, %v2340_v28  ;;  %v10365_v3 = vcombine.high %v2347_v58, %v2355_v59  ;;  %v2428_v19 = vld [vmem:[#allocation6 + $0xc18] sm:$0xff] }
 0x29e   :  { %8811 = vmatprep.subr.bf16.mxu1 %v10271_v4  ;;  %v10367_v4 = vcombine.high %v2348_v60, %v2356_v61  ;;  %v2436_v28 = vld [vmem:[#allocation6 + $0xc58] sm:$0xff] }
 0x2a0   :  { %8640 = vmatpush1.bf16.msra.mxu0 %v10268_v9  ;;  %v10364_v9 = vcombine.low %v2347_v58, %v2355_v59  ;;  %v2443_v58 = vld [vmem:[#allocation6 + $0xc90] sm:$0xff] }
 0x2a1   :  { %8812 = vmatpush1.bf16.msra.mxu1 %v10270_v11  ;;  %8641 = vmatprep.subr.bf16.mxu0 %v10285_v12  ;;  %v10366_v11 = vcombine.low %v2348_v60, %v2356_v61  ;;  %v10381_v12 = vcombine.high %v2363_v5, %v2371_v6  ;;  %v2451_v59 = vld [vmem:[#allocation6 + $0xcd0] sm:$0xff]  ;;  %v2444_v60 = vld [vmem:[#allocation6 + $0xc98] sm:$0xff] }
 0x2a2   :  { %8813 = vmatprep.subr.bf16.mxu1 %v10287_v13  ;;  %v10383_v13 = vcombine.high %v2364_v7, %v2372_v8  ;;  %v2452_v61 = vld [vmem:[#allocation6 + $0xcd8] sm:$0xff] }
 0x2a4   :  { %8642 = vmatpush1.bf16.msra.mxu0 %v10284_v25  ;;  %v10380_v25 = vcombine.low %v2363_v5, %v2371_v6  ;;  %v2459_v5 = vld [vmem:[#allocation6 + $0xd10] sm:$0xff] }
 0x2a5   :  { %8814 = vmatpush1.bf16.msra.mxu1 %v10286_v34  ;;  %8643 = vmatprep.subr.bf16.mxu0 %v10301_v36  ;;  %v10382_v34 = vcombine.low %v2364_v7, %v2372_v8  ;;  %v10397_v36 = vcombine.high %v2379_v20, %v2387_v21  ;;  %v2467_v6 = vld [vmem:[#allocation6 + $0xd50] sm:$0xff]  ;;  %v2460_v7 = vld [vmem:[#allocation6 + $0xd18] sm:$0xff] }
 0x2a6   :  { %8815 = vmatprep.subr.bf16.mxu1 %v10303_v37  ;;  %v10399_v37 = vcombine.high %v2380_v22, %v2388_v24  ;;  %v2468_v8 = vld [vmem:[#allocation6 + $0xd58] sm:$0xff] }
 0x2a8   :  { %8644 = vmatpush1.bf16.msra.mxu0 %v10300_v41  ;;  %v10396_v41 = vcombine.low %v2379_v20, %v2387_v21  ;;  %v2475_v20 = vld [vmem:[#allocation6 + $0xd90] sm:$0xff] }
 0x2a9   :  { %8816 = vmatpush1.bf16.msra.mxu1 %v10302_v42  ;;  %8656 = vmatprep.subr.bf16.mxu0 %v10317_v43  ;;  %v10398_v42 = vcombine.low %v2380_v22, %v2388_v24  ;;  %v10413_v43 = vcombine.high %v2395_v26, %v2403_v38  ;;  %v2483_v21 = vld [vmem:[#allocation6 + $0xdd0] sm:$0xff]  ;;  %v2476_v22 = vld [vmem:[#allocation6 + $0xd98] sm:$0xff] }
 0x2aa   :  { %8828 = vmatprep.subr.bf16.mxu1 %v10319_v10  ;;  %v10415_v10 = vcombine.high %v2396_v39, %v2404_v40  ;;  %v2484_v24 = vld [vmem:[#allocation6 + $0xdd8] sm:$0xff]  ;;  %v2491_v26 = vld [vmem:[#allocation6 + $0xe10] sm:$0xff] }
 0x2ab   :  { %8646 = vmatmul.mubr.bf16.vlgmr.msra.gmra.mrb[12].mxu0 %v11546_v57  ;;  %v2499_v38 = vld [vmem:[#allocation6 + $0xe50] sm:$0xff] }
 0x2ac   :  { %8818 = vmatmul.mubr.bf16.vlgmr.msra.gmra.mrb[12].mxu1 %v11546_v57  ;;  %8657 = vmatpush1.bf16.msra.mxu0 %v10316_v46  ;;  %v2412_v46 = vld [vmem:[#allocation6 + $0xb98] sm:$0xff] }
 0x2ad   :  { %8688 = vmatprep.mubr.bf16.mxu0 %v11556_v2  ;;  %8829 = vmatpush1.bf16.msra.mxu1 %v10318_v56  ;;  %v10414_v56 = vcombine.low %v2396_v39, %v2404_v40  ;;  %v10431_v49 = vcombine.high %v2412_v46, %v2420_v17  ;;  %v2492_v39 = vld [vmem:[#allocation6 + $0xe18] sm:$0xff] }
 0x2ae   :  { %8860 = vmatprep.mubr.bf16.mxu1 %v11556_v2  ;;  %8658 = vmatprep.subr.bf16.mxu0 %v10333_v48  ;;  %v10429_v48 = vcombine.high %v2411_v44, %v2419_v45  ;;  %v2500_v40 = vld [vmem:[#allocation6 + $0xe58] sm:$0xff] }
 0x2af   :  { %8830 = vmatprep.subr.bf16.mxu1 %v10335_v51  ;;  %v2435_v51 = vld [vmem:[#allocation6 + $0xc50] sm:$0xff] }
 0x2b0   :  { %8659 = vmatpush1.bf16.msra.mxu0 %v10332_v52  ;;  %v10428_v52 = vcombine.low %v2411_v44, %v2419_v45  ;;  %v2507_v44 = vld [vmem:[#allocation6 + $0xe90] sm:$0xff] }
 0x2b1   :  { %8831 = vmatpush1.bf16.msra.mxu1 %v10334_v53  ;;  %8660 = vmatprep.subr.bf16.mxu0 %v10349_v54  ;;  %v10430_v53 = vcombine.low %v2412_v46, %v2420_v17  ;;  %v10445_v54 = vcombine.high %v2427_v50, %v2435_v51  ;;  %v2515_v45 = vld [vmem:[#allocation6 + $0xed0] sm:$0xff]  ;;  %v2508_v46 = vld [vmem:[#allocation6 + $0xe98] sm:$0xff] }
 0x2b2   :  { %8832 = vmatprep.subr.bf16.mxu1 %v10351_v55  ;;  %v10447_v55 = vcombine.high %v2428_v19, %v2436_v28  ;;  %v2516_v17 = vld [vmem:[#allocation6 + $0xed8] sm:$0xff] }
 0x2b4   :  { %8661 = vmatpush1.bf16.msra.mxu0 %v10348_v0  ;;  %v10444_v0 = vcombine.low %v2427_v50, %v2435_v51  ;;  %v2523_v50 = vld [vmem:[#allocation6 + $0xf10] sm:$0xff] }
 0x2b5   :  { %8833 = vmatpush1.bf16.msra.mxu1 %v10350_v1  ;;  %8662 = vmatprep.subr.bf16.mxu0 %v10365_v3  ;;  %v10446_v1 = vcombine.low %v2428_v19, %v2436_v28  ;;  %v10461_v3 = vcombine.high %v2443_v58, %v2451_v59  ;;  %v2531_v51 = vld [vmem:[#allocation6 + $0xf50] sm:$0xff]  ;;  %v2524_v19 = vld [vmem:[#allocation6 + $0xf18] sm:$0xff] }
 0x2b6   :  { %8834 = vmatprep.subr.bf16.mxu1 %v10367_v4  ;;  %v10463_v4 = vcombine.high %v2444_v60, %v2452_v61  ;;  %v2532_v28 = vld [vmem:[#allocation6 + $0xf58] sm:$0xff] }
 0x2b8   :  { %8663 = vmatpush1.bf16.msra.mxu0 %v10364_v9  ;;  %v10460_v9 = vcombine.low %v2443_v58, %v2451_v59  ;;  %v2539_v58 = vld [vmem:[#allocation6 + $0xf90] sm:$0xff] }
 0x2b9   :  { %8835 = vmatpush1.bf16.msra.mxu1 %v10366_v11  ;;  %8664 = vmatprep.subr.bf16.mxu0 %v10381_v12  ;;  %v10462_v11 = vcombine.low %v2444_v60, %v2452_v61  ;;  %v10477_v12 = vcombine.high %v2459_v5, %v2467_v6  ;;  %v2547_v59 = vld [vmem:[#allocation6 + $0xfd0] sm:$0xff]  ;;  %v2540_v60 = vld [vmem:[#allocation6 + $0xf98] sm:$0xff] }
 0x2ba   :  { %8836 = vmatprep.subr.bf16.mxu1 %v10383_v13  ;;  %v10479_v13 = vcombine.high %v2460_v7, %v2468_v8  ;;  %v2548_v61 = vld [vmem:[#allocation6 + $0xfd8] sm:$0xff] }
 0x2bc   :  { %8665 = vmatpush1.bf16.msra.mxu0 %v10380_v25  ;;  %v10476_v25 = vcombine.low %v2459_v5, %v2467_v6  ;;  %v2555_v5 = vld [vmem:[#allocation6 + $0x1010] sm:$0xff] }
 0x2bd   :  { %8837 = vmatpush1.bf16.msra.mxu1 %v10382_v34  ;;  %8666 = vmatprep.subr.bf16.mxu0 %v10397_v36  ;;  %v10478_v34 = vcombine.low %v2460_v7, %v2468_v8  ;;  %v10493_v36 = vcombine.high %v2475_v20, %v2483_v21  ;;  %v2563_v6 = vld [vmem:[#allocation6 + $0x1050] sm:$0xff]  ;;  %v2556_v7 = vld [vmem:[#allocation6 + $0x1018] sm:$0xff] }
 0x2be   :  { %8838 = vmatprep.subr.bf16.mxu1 %v10399_v37  ;;  %v10495_v37 = vcombine.high %v2476_v22, %v2484_v24  ;;  %v2564_v8 = vld [vmem:[#allocation6 + $0x1058] sm:$0xff] }
 0x2c0   :  { %8667 = vmatpush1.bf16.msra.mxu0 %v10396_v41  ;;  %v10492_v41 = vcombine.low %v2475_v20, %v2483_v21  ;;  %v2571_v20 = vld [vmem:[#allocation6 + $0x1090] sm:$0xff] }
 0x2c1   :  { %8839 = vmatpush1.bf16.msra.mxu1 %v10398_v42  ;;  %8668 = vmatprep.subr.bf16.mxu0 %v10413_v43  ;;  %v10494_v42 = vcombine.low %v2476_v22, %v2484_v24  ;;  %v10509_v43 = vcombine.high %v2491_v26, %v2499_v38  ;;  %v2579_v21 = vld [vmem:[#allocation6 + $0x10d0] sm:$0xff]  ;;  %v10572_v22 = vcombine.low %v2555_v5, %v2563_v6  ;;  %v2572_v24 = vld [vmem:[#allocation6 + $0x1098] sm:$0xff] }
 0x2c2   :  { %8840 = vmatprep.subr.bf16.mxu1 %v10415_v10  ;;  %v10511_v10 = vcombine.high %v2492_v39, %v2500_v40 }
 0x2c4   :  { %8669 = vmatpush1.bf16.msra.mxu0 %v10412_v47  ;;  %v10508_v47 = vcombine.low %v2491_v26, %v2499_v38  ;;  %v2595_v26 = vld [vmem:[#allocation6 + $0x1150] sm:$0xff] }
 0x2c5   :  { %8841 = vmatpush1.bf16.msra.mxu1 %v10414_v56  ;;  %8670 = vmatprep.subr.bf16.mxu0 %v10429_v48  ;;  %v10510_v56 = vcombine.low %v2492_v39, %v2500_v40  ;;  %v10525_v48 = vcombine.high %v2507_v44, %v2515_v45  ;;  %v2588_v39 = vld [vmem:[#allocation6 + $0x1118] sm:$0xff] }
 0x2c6   :  { %8842 = vmatprep.subr.bf16.mxu1 %v10431_v49  ;;  %v10527_v49 = vcombine.high %v2508_v46, %v2516_v17  ;;  %v2596_v40 = vld [vmem:[#allocation6 + $0x1158] sm:$0xff] }
 0x2c8   :  { %8671 = vmatpush1.bf16.msra.mxu0 %v10428_v52  ;;  %v10524_v52 = vcombine.low %v2507_v44, %v2515_v45  ;;  %v2603_v44 = vld [vmem:[#allocation6 + $0x1190] sm:$0xff] }
 0x2c9   :  { %8843 = vmatpush1.bf16.msra.mxu1 %v10430_v53  ;;  %8672 = vmatprep.subr.bf16.mxu0 %v10445_v54  ;;  %v10526_v53 = vcombine.low %v2508_v46, %v2516_v17  ;;  %v10541_v54 = vcombine.high %v2523_v50, %v2531_v51  ;;  %v2611_v45 = vld [vmem:[#allocation6 + $0x11d0] sm:$0xff]  ;;  %v2604_v46 = vld [vmem:[#allocation6 + $0x1198] sm:$0xff] }
 0x2ca   :  { %8844 = vmatprep.subr.bf16.mxu1 %v10447_v55  ;;  %v10543_v55 = vcombine.high %v2524_v19, %v2532_v28  ;;  %v2612_v17 = vld [vmem:[#allocation6 + $0x11d8] sm:$0xff] }
 0x2cc   :  { %8673 = vmatpush1.bf16.msra.mxu0 %v10444_v0  ;;  %v10540_v0 = vcombine.low %v2523_v50, %v2531_v51  ;;  %v2619_v50 = vld [vmem:[#allocation6 + $0x1210] sm:$0xff] }
 0x2cd   :  { %8845 = vmatpush1.bf16.msra.mxu1 %v10446_v1  ;;  %8674 = vmatprep.subr.bf16.mxu0 %v10461_v3  ;;  %v10542_v1 = vcombine.low %v2524_v19, %v2532_v28  ;;  %v10557_v3 = vcombine.high %v2539_v58, %v2547_v59  ;;  %v2627_v51 = vld [vmem:[#allocation6 + $0x1250] sm:$0xff]  ;;  %v2620_v19 = vld [vmem:[#allocation6 + $0x1218] sm:$0xff] }
 0x2ce   :  { %8846 = vmatprep.subr.bf16.mxu1 %v10463_v4  ;;  %v10559_v4 = vcombine.high %v2540_v60, %v2548_v61  ;;  %v2628_v28 = vld [vmem:[#allocation6 + $0x1258] sm:$0xff] }
 0x2d0   :  { %8675 = vmatpush1.bf16.msra.mxu0 %v10460_v9  ;;  %v10556_v9 = vcombine.low %v2539_v58, %v2547_v59  ;;  %v2635_v58 = vld [vmem:[#allocation6 + $0x1290] sm:$0xff] }
 0x2d1   :  { %8847 = vmatpush1.bf16.msra.mxu1 %v10462_v11  ;;  %8676 = vmatprep.subr.bf16.mxu0 %v10477_v12  ;;  %v10558_v11 = vcombine.low %v2540_v60, %v2548_v61  ;;  %v10573_v12 = vcombine.high %v2555_v5, %v2563_v6  ;;  %v2643_v59 = vld [vmem:[#allocation6 + $0x12d0] sm:$0xff]  ;;  %v2636_v60 = vld [vmem:[#allocation6 + $0x1298] sm:$0xff] }
 0x2d2   :  { %8848 = vmatprep.subr.bf16.mxu1 %v10479_v13  ;;  %v10575_v13 = vcombine.high %v2556_v7, %v2564_v8  ;;  %v2644_v61 = vld [vmem:[#allocation6 + $0x12d8] sm:$0xff]  ;;  %v2651_v5 = vld [vmem:[#allocation6 + $0x1310] sm:$0xff] }
 0x2d3   :  { %v2659_v6 = vld [vmem:[#allocation6 + $0x1350] sm:$0xff] }
 0x2d4   :  { %8677 = vmatpush1.bf16.msra.mxu0 %v10476_v25  ;;  %v2580_v25 = vld [vmem:[#allocation6 + $0x10d8] sm:$0xff] }
 0x2d5   :  { %8849 = vmatpush1.bf16.msra.mxu1 %v10478_v34  ;;  %8678 = vmatprep.subr.bf16.mxu0 %v10493_v36  ;;  %v10574_v34 = vcombine.low %v2556_v7, %v2564_v8  ;;  %v10589_v36 = vcombine.high %v2571_v20, %v2579_v21  ;;  %v10591_v38 = vcombine.high %v2572_v24, %v2580_v25  ;;  %v2652_v7 = vld [vmem:[#allocation6 + $0x1318] sm:$0xff] }
 0x2d6   :  { %8850 = vmatprep.subr.bf16.mxu1 %v10495_v37  ;;  %v2587_v37 = vld [vmem:[#allocation6 + $0x1110] sm:$0xff]  ;;  %v2660_v8 = vld [vmem:[#allocation6 + $0x1358] sm:$0xff] }
 0x2d8   :  { %8679 = vmatpush1.bf16.msra.mxu0 %v10492_v41  ;;  %v10588_v41 = vcombine.low %v2571_v20, %v2579_v21  ;;  %v2667_v20 = vld [vmem:[#allocation6 + $0x1390] sm:$0xff] }
 0x2d9   :  { %8851 = vmatpush1.bf16.msra.mxu1 %v10494_v42  ;;  %8680 = vmatprep.subr.bf16.mxu0 %v10509_v43  ;;  %v10590_v42 = vcombine.low %v2572_v24, %v2580_v25  ;;  %v10605_v43 = vcombine.high %v2587_v37, %v2595_v26  ;;  %v2675_v21 = vld [vmem:[#allocation6 + $0x13d0] sm:$0xff]  ;;  %v2676_v24 = vld [vmem:[#allocation6 + $0x13d8] sm:$0xff]  ;;  %v10668_v25 = vcombine.low %v2651_v5, %v2659_v6 }
 0x2da   :  { %8852 = vmatprep.subr.bf16.mxu1 %v10511_v10  ;;  %v10607_v10 = vcombine.high %v2588_v39, %v2596_v40 }
 0x2dc   :  { %8681 = vmatpush1.bf16.msra.mxu0 %v10508_v47  ;;  %v10604_v47 = vcombine.low %v2587_v37, %v2595_v26  ;;  %v2683_v26 = vld [vmem:[#allocation6 + $0x1410] sm:$0xff] }
 0x2dd   :  { %8853 = vmatpush1.bf16.msra.mxu1 %v10510_v56  ;;  %8682 = vmatprep.subr.bf16.mxu0 %v10525_v48  ;;  %v10606_v56 = vcombine.low %v2588_v39, %v2596_v40  ;;  %v10621_v48 = vcombine.high %v2603_v44, %v2611_v45  ;;  %v2684_v39 = vld [vmem:[#allocation6 + $0x1418] sm:$0xff] }
 0x2de   :  { %8854 = vmatprep.subr.bf16.mxu1 %v10527_v49  ;;  %v10623_v49 = vcombine.high %v2604_v46, %v2612_v17  ;;  %v2692_v40 = vld [vmem:[#allocation6 + $0x1458] sm:$0xff] }
 0x2e0   :  { %8683 = vmatpush1.bf16.msra.mxu0 %v10524_v52  ;;  %v10620_v52 = vcombine.low %v2603_v44, %v2611_v45  ;;  %v2699_v44 = vld [vmem:[#allocation6 + $0x1490] sm:$0xff] }
 0x2e1   :  { %8855 = vmatpush1.bf16.msra.mxu1 %v10526_v53  ;;  %8684 = vmatprep.subr.bf16.mxu0 %v10541_v54  ;;  %v10622_v53 = vcombine.low %v2604_v46, %v2612_v17  ;;  %v10637_v54 = vcombine.high %v2619_v50, %v2627_v51  ;;  %v2707_v45 = vld [vmem:[#allocation6 + $0x14d0] sm:$0xff]  ;;  %v2700_v46 = vld [vmem:[#allocation6 + $0x1498] sm:$0xff] }
 0x2e2   :  { %8856 = vmatprep.subr.bf16.mxu1 %v10543_v55  ;;  %v10639_v55 = vcombine.high %v2620_v19, %v2628_v28  ;;  %v2708_v17 = vld [vmem:[#allocation6 + $0x14d8] sm:$0xff] }
 0x2e4   :  { %8685 = vmatpush1.bf16.msra.mxu0 %v10540_v0  ;;  %v10636_v0 = vcombine.low %v2619_v50, %v2627_v51  ;;  %v2715_v50 = vld [vmem:[#allocation6 + $0x1510] sm:$0xff] }
 0x2e5   :  { %8857 = vmatpush1.bf16.msra.mxu1 %v10542_v1  ;;  %8686 = vmatprep.subr.bf16.mxu0 %v10557_v3  ;;  %v10638_v1 = vcombine.low %v2620_v19, %v2628_v28  ;;  %v10653_v3 = vcombine.high %v2635_v58, %v2643_v59  ;;  %v2723_v51 = vld [vmem:[#allocation6 + $0x1550] sm:$0xff]  ;;  %v2716_v19 = vld [vmem:[#allocation6 + $0x1518] sm:$0xff] }
 0x2e6   :  { %8858 = vmatprep.subr.bf16.mxu1 %v10559_v4  ;;  %v10655_v4 = vcombine.high %v2636_v60, %v2644_v61  ;;  %v2724_v28 = vld [vmem:[#allocation6 + $0x1558] sm:$0xff] }
 0x2e8   :  { %8687 = vmatpush1.bf16.msra.mxu0 %v10556_v9  ;;  %v10652_v9 = vcombine.low %v2635_v58, %v2643_v59  ;;  %v2731_v58 = vld [vmem:[#allocation6 + $0x1590] sm:$0xff] }
 0x2e9   :  { %8859 = vmatpush1.bf16.msra.mxu1 %v10558_v11  ;;  %8699 = vmatprep.subr.bf16.mxu0 %v10573_v12  ;;  %v10654_v11 = vcombine.low %v2636_v60, %v2644_v61  ;;  %v10669_v12 = vcombine.high %v2651_v5, %v2659_v6  ;;  %v2739_v59 = vld [vmem:[#allocation6 + $0x15d0] sm:$0xff]  ;;  %v2732_v60 = vld [vmem:[#allocation6 + $0x1598] sm:$0xff] }
 0x2ea   :  { %8871 = vmatprep.subr.bf16.mxu1 %v10575_v13  ;;  %v10671_v13 = vcombine.high %v2652_v7, %v2660_v8  ;;  %v2740_v61 = vld [vmem:[#allocation6 + $0x15d8] sm:$0xff]  ;;  %v2747_v5 = vld [vmem:[#allocation6 + $0x1610] sm:$0xff] }
 0x2eb   :  { %8689 = vmatmul.mubr.bf16.vlgmr.msra.gmra.mrb[12].mxu0 %v11548_v62  ;;  %v2755_v6 = vld [vmem:[#allocation6 + $0x1650] sm:$0xff] }
 0x2ec   :  { %8861 = vmatmul.mubr.bf16.vlgmr.msra.gmra.mrb[12].mxu1 %v11548_v62  ;;  %8700 = vmatpush1.bf16.msra.mxu0 %v10572_v22  ;;  %v2668_v22 = vld [vmem:[#allocation6 + $0x1398] sm:$0xff] }
 0x2ed   :  { %8731 = vmatprep.mubr.bf16.mxu0 %v11590_v33  ;;  %8872 = vmatpush1.bf16.msra.mxu1 %v10574_v34  ;;  %v10670_v34 = vcombine.low %v2652_v7, %v2660_v8  ;;  %v10687_v37 = vcombine.high %v2668_v22, %v2676_v24  ;;  %v2748_v7 = vld [vmem:[#allocation6 + $0x1618] sm:$0xff] }
 0x2ee   :  { %8903 = vmatprep.mubr.bf16.mxu1 %v11590_v33  ;;  %8701 = vmatprep.subr.bf16.mxu0 %v10589_v36  ;;  %v10685_v36 = vcombine.high %v2667_v20, %v2675_v21  ;;  %v2756_v8 = vld [vmem:[#allocation6 + $0x1658] sm:$0xff] }
 0x2ef   :  { %8873 = vmatprep.subr.bf16.mxu1 %v10591_v38  ;;  %v2691_v38 = vld [vmem:[#allocation6 + $0x1450] sm:$0xff] }
 0x2f0   :  { %8702 = vmatpush1.bf16.msra.mxu0 %v10588_v41  ;;  %v10684_v41 = vcombine.low %v2667_v20, %v2675_v21  ;;  %v2763_v20 = vld [vmem:[#allocation6 + $0x1690] sm:$0xff] }
 0x2f1   :  { %8874 = vmatpush1.bf16.msra.mxu1 %v10590_v42  ;;  %8703 = vmatprep.subr.bf16.mxu0 %v10605_v43  ;;  %v10686_v42 = vcombine.low %v2668_v22, %v2676_v24  ;;  %v10701_v43 = vcombine.high %v2683_v26, %v2691_v38  ;;  %v2771_v21 = vld [vmem:[#allocation6 + $0x16d0] sm:$0xff]  ;;  %v2764_v22 = vld [vmem:[#allocation6 + $0x1698] sm:$0xff] }
 0x2f2   :  { %8875 = vmatprep.subr.bf16.mxu1 %v10607_v10  ;;  %v10703_v10 = vcombine.high %v2684_v39, %v2692_v40  ;;  %v2772_v24 = vld [vmem:[#allocation6 + $0x16d8] sm:$0xff] }
 0x2f4   :  { %8704 = vmatpush1.bf16.msra.mxu0 %v10604_v47  ;;  %v10700_v47 = vcombine.low %v2683_v26, %v2691_v38  ;;  %v2779_v26 = vld [vmem:[#allocation6 + $0x1710] sm:$0xff] }
 0x2f5   :  { %8876 = vmatpush1.bf16.msra.mxu1 %v10606_v56  ;;  %8705 = vmatprep.subr.bf16.mxu0 %v10621_v48  ;;  %v10702_v56 = vcombine.low %v2684_v39, %v2692_v40  ;;  %v10717_v48 = vcombine.high %v2699_v44, %v2707_v45  ;;  %v2787_v38 = vld [vmem:[#allocation6 + $0x1750] sm:$0xff]  ;;  %v2780_v39 = vld [vmem:[#allocation6 + $0x1718] sm:$0xff] }
 0x2f6   :  { %8877 = vmatprep.subr.bf16.mxu1 %v10623_v49  ;;  %v10719_v49 = vcombine.high %v2700_v46, %v2708_v17  ;;  %v2788_v40 = vld [vmem:[#allocation6 + $0x1758] sm:$0xff] }
 0x2f8   :  { %8706 = vmatpush1.bf16.msra.mxu0 %v10620_v52  ;;  %v10716_v52 = vcombine.low %v2699_v44, %v2707_v45  ;;  %v2795_v44 = vld [vmem:[#allocation6 + $0x1790] sm:$0xff] }
 0x2f9   :  { %8878 = vmatpush1.bf16.msra.mxu1 %v10622_v53  ;;  %8707 = vmatprep.subr.bf16.mxu0 %v10637_v54  ;;  %v10718_v53 = vcombine.low %v2700_v46, %v2708_v17  ;;  %v10733_v54 = vcombine.high %v2715_v50, %v2723_v51  ;;  %v2803_v45 = vld [vmem:[#allocation6 + $0x17d0] sm:$0xff]  ;;  %v2796_v46 = vld [vmem:[#allocation6 + $0x1798] sm:$0xff] }
 0x2fa   :  { %8879 = vmatprep.subr.bf16.mxu1 %v10639_v55  ;;  %v10735_v55 = vcombine.high %v2716_v19, %v2724_v28  ;;  %v2804_v17 = vld [vmem:[#allocation6 + $0x17d8] sm:$0xff] }
 0x2fc   :  { %8708 = vmatpush1.bf16.msra.mxu0 %v10636_v0  ;;  %v10732_v0 = vcombine.low %v2715_v50, %v2723_v51  ;;  %v2811_v50 = vld [vmem:[#allocation6 + $0x1810] sm:$0xff] }
 0x2fd   :  { %8880 = vmatpush1.bf16.msra.mxu1 %v10638_v1  ;;  %8709 = vmatprep.subr.bf16.mxu0 %v10653_v3  ;;  %v10734_v1 = vcombine.low %v2716_v19, %v2724_v28  ;;  %v10749_v3 = vcombine.high %v2731_v58, %v2739_v59  ;;  %v2819_v51 = vld [vmem:[#allocation6 + $0x1850] sm:$0xff]  ;;  %v2812_v19 = vld [vmem:[#allocation6 + $0x1818] sm:$0xff] }
 0x2fe   :  { %8881 = vmatprep.subr.bf16.mxu1 %v10655_v4  ;;  %v10751_v4 = vcombine.high %v2732_v60, %v2740_v61  ;;  %v2820_v28 = vld [vmem:[#allocation6 + $0x1858] sm:$0xff] }
 0x300   :  { %8710 = vmatpush1.bf16.msra.mxu0 %v10652_v9  ;;  %v10748_v9 = vcombine.low %v2731_v58, %v2739_v59  ;;  %v2827_v58 = vld [vmem:[#allocation6 + $0x1890] sm:$0xff] }
 0x301   :  { %8882 = vmatpush1.bf16.msra.mxu1 %v10654_v11  ;;  %8711 = vmatprep.subr.bf16.mxu0 %v10669_v12  ;;  %v10750_v11 = vcombine.low %v2732_v60, %v2740_v61  ;;  %v10765_v12 = vcombine.high %v2747_v5, %v2755_v6  ;;  %v2835_v59 = vld [vmem:[#allocation6 + $0x18d0] sm:$0xff]  ;;  %v10828_v60 = vcombine.low %v2811_v50, %v2819_v51  ;;  %v2828_v61 = vld [vmem:[#allocation6 + $0x1898] sm:$0xff] }
 0x302   :  { %8883 = vmatprep.subr.bf16.mxu1 %v10671_v13  ;;  %v10767_v13 = vcombine.high %v2748_v7, %v2756_v8 }
 0x304   :  { %8712 = vmatpush1.bf16.msra.mxu0 %v10668_v25  ;;  %v10764_v25 = vcombine.low %v2747_v5, %v2755_v6  ;;  %v2851_v5 = vld [vmem:[#allocation6 + $0x1950] sm:$0xff] }
 0x305   :  { %8884 = vmatpush1.bf16.msra.mxu1 %v10670_v34  ;;  %8713 = vmatprep.subr.bf16.mxu0 %v10685_v36  ;;  %v10766_v34 = vcombine.low %v2748_v7, %v2756_v8  ;;  %v10781_v36 = vcombine.high %v2763_v20, %v2771_v21  ;;  %v2844_v7 = vld [vmem:[#allocation6 + $0x1918] sm:$0xff] }
 0x306   :  { %8885 = vmatprep.subr.bf16.mxu1 %v10687_v37  ;;  %v10783_v37 = vcombine.high %v2764_v22, %v2772_v24  ;;  %v2852_v8 = vld [vmem:[#allocation6 + $0x1958] sm:$0xff] }
 0x308   :  { %8714 = vmatpush1.bf16.msra.mxu0 %v10684_v41  ;;  %v10780_v41 = vcombine.low %v2763_v20, %v2771_v21  ;;  %v2859_v20 = vld [vmem:[#allocation6 + $0x1990] sm:$0xff] }
 0x309   :  { %8886 = vmatpush1.bf16.msra.mxu1 %v10686_v42  ;;  %8715 = vmatprep.subr.bf16.mxu0 %v10701_v43  ;;  %v10782_v42 = vcombine.low %v2764_v22, %v2772_v24  ;;  %v10797_v43 = vcombine.high %v2779_v26, %v2787_v38  ;;  %v2867_v21 = vld [vmem:[#allocation6 + $0x19d0] sm:$0xff]  ;;  %v2860_v22 = vld [vmem:[#allocation6 + $0x1998] sm:$0xff] }
 0x30a   :  { %8887 = vmatprep.subr.bf16.mxu1 %v10703_v10  ;;  %v10799_v10 = vcombine.high %v2780_v39, %v2788_v40  ;;  %v2868_v24 = vld [vmem:[#allocation6 + $0x19d8] sm:$0xff] }
 0x30c   :  { %8716 = vmatpush1.bf16.msra.mxu0 %v10700_v47  ;;  %v10796_v47 = vcombine.low %v2779_v26, %v2787_v38  ;;  %v2875_v26 = vld [vmem:[#allocation6 + $0x1a10] sm:$0xff] }
 0x30d   :  { %8888 = vmatpush1.bf16.msra.mxu1 %v10702_v56  ;;  %8717 = vmatprep.subr.bf16.mxu0 %v10717_v48  ;;  %v10798_v56 = vcombine.low %v2780_v39, %v2788_v40  ;;  %v10813_v48 = vcombine.high %v2795_v44, %v2803_v45  ;;  %v2883_v38 = vld [vmem:[#allocation6 + $0x1a50] sm:$0xff]  ;;  %v2876_v39 = vld [vmem:[#allocation6 + $0x1a18] sm:$0xff] }
 0x30e   :  { %8889 = vmatprep.subr.bf16.mxu1 %v10719_v49  ;;  %v10815_v49 = vcombine.high %v2796_v46, %v2804_v17  ;;  %v2884_v40 = vld [vmem:[#allocation6 + $0x1a58] sm:$0xff] }
 0x310   :  { %8718 = vmatpush1.bf16.msra.mxu0 %v10716_v52  ;;  %v10812_v52 = vcombine.low %v2795_v44, %v2803_v45  ;;  %v2891_v44 = vld [vmem:[#allocation6 + $0x1a90] sm:$0xff] }
 0x311   :  { %8890 = vmatpush1.bf16.msra.mxu1 %v10718_v53  ;;  %8719 = vmatprep.subr.bf16.mxu0 %v10733_v54  ;;  %v10814_v53 = vcombine.low %v2796_v46, %v2804_v17  ;;  %v10829_v54 = vcombine.high %v2811_v50, %v2819_v51  ;;  %v2899_v45 = vld [vmem:[#allocation6 + $0x1ad0] sm:$0xff]  ;;  %v2892_v46 = vld [vmem:[#allocation6 + $0x1a98] sm:$0xff] }
 0x312   :  { %8891 = vmatprep.subr.bf16.mxu1 %v10735_v55  ;;  %v10831_v55 = vcombine.high %v2812_v19, %v2820_v28  ;;  %v2900_v17 = vld [vmem:[#allocation6 + $0x1ad8] sm:$0xff]  ;;  %v2907_v51 = vld [vmem:[#allocation6 + $0x1b10] sm:$0xff] }
 0x313   :  { %v10911_v50 = vcombine.high %v2892_v46, %v2900_v17 }
 0x314   :  { %8720 = vmatpush1.bf16.msra.mxu0 %v10732_v0  ;;  %v2836_v0 = vld [vmem:[#allocation6 + $0x18d8] sm:$0xff] }
 0x315   :  { %8892 = vmatpush1.bf16.msra.mxu1 %v10734_v1  ;;  %8721 = vmatprep.subr.bf16.mxu0 %v10749_v3  ;;  %v10830_v1 = vcombine.low %v2812_v19, %v2820_v28  ;;  %v10845_v3 = vcombine.high %v2827_v58, %v2835_v59  ;;  %v10847_v6 = vcombine.high %v2828_v61, %v2836_v0  ;;  %v2915_v19 = vld [vmem:[#allocation6 + $0x1b50] sm:$0xff] }
 0x316   :  { %8893 = vmatprep.subr.bf16.mxu1 %v10751_v4  ;;  %v2843_v4 = vld [vmem:[#allocation6 + $0x1910] sm:$0xff] }
 0x318   :  { %8722 = vmatpush1.bf16.msra.mxu0 %v10748_v9  ;;  %v10844_v9 = vcombine.low %v2827_v58, %v2835_v59  ;;  %v10908_v59 = vcombine.low %v2891_v44, %v2899_v45 }
 0x319   :  { %8894 = vmatpush1.bf16.msra.mxu1 %v10750_v11  ;;  %8723 = vmatprep.subr.bf16.mxu0 %v10765_v12  ;;  %v10846_v11 = vcombine.low %v2828_v61, %v2836_v0  ;;  %v10861_v12 = vcombine.high %v2843_v4, %v2851_v5  ;;  %v10910_v61 = vcombine.low %v2892_v46, %v2900_v17  ;;  %v2947_v46 = vld [vmem:[#allocation6 + $0x1c50] sm:$0xff] }
 0x31a   :  { %8895 = vmatprep.subr.bf16.mxu1 %v10767_v13  ;;  %v10863_v13 = vcombine.high %v2844_v7, %v2852_v8  ;;  %v10925_v0 = vcombine.high %v2907_v51, %v2915_v19 }
 0x31c   :  { %8724 = vmatpush1.bf16.msra.mxu0 %v10764_v25  ;;  %v10860_v25 = vcombine.low %v2843_v4, %v2851_v5  ;;  %v2932_v4 = vld [vmem:[#allocation6 + $0x1bd8] sm:$0xff] }
 0x31d   :  { %8896 = vmatpush1.bf16.msra.mxu1 %v10766_v34  ;;  %8725 = vmatprep.subr.bf16.mxu0 %v10781_v36  ;;  %v10862_v34 = vcombine.low %v2844_v7, %v2852_v8  ;;  %v10877_v36 = vcombine.high %v2859_v20, %v2867_v21 }
 0x31e   :  { %8897 = vmatprep.subr.bf16.mxu1 %v10783_v37  ;;  %v10879_v37 = vcombine.high %v2860_v22, %v2868_v24 }
 0x320   :  { %8726 = vmatpush1.bf16.msra.mxu0 %v10780_v41  ;;  %v10876_v41 = vcombine.low %v2859_v20, %v2867_v21 }
 0x321   :  { %8898 = vmatpush1.bf16.msra.mxu1 %v10782_v42  ;;  %8727 = vmatprep.subr.bf16.mxu0 %v10797_v43  ;;  %v10878_v42 = vcombine.low %v2860_v22, %v2868_v24  ;;  %v10893_v43 = vcombine.high %v2875_v26, %v2883_v38 }
 0x322   :  { %8899 = vmatprep.subr.bf16.mxu1 %v10799_v10  ;;  %v10895_v10 = vcombine.high %v2876_v39, %v2884_v40 }
 0x324   :  { %8728 = vmatpush1.bf16.msra.mxu0 %v10796_v47  ;;  %v10892_v47 = vcombine.low %v2875_v26, %v2883_v38 }
 0x325   :  { %8900 = vmatpush1.bf16.msra.mxu1 %v10798_v56  ;;  %8729 = vmatprep.subr.bf16.mxu0 %v10813_v48  ;;  %v3065_v56 = vld [vmem:[#allocation7] sm:$0xff]  ;;  %v10894_v48 = vcombine.low %v2876_v39, %v2884_v40 }
 0x326   :  { %8901 = vmatprep.subr.bf16.mxu1 %v10815_v49  ;;  %v10909_v49 = vcombine.high %v2891_v44, %v2899_v45  ;;  %v3072_v28 = vrot.slane %v3065_v56, %v11525_v27  ;;  %v3084_v58 = vrot.slane %v3065_v56, %v11536_v31  ;;  %v2939_v45 = vld [vmem:[#allocation6 + $0x1c10] sm:$0xff] }
 0x328   :  { %8730 = vmatpush1.bf16.msra.mxu0 %v10812_v52  ;;  %v3080_v52 = vrot.slane %v3065_v56, %v11530_v29 }
 0x329   :  { %8902 = vmatpush1.bf16.msra.mxu1 %v10814_v53  ;;  %8742 = vmatprep.subr.bf16.mxu0 %v10829_v54  ;;  %v2908_v53 = vld [vmem:[#allocation6 + $0x1b18] sm:$0xff] }
 0x32a   :  { %8914 = vmatprep.subr.bf16.mxu1 %v10831_v55  ;;  %v2916_v54 = vld [vmem:[#allocation6 + $0x1b58] sm:$0xff]  ;;  %v3076_v55 = vrot.slane %v3065_v56, %v11533_v30 }
 0x32b   :  { %8732 = vmatmul.mubr.bf16.vlgmr.msra.gmra.mrb[12].mxu0 %v11586_v15  ;;  %v10927_v7 = vcombine.high %v2908_v53, %v2916_v54  ;;  %v10926_v20 = vcombine.low %v2908_v53, %v2916_v54  ;;  %v10957_v53 = vcombine.high %v2939_v45, %v2947_v46 }
 0x32c   :  { %8904 = vmatmul.mubr.bf16.vlgmr.msra.gmra.mrb[12].mxu1 %v11586_v15  ;;  %8743 = vmatpush1.bf16.msra.mxu0 %v10828_v60  ;;  %v11620_v60 = vld [vmem:[#allocation6 + $0x1b90] sm:$0xff] }
 0x32d   :  { %8774 = vmatprep.mubr.bf16.mxu0 %v11592_v35  ;;  %8915 = vmatpush1.bf16.msra.mxu1 %v10830_v1  ;;  %v2931_v1 = vld [vmem:[#allocation6 + $0x1bd0] sm:$0xff] }
 0x32e   :  { %8946 = vmatprep.mubr.bf16.mxu1 %v11592_v35  ;;  %8744 = vmatprep.subr.bf16.mxu0 %v10845_v3  ;;  %v2924_v3 = vld [vmem:[#allocation6 + $0x1b98] sm:$0xff]  ;;  %v10940_v56 = vcombine.low %v11620_v60, %v2931_v1 }
 0x32f   :  { %8916 = vmatprep.subr.bf16.mxu1 %v10847_v6 }
 0x330   :  { %8745 = vmatpush1.bf16.msra.mxu0 %v10844_v9 }
 0x331   :  { %8917 = vmatpush1.bf16.msra.mxu1 %v10846_v11  ;;  %8746 = vmatprep.subr.bf16.mxu0 %v10861_v12 }
 0x332   :  { %8918 = vmatprep.subr.bf16.mxu1 %v10863_v13  ;;  %v10924_v13 = vcombine.low %v2907_v51, %v2915_v19 }
 0x334   :  { %8747 = vmatpush1.bf16.msra.mxu0 %v10860_v25 }
 0x335   :  { %8919 = vmatpush1.bf16.msra.mxu1 %v10862_v34  ;;  %8748 = vmatprep.subr.bf16.mxu0 %v10877_v36  ;;  %v10941_v34 = vcombine.high %v11620_v60, %v2931_v1  ;;  %v10943_v36 = vcombine.high %v2924_v3, %v2932_v4  ;;  %v2963_v60 = vld [vmem:[#allocation6 + $0x1cd0] sm:$0xff]  ;;  %v10956_v1 = vcombine.low %v2939_v45, %v2947_v46 }
 0x336   :  { %8920 = vmatprep.subr.bf16.mxu1 %v10879_v37  ;;  %v3019_v45 = vld [vmem:[#allocation6 + $0x1e90] sm:$0xff] }
 0x337   :  { %v3027_v46 = vld [vmem:[#allocation6 + $0x1ed0] sm:$0xff] }
 0x338   :  { %8749 = vmatpush1.bf16.msra.mxu0 %v10876_v41 }
 0x339   :  { %8921 = vmatpush1.bf16.msra.mxu1 %v10878_v42  ;;  %8750 = vmatprep.subr.bf16.mxu0 %v10893_v43 }
 0x33a   :  { %8922 = vmatprep.subr.bf16.mxu1 %v10895_v10 }
 0x33c   :  { %8751 = vmatpush1.bf16.msra.mxu0 %v10892_v47 }
 0x33d   :  { %8923 = vmatpush1.bf16.msra.mxu1 %v10894_v48  ;;  %8752 = vmatprep.subr.bf16.mxu0 %v10909_v49  ;;  %v2940_v48 = vld [vmem:[#allocation6 + $0x1c18] sm:$0xff] }
 0x33e   :  { %v8432_v5 = vpop.f32.mrb[8].mxu0  ;;  %v8604_v6 = vpop.f32.mrb[8].mxu1  ;;  %8924 = vmatprep.subr.bf16.mxu1 %v10911_v50  ;;  %v2948_v49 = vld [vmem:[#allocation6 + $0x1c58] sm:$0xff] }
 0x33f   :  { %v11128_v8 = vadd.f32 %v8432_v5, %v3072_v28  ;;  %v11132_v9 = vadd.f32 %v8604_v6, %v3080_v52  ;;  %v8434_v11 = vpop.f32.mrb[9].mxu0  ;;  %v8606_v12 = vpop.f32.mrb[9].mxu1  ;;  %v2971_v6 = vld [vmem:[#allocation6 + $0x1d10] sm:$0xff] }
 0x340   :  { %v11129_v21 = vadd.f32 %v8434_v11, %v3076_v55  ;;  %v11133_v22 = vadd.f32 %v8606_v12, %v3084_v58  ;;  %v8436_v24 = vpop.f32.mrb[10].mxu0  ;;  %v8608_v25 = vpop.f32.mrb[10].mxu1  ;;  %8753 = vmatpush1.bf16.msra.mxu0 %v10908_v59  ;;  %v2955_v59 = vld [vmem:[#allocation6 + $0x1c90] sm:$0xff] }
 0x341   :  { %v9645_v37 = vmax.f32 %v11128_v8, 0.0  ;;  %v9647_v26 = vmax.f32 %v11132_v9, 0.0  ;;  %v11130_v38 = vadd.f32 %v8436_v24, %v3072_v28  ;;  %v11134_v39 = vadd.f32 %v8608_v25, %v3080_v52  ;;  %8925 = vmatpush1.bf16.msra.mxu1 %v10910_v61  ;;  %v8438_v40 = vpop.f32.mrb[11].mxu0  ;;  %v8610_v41 = vpop.f32.mrb[11].mxu1  ;;  %8754 = vmatprep.subr.bf16.mxu0 %v10925_v0  ;;  %v2956_v61 = vld [vmem:[#allocation6 + $0x1c98] sm:$0xff] }
 0x342   :  { %v9646_v42 = vmax.f32 %v11129_v21, 0.0  ;;  %v9648_v43 = vmax.f32 %v11133_v22, 0.0  ;;  %v11131_v10 = vadd.f32 %v8438_v40, %v3076_v55  ;;  %v11135_v44 = vadd.f32 %v8610_v41, %v3084_v58  ;;  %8926 = vmatprep.subr.bf16.mxu1 %v10927_v7  ;;  %v2964_v0 = vld [vmem:[#allocation6 + $0x1cd8] sm:$0xff]  ;;  %v2979_v7 = vld [vmem:[#allocation6 + $0x1d50] sm:$0xff] }
 0x343   :  { %v9661_v17 = vmax.f32 %v11130_v38, 0.0  ;;  %v9663_v47 = vmax.f32 %v11134_v39, 0.0  ;;  %v10942_v52 = vcombine.low %v2924_v3, %v2932_v4  ;;  %v10959_v58 = vcombine.high %v2940_v48, %v2948_v49  ;;  %v2972_v8 = vld [vmem:[#allocation6 + $0x1d18] sm:$0xff]  ;;  %v2987_v21 = vld [vmem:[#allocation6 + $0x1d90] sm:$0xff] }
 0x344   :  { %v11096_v50 = vpack.c.bf16 %v9646_v42, %v9645_v37  ;;  %v11097_v51 = vpack.c.bf16 %v9648_v43, %v9647_v26  ;;  %v9662_v19 = vmax.f32 %v11131_v10, 0.0  ;;  %v9664_v28 = vmax.f32 %v11135_v44, 0.0  ;;  %8755 = vmatpush1.bf16.msra.mxu0 %v10924_v13  ;;  %v2980_v9 = vld [vmem:[#allocation6 + $0x1d58] sm:$0xff]  ;;  %v2995_v22 = vld [vmem:[#allocation6 + $0x1dd0] sm:$0xff] }
 0x345   :  { %8927 = vmatpush1.bf16.msra.mxu1 %v10926_v20  ;;  %8756 = vmatprep.subr.bf16.mxu0 %v10941_v34  ;;  %v10958_v3 = vcombine.low %v2940_v48, %v2948_v49  ;;  %v10973_v4 = vcombine.high %v2955_v59, %v2963_v60  ;;  %v10975_v5 = vcombine.high %v2956_v61, %v2964_v0  ;;  %v2988_v24 = vld [vmem:[#allocation6 + $0x1d98] sm:$0xff]  ;;  %v3003_v38 = vld [vmem:[#allocation6 + $0x1e10] sm:$0xff] }
 0x346   :  { %9773 = vst [vmem:[%s11733_s5] sm:$0xff] %v11096_v50  ;;  %9774 = vst [vmem:[%s11733_s5 + $0x8] sm:$0xff] %v11097_v51  ;;  %v11104_v54 = vpack.c.bf16 %v9662_v19, %v9661_v17  ;;  %v11105_v55 = vpack.c.bf16 %v9664_v28, %v9663_v47  ;;  %8928 = vmatprep.subr.bf16.mxu1 %v10943_v36  ;;  %v10972_v11 = vcombine.low %v2955_v59, %v2963_v60  ;;  %v2996_v25 = vld [vmem:[#allocation6 + $0x1dd8] sm:$0xff]  ;;  %v3011_v39 = vld [vmem:[#allocation6 + $0x1e50] sm:$0xff] }
 0x347   :  { %v10974_v12 = vcombine.low %v2956_v61, %v2964_v0  ;;  %v10989_v13 = vcombine.high %v2971_v6, %v2979_v7  ;;  %v10991_v20 = vcombine.high %v2972_v8, %v2980_v9  ;;  %v10988_v34 = vcombine.low %v2971_v6, %v2979_v7  ;;  %v3004_v40 = vld [vmem:[#allocation6 + $0x1e18] sm:$0xff]  ;;  %v3035_v51 = vld [vmem:[#allocation6 + $0x1f10] sm:$0xff]  ;;  %v2045_v6 = vld [vmem:[#allocation6 + $0x20] sm:$0xff] }
 0x348   :  { %9781 = vst [vmem:[%s11733_s5 + $0x40] sm:$0xff] %v11104_v54  ;;  %9782 = vst [vmem:[%s11733_s5 + $0x48] sm:$0xff] %v11105_v55  ;;  %8757 = vmatpush1.bf16.msra.mxu0 %v10940_v56  ;;  %v10990_v36 = vcombine.low %v2972_v8, %v2980_v9  ;;  %v11005_v37 = vcombine.high %v2987_v21, %v2995_v22  ;;  %v11007_v26 = vcombine.high %v2988_v24, %v2996_v25  ;;  %v3012_v41 = vld [vmem:[#allocation6 + $0x1e58] sm:$0xff]  ;;  %v3043_v19 = vld [vmem:[#allocation6 + $0x1f50] sm:$0xff] }
 0x349   :  { %8929 = vmatpush1.bf16.msra.mxu1 %v10942_v52  ;;  %8758 = vmatprep.subr.bf16.mxu0 %v10957_v53  ;;  %v11004_v42 = vcombine.low %v2987_v21, %v2995_v22  ;;  %v11006_v43 = vcombine.low %v2988_v24, %v2996_v25  ;;  %v11021_v10 = vcombine.high %v3003_v38, %v3011_v39  ;;  %v3020_v17 = vld [vmem:[#allocation6 + $0x1e98] sm:$0xff]  ;;  %v3051_v59 = vld [vmem:[#allocation6 + $0x1f90] sm:$0xff]  ;;  %v2053_v7 = vld [vmem:[#allocation6 + $0x60] sm:$0xff] }
 0x34a   :  { %8930 = vmatprep.subr.bf16.mxu1 %v10959_v58  ;;  %v11023_v44 = vcombine.high %v3004_v40, %v3012_v41  ;;  %v3028_v47 = vld [vmem:[#allocation6 + $0x1ed8] sm:$0xff]  ;;  %v11020_v56 = vcombine.low %v3003_v38, %v3011_v39  ;;  %v11022_v48 = vcombine.low %v3004_v40, %v3012_v41  ;;  %v11037_v49 = vcombine.high %v3019_v45, %v3027_v46  ;;  %v3059_v60 = vld [vmem:[#allocation6 + $0x1fd0] sm:$0xff]  ;;  %v2046_v8 = vld [vmem:[#allocation6 + $0x28] sm:$0xff] }
 0x34b   :  { %v11039_v50 = vcombine.high %v3020_v17, %v3028_v47  ;;  %v3036_v28 = vld [vmem:[#allocation6 + $0x1f18] sm:$0xff]  ;;  %v11036_v53 = vcombine.low %v3019_v45, %v3027_v46  ;;  %v11038_v54 = vcombine.low %v3020_v17, %v3028_v47  ;;  %v11053_v55 = vcombine.high %v3035_v51, %v3043_v19  ;;  %v2054_v9 = vld [vmem:[#allocation6 + $0x68] sm:$0xff]  ;;  %v2061_v21 = vld [vmem:[#allocation6 + $0xa0] sm:$0xff] }
 0x34c   :  { %8759 = vmatpush1.bf16.msra.mxu0 %v10956_v1  ;;  %v3044_v52 = vld [vmem:[#allocation6 + $0x1f58] sm:$0xff]  ;;  %v11052_v1 = vcombine.low %v3035_v51, %v3043_v19  ;;  %v2069_v22 = vld [vmem:[#allocation6 + $0xe0] sm:$0xff]  ;;  %v10064_v24 = vcombine.low %v2045_v6, %v2053_v7  ;;  %v2062_v25 = vld [vmem:[#allocation6 + $0xa8] sm:$0xff] }
 0x34d   :  { %8931 = vmatpush1.bf16.msra.mxu1 %v10958_v3  ;;  %8760 = vmatprep.subr.bf16.mxu0 %v10973_v4  ;;  %v11055_v58 = vcombine.high %v3036_v28, %v3044_v52  ;;  %v3052_v61 = vld [vmem:[#allocation6 + $0x1f98] sm:$0xff]  ;;  %v11054_v3 = vcombine.low %v3036_v28, %v3044_v52  ;;  %v11069_v4 = vcombine.high %v3051_v59, %v3059_v60  ;;  %v2085_v38 = vld [vmem:[#allocation6 + $0x160] sm:$0xff]  ;;  %v2078_v40 = vld [vmem:[#allocation6 + $0x128] sm:$0xff] }
 0x34e   :  { %8932 = vmatprep.subr.bf16.mxu1 %v10975_v5  ;;  %v3060_v0 = vld [vmem:[#allocation6 + $0x1fd8] sm:$0xff]  ;;  %v2086_v41 = vld [vmem:[#allocation6 + $0x168] sm:$0xff]  ;;  %v2093_v45 = vld [vmem:[#allocation6 + $0x1a0] sm:$0xff] }
 0x34f   :  { %v11071_v5 = vcombine.high %v3052_v61, %v3060_v0  ;;  %v2101_v46 = vld [vmem:[#allocation6 + $0x1e0] sm:$0xff]  ;;  %v2094_v17 = vld [vmem:[#allocation6 + $0x1a8] sm:$0xff] }
 0x350   :  { %8761 = vmatpush1.bf16.msra.mxu0 %v10972_v11  ;;  %v11068_v11 = vcombine.low %v3051_v59, %v3059_v60  ;;  %v2102_v47 = vld [vmem:[#allocation6 + $0x1e8] sm:$0xff]  ;;  %v2109_v51 = vld [vmem:[#allocation6 + $0x220] sm:$0xff] }
 0x351   :  { %8933 = vmatpush1.bf16.msra.mxu1 %v10974_v12  ;;  %8762 = vmatprep.subr.bf16.mxu0 %v10989_v13  ;;  %v11070_v12 = vcombine.low %v3052_v61, %v3060_v0  ;;  %v10065_v13 = vcombine.high %v2045_v6, %v2053_v7  ;;  %v2117_v19 = vld [vmem:[#allocation6 + $0x260] sm:$0xff]  ;;  %v2110_v28 = vld [vmem:[#allocation6 + $0x228] sm:$0xff] }
 0x352   :  { %8934 = vmatprep.subr.bf16.mxu1 %v10991_v20  ;;  %v10067_v20 = vcombine.high %v2046_v8, %v2054_v9  ;;  %v2118_v52 = vld [vmem:[#allocation6 + $0x268] sm:$0xff]  ;;  %v2125_v59 = vld [vmem:[#allocation6 + $0x2a0] sm:$0xff] }
 0x353   :  { %v2133_v60 = vld [vmem:[#allocation6 + $0x2e0] sm:$0xff]  ;;  %v2126_v61 = vld [vmem:[#allocation6 + $0x2a8] sm:$0xff] }
 0x354   :  { %8763 = vmatpush1.bf16.msra.mxu0 %v10988_v34  ;;  %v2070_v34 = vld [vmem:[#allocation6 + $0xe8] sm:$0xff]  ;;  %v2141_v6 = vld [vmem:[#allocation6 + $0x320] sm:$0xff] }
 0x355   :  { %8935 = vmatpush1.bf16.msra.mxu1 %v10990_v36  ;;  %8764 = vmatprep.subr.bf16.mxu0 %v11005_v37  ;;  %v10066_v36 = vcombine.low %v2046_v8, %v2054_v9  ;;  %v10081_v37 = vcombine.high %v2061_v21, %v2069_v22  ;;  %v10083_v39 = vcombine.high %v2062_v25, %v2070_v34  ;;  %v2134_v0 = vld [vmem:[#allocation6 + $0x2e8] sm:$0xff]  ;;  %v2149_v7 = vld [vmem:[#allocation6 + $0x360] sm:$0xff] }
 0x356   :  { %8936 = vmatprep.subr.bf16.mxu1 %v11007_v26  ;;  %v2077_v26 = vld [vmem:[#allocation6 + $0x120] sm:$0xff]  ;;  %v2142_v8 = vld [vmem:[#allocation6 + $0x328] sm:$0xff] }
 0x357   :  { %v2150_v9 = vld [vmem:[#allocation6 + $0x368] sm:$0xff] }
 0x358   :  { %8765 = vmatpush1.bf16.msra.mxu0 %v11004_v42  ;;  %v10080_v42 = vcombine.low %v2061_v21, %v2069_v22  ;;  %v2157_v21 = vld [vmem:[#allocation6 + $0x3a0] sm:$0xff] }
 0x359   :  { %8937 = vmatpush1.bf16.msra.mxu1 %v11006_v43  ;;  %8766 = vmatprep.subr.bf16.mxu0 %v11021_v10  ;;  %v10082_v43 = vcombine.low %v2062_v25, %v2070_v34  ;;  %v10097_v10 = vcombine.high %v2077_v26, %v2085_v38  ;;  %v2165_v22 = vld [vmem:[#allocation6 + $0x3e0] sm:$0xff]  ;;  %v2166_v25 = vld [vmem:[#allocation6 + $0x3e8] sm:$0xff]  ;;  %v10160_v34 = vcombine.low %v2141_v6, %v2149_v7 }
 0x35a   :  { %8938 = vmatprep.subr.bf16.mxu1 %v11023_v44  ;;  %v10099_v44 = vcombine.high %v2078_v40, %v2086_v41 }
 0x35c   :  { %8767 = vmatpush1.bf16.msra.mxu0 %v11020_v56  ;;  %v10096_v56 = vcombine.low %v2077_v26, %v2085_v38  ;;  %v2173_v38 = vld [vmem:[#allocation6 + $0x420] sm:$0xff] }
 0x35d   :  { %8939 = vmatpush1.bf16.msra.mxu1 %v11022_v48  ;;  %8768 = vmatprep.subr.bf16.mxu0 %v11037_v49  ;;  %v10098_v48 = vcombine.low %v2078_v40, %v2086_v41  ;;  %v10113_v49 = vcombine.high %v2093_v45, %v2101_v46  ;;  %v2174_v40 = vld [vmem:[#allocation6 + $0x428] sm:$0xff] }
 0x35e   :  { %8940 = vmatprep.subr.bf16.mxu1 %v11039_v50  ;;  %v10115_v50 = vcombine.high %v2094_v17, %v2102_v47  ;;  %v2182_v41 = vld [vmem:[#allocation6 + $0x468] sm:$0xff] }
 0x360   :  { %8769 = vmatpush1.bf16.msra.mxu0 %v11036_v53  ;;  %v10112_v53 = vcombine.low %v2093_v45, %v2101_v46  ;;  %v2189_v45 = vld [vmem:[#allocation6 + $0x4a0] sm:$0xff] }
 0x361   :  { %8941 = vmatpush1.bf16.msra.mxu1 %v11038_v54  ;;  %8770 = vmatprep.subr.bf16.mxu0 %v11053_v55  ;;  %v10114_v54 = vcombine.low %v2094_v17, %v2102_v47  ;;  %v10129_v55 = vcombine.high %v2109_v51, %v2117_v19  ;;  %v2197_v46 = vld [vmem:[#allocation6 + $0x4e0] sm:$0xff]  ;;  %v2190_v17 = vld [vmem:[#allocation6 + $0x4a8] sm:$0xff] }
 0x362   :  { %8942 = vmatprep.subr.bf16.mxu1 %v11055_v58  ;;  %v10131_v58 = vcombine.high %v2110_v28, %v2118_v52  ;;  %v2198_v47 = vld [vmem:[#allocation6 + $0x4e8] sm:$0xff] }
 0x364   :  { %8771 = vmatpush1.bf16.msra.mxu0 %v11052_v1  ;;  %v10128_v1 = vcombine.low %v2109_v51, %v2117_v19  ;;  %v2205_v51 = vld [vmem:[#allocation6 + $0x520] sm:$0xff] }
 0x365   :  { %8943 = vmatpush1.bf16.msra.mxu1 %v11054_v3  ;;  %8772 = vmatprep.subr.bf16.mxu0 %v11069_v4  ;;  %v10130_v3 = vcombine.low %v2110_v28, %v2118_v52  ;;  %v10145_v4 = vcombine.high %v2125_v59, %v2133_v60  ;;  %v2213_v19 = vld [vmem:[#allocation6 + $0x560] sm:$0xff]  ;;  %v2206_v28 = vld [vmem:[#allocation6 + $0x528] sm:$0xff] }
 0x366   :  { %8944 = vmatprep.subr.bf16.mxu1 %v11071_v5  ;;  %v10147_v5 = vcombine.high %v2126_v61, %v2134_v0  ;;  %v2214_v52 = vld [vmem:[#allocation6 + $0x568] sm:$0xff] }
 0x368   :  { %8773 = vmatpush1.bf16.msra.mxu0 %v11068_v11  ;;  %v10144_v11 = vcombine.low %v2125_v59, %v2133_v60  ;;  %v2221_v59 = vld [vmem:[#allocation6 + $0x5a0] sm:$0xff] }
 0x369   :  { %8945 = vmatpush1.bf16.msra.mxu1 %v11070_v12  ;;  %8957 = vmatprep.subr.bf16.mxu0 %v10065_v13  ;;  %v10146_v12 = vcombine.low %v2126_v61, %v2134_v0  ;;  %v10161_v13 = vcombine.high %v2141_v6, %v2149_v7  ;;  %v2229_v60 = vld [vmem:[#allocation6 + $0x5e0] sm:$0xff]  ;;  %v2222_v61 = vld [vmem:[#allocation6 + $0x5a8] sm:$0xff] }
 0x36a   :  { %9129 = vmatprep.subr.bf16.mxu1 %v10067_v20  ;;  %v10163_v20 = vcombine.high %v2142_v8, %v2150_v9  ;;  %v2230_v0 = vld [vmem:[#allocation6 + $0x5e8] sm:$0xff]  ;;  %v2237_v6 = vld [vmem:[#allocation6 + $0x620] sm:$0xff] }
 0x36b   :  { %8775 = vmatmul.mubr.bf16.vlgmr.msra.gmra.mrb[12].mxu0 %v11588_v32  ;;  %v2245_v7 = vld [vmem:[#allocation6 + $0x660] sm:$0xff] }
 0x36c   :  { %8947 = vmatmul.mubr.bf16.vlgmr.msra.gmra.mrb[12].mxu1 %v11588_v32  ;;  %8958 = vmatpush1.bf16.msra.mxu0 %v10064_v24  ;;  %v2158_v24 = vld [vmem:[#allocation6 + $0x3a8] sm:$0xff] }
 0x36d   :  { %8989 = vmatprep.mubr.bf16.mxu0 %v11550_v63  ;;  %9130 = vmatpush1.bf16.msra.mxu1 %v10066_v36  ;;  %v10162_v36 = vcombine.low %v2142_v8, %v2150_v9  ;;  %v10179_v26 = vcombine.high %v2158_v24, %v2166_v25  ;;  %v2238_v8 = vld [vmem:[#allocation6 + $0x628] sm:$0xff] }
 0x36e   :  { %9161 = vmatprep.mubr.bf16.mxu1 %v11550_v63  ;;  %8959 = vmatprep.subr.bf16.mxu0 %v10081_v37  ;;  %v10177_v37 = vcombine.high %v2157_v21, %v2165_v22  ;;  %v2246_v9 = vld [vmem:[#allocation6 + $0x668] sm:$0xff] }
 0x36f   :  { %9131 = vmatprep.subr.bf16.mxu1 %v10083_v39  ;;  %v2181_v39 = vld [vmem:[#allocation6 + $0x460] sm:$0xff] }
 0x370   :  { %8960 = vmatpush1.bf16.msra.mxu0 %v10080_v42  ;;  %v10176_v42 = vcombine.low %v2157_v21, %v2165_v22  ;;  %v2253_v21 = vld [vmem:[#allocation6 + $0x6a0] sm:$0xff] }
 0x371   :  { %9132 = vmatpush1.bf16.msra.mxu1 %v10082_v43  ;;  %8961 = vmatprep.subr.bf16.mxu0 %v10097_v10  ;;  %v10178_v43 = vcombine.low %v2158_v24, %v2166_v25  ;;  %v10193_v10 = vcombine.high %v2173_v38, %v2181_v39  ;;  %v2261_v22 = vld [vmem:[#allocation6 + $0x6e0] sm:$0xff]  ;;  %v2254_v24 = vld [vmem:[#allocation6 + $0x6a8] sm:$0xff] }
 0x372   :  { %9133 = vmatprep.subr.bf16.mxu1 %v10099_v44  ;;  %v10195_v44 = vcombine.high %v2174_v40, %v2182_v41  ;;  %v2262_v25 = vld [vmem:[#allocation6 + $0x6e8] sm:$0xff] }
 0x374   :  { %8962 = vmatpush1.bf16.msra.mxu0 %v10096_v56  ;;  %v10192_v56 = vcombine.low %v2173_v38, %v2181_v39  ;;  %v2269_v38 = vld [vmem:[#allocation6 + $0x720] sm:$0xff] }
 0x375   :  { %9134 = vmatpush1.bf16.msra.mxu1 %v10098_v48  ;;  %8963 = vmatprep.subr.bf16.mxu0 %v10113_v49  ;;  %v10194_v48 = vcombine.low %v2174_v40, %v2182_v41  ;;  %v10209_v49 = vcombine.high %v2189_v45, %v2197_v46  ;;  %v2277_v39 = vld [vmem:[#allocation6 + $0x760] sm:$0xff]  ;;  %v2270_v40 = vld [vmem:[#allocation6 + $0x728] sm:$0xff] }
 0x376   :  { %9135 = vmatprep.subr.bf16.mxu1 %v10115_v50  ;;  %v10211_v50 = vcombine.high %v2190_v17, %v2198_v47  ;;  %v2278_v41 = vld [vmem:[#allocation6 + $0x768] sm:$0xff] }
 0x378   :  { %8964 = vmatpush1.bf16.msra.mxu0 %v10112_v53  ;;  %v10208_v53 = vcombine.low %v2189_v45, %v2197_v46  ;;  %v2285_v45 = vld [vmem:[#allocation6 + $0x7a0] sm:$0xff] }
 0x379   :  { %9136 = vmatpush1.bf16.msra.mxu1 %v10114_v54  ;;  %8965 = vmatprep.subr.bf16.mxu0 %v10129_v55  ;;  %v10210_v54 = vcombine.low %v2190_v17, %v2198_v47  ;;  %v10225_v55 = vcombine.high %v2205_v51, %v2213_v19  ;;  %v2293_v46 = vld [vmem:[#allocation6 + $0x7e0] sm:$0xff]  ;;  %v2286_v17 = vld [vmem:[#allocation6 + $0x7a8] sm:$0xff] }
 0x37a   :  { %9137 = vmatprep.subr.bf16.mxu1 %v10131_v58  ;;  %v10227_v58 = vcombine.high %v2206_v28, %v2214_v52  ;;  %v2294_v47 = vld [vmem:[#allocation6 + $0x7e8] sm:$0xff] }
 0x37c   :  { %8966 = vmatpush1.bf16.msra.mxu0 %v10128_v1  ;;  %v10224_v1 = vcombine.low %v2205_v51, %v2213_v19  ;;  %v2301_v51 = vld [vmem:[#allocation6 + $0x820] sm:$0xff] }
 0x37d   :  { %9138 = vmatpush1.bf16.msra.mxu1 %v10130_v3  ;;  %8967 = vmatprep.subr.bf16.mxu0 %v10145_v4  ;;  %v10226_v3 = vcombine.low %v2206_v28, %v2214_v52  ;;  %v10241_v4 = vcombine.high %v2221_v59, %v2229_v60  ;;  %v2309_v19 = vld [vmem:[#allocation6 + $0x860] sm:$0xff]  ;;  %v2302_v28 = vld [vmem:[#allocation6 + $0x828] sm:$0xff] }
 0x37e   :  { %9139 = vmatprep.subr.bf16.mxu1 %v10147_v5  ;;  %v10243_v5 = vcombine.high %v2222_v61, %v2230_v0  ;;  %v2310_v52 = vld [vmem:[#allocation6 + $0x868] sm:$0xff] }
 0x380   :  { %8968 = vmatpush1.bf16.msra.mxu0 %v10144_v11  ;;  %v10240_v11 = vcombine.low %v2221_v59, %v2229_v60  ;;  %v2317_v59 = vld [vmem:[#allocation6 + $0x8a0] sm:$0xff] }
 0x381   :  { %9140 = vmatpush1.bf16.msra.mxu1 %v10146_v12  ;;  %8969 = vmatprep.subr.bf16.mxu0 %v10161_v13  ;;  %v10242_v12 = vcombine.low %v2222_v61, %v2230_v0  ;;  %v10257_v13 = vcombine.high %v2237_v6, %v2245_v7  ;;  %v2325_v60 = vld [vmem:[#allocation6 + $0x8e0] sm:$0xff]  ;;  %v10320_v61 = vcombine.low %v2301_v51, %v2309_v19  ;;  %v2318_v0 = vld [vmem:[#allocation6 + $0x8a8] sm:$0xff] }
 0x382   :  { %9141 = vmatprep.subr.bf16.mxu1 %v10163_v20  ;;  %v10259_v20 = vcombine.high %v2238_v8, %v2246_v9 }
 0x384   :  { %8970 = vmatpush1.bf16.msra.mxu0 %v10160_v34  ;;  %v10256_v34 = vcombine.low %v2237_v6, %v2245_v7  ;;  %v2341_v6 = vld [vmem:[#allocation6 + $0x960] sm:$0xff] }
 0x385   :  { %9142 = vmatpush1.bf16.msra.mxu1 %v10162_v36  ;;  %8971 = vmatprep.subr.bf16.mxu0 %v10177_v37  ;;  %v10258_v36 = vcombine.low %v2238_v8, %v2246_v9  ;;  %v10273_v37 = vcombine.high %v2253_v21, %v2261_v22  ;;  %v2334_v8 = vld [vmem:[#allocation6 + $0x928] sm:$0xff] }
 0x386   :  { %9143 = vmatprep.subr.bf16.mxu1 %v10179_v26  ;;  %v10275_v26 = vcombine.high %v2254_v24, %v2262_v25  ;;  %v2342_v9 = vld [vmem:[#allocation6 + $0x968] sm:$0xff] }
 0x388   :  { %8972 = vmatpush1.bf16.msra.mxu0 %v10176_v42  ;;  %v10272_v42 = vcombine.low %v2253_v21, %v2261_v22  ;;  %v2349_v21 = vld [vmem:[#allocation6 + $0x9a0] sm:$0xff] }
 0x389   :  { %9144 = vmatpush1.bf16.msra.mxu1 %v10178_v43  ;;  %8973 = vmatprep.subr.bf16.mxu0 %v10193_v10  ;;  %v10274_v43 = vcombine.low %v2254_v24, %v2262_v25  ;;  %v10289_v10 = vcombine.high %v2269_v38, %v2277_v39  ;;  %v2357_v22 = vld [vmem:[#allocation6 + $0x9e0] sm:$0xff]  ;;  %v2350_v24 = vld [vmem:[#allocation6 + $0x9a8] sm:$0xff] }
 0x38a   :  { %9145 = vmatprep.subr.bf16.mxu1 %v10195_v44  ;;  %v10291_v44 = vcombine.high %v2270_v40, %v2278_v41  ;;  %v2358_v25 = vld [vmem:[#allocation6 + $0x9e8] sm:$0xff] }
 0x38c   :  { %8974 = vmatpush1.bf16.msra.mxu0 %v10192_v56  ;;  %v10288_v56 = vcombine.low %v2269_v38, %v2277_v39  ;;  %v2365_v38 = vld [vmem:[#allocation6 + $0xa20] sm:$0xff] }
 0x38d   :  { %9146 = vmatpush1.bf16.msra.mxu1 %v10194_v48  ;;  %8975 = vmatprep.subr.bf16.mxu0 %v10209_v49  ;;  %v10290_v48 = vcombine.low %v2270_v40, %v2278_v41  ;;  %v10305_v49 = vcombine.high %v2285_v45, %v2293_v46  ;;  %v2373_v39 = vld [vmem:[#allocation6 + $0xa60] sm:$0xff]  ;;  %v2366_v40 = vld [vmem:[#allocation6 + $0xa28] sm:$0xff] }
 0x38e   :  { %9147 = vmatprep.subr.bf16.mxu1 %v10211_v50  ;;  %v10307_v50 = vcombine.high %v2286_v17, %v2294_v47  ;;  %v2374_v41 = vld [vmem:[#allocation6 + $0xa68] sm:$0xff] }
 0x390   :  { %8976 = vmatpush1.bf16.msra.mxu0 %v10208_v53  ;;  %v10304_v53 = vcombine.low %v2285_v45, %v2293_v46  ;;  %v2381_v45 = vld [vmem:[#allocation6 + $0xaa0] sm:$0xff] }
 0x391   :  { %9148 = vmatpush1.bf16.msra.mxu1 %v10210_v54  ;;  %8977 = vmatprep.subr.bf16.mxu0 %v10225_v55  ;;  %v10306_v54 = vcombine.low %v2286_v17, %v2294_v47  ;;  %v10321_v55 = vcombine.high %v2301_v51, %v2309_v19  ;;  %v2389_v46 = vld [vmem:[#allocation6 + $0xae0] sm:$0xff]  ;;  %v2382_v17 = vld [vmem:[#allocation6 + $0xaa8] sm:$0xff] }
 0x392   :  { %9149 = vmatprep.subr.bf16.mxu1 %v10227_v58  ;;  %v10323_v58 = vcombine.high %v2302_v28, %v2310_v52  ;;  %v2390_v47 = vld [vmem:[#allocation6 + $0xae8] sm:$0xff]  ;;  %v2397_v51 = vld [vmem:[#allocation6 + $0xb20] sm:$0xff] }
 0x393   :  { %v2405_v19 = vld [vmem:[#allocation6 + $0xb60] sm:$0xff] }
 0x394   :  { %8978 = vmatpush1.bf16.msra.mxu0 %v10224_v1  ;;  %v2326_v1 = vld [vmem:[#allocation6 + $0x8e8] sm:$0xff] }
 0x395   :  { %9150 = vmatpush1.bf16.msra.mxu1 %v10226_v3  ;;  %8979 = vmatprep.subr.bf16.mxu0 %v10241_v4  ;;  %v10322_v3 = vcombine.low %v2302_v28, %v2310_v52  ;;  %v10337_v4 = vcombine.high %v2317_v59, %v2325_v60  ;;  %v10339_v7 = vcombine.high %v2318_v0, %v2326_v1  ;;  %v2398_v28 = vld [vmem:[#allocation6 + $0xb28] sm:$0xff] }
 0x396   :  { %9151 = vmatprep.subr.bf16.mxu1 %v10243_v5  ;;  %v2333_v5 = vld [vmem:[#allocation6 + $0x920] sm:$0xff]  ;;  %v2406_v52 = vld [vmem:[#allocation6 + $0xb68] sm:$0xff] }
 0x398   :  { %8980 = vmatpush1.bf16.msra.mxu0 %v10240_v11  ;;  %v10336_v11 = vcombine.low %v2317_v59, %v2325_v60  ;;  %v2413_v59 = vld [vmem:[#allocation6 + $0xba0] sm:$0xff] }
 0x399   :  { %9152 = vmatpush1.bf16.msra.mxu1 %v10242_v12  ;;  %8981 = vmatprep.subr.bf16.mxu0 %v10257_v13  ;;  %v10338_v12 = vcombine.low %v2318_v0, %v2326_v1  ;;  %v10353_v13 = vcombine.high %v2333_v5, %v2341_v6  ;;  %v2421_v60 = vld [vmem:[#allocation6 + $0xbe0] sm:$0xff]  ;;  %v2422_v0 = vld [vmem:[#allocation6 + $0xbe8] sm:$0xff]  ;;  %v10416_v1 = vcombine.low %v2397_v51, %v2405_v19 }
 0x39a   :  { %9153 = vmatprep.subr.bf16.mxu1 %v10259_v20  ;;  %v10355_v20 = vcombine.high %v2334_v8, %v2342_v9 }
 0x39c   :  { %8982 = vmatpush1.bf16.msra.mxu0 %v10256_v34  ;;  %v10352_v34 = vcombine.low %v2333_v5, %v2341_v6  ;;  %v2429_v6 = vld [vmem:[#allocation6 + $0xc20] sm:$0xff] }
 0x39d   :  { %9154 = vmatpush1.bf16.msra.mxu1 %v10258_v36  ;;  %8983 = vmatprep.subr.bf16.mxu0 %v10273_v37  ;;  %v10354_v36 = vcombine.low %v2334_v8, %v2342_v9  ;;  %v10369_v37 = vcombine.high %v2349_v21, %v2357_v22  ;;  %v2430_v8 = vld [vmem:[#allocation6 + $0xc28] sm:$0xff] }
 0x39e   :  { %9155 = vmatprep.subr.bf16.mxu1 %v10275_v26  ;;  %v10371_v26 = vcombine.high %v2350_v24, %v2358_v25  ;;  %v2438_v9 = vld [vmem:[#allocation6 + $0xc68] sm:$0xff] }
 0x3a0   :  { %8984 = vmatpush1.bf16.msra.mxu0 %v10272_v42  ;;  %v10368_v42 = vcombine.low %v2349_v21, %v2357_v22  ;;  %v2445_v21 = vld [vmem:[#allocation6 + $0xca0] sm:$0xff] }
 0x3a1   :  { %9156 = vmatpush1.bf16.msra.mxu1 %v10274_v43  ;;  %8985 = vmatprep.subr.bf16.mxu0 %v10289_v10  ;;  %v10370_v43 = vcombine.low %v2350_v24, %v2358_v25  ;;  %v10385_v10 = vcombine.high %v2365_v38, %v2373_v39  ;;  %v2453_v22 = vld [vmem:[#allocation6 + $0xce0] sm:$0xff]  ;;  %v2446_v24 = vld [vmem:[#allocation6 + $0xca8] sm:$0xff] }
 0x3a2   :  { %9157 = vmatprep.subr.bf16.mxu1 %v10291_v44  ;;  %v10387_v44 = vcombine.high %v2366_v40, %v2374_v41  ;;  %v2454_v25 = vld [vmem:[#allocation6 + $0xce8] sm:$0xff] }
 0x3a4   :  { %8986 = vmatpush1.bf16.msra.mxu0 %v10288_v56  ;;  %v10384_v56 = vcombine.low %v2365_v38, %v2373_v39  ;;  %v2461_v38 = vld [vmem:[#allocation6 + $0xd20] sm:$0xff] }
 0x3a5   :  { %9158 = vmatpush1.bf16.msra.mxu1 %v10290_v48  ;;  %8987 = vmatprep.subr.bf16.mxu0 %v10305_v49  ;;  %v10386_v48 = vcombine.low %v2366_v40, %v2374_v41  ;;  %v10401_v49 = vcombine.high %v2381_v45, %v2389_v46  ;;  %v2469_v39 = vld [vmem:[#allocation6 + $0xd60] sm:$0xff]  ;;  %v2462_v40 = vld [vmem:[#allocation6 + $0xd28] sm:$0xff] }
 0x3a6   :  { %9159 = vmatprep.subr.bf16.mxu1 %v10307_v50  ;;  %v10403_v50 = vcombine.high %v2382_v17, %v2390_v47  ;;  %v2470_v41 = vld [vmem:[#allocation6 + $0xd68] sm:$0xff] }
 0x3a8   :  { %8988 = vmatpush1.bf16.msra.mxu0 %v10304_v53  ;;  %v10400_v53 = vcombine.low %v2381_v45, %v2389_v46  ;;  %v2477_v45 = vld [vmem:[#allocation6 + $0xda0] sm:$0xff] }
 0x3a9   :  { %9160 = vmatpush1.bf16.msra.mxu1 %v10306_v54  ;;  %9000 = vmatprep.subr.bf16.mxu0 %v10321_v55  ;;  %v10402_v54 = vcombine.low %v2382_v17, %v2390_v47  ;;  %v10417_v55 = vcombine.high %v2397_v51, %v2405_v19  ;;  %v2485_v46 = vld [vmem:[#allocation6 + $0xde0] sm:$0xff]  ;;  %v2478_v17 = vld [vmem:[#allocation6 + $0xda8] sm:$0xff] }
 0x3aa   :  { %9172 = vmatprep.subr.bf16.mxu1 %v10323_v58  ;;  %v10419_v58 = vcombine.high %v2398_v28, %v2406_v52  ;;  %v2486_v47 = vld [vmem:[#allocation6 + $0xde8] sm:$0xff]  ;;  %v2493_v51 = vld [vmem:[#allocation6 + $0xe20] sm:$0xff] }
 0x3ab   :  { %8990 = vmatmul.mubr.bf16.vlgmr.msra.gmra.mrb[16].mxu0 %v11546_v57  ;;  %v2501_v19 = vld [vmem:[#allocation6 + $0xe60] sm:$0xff] }
 0x3ac   :  { %9162 = vmatmul.mubr.bf16.vlgmr.msra.gmra.mrb[16].mxu1 %v11546_v57  ;;  %9001 = vmatpush1.bf16.msra.mxu0 %v10320_v61  ;;  %v2414_v61 = vld [vmem:[#allocation6 + $0xba8] sm:$0xff] }
 0x3ad   :  { %9032 = vmatprep.mubr.bf16.mxu0 %v11556_v2  ;;  %9173 = vmatpush1.bf16.msra.mxu1 %v10322_v3  ;;  %v10418_v3 = vcombine.low %v2398_v28, %v2406_v52  ;;  %v10435_v5 = vcombine.high %v2414_v61, %v2422_v0  ;;  %v2494_v28 = vld [vmem:[#allocation6 + $0xe28] sm:$0xff] }
 0x3ae   :  { %9204 = vmatprep.mubr.bf16.mxu1 %v11556_v2  ;;  %9002 = vmatprep.subr.bf16.mxu0 %v10337_v4  ;;  %v10433_v4 = vcombine.high %v2413_v59, %v2421_v60  ;;  %v2502_v52 = vld [vmem:[#allocation6 + $0xe68] sm:$0xff] }
 0x3af   :  { %9174 = vmatprep.subr.bf16.mxu1 %v10339_v7  ;;  %v2437_v7 = vld [vmem:[#allocation6 + $0xc60] sm:$0xff] }
 0x3b0   :  { %9003 = vmatpush1.bf16.msra.mxu0 %v10336_v11  ;;  %v10432_v11 = vcombine.low %v2413_v59, %v2421_v60  ;;  %v2509_v59 = vld [vmem:[#allocation6 + $0xea0] sm:$0xff] }
 0x3b1   :  { %9175 = vmatpush1.bf16.msra.mxu1 %v10338_v12  ;;  %9004 = vmatprep.subr.bf16.mxu0 %v10353_v13  ;;  %v10434_v12 = vcombine.low %v2414_v61, %v2422_v0  ;;  %v10449_v13 = vcombine.high %v2429_v6, %v2437_v7  ;;  %v2517_v60 = vld [vmem:[#allocation6 + $0xee0] sm:$0xff]  ;;  %v2510_v61 = vld [vmem:[#allocation6 + $0xea8] sm:$0xff] }
 0x3b2   :  { %9176 = vmatprep.subr.bf16.mxu1 %v10355_v20  ;;  %v10451_v20 = vcombine.high %v2430_v8, %v2438_v9  ;;  %v2518_v0 = vld [vmem:[#allocation6 + $0xee8] sm:$0xff] }
 0x3b4   :  { %9005 = vmatpush1.bf16.msra.mxu0 %v10352_v34  ;;  %v10448_v34 = vcombine.low %v2429_v6, %v2437_v7  ;;  %v2525_v6 = vld [vmem:[#allocation6 + $0xf20] sm:$0xff] }
 0x3b5   :  { %9177 = vmatpush1.bf16.msra.mxu1 %v10354_v36  ;;  %9006 = vmatprep.subr.bf16.mxu0 %v10369_v37  ;;  %v10450_v36 = vcombine.low %v2430_v8, %v2438_v9  ;;  %v10465_v37 = vcombine.high %v2445_v21, %v2453_v22  ;;  %v2533_v7 = vld [vmem:[#allocation6 + $0xf60] sm:$0xff]  ;;  %v2526_v8 = vld [vmem:[#allocation6 + $0xf28] sm:$0xff] }
 0x3b6   :  { %9178 = vmatprep.subr.bf16.mxu1 %v10371_v26  ;;  %v10467_v26 = vcombine.high %v2446_v24, %v2454_v25  ;;  %v2534_v9 = vld [vmem:[#allocation6 + $0xf68] sm:$0xff] }
 0x3b8   :  { %9007 = vmatpush1.bf16.msra.mxu0 %v10368_v42  ;;  %v10464_v42 = vcombine.low %v2445_v21, %v2453_v22  ;;  %v2541_v21 = vld [vmem:[#allocation6 + $0xfa0] sm:$0xff] }
 0x3b9   :  { %9179 = vmatpush1.bf16.msra.mxu1 %v10370_v43  ;;  %9008 = vmatprep.subr.bf16.mxu0 %v10385_v10  ;;  %v10466_v43 = vcombine.low %v2446_v24, %v2454_v25  ;;  %v10481_v10 = vcombine.high %v2461_v38, %v2469_v39  ;;  %v2549_v22 = vld [vmem:[#allocation6 + $0xfe0] sm:$0xff]  ;;  %v2542_v24 = vld [vmem:[#allocation6 + $0xfa8] sm:$0xff] }
 0x3ba   :  { %9180 = vmatprep.subr.bf16.mxu1 %v10387_v44  ;;  %v10483_v44 = vcombine.high %v2462_v40, %v2470_v41  ;;  %v2550_v25 = vld [vmem:[#allocation6 + $0xfe8] sm:$0xff] }
 0x3bc   :  { %9009 = vmatpush1.bf16.msra.mxu0 %v10384_v56  ;;  %v10480_v56 = vcombine.low %v2461_v38, %v2469_v39  ;;  %v2557_v38 = vld [vmem:[#allocation6 + $0x1020] sm:$0xff] }
 0x3bd   :  { %9181 = vmatpush1.bf16.msra.mxu1 %v10386_v48  ;;  %9010 = vmatprep.subr.bf16.mxu0 %v10401_v49  ;;  %v10482_v48 = vcombine.low %v2462_v40, %v2470_v41  ;;  %v10497_v49 = vcombine.high %v2477_v45, %v2485_v46  ;;  %v2565_v39 = vld [vmem:[#allocation6 + $0x1060] sm:$0xff]  ;;  %v2558_v40 = vld [vmem:[#allocation6 + $0x1028] sm:$0xff] }
 0x3be   :  { %9182 = vmatprep.subr.bf16.mxu1 %v10403_v50  ;;  %v10499_v50 = vcombine.high %v2478_v17, %v2486_v47  ;;  %v2566_v41 = vld [vmem:[#allocation6 + $0x1068] sm:$0xff] }
 0x3c0   :  { %9011 = vmatpush1.bf16.msra.mxu0 %v10400_v53  ;;  %v10496_v53 = vcombine.low %v2477_v45, %v2485_v46  ;;  %v2573_v45 = vld [vmem:[#allocation6 + $0x10a0] sm:$0xff] }
 0x3c1   :  { %9183 = vmatpush1.bf16.msra.mxu1 %v10402_v54  ;;  %9012 = vmatprep.subr.bf16.mxu0 %v10417_v55  ;;  %v10498_v54 = vcombine.low %v2478_v17, %v2486_v47  ;;  %v10513_v55 = vcombine.high %v2493_v51, %v2501_v19  ;;  %v2581_v46 = vld [vmem:[#allocation6 + $0x10e0] sm:$0xff]  ;;  %v10576_v17 = vcombine.low %v2557_v38, %v2565_v39  ;;  %v2574_v47 = vld [vmem:[#allocation6 + $0x10a8] sm:$0xff] }
 0x3c2   :  { %9184 = vmatprep.subr.bf16.mxu1 %v10419_v58  ;;  %v10515_v58 = vcombine.high %v2494_v28, %v2502_v52 }
 0x3c4   :  { %9013 = vmatpush1.bf16.msra.mxu0 %v10416_v1  ;;  %v10512_v1 = vcombine.low %v2493_v51, %v2501_v19  ;;  %v2597_v51 = vld [vmem:[#allocation6 + $0x1160] sm:$0xff] }
 0x3c5   :  { %9185 = vmatpush1.bf16.msra.mxu1 %v10418_v3  ;;  %9014 = vmatprep.subr.bf16.mxu0 %v10433_v4  ;;  %v10514_v3 = vcombine.low %v2494_v28, %v2502_v52  ;;  %v10529_v4 = vcombine.high %v2509_v59, %v2517_v60  ;;  %v2590_v28 = vld [vmem:[#allocation6 + $0x1128] sm:$0xff] }
 0x3c6   :  { %9186 = vmatprep.subr.bf16.mxu1 %v10435_v5  ;;  %v10531_v5 = vcombine.high %v2510_v61, %v2518_v0  ;;  %v2598_v52 = vld [vmem:[#allocation6 + $0x1168] sm:$0xff] }
 0x3c8   :  { %9015 = vmatpush1.bf16.msra.mxu0 %v10432_v11  ;;  %v10528_v11 = vcombine.low %v2509_v59, %v2517_v60  ;;  %v2605_v59 = vld [vmem:[#allocation6 + $0x11a0] sm:$0xff] }
 0x3c9   :  { %9187 = vmatpush1.bf16.msra.mxu1 %v10434_v12  ;;  %9016 = vmatprep.subr.bf16.mxu0 %v10449_v13  ;;  %v10530_v12 = vcombine.low %v2510_v61, %v2518_v0  ;;  %v10545_v13 = vcombine.high %v2525_v6, %v2533_v7  ;;  %v2613_v60 = vld [vmem:[#allocation6 + $0x11e0] sm:$0xff]  ;;  %v2606_v61 = vld [vmem:[#allocation6 + $0x11a8] sm:$0xff] }
 0x3ca   :  { %9188 = vmatprep.subr.bf16.mxu1 %v10451_v20  ;;  %v10547_v20 = vcombine.high %v2526_v8, %v2534_v9  ;;  %v2614_v0 = vld [vmem:[#allocation6 + $0x11e8] sm:$0xff] }
 0x3cc   :  { %9017 = vmatpush1.bf16.msra.mxu0 %v10448_v34  ;;  %v10544_v34 = vcombine.low %v2525_v6, %v2533_v7  ;;  %v2621_v6 = vld [vmem:[#allocation6 + $0x1220] sm:$0xff] }
 0x3cd   :  { %9189 = vmatpush1.bf16.msra.mxu1 %v10450_v36  ;;  %9018 = vmatprep.subr.bf16.mxu0 %v10465_v37  ;;  %v10546_v36 = vcombine.low %v2526_v8, %v2534_v9  ;;  %v10561_v37 = vcombine.high %v2541_v21, %v2549_v22  ;;  %v2629_v7 = vld [vmem:[#allocation6 + $0x1260] sm:$0xff]  ;;  %v2622_v8 = vld [vmem:[#allocation6 + $0x1228] sm:$0xff] }
 0x3ce   :  { %9190 = vmatprep.subr.bf16.mxu1 %v10467_v26  ;;  %v10563_v26 = vcombine.high %v2542_v24, %v2550_v25  ;;  %v2630_v9 = vld [vmem:[#allocation6 + $0x1268] sm:$0xff] }
 0x3d0   :  { %9019 = vmatpush1.bf16.msra.mxu0 %v10464_v42  ;;  %v10560_v42 = vcombine.low %v2541_v21, %v2549_v22  ;;  %v2637_v21 = vld [vmem:[#allocation6 + $0x12a0] sm:$0xff] }
 0x3d1   :  { %9191 = vmatpush1.bf16.msra.mxu1 %v10466_v43  ;;  %9020 = vmatprep.subr.bf16.mxu0 %v10481_v10  ;;  %v10562_v43 = vcombine.low %v2542_v24, %v2550_v25  ;;  %v10577_v10 = vcombine.high %v2557_v38, %v2565_v39  ;;  %v2645_v22 = vld [vmem:[#allocation6 + $0x12e0] sm:$0xff]  ;;  %v2638_v24 = vld [vmem:[#allocation6 + $0x12a8] sm:$0xff] }
 0x3d2   :  { %9192 = vmatprep.subr.bf16.mxu1 %v10483_v44  ;;  %v10579_v44 = vcombine.high %v2558_v40, %v2566_v41  ;;  %v2646_v25 = vld [vmem:[#allocation6 + $0x12e8] sm:$0xff]  ;;  %v2653_v38 = vld [vmem:[#allocation6 + $0x1320] sm:$0xff] }
 0x3d3   :  { %v2661_v39 = vld [vmem:[#allocation6 + $0x1360] sm:$0xff] }
 0x3d4   :  { %9021 = vmatpush1.bf16.msra.mxu0 %v10480_v56  ;;  %v2582_v56 = vld [vmem:[#allocation6 + $0x10e8] sm:$0xff] }
 0x3d5   :  { %9193 = vmatpush1.bf16.msra.mxu1 %v10482_v48  ;;  %9022 = vmatprep.subr.bf16.mxu0 %v10497_v49  ;;  %v10578_v48 = vcombine.low %v2558_v40, %v2566_v41  ;;  %v10593_v49 = vcombine.high %v2573_v45, %v2581_v46  ;;  %v10595_v19 = vcombine.high %v2574_v47, %v2582_v56  ;;  %v2654_v40 = vld [vmem:[#allocation6 + $0x1328] sm:$0xff] }
 0x3d6   :  { %9194 = vmatprep.subr.bf16.mxu1 %v10499_v50  ;;  %v2589_v50 = vld [vmem:[#allocation6 + $0x1120] sm:$0xff]  ;;  %v2662_v41 = vld [vmem:[#allocation6 + $0x1368] sm:$0xff] }
 0x3d8   :  { %9023 = vmatpush1.bf16.msra.mxu0 %v10496_v53  ;;  %v10592_v53 = vcombine.low %v2573_v45, %v2581_v46  ;;  %v2669_v45 = vld [vmem:[#allocation6 + $0x13a0] sm:$0xff] }
 0x3d9   :  { %9195 = vmatpush1.bf16.msra.mxu1 %v10498_v54  ;;  %9024 = vmatprep.subr.bf16.mxu0 %v10513_v55  ;;  %v10594_v54 = vcombine.low %v2574_v47, %v2582_v56  ;;  %v10609_v55 = vcombine.high %v2589_v50, %v2597_v51  ;;  %v2677_v46 = vld [vmem:[#allocation6 + $0x13e0] sm:$0xff]  ;;  %v2678_v47 = vld [vmem:[#allocation6 + $0x13e8] sm:$0xff]  ;;  %v10672_v56 = vcombine.low %v2653_v38, %v2661_v39 }
 0x3da   :  { %9196 = vmatprep.subr.bf16.mxu1 %v10515_v58  ;;  %v10611_v58 = vcombine.high %v2590_v28, %v2598_v52 }
 0x3dc   :  { %9025 = vmatpush1.bf16.msra.mxu0 %v10512_v1  ;;  %v10608_v1 = vcombine.low %v2589_v50, %v2597_v51  ;;  %v2685_v51 = vld [vmem:[#allocation6 + $0x1420] sm:$0xff] }
 0x3dd   :  { %9197 = vmatpush1.bf16.msra.mxu1 %v10514_v3  ;;  %9026 = vmatprep.subr.bf16.mxu0 %v10529_v4  ;;  %v10610_v3 = vcombine.low %v2590_v28, %v2598_v52  ;;  %v10625_v4 = vcombine.high %v2605_v59, %v2613_v60  ;;  %v2686_v28 = vld [vmem:[#allocation6 + $0x1428] sm:$0xff] }
 0x3de   :  { %9198 = vmatprep.subr.bf16.mxu1 %v10531_v5  ;;  %v10627_v5 = vcombine.high %v2606_v61, %v2614_v0  ;;  %v2694_v52 = vld [vmem:[#allocation6 + $0x1468] sm:$0xff] }
 0x3e0   :  { %9027 = vmatpush1.bf16.msra.mxu0 %v10528_v11  ;;  %v10624_v11 = vcombine.low %v2605_v59, %v2613_v60  ;;  %v2701_v59 = vld [vmem:[#allocation6 + $0x14a0] sm:$0xff] }
 0x3e1   :  { %9199 = vmatpush1.bf16.msra.mxu1 %v10530_v12  ;;  %9028 = vmatprep.subr.bf16.mxu0 %v10545_v13  ;;  %v10626_v12 = vcombine.low %v2606_v61, %v2614_v0  ;;  %v10641_v13 = vcombine.high %v2621_v6, %v2629_v7  ;;  %v2709_v60 = vld [vmem:[#allocation6 + $0x14e0] sm:$0xff]  ;;  %v2702_v61 = vld [vmem:[#allocation6 + $0x14a8] sm:$0xff] }
 0x3e2   :  { %9200 = vmatprep.subr.bf16.mxu1 %v10547_v20  ;;  %v10643_v20 = vcombine.high %v2622_v8, %v2630_v9  ;;  %v2710_v0 = vld [vmem:[#allocation6 + $0x14e8] sm:$0xff] }
 0x3e4   :  { %9029 = vmatpush1.bf16.msra.mxu0 %v10544_v34  ;;  %v10640_v34 = vcombine.low %v2621_v6, %v2629_v7  ;;  %v2717_v6 = vld [vmem:[#allocation6 + $0x1520] sm:$0xff] }
 0x3e5   :  { %9201 = vmatpush1.bf16.msra.mxu1 %v10546_v36  ;;  %9030 = vmatprep.subr.bf16.mxu0 %v10561_v37  ;;  %v10642_v36 = vcombine.low %v2622_v8, %v2630_v9  ;;  %v10657_v37 = vcombine.high %v2637_v21, %v2645_v22  ;;  %v2725_v7 = vld [vmem:[#allocation6 + $0x1560] sm:$0xff]  ;;  %v2718_v8 = vld [vmem:[#allocation6 + $0x1528] sm:$0xff] }
 0x3e6   :  { %9202 = vmatprep.subr.bf16.mxu1 %v10563_v26  ;;  %v10659_v26 = vcombine.high %v2638_v24, %v2646_v25  ;;  %v2726_v9 = vld [vmem:[#allocation6 + $0x1568] sm:$0xff] }
 0x3e8   :  { %9031 = vmatpush1.bf16.msra.mxu0 %v10560_v42  ;;  %v10656_v42 = vcombine.low %v2637_v21, %v2645_v22  ;;  %v2733_v21 = vld [vmem:[#allocation6 + $0x15a0] sm:$0xff] }
 0x3e9   :  { %9203 = vmatpush1.bf16.msra.mxu1 %v10562_v43  ;;  %9043 = vmatprep.subr.bf16.mxu0 %v10577_v10  ;;  %v10658_v43 = vcombine.low %v2638_v24, %v2646_v25  ;;  %v10673_v10 = vcombine.high %v2653_v38, %v2661_v39  ;;  %v2741_v22 = vld [vmem:[#allocation6 + $0x15e0] sm:$0xff]  ;;  %v2734_v24 = vld [vmem:[#allocation6 + $0x15a8] sm:$0xff] }
 0x3ea   :  { %9215 = vmatprep.subr.bf16.mxu1 %v10579_v44  ;;  %v10675_v44 = vcombine.high %v2654_v40, %v2662_v41  ;;  %v2742_v25 = vld [vmem:[#allocation6 + $0x15e8] sm:$0xff]  ;;  %v2749_v38 = vld [vmem:[#allocation6 + $0x1620] sm:$0xff] }
 0x3eb   :  { %9033 = vmatmul.mubr.bf16.vlgmr.msra.gmra.mrb[16].mxu0 %v11548_v62  ;;  %v2757_v39 = vld [vmem:[#allocation6 + $0x1660] sm:$0xff] }
 0x3ec   :  { %9205 = vmatmul.mubr.bf16.vlgmr.msra.gmra.mrb[16].mxu1 %v11548_v62  ;;  %9044 = vmatpush1.bf16.msra.mxu0 %v10576_v17  ;;  %v2670_v17 = vld [vmem:[#allocation6 + $0x13a8] sm:$0xff] }
 0x3ed   :  { %9075 = vmatprep.mubr.bf16.mxu0 %v11590_v33  ;;  %9216 = vmatpush1.bf16.msra.mxu1 %v10578_v48  ;;  %v10674_v48 = vcombine.low %v2654_v40, %v2662_v41  ;;  %v10691_v50 = vcombine.high %v2670_v17, %v2678_v47  ;;  %v2750_v40 = vld [vmem:[#allocation6 + $0x1628] sm:$0xff] }
 0x3ee   :  { %9247 = vmatprep.mubr.bf16.mxu1 %v11590_v33  ;;  %9045 = vmatprep.subr.bf16.mxu0 %v10593_v49  ;;  %v10689_v49 = vcombine.high %v2669_v45, %v2677_v46  ;;  %v2758_v41 = vld [vmem:[#allocation6 + $0x1668] sm:$0xff] }
 0x3ef   :  { %9217 = vmatprep.subr.bf16.mxu1 %v10595_v19  ;;  %v2693_v19 = vld [vmem:[#allocation6 + $0x1460] sm:$0xff] }
 0x3f0   :  { %9046 = vmatpush1.bf16.msra.mxu0 %v10592_v53  ;;  %v10688_v53 = vcombine.low %v2669_v45, %v2677_v46  ;;  %v2765_v45 = vld [vmem:[#allocation6 + $0x16a0] sm:$0xff] }
 0x3f1   :  { %9218 = vmatpush1.bf16.msra.mxu1 %v10594_v54  ;;  %9047 = vmatprep.subr.bf16.mxu0 %v10609_v55  ;;  %v10690_v54 = vcombine.low %v2670_v17, %v2678_v47  ;;  %v10705_v55 = vcombine.high %v2685_v51, %v2693_v19  ;;  %v2773_v46 = vld [vmem:[#allocation6 + $0x16e0] sm:$0xff]  ;;  %v2766_v17 = vld [vmem:[#allocation6 + $0x16a8] sm:$0xff] }
 0x3f2   :  { %9219 = vmatprep.subr.bf16.mxu1 %v10611_v58  ;;  %v10707_v58 = vcombine.high %v2686_v28, %v2694_v52  ;;  %v2774_v47 = vld [vmem:[#allocation6 + $0x16e8] sm:$0xff] }
 0x3f4   :  { %9048 = vmatpush1.bf16.msra.mxu0 %v10608_v1  ;;  %v10704_v1 = vcombine.low %v2685_v51, %v2693_v19  ;;  %v2781_v51 = vld [vmem:[#allocation6 + $0x1720] sm:$0xff] }
 0x3f5   :  { %9220 = vmatpush1.bf16.msra.mxu1 %v10610_v3  ;;  %9049 = vmatprep.subr.bf16.mxu0 %v10625_v4  ;;  %v10706_v3 = vcombine.low %v2686_v28, %v2694_v52  ;;  %v10721_v4 = vcombine.high %v2701_v59, %v2709_v60  ;;  %v2789_v19 = vld [vmem:[#allocation6 + $0x1760] sm:$0xff]  ;;  %v2782_v28 = vld [vmem:[#allocation6 + $0x1728] sm:$0xff] }
 0x3f6   :  { %9221 = vmatprep.subr.bf16.mxu1 %v10627_v5  ;;  %v10723_v5 = vcombine.high %v2702_v61, %v2710_v0  ;;  %v2790_v52 = vld [vmem:[#allocation6 + $0x1768] sm:$0xff] }
 0x3f8   :  { %9050 = vmatpush1.bf16.msra.mxu0 %v10624_v11  ;;  %v10720_v11 = vcombine.low %v2701_v59, %v2709_v60  ;;  %v2797_v59 = vld [vmem:[#allocation6 + $0x17a0] sm:$0xff] }
 0x3f9   :  { %9222 = vmatpush1.bf16.msra.mxu1 %v10626_v12  ;;  %9051 = vmatprep.subr.bf16.mxu0 %v10641_v13  ;;  %v10722_v12 = vcombine.low %v2702_v61, %v2710_v0  ;;  %v10737_v13 = vcombine.high %v2717_v6, %v2725_v7  ;;  %v2805_v60 = vld [vmem:[#allocation6 + $0x17e0] sm:$0xff]  ;;  %v2798_v61 = vld [vmem:[#allocation6 + $0x17a8] sm:$0xff] }
 0x3fa   :  { %9223 = vmatprep.subr.bf16.mxu1 %v10643_v20  ;;  %v10739_v20 = vcombine.high %v2718_v8, %v2726_v9  ;;  %v2806_v0 = vld [vmem:[#allocation6 + $0x17e8] sm:$0xff] }
 0x3fc   :  { %9052 = vmatpush1.bf16.msra.mxu0 %v10640_v34  ;;  %v10736_v34 = vcombine.low %v2717_v6, %v2725_v7  ;;  %v2813_v6 = vld [vmem:[#allocation6 + $0x1820] sm:$0xff] }
 0x3fd   :  { %9224 = vmatpush1.bf16.msra.mxu1 %v10642_v36  ;;  %9053 = vmatprep.subr.bf16.mxu0 %v10657_v37  ;;  %v10738_v36 = vcombine.low %v2718_v8, %v2726_v9  ;;  %v10753_v37 = vcombine.high %v2733_v21, %v2741_v22  ;;  %v2821_v7 = vld [vmem:[#allocation6 + $0x1860] sm:$0xff]  ;;  %v2814_v8 = vld [vmem:[#allocation6 + $0x1828] sm:$0xff] }
 0x3fe   :  { %9225 = vmatprep.subr.bf16.mxu1 %v10659_v26  ;;  %v10755_v26 = vcombine.high %v2734_v24, %v2742_v25  ;;  %v2822_v9 = vld [vmem:[#allocation6 + $0x1868] sm:$0xff] }
 0x400   :  { %9054 = vmatpush1.bf16.msra.mxu0 %v10656_v42  ;;  %v10752_v42 = vcombine.low %v2733_v21, %v2741_v22  ;;  %v2829_v21 = vld [vmem:[#allocation6 + $0x18a0] sm:$0xff] }
 0x401   :  { %9226 = vmatpush1.bf16.msra.mxu1 %v10658_v43  ;;  %9055 = vmatprep.subr.bf16.mxu0 %v10673_v10  ;;  %v10754_v43 = vcombine.low %v2734_v24, %v2742_v25  ;;  %v10769_v10 = vcombine.high %v2749_v38, %v2757_v39  ;;  %v2837_v22 = vld [vmem:[#allocation6 + $0x18e0] sm:$0xff]  ;;  %v10832_v24 = vcombine.low %v2813_v6, %v2821_v7  ;;  %v2830_v25 = vld [vmem:[#allocation6 + $0x18a8] sm:$0xff] }
 0x402   :  { %9227 = vmatprep.subr.bf16.mxu1 %v10675_v44  ;;  %v10771_v44 = vcombine.high %v2750_v40, %v2758_v41 }
 0x404   :  { %9056 = vmatpush1.bf16.msra.mxu0 %v10672_v56  ;;  %v10768_v56 = vcombine.low %v2749_v38, %v2757_v39  ;;  %v2853_v38 = vld [vmem:[#allocation6 + $0x1960] sm:$0xff] }
 0x405   :  { %9228 = vmatpush1.bf16.msra.mxu1 %v10674_v48  ;;  %9057 = vmatprep.subr.bf16.mxu0 %v10689_v49  ;;  %v10770_v48 = vcombine.low %v2750_v40, %v2758_v41  ;;  %v10785_v49 = vcombine.high %v2765_v45, %v2773_v46  ;;  %v2846_v40 = vld [vmem:[#allocation6 + $0x1928] sm:$0xff] }
 0x406   :  { %9229 = vmatprep.subr.bf16.mxu1 %v10691_v50  ;;  %v10787_v50 = vcombine.high %v2766_v17, %v2774_v47  ;;  %v2854_v41 = vld [vmem:[#allocation6 + $0x1968] sm:$0xff] }
 0x408   :  { %9058 = vmatpush1.bf16.msra.mxu0 %v10688_v53  ;;  %v10784_v53 = vcombine.low %v2765_v45, %v2773_v46  ;;  %v2861_v45 = vld [vmem:[#allocation6 + $0x19a0] sm:$0xff] }
 0x409   :  { %9230 = vmatpush1.bf16.msra.mxu1 %v10690_v54  ;;  %9059 = vmatprep.subr.bf16.mxu0 %v10705_v55  ;;  %v10786_v54 = vcombine.low %v2766_v17, %v2774_v47  ;;  %v10801_v55 = vcombine.high %v2781_v51, %v2789_v19  ;;  %v2869_v46 = vld [vmem:[#allocation6 + $0x19e0] sm:$0xff]  ;;  %v2862_v17 = vld [vmem:[#allocation6 + $0x19a8] sm:$0xff] }
 0x40a   :  { %9231 = vmatprep.subr.bf16.mxu1 %v10707_v58  ;;  %v10803_v58 = vcombine.high %v2782_v28, %v2790_v52  ;;  %v2870_v47 = vld [vmem:[#allocation6 + $0x19e8] sm:$0xff] }
 0x40c   :  { %9060 = vmatpush1.bf16.msra.mxu0 %v10704_v1  ;;  %v10800_v1 = vcombine.low %v2781_v51, %v2789_v19  ;;  %v2877_v51 = vld [vmem:[#allocation6 + $0x1a20] sm:$0xff] }
 0x40d   :  { %9232 = vmatpush1.bf16.msra.mxu1 %v10706_v3  ;;  %9061 = vmatprep.subr.bf16.mxu0 %v10721_v4  ;;  %v10802_v3 = vcombine.low %v2782_v28, %v2790_v52  ;;  %v10817_v4 = vcombine.high %v2797_v59, %v2805_v60  ;;  %v2885_v19 = vld [vmem:[#allocation6 + $0x1a60] sm:$0xff]  ;;  %v2878_v28 = vld [vmem:[#allocation6 + $0x1a28] sm:$0xff] }
 0x40e   :  { %9233 = vmatprep.subr.bf16.mxu1 %v10723_v5  ;;  %v10819_v5 = vcombine.high %v2798_v61, %v2806_v0  ;;  %v2886_v52 = vld [vmem:[#allocation6 + $0x1a68] sm:$0xff] }
 0x410   :  { %9062 = vmatpush1.bf16.msra.mxu0 %v10720_v11  ;;  %v10816_v11 = vcombine.low %v2797_v59, %v2805_v60  ;;  %v2893_v59 = vld [vmem:[#allocation6 + $0x1aa0] sm:$0xff] }
 0x411   :  { %9234 = vmatpush1.bf16.msra.mxu1 %v10722_v12  ;;  %9063 = vmatprep.subr.bf16.mxu0 %v10737_v13  ;;  %v10818_v12 = vcombine.low %v2798_v61, %v2806_v0  ;;  %v10833_v13 = vcombine.high %v2813_v6, %v2821_v7  ;;  %v2901_v60 = vld [vmem:[#allocation6 + $0x1ae0] sm:$0xff]  ;;  %v2894_v61 = vld [vmem:[#allocation6 + $0x1aa8] sm:$0xff] }
 0x412   :  { %9235 = vmatprep.subr.bf16.mxu1 %v10739_v20  ;;  %v10835_v20 = vcombine.high %v2814_v8, %v2822_v9  ;;  %v2902_v0 = vld [vmem:[#allocation6 + $0x1ae8] sm:$0xff]  ;;  %v2909_v6 = vld [vmem:[#allocation6 + $0x1b20] sm:$0xff] }
 0x413   :  { %v2917_v7 = vld [vmem:[#allocation6 + $0x1b60] sm:$0xff] }
 0x414   :  { %9064 = vmatpush1.bf16.msra.mxu0 %v10736_v34  ;;  %v2838_v34 = vld [vmem:[#allocation6 + $0x18e8] sm:$0xff] }
 0x415   :  { %9236 = vmatpush1.bf16.msra.mxu1 %v10738_v36  ;;  %9065 = vmatprep.subr.bf16.mxu0 %v10753_v37  ;;  %v10834_v36 = vcombine.low %v2814_v8, %v2822_v9  ;;  %v10849_v37 = vcombine.high %v2829_v21, %v2837_v22  ;;  %v10851_v39 = vcombine.high %v2830_v25, %v2838_v34  ;;  %v11286_v8 = vld [vmem:[#allocation7] sm:$0xff] }
 0x416   :  { %9237 = vmatprep.subr.bf16.mxu1 %v10755_v26  ;;  %v2845_v26 = vld [vmem:[#allocation6 + $0x1920] sm:$0xff]  ;;  %v3088_v9 = vrot.slane %v11286_v8, %v11567_v14 }
 0x418   :  { %9066 = vmatpush1.bf16.msra.mxu0 %v10752_v42  ;;  %v10848_v42 = vcombine.low %v2829_v21, %v2837_v22  ;;  %v10912_v21 = vcombine.low %v2893_v59, %v2901_v60  ;;  %v3100_v22 = vrot.slane %v11286_v8, %v11576_v23 }
 0x419   :  { %9238 = vmatpush1.bf16.msra.mxu1 %v10754_v43  ;;  %9067 = vmatprep.subr.bf16.mxu0 %v10769_v10  ;;  %v10850_v43 = vcombine.low %v2830_v25, %v2838_v34  ;;  %v10865_v10 = vcombine.high %v2845_v26, %v2853_v38  ;;  %v10929_v25 = vcombine.high %v2909_v6, %v2917_v7  ;;  %v2925_v34 = vld [vmem:[#allocation6 + $0x1ba0] sm:$0xff] }
 0x41a   :  { %9239 = vmatprep.subr.bf16.mxu1 %v10771_v44  ;;  %v10867_v44 = vcombine.high %v2846_v40, %v2854_v41 }
 0x41c   :  { %9068 = vmatpush1.bf16.msra.mxu0 %v10768_v56  ;;  %v10864_v56 = vcombine.low %v2845_v26, %v2853_v38  ;;  %v2926_v38 = vld [vmem:[#allocation6 + $0x1ba8] sm:$0xff] }
 0x41d   :  { %9240 = vmatpush1.bf16.msra.mxu1 %v10770_v48  ;;  %9069 = vmatprep.subr.bf16.mxu0 %v10785_v49  ;;  %v10866_v48 = vcombine.low %v2846_v40, %v2854_v41  ;;  %v10881_v49 = vcombine.high %v2861_v45, %v2869_v46 }
 0x41e   :  { %9241 = vmatprep.subr.bf16.mxu1 %v10787_v50  ;;  %v10883_v50 = vcombine.high %v2862_v17, %v2870_v47 }
 0x420   :  { %9070 = vmatpush1.bf16.msra.mxu0 %v10784_v53  ;;  %v10880_v53 = vcombine.low %v2861_v45, %v2869_v46 }
 0x421   :  { %9242 = vmatpush1.bf16.msra.mxu1 %v10786_v54  ;;  %9071 = vmatprep.subr.bf16.mxu0 %v10801_v55  ;;  %v10882_v54 = vcombine.low %v2862_v17, %v2870_v47  ;;  %v10897_v55 = vcombine.high %v2877_v51, %v2885_v19 }
 0x422   :  { %9243 = vmatprep.subr.bf16.mxu1 %v10803_v58  ;;  %v10899_v58 = vcombine.high %v2878_v28, %v2886_v52 }
 0x424   :  { %9072 = vmatpush1.bf16.msra.mxu0 %v10800_v1  ;;  %v10896_v1 = vcombine.low %v2877_v51, %v2885_v19 }
 0x425   :  { %9244 = vmatpush1.bf16.msra.mxu1 %v10802_v3  ;;  %9073 = vmatprep.subr.bf16.mxu0 %v10817_v4  ;;  %v10898_v3 = vcombine.low %v2878_v28, %v2886_v52  ;;  %v10913_v4 = vcombine.high %v2893_v59, %v2901_v60  ;;  %v2949_v59 = vld [vmem:[#allocation6 + $0x1c60] sm:$0xff] }
 0x426   :  { %9245 = vmatprep.subr.bf16.mxu1 %v10819_v5  ;;  %v10915_v5 = vcombine.high %v2894_v61, %v2902_v0 }
 0x428   :  { %9074 = vmatpush1.bf16.msra.mxu0 %v10816_v11  ;;  %v2910_v11 = vld [vmem:[#allocation6 + $0x1b28] sm:$0xff] }
 0x429   :  { %9246 = vmatpush1.bf16.msra.mxu1 %v10818_v12  ;;  %9086 = vmatprep.subr.bf16.mxu0 %v10833_v13  ;;  %v2918_v12 = vld [vmem:[#allocation6 + $0x1b68] sm:$0xff]  ;;  %v3096_v13 = vrot.slane %v11286_v8, %v11570_v16 }
 0x42a   :  { %9258 = vmatprep.subr.bf16.mxu1 %v10835_v20  ;;  %v3092_v20 = vrot.slane %v11286_v8, %v11573_v18  ;;  %v10931_v26 = vcombine.high %v2910_v11, %v2918_v12  ;;  %v10930_v17 = vcombine.low %v2910_v11, %v2918_v12 }
 0x42b   :  { %9076 = vmatmul.mubr.bf16.vlgmr.msra.gmra.mrb[16].mxu0 %v11586_v15 }
 0x42c   :  { %9248 = vmatmul.mubr.bf16.vlgmr.msra.gmra.mrb[16].mxu1 %v11586_v15  ;;  %9087 = vmatpush1.bf16.msra.mxu0 %v10832_v24  ;;  %v10914_v24 = vcombine.low %v2894_v61, %v2902_v0 }
 0x42d   :  { %9118 = vmatprep.mubr.bf16.mxu0 %v11592_v35  ;;  %9259 = vmatpush1.bf16.msra.mxu1 %v10834_v36  ;;  %v2933_v36 = vld [vmem:[#allocation6 + $0x1be0] sm:$0xff] }
 0x42e   :  { %9290 = vmatprep.mubr.bf16.mxu1 %v11592_v35  ;;  %9088 = vmatprep.subr.bf16.mxu0 %v10849_v37  ;;  %v10945_v47 = vcombine.high %v2925_v34, %v2933_v36 }
 0x42f   :  { %9260 = vmatprep.subr.bf16.mxu1 %v10851_v39  ;;  %v2934_v39 = vld [vmem:[#allocation6 + $0x1be8] sm:$0xff] }
 0x430   :  { %9089 = vmatpush1.bf16.msra.mxu0 %v10848_v42  ;;  %v10947_v19 = vcombine.high %v2926_v38, %v2934_v39  ;;  %v10946_v11 = vcombine.low %v2926_v38, %v2934_v39  ;;  %v2973_v39 = vld [vmem:[#allocation6 + $0x1d20] sm:$0xff] }
 0x431   :  { %9261 = vmatpush1.bf16.msra.mxu1 %v10850_v43  ;;  %9090 = vmatprep.subr.bf16.mxu0 %v10865_v10  ;;  %v10928_v43 = vcombine.low %v2909_v6, %v2917_v7  ;;  %v10944_v7 = vcombine.low %v2925_v34, %v2933_v36  ;;  %v2966_v34 = vld [vmem:[#allocation6 + $0x1ce8] sm:$0xff] }
 0x432   :  { %9262 = vmatprep.subr.bf16.mxu1 %v10867_v44 }
 0x434   :  { %9091 = vmatpush1.bf16.msra.mxu0 %v10864_v56 }
 0x435   :  { %9263 = vmatpush1.bf16.msra.mxu1 %v10866_v48  ;;  %9092 = vmatprep.subr.bf16.mxu0 %v10881_v49 }
 0x436   :  { %9264 = vmatprep.subr.bf16.mxu1 %v10883_v50 }
 0x438   :  { %9093 = vmatpush1.bf16.msra.mxu0 %v10880_v53 }
 0x439   :  { %9265 = vmatpush1.bf16.msra.mxu1 %v10882_v54  ;;  %9094 = vmatprep.subr.bf16.mxu0 %v10897_v55 }
 0x43a   :  { %9266 = vmatprep.subr.bf16.mxu1 %v10899_v58  ;;  %v2941_v58 = vld [vmem:[#allocation6 + $0x1c20] sm:$0xff] }
 0x43b   :  { %v10961_v12 = vcombine.high %v2941_v58, %v2949_v59  ;;  %v10960_v36 = vcombine.low %v2941_v58, %v2949_v59 }
 0x43c   :  { %9095 = vmatpush1.bf16.msra.mxu0 %v10896_v1  ;;  %v2942_v1 = vld [vmem:[#allocation6 + $0x1c28] sm:$0xff] }
 0x43d   :  { %9267 = vmatpush1.bf16.msra.mxu1 %v10898_v3  ;;  %9096 = vmatprep.subr.bf16.mxu0 %v10913_v4  ;;  %v2950_v3 = vld [vmem:[#allocation6 + $0x1c68] sm:$0xff] }
 0x43e   :  { %v8776_v37 = vpop.f32.mrb[12].mxu0  ;;  %9268 = vmatprep.subr.bf16.mxu1 %v10915_v5 }
 0x43f   :  { %v11136_v40 = vadd.f32 %v8776_v37, %v3088_v9  ;;  %v8948_v41 = vpop.f32.mrb[12].mxu1  ;;  %v8778_v42 = vpop.f32.mrb[13].mxu0  ;;  %v10962_v37 = vcombine.low %v2942_v1, %v2950_v3 }
 0x440   :  { %v11140_v10 = vadd.f32 %v8948_v41, %v3096_v13  ;;  %v11137_v44 = vadd.f32 %v8778_v42, %v3092_v20  ;;  %v8950_v45 = vpop.f32.mrb[13].mxu1  ;;  %v8780_v46 = vpop.f32.mrb[14].mxu0  ;;  %9097 = vmatpush1.bf16.msra.mxu0 %v10912_v21  ;;  %v2957_v21 = vld [vmem:[#allocation6 + $0x1ca0] sm:$0xff]  ;;  %v2974_v41 = vld [vmem:[#allocation6 + $0x1d28] sm:$0xff] }
 0x441   :  { %v9649_v56 = vmax.f32 %v11136_v40, 0.0  ;;  %v11141_v48 = vadd.f32 %v8950_v45, %v3100_v22  ;;  %v11138_v49 = vadd.f32 %v8780_v46, %v3088_v9  ;;  %v8952_v50 = vpop.f32.mrb[14].mxu1  ;;  %9269 = vmatpush1.bf16.msra.mxu1 %v10914_v24  ;;  %v8782_v51 = vpop.f32.mrb[15].mxu0  ;;  %9098 = vmatprep.subr.bf16.mxu0 %v10929_v25  ;;  %v2958_v25 = vld [vmem:[#allocation6 + $0x1ca8] sm:$0xff]  ;;  %v2981_v40 = vld [vmem:[#allocation6 + $0x1d60] sm:$0xff] }
 0x442   :  { %v9651_v28 = vmax.f32 %v11140_v10, 0.0  ;;  %v9650_v52 = vmax.f32 %v11137_v44, 0.0  ;;  %v11142_v53 = vadd.f32 %v8952_v50, %v3096_v13  ;;  %v11139_v54 = vadd.f32 %v8782_v51, %v3092_v20  ;;  %v8954_v55 = vpop.f32.mrb[15].mxu1  ;;  %9270 = vmatprep.subr.bf16.mxu1 %v10931_v26  ;;  %v2982_v42 = vld [vmem:[#allocation6 + $0x1d68] sm:$0xff]  ;;  %v2989_v46 = vld [vmem:[#allocation6 + $0x1da0] sm:$0xff] }
 0x443   :  { %v9652_v60 = vmax.f32 %v11141_v48, 0.0  ;;  %v9665_v61 = vmax.f32 %v11138_v49, 0.0  ;;  %v11143_v0 = vadd.f32 %v8954_v55, %v3100_v22  ;;  %v10963_v20 = vcombine.high %v2942_v1, %v2950_v3  ;;  %v2965_v22 = vld [vmem:[#allocation6 + $0x1ce0] sm:$0xff]  ;;  %v3030_v1 = vld [vmem:[#allocation6 + $0x1ee8] sm:$0xff] }
 0x444   :  { %v11098_v4 = vpack.c.bf16 %v9650_v52, %v9649_v56  ;;  %v9667_v5 = vmax.f32 %v11142_v53, 0.0  ;;  %v9666_v6 = vmax.f32 %v11139_v54, 0.0  ;;  %9099 = vmatpush1.bf16.msra.mxu0 %v10928_v43  ;;  %v10977_v26 = vcombine.high %v2957_v21, %v2965_v22  ;;  %v2998_v56 = vld [vmem:[#allocation6 + $0x1de8] sm:$0xff] }
 0x445   :  { %v11099_v8 = vpack.c.bf16 %v9652_v60, %v9651_v28  ;;  %v9668_v9 = vmax.f32 %v11143_v0, 0.0  ;;  %9271 = vmatpush1.bf16.msra.mxu1 %v10930_v17  ;;  %9100 = vmatprep.subr.bf16.mxu0 %v10945_v47  ;;  %v10979_v38 = vcombine.high %v2958_v25, %v2966_v34  ;;  %v10976_v43 = vcombine.low %v2957_v21, %v2965_v22  ;;  %v2997_v17 = vld [vmem:[#allocation6 + $0x1de0] sm:$0xff]  ;;  %v2990_v47 = vld [vmem:[#allocation6 + $0x1da8] sm:$0xff] }
 0x446   :  { %9775 = vst [vmem:[%s11733_s5 + $0x10] sm:$0xff] %v11098_v4  ;;  %v11106_v13 = vpack.c.bf16 %v9666_v6, %v9665_v61  ;;  %9272 = vmatprep.subr.bf16.mxu1 %v10947_v19  ;;  %v10978_v10 = vcombine.low %v2958_v25, %v2966_v34  ;;  %v10993_v44 = vcombine.high %v2973_v39, %v2981_v40  ;;  %v3005_v19 = vld [vmem:[#allocation6 + $0x1e20] sm:$0xff]  ;;  %v3006_v52 = vld [vmem:[#allocation6 + $0x1e28] sm:$0xff] }
 0x447   :  { %9776 = vst [vmem:[%s11733_s5 + $0x18] sm:$0xff] %v11099_v8  ;;  %v11107_v24 = vpack.c.bf16 %v9668_v9, %v9667_v5  ;;  %v10995_v45 = vcombine.high %v2974_v41, %v2982_v42  ;;  %v10992_v48 = vcombine.low %v2973_v39, %v2981_v40  ;;  %v10994_v49 = vcombine.low %v2974_v41, %v2982_v42  ;;  %v3013_v28 = vld [vmem:[#allocation6 + $0x1e60] sm:$0xff]  ;;  %v3014_v53 = vld [vmem:[#allocation6 + $0x1e68] sm:$0xff]  ;;  %v2047_v39 = vld [vmem:[#allocation6 + $0x30] sm:$0xff] }
 0x448   :  { %9783 = vst [vmem:[%s11733_s5 + $0x50] sm:$0xff] %v11106_v13  ;;  %9101 = vmatpush1.bf16.msra.mxu0 %v10944_v7  ;;  %v11009_v50 = vcombine.high %v2989_v46, %v2997_v17  ;;  %v11011_v51 = vcombine.high %v2990_v47, %v2998_v56  ;;  %v11008_v54 = vcombine.low %v2989_v46, %v2997_v17  ;;  %v3021_v60 = vld [vmem:[#allocation6 + $0x1ea0] sm:$0xff]  ;;  %v3022_v0 = vld [vmem:[#allocation6 + $0x1ea8] sm:$0xff]  ;;  %v2055_v40 = vld [vmem:[#allocation6 + $0x70] sm:$0xff] }
 0x449   :  { %9784 = vst [vmem:[%s11733_s5 + $0x58] sm:$0xff] %v11107_v24  ;;  %9273 = vmatpush1.bf16.msra.mxu1 %v10946_v11  ;;  %9102 = vmatprep.subr.bf16.mxu0 %v10961_v12  ;;  %v11010_v55 = vcombine.low %v2990_v47, %v2998_v56  ;;  %v11025_v58 = vcombine.high %v3005_v19, %v3013_v28  ;;  %v3029_v61 = vld [vmem:[#allocation6 + $0x1ee0] sm:$0xff]  ;;  %v3038_v9 = vld [vmem:[#allocation6 + $0x1f28] sm:$0xff]  ;;  %v2048_v41 = vld [vmem:[#allocation6 + $0x38] sm:$0xff] }
 0x44a   :  { %9274 = vmatprep.subr.bf16.mxu1 %v10963_v20  ;;  %v11027_v59 = vcombine.high %v3006_v52, %v3014_v53  ;;  %v11024_v3 = vcombine.low %v3005_v19, %v3013_v28  ;;  %v11026_v4 = vcombine.low %v3006_v52, %v3014_v53  ;;  %v11041_v5 = vcombine.high %v3021_v60, %v3029_v61  ;;  %v3037_v7 = vld [vmem:[#allocation6 + $0x1f20] sm:$0xff]  ;;  %v3046_v11 = vld [vmem:[#allocation6 + $0x1f68] sm:$0xff]  ;;  %v2056_v42 = vld [vmem:[#allocation6 + $0x78] sm:$0xff] }
 0x44b   :  { %v11043_v6 = vcombine.high %v3022_v0, %v3030_v1  ;;  %v3045_v8 = vld [vmem:[#allocation6 + $0x1f60] sm:$0xff]  ;;  %v11040_v12 = vcombine.low %v3021_v60, %v3029_v61  ;;  %v11042_v13 = vcombine.low %v3022_v0, %v3030_v1  ;;  %v11059_v21 = vcombine.high %v3038_v9, %v3046_v11  ;;  %v3054_v25 = vld [vmem:[#allocation6 + $0x1fa8] sm:$0xff]  ;;  %v2063_v46 = vld [vmem:[#allocation6 + $0xb0] sm:$0xff] }
 0x44c   :  { %9103 = vmatpush1.bf16.msra.mxu0 %v10960_v36  ;;  %v11057_v20 = vcombine.high %v3037_v7, %v3045_v8  ;;  %v3053_v22 = vld [vmem:[#allocation6 + $0x1fa0] sm:$0xff]  ;;  %v3062_v34 = vld [vmem:[#allocation6 + $0x1fe8] sm:$0xff]  ;;  %v11056_v36 = vcombine.low %v3037_v7, %v3045_v8  ;;  %v2071_v17 = vld [vmem:[#allocation6 + $0xf0] sm:$0xff]  ;;  %v10068_v47 = vcombine.low %v2047_v39, %v2055_v40 }
 0x44d   :  { %9275 = vmatpush1.bf16.msra.mxu1 %v10962_v37  ;;  %9104 = vmatprep.subr.bf16.mxu0 %v10977_v26  ;;  %v3061_v24 = vld [vmem:[#allocation6 + $0x1fe0] sm:$0xff]  ;;  %v11058_v37 = vcombine.low %v3038_v9, %v3046_v11  ;;  %v2064_v56 = vld [vmem:[#allocation6 + $0xb8] sm:$0xff]  ;;  %v2087_v19 = vld [vmem:[#allocation6 + $0x170] sm:$0xff] }
 0x44e   :  { %9276 = vmatprep.subr.bf16.mxu1 %v10979_v38  ;;  %v11073_v26 = vcombine.high %v3053_v22, %v3061_v24  ;;  %v11075_v38 = vcombine.high %v3054_v25, %v3062_v34  ;;  %v2080_v52 = vld [vmem:[#allocation6 + $0x138] sm:$0xff]  ;;  %v2095_v60 = vld [vmem:[#allocation6 + $0x1b0] sm:$0xff] }
 0x44f   :  { %v2088_v53 = vld [vmem:[#allocation6 + $0x178] sm:$0xff]  ;;  %v2103_v61 = vld [vmem:[#allocation6 + $0x1f0] sm:$0xff] }
 0x450   :  { %9105 = vmatpush1.bf16.msra.mxu0 %v10976_v43  ;;  %v11072_v43 = vcombine.low %v3053_v22, %v3061_v24  ;;  %v2096_v0 = vld [vmem:[#allocation6 + $0x1b8] sm:$0xff]  ;;  %v2111_v7 = vld [vmem:[#allocation6 + $0x230] sm:$0xff] }
 0x451   :  { %9277 = vmatpush1.bf16.msra.mxu1 %v10978_v10  ;;  %9106 = vmatprep.subr.bf16.mxu0 %v10993_v44  ;;  %v11074_v10 = vcombine.low %v3054_v25, %v3062_v34  ;;  %v10069_v44 = vcombine.high %v2047_v39, %v2055_v40  ;;  %v2104_v1 = vld [vmem:[#allocation6 + $0x1f8] sm:$0xff]  ;;  %v2119_v8 = vld [vmem:[#allocation6 + $0x270] sm:$0xff] }
 0x452   :  { %9278 = vmatprep.subr.bf16.mxu1 %v10995_v45  ;;  %v10071_v45 = vcombine.high %v2048_v41, %v2056_v42  ;;  %v2112_v9 = vld [vmem:[#allocation6 + $0x238] sm:$0xff]  ;;  %v2135_v22 = vld [vmem:[#allocation6 + $0x2f0] sm:$0xff]  ;;  %v10132_v34 = vcombine.low %v2111_v7, %v2119_v8 }
 0x453   :  { %v2120_v11 = vld [vmem:[#allocation6 + $0x278] sm:$0xff]  ;;  %v2151_v39 = vld [vmem:[#allocation6 + $0x370] sm:$0xff] }
 0x454   :  { %9107 = vmatpush1.bf16.msra.mxu0 %v10992_v48  ;;  %v2072_v48 = vld [vmem:[#allocation6 + $0xf8] sm:$0xff] }
 0x455   :  { %9279 = vmatpush1.bf16.msra.mxu1 %v10994_v49  ;;  %9108 = vmatprep.subr.bf16.mxu0 %v11009_v50  ;;  %v10070_v49 = vcombine.low %v2048_v41, %v2056_v42  ;;  %v10085_v50 = vcombine.high %v2063_v46, %v2071_v17  ;;  %v10087_v28 = vcombine.high %v2064_v56, %v2072_v48  ;;  %v2128_v24 = vld [vmem:[#allocation6 + $0x2b8] sm:$0xff] }
 0x456   :  { %9280 = vmatprep.subr.bf16.mxu1 %v11011_v51  ;;  %v2079_v51 = vld [vmem:[#allocation6 + $0x130] sm:$0xff]  ;;  %v2136_v25 = vld [vmem:[#allocation6 + $0x2f8] sm:$0xff] }
 0x457   :  { %v2144_v40 = vld [vmem:[#allocation6 + $0x338] sm:$0xff] }
 0x458   :  { %9109 = vmatpush1.bf16.msra.mxu0 %v11008_v54  ;;  %v10084_v54 = vcombine.low %v2063_v46, %v2071_v17  ;;  %v2152_v41 = vld [vmem:[#allocation6 + $0x378] sm:$0xff]  ;;  %v2167_v46 = vld [vmem:[#allocation6 + $0x3f0] sm:$0xff] }
 0x459   :  { %9281 = vmatpush1.bf16.msra.mxu1 %v11010_v55  ;;  %9110 = vmatprep.subr.bf16.mxu0 %v11025_v58  ;;  %v10086_v55 = vcombine.low %v2064_v56, %v2072_v48  ;;  %v10101_v58 = vcombine.high %v2079_v51, %v2087_v19  ;;  %v2160_v17 = vld [vmem:[#allocation6 + $0x3b8] sm:$0xff]  ;;  %v10166_v48 = vcombine.low %v2144_v40, %v2152_v41 }
 0x45a   :  { %9282 = vmatprep.subr.bf16.mxu1 %v11027_v59  ;;  %v10103_v59 = vcombine.high %v2080_v52, %v2088_v53 }
 0x45c   :  { %9111 = vmatpush1.bf16.msra.mxu0 %v11024_v3  ;;  %v10100_v3 = vcombine.low %v2079_v51, %v2087_v19  ;;  %v2175_v51 = vld [vmem:[#allocation6 + $0x430] sm:$0xff] }
 0x45d   :  { %9283 = vmatpush1.bf16.msra.mxu1 %v11026_v4  ;;  %9112 = vmatprep.subr.bf16.mxu0 %v11041_v5  ;;  %v10102_v4 = vcombine.low %v2080_v52, %v2088_v53  ;;  %v10117_v5 = vcombine.high %v2095_v60, %v2103_v61  ;;  %v2183_v19 = vld [vmem:[#allocation6 + $0x470] sm:$0xff]  ;;  %v2184_v52 = vld [vmem:[#allocation6 + $0x478] sm:$0xff] }
 0x45e   :  { %9284 = vmatprep.subr.bf16.mxu1 %v11043_v6  ;;  %v10119_v6 = vcombine.high %v2096_v0, %v2104_v1 }
 0x460   :  { %9113 = vmatpush1.bf16.msra.mxu0 %v11040_v12  ;;  %v10118_v12 = vcombine.low %v2096_v0, %v2104_v1  ;;  %v2200_v0 = vld [vmem:[#allocation6 + $0x4f8] sm:$0xff]  ;;  %v10196_v1 = vcombine.low %v2175_v51, %v2183_v19 }
 0x461   :  { %9285 = vmatpush1.bf16.msra.mxu1 %v11042_v13  ;;  %9114 = vmatprep.subr.bf16.mxu0 %v11057_v20  ;;  %v10133_v13 = vcombine.high %v2111_v7, %v2119_v8  ;;  %v10135_v20 = vcombine.high %v2112_v9, %v2120_v11  ;;  %v2215_v7 = vld [vmem:[#allocation6 + $0x570] sm:$0xff]  ;;  %v2208_v8 = vld [vmem:[#allocation6 + $0x538] sm:$0xff] }
 0x462   :  { %9286 = vmatprep.subr.bf16.mxu1 %v11059_v21  ;;  %v2127_v21 = vld [vmem:[#allocation6 + $0x2b0] sm:$0xff] }
 0x463   :  { %v10148_v42 = vcombine.low %v2127_v21, %v2135_v22 }
 0x464   :  { %9115 = vmatpush1.bf16.msra.mxu0 %v11056_v36  ;;  %v10134_v36 = vcombine.low %v2112_v9, %v2120_v11  ;;  %v2216_v9 = vld [vmem:[#allocation6 + $0x578] sm:$0xff] }
 0x465   :  { %9287 = vmatpush1.bf16.msra.mxu1 %v11058_v37  ;;  %9116 = vmatprep.subr.bf16.mxu0 %v11073_v26  ;;  %v10149_v37 = vcombine.high %v2127_v21, %v2135_v22  ;;  %v10151_v26 = vcombine.high %v2128_v24, %v2136_v25  ;;  %v2231_v21 = vld [vmem:[#allocation6 + $0x5f0] sm:$0xff]  ;;  %v2224_v22 = vld [vmem:[#allocation6 + $0x5b8] sm:$0xff] }
 0x466   :  { %9288 = vmatprep.subr.bf16.mxu1 %v11075_v38  ;;  %v2143_v38 = vld [vmem:[#allocation6 + $0x330] sm:$0xff] }
 0x467   :  { %v10164_v56 = vcombine.low %v2143_v38, %v2151_v39 }
 0x468   :  { %9117 = vmatpush1.bf16.msra.mxu0 %v11072_v43  ;;  %v10150_v43 = vcombine.low %v2128_v24, %v2136_v25  ;;  %v2232_v24 = vld [vmem:[#allocation6 + $0x5f8] sm:$0xff] }
 0x469   :  { %9289 = vmatpush1.bf16.msra.mxu1 %v11074_v10  ;;  %9301 = vmatprep.subr.bf16.mxu0 %v10069_v44  ;;  %v10165_v10 = vcombine.high %v2143_v38, %v2151_v39  ;;  %v10167_v44 = vcombine.high %v2144_v40, %v2152_v41  ;;  %v2247_v38 = vld [vmem:[#allocation6 + $0x670] sm:$0xff]  ;;  %v2240_v39 = vld [vmem:[#allocation6 + $0x638] sm:$0xff] }
 0x46a   :  { %9473 = vmatprep.subr.bf16.mxu1 %v10071_v45  ;;  %v2159_v45 = vld [vmem:[#allocation6 + $0x3b0] sm:$0xff]  ;;  %v2248_v40 = vld [vmem:[#allocation6 + $0x678] sm:$0xff] }
 0x46b   :  { %9119 = vmatmul.mubr.bf16.vlgmr.msra.gmra.mrb[16].mxu0 %v11588_v32  ;;  %v10180_v53 = vcombine.low %v2159_v45, %v2167_v46 }
 0x46c   :  { %9291 = vmatmul.mubr.bf16.vlgmr.msra.gmra.mrb[16].mxu1 %v11588_v32  ;;  %9302 = vmatpush1.bf16.msra.mxu0 %v10068_v47  ;;  %v2168_v47 = vld [vmem:[#allocation6 + $0x3f8] sm:$0xff] }
 0x46d   :  { %9333 = vmatprep.mubr.bf16.mxu0 %v11550_v63  ;;  %9474 = vmatpush1.bf16.msra.mxu1 %v10070_v49  ;;  %v10181_v49 = vcombine.high %v2159_v45, %v2167_v46  ;;  %v2263_v45 = vld [vmem:[#allocation6 + $0x6f0] sm:$0xff]  ;;  %v2256_v46 = vld [vmem:[#allocation6 + $0x6b8] sm:$0xff] }
 0x46e   :  { %9505 = vmatprep.mubr.bf16.mxu1 %v11550_v63  ;;  %9303 = vmatprep.subr.bf16.mxu0 %v10085_v50  ;;  %v10116_v63 = vcombine.low %v2095_v60, %v2103_v61  ;;  %v10183_v50 = vcombine.high %v2160_v17, %v2168_v47  ;;  %v2199_v60 = vld [vmem:[#allocation6 + $0x4f0] sm:$0xff]  ;;  %v2192_v61 = vld [vmem:[#allocation6 + $0x4b8] sm:$0xff] }
 0x46f   :  { %9475 = vmatprep.subr.bf16.mxu1 %v10087_v28  ;;  %v2176_v28 = vld [vmem:[#allocation6 + $0x438] sm:$0xff] }
 0x470   :  { %9304 = vmatpush1.bf16.msra.mxu0 %v10084_v54  ;;  %v10182_v54 = vcombine.low %v2160_v17, %v2168_v47  ;;  %v2264_v17 = vld [vmem:[#allocation6 + $0x6f8] sm:$0xff] }
 0x471   :  { %9476 = vmatpush1.bf16.msra.mxu1 %v10086_v55  ;;  %9305 = vmatprep.subr.bf16.mxu0 %v10101_v58  ;;  %v10197_v55 = vcombine.high %v2175_v51, %v2183_v19  ;;  %v10199_v58 = vcombine.high %v2176_v28, %v2184_v52  ;;  %v2279_v51 = vld [vmem:[#allocation6 + $0x770] sm:$0xff]  ;;  %v2272_v19 = vld [vmem:[#allocation6 + $0x738] sm:$0xff] }
 0x472   :  { %9477 = vmatprep.subr.bf16.mxu1 %v10103_v59  ;;  %v2191_v59 = vld [vmem:[#allocation6 + $0x4b0] sm:$0xff] }
 0x473   :  { %v10212_v11 = vcombine.low %v2191_v59, %v2199_v60 }
 0x474   :  { %9306 = vmatpush1.bf16.msra.mxu0 %v10100_v3  ;;  %v10198_v3 = vcombine.low %v2176_v28, %v2184_v52  ;;  %v2280_v28 = vld [vmem:[#allocation6 + $0x778] sm:$0xff] }
 0x475   :  { %9478 = vmatpush1.bf16.msra.mxu1 %v10102_v4  ;;  %9307 = vmatprep.subr.bf16.mxu0 %v10117_v5  ;;  %v10213_v4 = vcombine.high %v2191_v59, %v2199_v60  ;;  %v10215_v5 = vcombine.high %v2192_v61, %v2200_v0  ;;  %v2295_v59 = vld [vmem:[#allocation6 + $0x7f0] sm:$0xff]  ;;  %v2288_v60 = vld [vmem:[#allocation6 + $0x7b8] sm:$0xff] }
 0x476   :  { %9479 = vmatprep.subr.bf16.mxu1 %v10119_v6  ;;  %v2207_v6 = vld [vmem:[#allocation6 + $0x530] sm:$0xff] }
 0x477   :  { %v10228_v25 = vcombine.low %v2207_v6, %v2215_v7 }
 0x478   :  { %9308 = vmatpush1.bf16.msra.mxu0 %v10116_v63  ;;  %v10214_v63 = vcombine.low %v2192_v61, %v2200_v0  ;;  %v2296_v61 = vld [vmem:[#allocation6 + $0x7f8] sm:$0xff] }
 0x479   :  { %9480 = vmatpush1.bf16.msra.mxu1 %v10118_v12  ;;  %9309 = vmatprep.subr.bf16.mxu0 %v10133_v13  ;;  %v10229_v12 = vcombine.high %v2207_v6, %v2215_v7  ;;  %v10231_v13 = vcombine.high %v2208_v8, %v2216_v9  ;;  %v2311_v6 = vld [vmem:[#allocation6 + $0x870] sm:$0xff]  ;;  %v2304_v7 = vld [vmem:[#allocation6 + $0x838] sm:$0xff] }
 0x47a   :  { %9481 = vmatprep.subr.bf16.mxu1 %v10135_v20  ;;  %v2223_v20 = vld [vmem:[#allocation6 + $0x5b0] sm:$0xff] }
 0x47b   :  { %v10244_v41 = vcombine.low %v2223_v20, %v2231_v21 }
 0x47c   :  { %9310 = vmatpush1.bf16.msra.mxu0 %v10132_v34  ;;  %v10230_v34 = vcombine.low %v2208_v8, %v2216_v9  ;;  %v2312_v8 = vld [vmem:[#allocation6 + $0x878] sm:$0xff] }
 0x47d   :  { %9482 = vmatpush1.bf16.msra.mxu1 %v10134_v36  ;;  %9311 = vmatprep.subr.bf16.mxu0 %v10149_v37  ;;  %v10245_v36 = vcombine.high %v2223_v20, %v2231_v21  ;;  %v10247_v37 = vcombine.high %v2224_v22, %v2232_v24  ;;  %v2327_v20 = vld [vmem:[#allocation6 + $0x8f0] sm:$0xff] }
 0x47e   :  { %9483 = vmatprep.subr.bf16.mxu1 %v10151_v26  ;;  %v2239_v26 = vld [vmem:[#allocation6 + $0x630] sm:$0xff] }
 0x47f   :  { %v10260_v47 = vcombine.low %v2239_v26, %v2247_v38 }
 0x480   :  { %9312 = vmatpush1.bf16.msra.mxu0 %v10148_v42  ;;  %v10246_v42 = vcombine.low %v2224_v22, %v2232_v24  ;;  %v2320_v22 = vld [vmem:[#allocation6 + $0x8b8] sm:$0xff] }
 0x481   :  { %9484 = vmatpush1.bf16.msra.mxu1 %v10150_v43  ;;  %9313 = vmatprep.subr.bf16.mxu0 %v10165_v10  ;;  %v10261_v43 = vcombine.high %v2239_v26, %v2247_v38  ;;  %v10263_v10 = vcombine.high %v2240_v39, %v2248_v40  ;;  %v2328_v24 = vld [vmem:[#allocation6 + $0x8f8] sm:$0xff] }
 0x482   :  { %9485 = vmatprep.subr.bf16.mxu1 %v10167_v44  ;;  %v2255_v44 = vld [vmem:[#allocation6 + $0x6b0] sm:$0xff]  ;;  %v10343_v26 = vcombine.high %v2320_v22, %v2328_v24  ;;  %v2336_v38 = vld [vmem:[#allocation6 + $0x938] sm:$0xff] }
 0x483   :  { %v10276_v52 = vcombine.low %v2255_v44, %v2263_v45 }
 0x484   :  { %9314 = vmatpush1.bf16.msra.mxu0 %v10164_v56  ;;  %v10262_v56 = vcombine.low %v2240_v39, %v2248_v40  ;;  %v2344_v39 = vld [vmem:[#allocation6 + $0x978] sm:$0xff] }
 0x485   :  { %9486 = vmatpush1.bf16.msra.mxu1 %v10166_v48  ;;  %9315 = vmatprep.subr.bf16.mxu0 %v10181_v49  ;;  %v10277_v48 = vcombine.high %v2255_v44, %v2263_v45  ;;  %v10279_v49 = vcombine.high %v2256_v46, %v2264_v17  ;;  %v2359_v44 = vld [vmem:[#allocation6 + $0x9f0] sm:$0xff]  ;;  %v2352_v45 = vld [vmem:[#allocation6 + $0x9b8] sm:$0xff] }
 0x486   :  { %9487 = vmatprep.subr.bf16.mxu1 %v10183_v50  ;;  %v2271_v50 = vld [vmem:[#allocation6 + $0x730] sm:$0xff] }
 0x487   :  { %v10292_v0 = vcombine.low %v2271_v50, %v2279_v51 }
 0x488   :  { %9316 = vmatpush1.bf16.msra.mxu0 %v10180_v53  ;;  %v10278_v53 = vcombine.low %v2256_v46, %v2264_v17  ;;  %v2360_v46 = vld [vmem:[#allocation6 + $0x9f8] sm:$0xff] }
 0x489   :  { %9488 = vmatpush1.bf16.msra.mxu1 %v10182_v54  ;;  %9317 = vmatprep.subr.bf16.mxu0 %v10197_v55  ;;  %v10293_v54 = vcombine.high %v2271_v50, %v2279_v51  ;;  %v10295_v55 = vcombine.high %v2272_v19, %v2280_v28  ;;  %v2368_v50 = vld [vmem:[#allocation6 + $0xa38] sm:$0xff] }
 0x48a   :  { %9489 = vmatprep.subr.bf16.mxu1 %v10199_v58  ;;  %v2287_v58 = vld [vmem:[#allocation6 + $0x7b0] sm:$0xff]  ;;  %v2376_v51 = vld [vmem:[#allocation6 + $0xa78] sm:$0xff] }
 0x48b   :  { %v10308_v9 = vcombine.low %v2287_v58, %v2295_v59 }
 0x48c   :  { %9318 = vmatpush1.bf16.msra.mxu0 %v10196_v1  ;;  %v10294_v1 = vcombine.low %v2272_v19, %v2280_v28  ;;  %v10374_v19 = vcombine.low %v2352_v45, %v2360_v46 }
 0x48d   :  { %9490 = vmatpush1.bf16.msra.mxu1 %v10198_v3  ;;  %9319 = vmatprep.subr.bf16.mxu0 %v10213_v4  ;;  %v10309_v3 = vcombine.high %v2287_v58, %v2295_v59  ;;  %v10311_v4 = vcombine.high %v2288_v60, %v2296_v61  ;;  %v2392_v58 = vld [vmem:[#allocation6 + $0xaf8] sm:$0xff] }
 0x48e   :  { %9491 = vmatprep.subr.bf16.mxu1 %v10215_v5  ;;  %v2303_v5 = vld [vmem:[#allocation6 + $0x830] sm:$0xff] }
 0x48f   :  { %v10324_v21 = vcombine.low %v2303_v5, %v2311_v6 }
 0x490   :  { %9320 = vmatpush1.bf16.msra.mxu0 %v10212_v11  ;;  %v10310_v11 = vcombine.low %v2288_v60, %v2296_v61  ;;  %v10390_v60 = vcombine.low %v2368_v50, %v2376_v51 }
 0x491   :  { %9492 = vmatpush1.bf16.msra.mxu1 %v10214_v63  ;;  %9321 = vmatprep.subr.bf16.mxu0 %v10229_v12  ;;  %v10325_v63 = vcombine.high %v2303_v5, %v2311_v6  ;;  %v10327_v12 = vcombine.high %v2304_v7, %v2312_v8  ;;  %v2408_v5 = vld [vmem:[#allocation6 + $0xb78] sm:$0xff] }
 0x492   :  { %9493 = vmatprep.subr.bf16.mxu1 %v10231_v13  ;;  %v2319_v13 = vld [vmem:[#allocation6 + $0x8b0] sm:$0xff] }
 0x493   :  { %v10340_v40 = vcombine.low %v2319_v13, %v2327_v20 }
 0x494   :  { %9322 = vmatpush1.bf16.msra.mxu0 %v10228_v25  ;;  %v10326_v25 = vcombine.low %v2304_v7, %v2312_v8 }
 0x495   :  { %9494 = vmatpush1.bf16.msra.mxu1 %v10230_v34  ;;  %9323 = vmatprep.subr.bf16.mxu0 %v10245_v36  ;;  %v10341_v34 = vcombine.high %v2319_v13, %v2327_v20  ;;  %v2335_v36 = vld [vmem:[#allocation6 + $0x930] sm:$0xff]  ;;  %v2424_v13 = vld [vmem:[#allocation6 + $0xbf8] sm:$0xff] }
 0x496   :  { %9495 = vmatprep.subr.bf16.mxu1 %v10247_v37  ;;  %v2343_v37 = vld [vmem:[#allocation6 + $0x970] sm:$0xff] }
 0x497   :  { %v10356_v17 = vcombine.low %v2335_v36, %v2343_v37 }
 0x498   :  { %9324 = vmatpush1.bf16.msra.mxu0 %v10244_v41  ;;  %v10342_v41 = vcombine.low %v2320_v22, %v2328_v24 }
 0x499   :  { %9496 = vmatpush1.bf16.msra.mxu1 %v10246_v42  ;;  %9325 = vmatprep.subr.bf16.mxu0 %v10261_v43  ;;  %v10357_v42 = vcombine.high %v2335_v36, %v2343_v37  ;;  %v10359_v43 = vcombine.high %v2336_v38, %v2344_v39  ;;  %v2432_v36 = vld [vmem:[#allocation6 + $0xc38] sm:$0xff] }
 0x49a   :  { %9497 = vmatprep.subr.bf16.mxu1 %v10263_v10  ;;  %v2351_v10 = vld [vmem:[#allocation6 + $0x9b0] sm:$0xff]  ;;  %v2440_v37 = vld [vmem:[#allocation6 + $0xc78] sm:$0xff] }
 0x49c   :  { %9326 = vmatpush1.bf16.msra.mxu0 %v10260_v47  ;;  %v10373_v47 = vcombine.high %v2351_v10, %v2359_v44 }
 0x49d   :  { %9498 = vmatpush1.bf16.msra.mxu1 %v10262_v56  ;;  %9327 = vmatprep.subr.bf16.mxu0 %v10277_v48  ;;  %v10375_v56 = vcombine.high %v2352_v45, %v2360_v46  ;;  %v2367_v48 = vld [vmem:[#allocation6 + $0xa30] sm:$0xff]  ;;  %v10454_v45 = vcombine.low %v2432_v36, %v2440_v37 }
 0x49e   :  { %9499 = vmatprep.subr.bf16.mxu1 %v10279_v49  ;;  %v2375_v49 = vld [vmem:[#allocation6 + $0xa70] sm:$0xff] }
 0x49f   :  { %v10389_v28 = vcombine.high %v2367_v48, %v2375_v49  ;;  %v10388_v59 = vcombine.low %v2367_v48, %v2375_v49  ;;  %v2472_v48 = vld [vmem:[#allocation6 + $0xd78] sm:$0xff] }
 0x4a0   :  { %9328 = vmatpush1.bf16.msra.mxu0 %v10276_v52  ;;  %v10391_v52 = vcombine.high %v2368_v50, %v2376_v51 }
 0x4a1   :  { %9500 = vmatpush1.bf16.msra.mxu1 %v10278_v53  ;;  %9329 = vmatprep.subr.bf16.mxu0 %v10293_v54  ;;  %v2383_v53 = vld [vmem:[#allocation6 + $0xab0] sm:$0xff] }
 0x4a2   :  { %9501 = vmatprep.subr.bf16.mxu1 %v10295_v55  ;;  %v2391_v54 = vld [vmem:[#allocation6 + $0xaf0] sm:$0xff]  ;;  %v2384_v55 = vld [vmem:[#allocation6 + $0xab8] sm:$0xff] }
 0x4a3   :  { %v10405_v61 = vcombine.high %v2383_v53, %v2391_v54  ;;  %v10404_v6 = vcombine.low %v2383_v53, %v2391_v54  ;;  %v10406_v7 = vcombine.low %v2384_v55, %v2392_v58  ;;  %v2488_v53 = vld [vmem:[#allocation6 + $0xdf8] sm:$0xff] }
 0x4a4   :  { %9330 = vmatpush1.bf16.msra.mxu0 %v10292_v0  ;;  %v10407_v0 = vcombine.high %v2384_v55, %v2392_v58 }
 0x4a5   :  { %9502 = vmatpush1.bf16.msra.mxu1 %v10294_v1  ;;  %9331 = vmatprep.subr.bf16.mxu0 %v10309_v3  ;;  %v2399_v1 = vld [vmem:[#allocation6 + $0xb30] sm:$0xff] }
 0x4a6   :  { %9503 = vmatprep.subr.bf16.mxu1 %v10311_v4  ;;  %v2407_v3 = vld [vmem:[#allocation6 + $0xb70] sm:$0xff]  ;;  %v2400_v4 = vld [vmem:[#allocation6 + $0xb38] sm:$0xff] }
 0x4a7   :  { %v10421_v8 = vcombine.high %v2399_v1, %v2407_v3  ;;  %v10420_v20 = vcombine.low %v2399_v1, %v2407_v3  ;;  %v2504_v1 = vld [vmem:[#allocation6 + $0xe78] sm:$0xff] }
 0x4a8   :  { %9332 = vmatpush1.bf16.msra.mxu0 %v10308_v9  ;;  %v10423_v9 = vcombine.high %v2400_v4, %v2408_v5 }
 0x4a9   :  { %9504 = vmatpush1.bf16.msra.mxu1 %v10310_v11  ;;  %9344 = vmatprep.subr.bf16.mxu0 %v10325_v63  ;;  %v2415_v11 = vld [vmem:[#allocation6 + $0xbb0] sm:$0xff] }
 0x4aa   :  { %9516 = vmatprep.subr.bf16.mxu1 %v10327_v12  ;;  %v2423_v63 = vld [vmem:[#allocation6 + $0xbf0] sm:$0xff]  ;;  %v2416_v12 = vld [vmem:[#allocation6 + $0xbb8] sm:$0xff] }
 0x4ab   :  { %9334 = vmatmul.mubr.bf16.vlgmr.msra.gmra.mrb[20].mxu0 %v11546_v57  ;;  %v10437_v22 = vcombine.high %v2415_v11, %v2423_v63  ;;  %v10439_v24 = vcombine.high %v2416_v12, %v2424_v13 }
 0x4ac   :  { %9506 = vmatmul.mubr.bf16.vlgmr.msra.gmra.mrb[20].mxu1 %v11546_v57  ;;  %9345 = vmatpush1.bf16.msra.mxu0 %v10324_v21  ;;  %v10358_v57 = vcombine.low %v2336_v38, %v2344_v39  ;;  %v10422_v21 = vcombine.low %v2400_v4, %v2408_v5  ;;  %v10438_v38 = vcombine.low %v2416_v12, %v2424_v13 }
 0x4ad   :  { %9376 = vmatprep.mubr.bf16.mxu0 %v11556_v2  ;;  %9517 = vmatpush1.bf16.msra.mxu1 %v10326_v25  ;;  %v2431_v25 = vld [vmem:[#allocation6 + $0xc30] sm:$0xff] }
 0x4ae   :  { %9548 = vmatprep.mubr.bf16.mxu1 %v11556_v2  ;;  %9346 = vmatprep.subr.bf16.mxu0 %v10341_v34  ;;  %v10372_v2 = vcombine.low %v2351_v10, %v2359_v44  ;;  %v2439_v34 = vld [vmem:[#allocation6 + $0xc70] sm:$0xff]  ;;  %v2456_v10 = vld [vmem:[#allocation6 + $0xcf8] sm:$0xff] }
 0x4af   :  { %9518 = vmatprep.subr.bf16.mxu1 %v10343_v26  ;;  %v10436_v26 = vcombine.low %v2415_v11, %v2423_v63  ;;  %v10453_v39 = vcombine.high %v2431_v25, %v2439_v34  ;;  %v10452_v44 = vcombine.low %v2431_v25, %v2439_v34  ;;  %v2520_v11 = vld [vmem:[#allocation6 + $0xef8] sm:$0xff] }
 0x4b0   :  { %9347 = vmatpush1.bf16.msra.mxu0 %v10340_v40  ;;  %v10455_v40 = vcombine.high %v2432_v36, %v2440_v37  ;;  %v2536_v25 = vld [vmem:[#allocation6 + $0xf78] sm:$0xff] }
 0x4b1   :  { %9519 = vmatpush1.bf16.msra.mxu1 %v10342_v41  ;;  %9348 = vmatprep.subr.bf16.mxu0 %v10357_v42  ;;  %v2447_v41 = vld [vmem:[#allocation6 + $0xcb0] sm:$0xff] }
 0x4b2   :  { %9520 = vmatprep.subr.bf16.mxu1 %v10359_v43  ;;  %v2455_v42 = vld [vmem:[#allocation6 + $0xcf0] sm:$0xff]  ;;  %v2448_v43 = vld [vmem:[#allocation6 + $0xcb8] sm:$0xff] }
 0x4b3   :  { %v10469_v46 = vcombine.high %v2447_v41, %v2455_v42  ;;  %v10468_v49 = vcombine.low %v2447_v41, %v2455_v42  ;;  %v10470_v50 = vcombine.low %v2448_v43, %v2456_v10  ;;  %v2552_v41 = vld [vmem:[#allocation6 + $0xff8] sm:$0xff] }
 0x4b4   :  { %9349 = vmatpush1.bf16.msra.mxu0 %v10356_v17  ;;  %v10471_v17 = vcombine.high %v2448_v43, %v2456_v10 }
 0x4b5   :  { %9521 = vmatpush1.bf16.msra.mxu1 %v10358_v57  ;;  %9350 = vmatprep.subr.bf16.mxu0 %v10373_v47  ;;  %v2463_v57 = vld [vmem:[#allocation6 + $0xd30] sm:$0xff] }
 0x4b6   :  { %9522 = vmatprep.subr.bf16.mxu1 %v10375_v56  ;;  %v2471_v47 = vld [vmem:[#allocation6 + $0xd70] sm:$0xff]  ;;  %v2464_v56 = vld [vmem:[#allocation6 + $0xd38] sm:$0xff] }
 0x4b7   :  { %v10485_v51 = vcombine.high %v2463_v57, %v2471_v47  ;;  %v10484_v54 = vcombine.low %v2463_v57, %v2471_v47  ;;  %v10486_v55 = vcombine.low %v2464_v56, %v2472_v48  ;;  %v2568_v57 = vld [vmem:[#allocation6 + $0x1078] sm:$0xff] }
 0x4b8   :  { %9351 = vmatpush1.bf16.msra.mxu0 %v10372_v2  ;;  %v10487_v2 = vcombine.high %v2464_v56, %v2472_v48 }
 0x4b9   :  { %9523 = vmatpush1.bf16.msra.mxu1 %v10374_v19  ;;  %9352 = vmatprep.subr.bf16.mxu0 %v10389_v28  ;;  %v2479_v19 = vld [vmem:[#allocation6 + $0xdb0] sm:$0xff] }
 0x4ba   :  { %9524 = vmatprep.subr.bf16.mxu1 %v10391_v52  ;;  %v2487_v28 = vld [vmem:[#allocation6 + $0xdf0] sm:$0xff]  ;;  %v2480_v52 = vld [vmem:[#allocation6 + $0xdb8] sm:$0xff] }
 0x4bb   :  { %v10501_v58 = vcombine.high %v2479_v19, %v2487_v28  ;;  %v10500_v3 = vcombine.low %v2479_v19, %v2487_v28  ;;  %v10502_v4 = vcombine.low %v2480_v52, %v2488_v53  ;;  %v2576_v19 = vld [vmem:[#allocation6 + $0x10b8] sm:$0xff] }
 0x4bc   :  { %9353 = vmatpush1.bf16.msra.mxu0 %v10388_v59  ;;  %v10503_v59 = vcombine.high %v2480_v52, %v2488_v53  ;;  %v2584_v28 = vld [vmem:[#allocation6 + $0x10f8] sm:$0xff] }
 0x4bd   :  { %9525 = vmatpush1.bf16.msra.mxu1 %v10390_v60  ;;  %9354 = vmatprep.subr.bf16.mxu0 %v10405_v61  ;;  %v2495_v60 = vld [vmem:[#allocation6 + $0xe30] sm:$0xff] }
 0x4be   :  { %9526 = vmatprep.subr.bf16.mxu1 %v10407_v0  ;;  %v2503_v61 = vld [vmem:[#allocation6 + $0xe70] sm:$0xff]  ;;  %v2496_v0 = vld [vmem:[#allocation6 + $0xe38] sm:$0xff] }
 0x4bf   :  { %v10517_v5 = vcombine.high %v2495_v60, %v2503_v61  ;;  %v10516_v63 = vcombine.low %v2495_v60, %v2503_v61  ;;  %v10518_v12 = vcombine.low %v2496_v0, %v2504_v1  ;;  %v2600_v60 = vld [vmem:[#allocation6 + $0x1178] sm:$0xff] }
 0x4c0   :  { %9355 = vmatpush1.bf16.msra.mxu0 %v10404_v6  ;;  %v10519_v6 = vcombine.high %v2496_v0, %v2504_v1  ;;  %v10598_v0 = vcombine.low %v2576_v19, %v2584_v28 }
 0x4c1   :  { %9527 = vmatpush1.bf16.msra.mxu1 %v10406_v7  ;;  %9356 = vmatprep.subr.bf16.mxu0 %v10421_v8  ;;  %v2511_v7 = vld [vmem:[#allocation6 + $0xeb0] sm:$0xff] }
 0x4c2   :  { %9528 = vmatprep.subr.bf16.mxu1 %v10423_v9  ;;  %v2519_v8 = vld [vmem:[#allocation6 + $0xef0] sm:$0xff]  ;;  %v2512_v9 = vld [vmem:[#allocation6 + $0xeb8] sm:$0xff] }
 0x4c3   :  { %v10533_v13 = vcombine.high %v2511_v7, %v2519_v8  ;;  %v10532_v34 = vcombine.low %v2511_v7, %v2519_v8  ;;  %v10534_v36 = vcombine.low %v2512_v9, %v2520_v11  ;;  %v2616_v7 = vld [vmem:[#allocation6 + $0x11f8] sm:$0xff] }
 0x4c4   :  { %9357 = vmatpush1.bf16.msra.mxu0 %v10420_v20  ;;  %v10535_v20 = vcombine.high %v2512_v9, %v2520_v11 }
 0x4c5   :  { %9529 = vmatpush1.bf16.msra.mxu1 %v10422_v21  ;;  %9358 = vmatprep.subr.bf16.mxu0 %v10437_v22  ;;  %v2527_v21 = vld [vmem:[#allocation6 + $0xf30] sm:$0xff] }
 0x4c6   :  { %9530 = vmatprep.subr.bf16.mxu1 %v10439_v24  ;;  %v2535_v22 = vld [vmem:[#allocation6 + $0xf70] sm:$0xff]  ;;  %v2528_v24 = vld [vmem:[#allocation6 + $0xf38] sm:$0xff] }
 0x4c7   :  { %v10549_v37 = vcombine.high %v2527_v21, %v2535_v22  ;;  %v10548_v42 = vcombine.low %v2527_v21, %v2535_v22  ;;  %v10550_v43 = vcombine.low %v2528_v24, %v2536_v25 }
 0x4c8   :  { %9359 = vmatpush1.bf16.msra.mxu0 %v10436_v26  ;;  %v10551_v26 = vcombine.high %v2528_v24, %v2536_v25  ;;  %v2639_v25 = vld [vmem:[#allocation6 + $0x12b0] sm:$0xff] }
 0x4c9   :  { %9531 = vmatpush1.bf16.msra.mxu1 %v10438_v38  ;;  %9360 = vmatprep.subr.bf16.mxu0 %v10453_v39  ;;  %v2543_v38 = vld [vmem:[#allocation6 + $0xfb0] sm:$0xff] }
 0x4ca   :  { %9532 = vmatprep.subr.bf16.mxu1 %v10455_v40  ;;  %v2551_v39 = vld [vmem:[#allocation6 + $0xff0] sm:$0xff]  ;;  %v2544_v40 = vld [vmem:[#allocation6 + $0xfb8] sm:$0xff] }
 0x4cb   :  { %v10565_v10 = vcombine.high %v2543_v38, %v2551_v39  ;;  %v10564_v47 = vcombine.low %v2543_v38, %v2551_v39  ;;  %v10566_v56 = vcombine.low %v2544_v40, %v2552_v41 }
 0x4cc   :  { %9361 = vmatpush1.bf16.msra.mxu0 %v10452_v44  ;;  %v10567_v44 = vcombine.high %v2544_v40, %v2552_v41  ;;  %v2655_v41 = vld [vmem:[#allocation6 + $0x1330] sm:$0xff] }
 0x4cd   :  { %9533 = vmatpush1.bf16.msra.mxu1 %v10454_v45  ;;  %9362 = vmatprep.subr.bf16.mxu0 %v10469_v46  ;;  %v2559_v45 = vld [vmem:[#allocation6 + $0x1030] sm:$0xff] }
 0x4ce   :  { %9534 = vmatprep.subr.bf16.mxu1 %v10471_v17  ;;  %v2567_v46 = vld [vmem:[#allocation6 + $0x1070] sm:$0xff]  ;;  %v2560_v17 = vld [vmem:[#allocation6 + $0x1038] sm:$0xff] }
 0x4cf   :  { %v10581_v48 = vcombine.high %v2559_v45, %v2567_v46  ;;  %v10582_v52 = vcombine.low %v2560_v17, %v2568_v57 }
 0x4d0   :  { %9363 = vmatpush1.bf16.msra.mxu0 %v10468_v49  ;;  %v10583_v49 = vcombine.high %v2560_v17, %v2568_v57  ;;  %v2671_v57 = vld [vmem:[#allocation6 + $0x13b0] sm:$0xff] }
 0x4d1   :  { %9535 = vmatpush1.bf16.msra.mxu1 %v10470_v50  ;;  %9364 = vmatprep.subr.bf16.mxu0 %v10485_v51  ;;  %v2575_v50 = vld [vmem:[#allocation6 + $0x10b0] sm:$0xff] }
 0x4d2   :  { %9536 = vmatprep.subr.bf16.mxu1 %v10487_v2  ;;  %v2583_v51 = vld [vmem:[#allocation6 + $0x10f0] sm:$0xff]  ;;  %v10580_v2 = vcombine.low %v2559_v45, %v2567_v46 }
 0x4d3   :  { %v10597_v53 = vcombine.high %v2575_v50, %v2583_v51  ;;  %v10596_v61 = vcombine.low %v2575_v50, %v2583_v51 }
 0x4d4   :  { %9365 = vmatpush1.bf16.msra.mxu0 %v10484_v54  ;;  %v2591_v54 = vld [vmem:[#allocation6 + $0x1130] sm:$0xff] }
 0x4d5   :  { %9537 = vmatpush1.bf16.msra.mxu1 %v10486_v55  ;;  %9366 = vmatprep.subr.bf16.mxu0 %v10501_v58  ;;  %v2599_v55 = vld [vmem:[#allocation6 + $0x1170] sm:$0xff]  ;;  %v10599_v58 = vcombine.high %v2576_v19, %v2584_v28 }
 0x4d6   :  { %9538 = vmatprep.subr.bf16.mxu1 %v10503_v59  ;;  %v2592_v59 = vld [vmem:[#allocation6 + $0x1138] sm:$0xff]  ;;  %v10613_v1 = vcombine.high %v2591_v54, %v2599_v55  ;;  %v10612_v8 = vcombine.low %v2591_v54, %v2599_v55  ;;  %v2687_v19 = vld [vmem:[#allocation6 + $0x1430] sm:$0xff] }
 0x4d7   :  { %v2695_v28 = vld [vmem:[#allocation6 + $0x1470] sm:$0xff] }
 0x4d8   :  { %9367 = vmatpush1.bf16.msra.mxu0 %v10500_v3  ;;  %v10615_v3 = vcombine.high %v2592_v59, %v2600_v60 }
 0x4d9   :  { %9539 = vmatpush1.bf16.msra.mxu1 %v10502_v4  ;;  %9368 = vmatprep.subr.bf16.mxu0 %v10517_v5  ;;  %v2607_v4 = vld [vmem:[#allocation6 + $0x11b0] sm:$0xff] }
 0x4da   :  { %9540 = vmatprep.subr.bf16.mxu1 %v10519_v6  ;;  %v2615_v5 = vld [vmem:[#allocation6 + $0x11f0] sm:$0xff]  ;;  %v2608_v6 = vld [vmem:[#allocation6 + $0x11b8] sm:$0xff] }
 0x4db   :  { %v10629_v9 = vcombine.high %v2607_v4, %v2615_v5  ;;  %v10631_v11 = vcombine.high %v2608_v6, %v2616_v7  ;;  %v10630_v21 = vcombine.low %v2608_v6, %v2616_v7  ;;  %v2719_v7 = vld [vmem:[#allocation6 + $0x1530] sm:$0xff] }
 0x4dc   :  { %9369 = vmatpush1.bf16.msra.mxu0 %v10516_v63  ;;  %v2623_v63 = vld [vmem:[#allocation6 + $0x1230] sm:$0xff] }
 0x4dd   :  { %9541 = vmatpush1.bf16.msra.mxu1 %v10518_v12  ;;  %9370 = vmatprep.subr.bf16.mxu0 %v10533_v13  ;;  %v2631_v12 = vld [vmem:[#allocation6 + $0x1270] sm:$0xff]  ;;  %v2624_v13 = vld [vmem:[#allocation6 + $0x1238] sm:$0xff] }
 0x4de   :  { %9542 = vmatprep.subr.bf16.mxu1 %v10535_v20  ;;  %v2632_v20 = vld [vmem:[#allocation6 + $0x1278] sm:$0xff]  ;;  %v10645_v22 = vcombine.high %v2623_v63, %v2631_v12 }
 0x4df   :  { %v10647_v24 = vcombine.high %v2624_v13, %v2632_v20  ;;  %v10646_v38 = vcombine.low %v2624_v13, %v2632_v20  ;;  %v2735_v20 = vld [vmem:[#allocation6 + $0x15b0] sm:$0xff] }
 0x4e0   :  { %9371 = vmatpush1.bf16.msra.mxu0 %v10532_v34  ;;  %v2647_v34 = vld [vmem:[#allocation6 + $0x12f0] sm:$0xff] }
 0x4e1   :  { %9543 = vmatpush1.bf16.msra.mxu1 %v10534_v36  ;;  %9372 = vmatprep.subr.bf16.mxu0 %v10549_v37  ;;  %v2640_v36 = vld [vmem:[#allocation6 + $0x12b8] sm:$0xff]  ;;  %v10661_v39 = vcombine.high %v2639_v25, %v2647_v34 }
 0x4e2   :  { %9544 = vmatprep.subr.bf16.mxu1 %v10551_v26  ;;  %v2648_v37 = vld [vmem:[#allocation6 + $0x12f8] sm:$0xff]  ;;  %v10644_v26 = vcombine.low %v2623_v63, %v2631_v12 }
 0x4e3   :  { %v10663_v40 = vcombine.high %v2640_v36, %v2648_v37  ;;  %v10662_v45 = vcombine.low %v2640_v36, %v2648_v37  ;;  %v2751_v37 = vld [vmem:[#allocation6 + $0x1630] sm:$0xff] }
 0x4e4   :  { %9373 = vmatpush1.bf16.msra.mxu0 %v10548_v42  ;;  %v2663_v42 = vld [vmem:[#allocation6 + $0x1370] sm:$0xff] }
 0x4e5   :  { %9545 = vmatpush1.bf16.msra.mxu1 %v10550_v43  ;;  %9374 = vmatprep.subr.bf16.mxu0 %v10565_v10  ;;  %v2656_v43 = vld [vmem:[#allocation6 + $0x1338] sm:$0xff]  ;;  %v10677_v46 = vcombine.high %v2655_v41, %v2663_v42 }
 0x4e6   :  { %9546 = vmatprep.subr.bf16.mxu1 %v10567_v44  ;;  %v2664_v10 = vld [vmem:[#allocation6 + $0x1378] sm:$0xff]  ;;  %v10660_v44 = vcombine.low %v2639_v25, %v2647_v34 }
 0x4e7   :  { %v10679_v17 = vcombine.high %v2656_v43, %v2664_v10  ;;  %v10678_v50 = vcombine.low %v2656_v43, %v2664_v10  ;;  %v2767_v10 = vld [vmem:[#allocation6 + $0x16b0] sm:$0xff] }
 0x4e8   :  { %9375 = vmatpush1.bf16.msra.mxu0 %v10564_v47  ;;  %v2679_v47 = vld [vmem:[#allocation6 + $0x13f0] sm:$0xff] }
 0x4e9   :  { %9547 = vmatpush1.bf16.msra.mxu1 %v10566_v56  ;;  %9387 = vmatprep.subr.bf16.mxu0 %v10581_v48  ;;  %v2672_v56 = vld [vmem:[#allocation6 + $0x13b8] sm:$0xff]  ;;  %v10693_v51 = vcombine.high %v2671_v57, %v2679_v47  ;;  %v10692_v54 = vcombine.low %v2671_v57, %v2679_v47 }
 0x4ea   :  { %9559 = vmatprep.subr.bf16.mxu1 %v10583_v49  ;;  %v2680_v48 = vld [vmem:[#allocation6 + $0x13f8] sm:$0xff]  ;;  %v10676_v49 = vcombine.low %v2655_v41, %v2663_v42 }
 0x4eb   :  { %9377 = vmatmul.mubr.bf16.vlgmr.msra.gmra.mrb[20].mxu0 %v11548_v62  ;;  %v10694_v55 = vcombine.low %v2672_v56, %v2680_v48 }
 0x4ec   :  { %9549 = vmatmul.mubr.bf16.vlgmr.msra.gmra.mrb[20].mxu1 %v11548_v62  ;;  %9388 = vmatpush1.bf16.msra.mxu0 %v10580_v2  ;;  %v10614_v62 = vcombine.low %v2592_v59, %v2600_v60  ;;  %v10695_v2 = vcombine.high %v2672_v56, %v2680_v48  ;;  %v2703_v60 = vld [vmem:[#allocation6 + $0x14b0] sm:$0xff] }
 0x4ed   :  { %9419 = vmatprep.mubr.bf16.mxu0 %v11590_v33  ;;  %9560 = vmatpush1.bf16.msra.mxu1 %v10582_v52  ;;  %v2688_v52 = vld [vmem:[#allocation6 + $0x1438] sm:$0xff]  ;;  %v2783_v48 = vld [vmem:[#allocation6 + $0x1730] sm:$0xff] }
 0x4ee   :  { %9591 = vmatprep.mubr.bf16.mxu1 %v11590_v33  ;;  %9389 = vmatprep.subr.bf16.mxu0 %v10597_v53  ;;  %v10628_v33 = vcombine.low %v2607_v4, %v2615_v5  ;;  %v2696_v53 = vld [vmem:[#allocation6 + $0x1478] sm:$0xff] }
 0x4ef   :  { %9561 = vmatprep.subr.bf16.mxu1 %v10599_v58  ;;  %v10709_v58 = vcombine.high %v2687_v19, %v2695_v28  ;;  %v10711_v59 = vcombine.high %v2688_v52, %v2696_v53  ;;  %v10710_v4 = vcombine.low %v2688_v52, %v2696_v53  ;;  %v2799_v53 = vld [vmem:[#allocation6 + $0x17b0] sm:$0xff] }
 0x4f0   :  { %9390 = vmatpush1.bf16.msra.mxu0 %v10596_v61  ;;  %v2711_v61 = vld [vmem:[#allocation6 + $0x14f0] sm:$0xff] }
 0x4f1   :  { %9562 = vmatpush1.bf16.msra.mxu1 %v10598_v0  ;;  %9391 = vmatprep.subr.bf16.mxu0 %v10613_v1  ;;  %v2704_v0 = vld [vmem:[#allocation6 + $0x14b8] sm:$0xff]  ;;  %v10725_v5 = vcombine.high %v2703_v60, %v2711_v61 }
 0x4f2   :  { %9563 = vmatprep.subr.bf16.mxu1 %v10615_v3  ;;  %v2712_v1 = vld [vmem:[#allocation6 + $0x14f8] sm:$0xff]  ;;  %v10708_v3 = vcombine.low %v2687_v19, %v2695_v28 }
 0x4f3   :  { %v10727_v6 = vcombine.high %v2704_v0, %v2712_v1  ;;  %v10726_v63 = vcombine.low %v2704_v0, %v2712_v1  ;;  %v2815_v1 = vld [vmem:[#allocation6 + $0x1830] sm:$0xff] }
 0x4f4   :  { %9392 = vmatpush1.bf16.msra.mxu0 %v10612_v8  ;;  %v2727_v8 = vld [vmem:[#allocation6 + $0x1570] sm:$0xff] }
 0x4f5   :  { %9564 = vmatpush1.bf16.msra.mxu1 %v10614_v62  ;;  %9393 = vmatprep.subr.bf16.mxu0 %v10629_v9  ;;  %v2720_v62 = vld [vmem:[#allocation6 + $0x1538] sm:$0xff]  ;;  %v10741_v12 = vcombine.high %v2719_v7, %v2727_v8 }
 0x4f6   :  { %9565 = vmatprep.subr.bf16.mxu1 %v10631_v11  ;;  %v2728_v9 = vld [vmem:[#allocation6 + $0x1578] sm:$0xff]  ;;  %v10724_v11 = vcombine.low %v2703_v60, %v2711_v61 }
 0x4f7   :  { %v10743_v13 = vcombine.high %v2720_v62, %v2728_v9  ;;  %v10742_v25 = vcombine.low %v2720_v62, %v2728_v9  ;;  %v2831_v9 = vld [vmem:[#allocation6 + $0x18b0] sm:$0xff] }
 0x4f8   :  { %9394 = vmatpush1.bf16.msra.mxu0 %v10628_v33  ;;  %v2743_v33 = vld [vmem:[#allocation6 + $0x15f0] sm:$0xff] }
 0x4f9   :  { %9566 = vmatpush1.bf16.msra.mxu1 %v10630_v21  ;;  %9395 = vmatprep.subr.bf16.mxu0 %v10645_v22  ;;  %v2736_v21 = vld [vmem:[#allocation6 + $0x15b8] sm:$0xff]  ;;  %v10757_v34 = vcombine.high %v2735_v20, %v2743_v33 }
 0x4fa   :  { %9567 = vmatprep.subr.bf16.mxu1 %v10647_v24  ;;  %v2744_v22 = vld [vmem:[#allocation6 + $0x15f8] sm:$0xff]  ;;  %v10740_v24 = vcombine.low %v2719_v7, %v2727_v8 }
 0x4fb   :  { %v10759_v36 = vcombine.high %v2736_v21, %v2744_v22  ;;  %v10758_v41 = vcombine.low %v2736_v21, %v2744_v22  ;;  %v2847_v21 = vld [vmem:[#allocation6 + $0x1930] sm:$0xff] }
 0x4fc   :  { %9396 = vmatpush1.bf16.msra.mxu0 %v10644_v26  ;;  %v2759_v26 = vld [vmem:[#allocation6 + $0x1670] sm:$0xff] }
 0x4fd   :  { %9568 = vmatpush1.bf16.msra.mxu1 %v10646_v38  ;;  %9397 = vmatprep.subr.bf16.mxu0 %v10661_v39  ;;  %v2752_v38 = vld [vmem:[#allocation6 + $0x1638] sm:$0xff]  ;;  %v10773_v42 = vcombine.high %v2751_v37, %v2759_v26  ;;  %v2855_v22 = vld [vmem:[#allocation6 + $0x1970] sm:$0xff] }
 0x4fe   :  { %9569 = vmatprep.subr.bf16.mxu1 %v10663_v40  ;;  %v2760_v39 = vld [vmem:[#allocation6 + $0x1678] sm:$0xff]  ;;  %v10756_v40 = vcombine.low %v2735_v20, %v2743_v33 }
 0x4ff   :  { %v10775_v43 = vcombine.high %v2752_v38, %v2760_v39  ;;  %v10774_v57 = vcombine.low %v2752_v38, %v2760_v39  ;;  %v2863_v39 = vld [vmem:[#allocation6 + $0x19b0] sm:$0xff] }
 0x500   :  { %9398 = vmatpush1.bf16.msra.mxu0 %v10660_v44  ;;  %v2775_v44 = vld [vmem:[#allocation6 + $0x16f0] sm:$0xff] }
 0x501   :  { %9570 = vmatpush1.bf16.msra.mxu1 %v10662_v45  ;;  %9399 = vmatprep.subr.bf16.mxu0 %v10677_v46  ;;  %v2768_v45 = vld [vmem:[#allocation6 + $0x16b8] sm:$0xff]  ;;  %v10789_v47 = vcombine.high %v2767_v10, %v2775_v44 }
 0x502   :  { %9571 = vmatprep.subr.bf16.mxu1 %v10679_v17  ;;  %v2776_v46 = vld [vmem:[#allocation6 + $0x16f8] sm:$0xff]  ;;  %v10772_v17 = vcombine.low %v2751_v37, %v2759_v26  ;;  %v10869_v26 = vcombine.high %v2847_v21, %v2855_v22 }
 0x503   :  { %v10791_v56 = vcombine.high %v2768_v45, %v2776_v46  ;;  %v10790_v19 = vcombine.low %v2768_v45, %v2776_v46  ;;  %v2879_v45 = vld [vmem:[#allocation6 + $0x1a30] sm:$0xff] }
 0x504   :  { %9400 = vmatpush1.bf16.msra.mxu0 %v10676_v49  ;;  %v2791_v49 = vld [vmem:[#allocation6 + $0x1770] sm:$0xff] }
 0x505   :  { %9572 = vmatpush1.bf16.msra.mxu1 %v10678_v50  ;;  %9401 = vmatprep.subr.bf16.mxu0 %v10693_v51  ;;  %v2784_v50 = vld [vmem:[#allocation6 + $0x1738] sm:$0xff]  ;;  %v10805_v28 = vcombine.high %v2783_v48, %v2791_v49  ;;  %v2887_v46 = vld [vmem:[#allocation6 + $0x1a70] sm:$0xff] }
 0x506   :  { %9573 = vmatprep.subr.bf16.mxu1 %v10695_v2  ;;  %v2792_v51 = vld [vmem:[#allocation6 + $0x1778] sm:$0xff]  ;;  %v10788_v2 = vcombine.low %v2767_v10, %v2775_v44 }
 0x507   :  { %v10807_v52 = vcombine.high %v2784_v50, %v2792_v51  ;;  %v10806_v60 = vcombine.low %v2784_v50, %v2792_v51  ;;  %v2903_v50 = vld [vmem:[#allocation6 + $0x1af0] sm:$0xff]  ;;  %v2896_v51 = vld [vmem:[#allocation6 + $0x1ab8] sm:$0xff] }
 0x508   :  { %9402 = vmatpush1.bf16.msra.mxu0 %v10692_v54  ;;  %v2807_v54 = vld [vmem:[#allocation6 + $0x17f0] sm:$0xff] }
 0x509   :  { %9574 = vmatpush1.bf16.msra.mxu1 %v10694_v55  ;;  %9403 = vmatprep.subr.bf16.mxu0 %v10709_v58  ;;  %v2800_v55 = vld [vmem:[#allocation6 + $0x17b8] sm:$0xff]  ;;  %v10821_v61 = vcombine.high %v2799_v53, %v2807_v54 }
 0x50a   :  { %9575 = vmatprep.subr.bf16.mxu1 %v10711_v59  ;;  %v2808_v58 = vld [vmem:[#allocation6 + $0x17f8] sm:$0xff]  ;;  %v10804_v59 = vcombine.low %v2783_v48, %v2791_v49  ;;  %v2895_v49 = vld [vmem:[#allocation6 + $0x1ab0] sm:$0xff] }
 0x50b   :  { %v10823_v0 = vcombine.high %v2800_v55, %v2808_v58  ;;  %v10822_v7 = vcombine.low %v2800_v55, %v2808_v58  ;;  %v2911_v55 = vld [vmem:[#allocation6 + $0x1b30] sm:$0xff] }
 0x50c   :  { %9404 = vmatpush1.bf16.msra.mxu0 %v10708_v3  ;;  %v2823_v3 = vld [vmem:[#allocation6 + $0x1870] sm:$0xff] }
 0x50d   :  { %9576 = vmatpush1.bf16.msra.mxu1 %v10710_v4  ;;  %9405 = vmatprep.subr.bf16.mxu0 %v10725_v5  ;;  %v2816_v4 = vld [vmem:[#allocation6 + $0x1838] sm:$0xff]  ;;  %v10837_v8 = vcombine.high %v2815_v1, %v2823_v3  ;;  %v2919_v58 = vld [vmem:[#allocation6 + $0x1b70] sm:$0xff] }
 0x50e   :  { %9577 = vmatprep.subr.bf16.mxu1 %v10727_v6  ;;  %v2824_v5 = vld [vmem:[#allocation6 + $0x1878] sm:$0xff]  ;;  %v10820_v6 = vcombine.low %v2799_v53, %v2807_v54  ;;  %v10917_v53 = vcombine.high %v2895_v49, %v2903_v50 }
 0x50f   :  { %v10839_v62 = vcombine.high %v2816_v4, %v2824_v5  ;;  %v10838_v20 = vcombine.low %v2816_v4, %v2824_v5 }
 0x510   :  { %9406 = vmatpush1.bf16.msra.mxu0 %v10724_v11  ;;  %v2839_v11 = vld [vmem:[#allocation6 + $0x18f0] sm:$0xff] }
 0x511   :  { %9578 = vmatpush1.bf16.msra.mxu1 %v10726_v63  ;;  %9407 = vmatprep.subr.bf16.mxu0 %v10741_v12  ;;  %v10836_v63 = vcombine.low %v2815_v1, %v2823_v3  ;;  %v2832_v12 = vld [vmem:[#allocation6 + $0x18b8] sm:$0xff]  ;;  %v10853_v33 = vcombine.high %v2831_v9, %v2839_v11  ;;  %v10916_v3 = vcombine.low %v2895_v49, %v2903_v50 }
 0x512   :  { %9579 = vmatprep.subr.bf16.mxu1 %v10743_v13  ;;  %v2840_v13 = vld [vmem:[#allocation6 + $0x18f8] sm:$0xff] }
 0x513   :  { %v10854_v37 = vcombine.low %v2832_v12, %v2840_v13 }
 0x514   :  { %9408 = vmatpush1.bf16.msra.mxu0 %v10740_v24  ;;  %v10855_v24 = vcombine.high %v2832_v12, %v2840_v13  ;;  %v10932_v13 = vcombine.low %v2911_v55, %v2919_v58 }
 0x515   :  { %9580 = vmatpush1.bf16.msra.mxu1 %v10742_v25  ;;  %9409 = vmatprep.subr.bf16.mxu0 %v10757_v34  ;;  %v2848_v25 = vld [vmem:[#allocation6 + $0x1938] sm:$0xff] }
 0x516   :  { %9581 = vmatprep.subr.bf16.mxu1 %v10759_v36  ;;  %v2856_v34 = vld [vmem:[#allocation6 + $0x1978] sm:$0xff]  ;;  %v10852_v36 = vcombine.low %v2831_v9, %v2839_v11 }
 0x517   :  { %v10871_v38 = vcombine.high %v2848_v25, %v2856_v34  ;;  %v2928_v9 = vld [vmem:[#allocation6 + $0x1bb8] sm:$0xff] }
 0x518   :  { %9410 = vmatpush1.bf16.msra.mxu0 %v10756_v40  ;;  %v2871_v40 = vld [vmem:[#allocation6 + $0x19f0] sm:$0xff]  ;;  %v2936_v11 = vld [vmem:[#allocation6 + $0x1bf8] sm:$0xff] }
 0x519   :  { %9582 = vmatpush1.bf16.msra.mxu1 %v10758_v41  ;;  %9411 = vmatprep.subr.bf16.mxu0 %v10773_v42  ;;  %v2864_v41 = vld [vmem:[#allocation6 + $0x19b8] sm:$0xff]  ;;  %v10885_v10 = vcombine.high %v2863_v39, %v2871_v40  ;;  %v10950_v50 = vcombine.low %v2928_v9, %v2936_v11 }
 0x51a   :  { %9583 = vmatprep.subr.bf16.mxu1 %v10775_v43  ;;  %v2872_v42 = vld [vmem:[#allocation6 + $0x19f8] sm:$0xff]  ;;  %v10868_v43 = vcombine.low %v2847_v21, %v2855_v22 }
 0x51b   :  { %v10887_v44 = vcombine.high %v2864_v41, %v2872_v42 }
 0x51c   :  { %9412 = vmatpush1.bf16.msra.mxu0 %v10772_v17  ;;  %v2880_v17 = vld [vmem:[#allocation6 + $0x1a38] sm:$0xff] }
 0x51d   :  { %9584 = vmatpush1.bf16.msra.mxu1 %v10774_v57  ;;  %9413 = vmatprep.subr.bf16.mxu0 %v10789_v47  ;;  %v2888_v57 = vld [vmem:[#allocation6 + $0x1a78] sm:$0xff]  ;;  %v10886_v47 = vcombine.low %v2864_v41, %v2872_v42 }
 0x51e   :  { %9585 = vmatprep.subr.bf16.mxu1 %v10791_v56  ;;  %v10901_v56 = vcombine.high %v2879_v45, %v2887_v46  ;;  %v10903_v48 = vcombine.high %v2880_v17, %v2888_v57 }
 0x520   :  { %9414 = vmatpush1.bf16.msra.mxu0 %v10788_v2  ;;  %v2904_v2 = vld [vmem:[#allocation6 + $0x1af8] sm:$0xff] }
 0x521   :  { %9586 = vmatpush1.bf16.msra.mxu1 %v10790_v19  ;;  %9415 = vmatprep.subr.bf16.mxu0 %v10805_v28  ;;  %v10900_v19 = vcombine.low %v2879_v45, %v2887_v46  ;;  %v11684_v28 = vld [vmem:[#allocation7 + $0x8] sm:$0xff]  ;;  %v10919_v54 = vcombine.high %v2896_v51, %v2904_v2  ;;  %v10918_v5 = vcombine.low %v2896_v51, %v2904_v2  ;;  %v2944_v46 = vld [vmem:[#allocation6 + $0x1c38] sm:$0xff] }
 0x522   :  { %9587 = vmatprep.subr.bf16.mxu1 %v10807_v52  ;;  %v10902_v52 = vcombine.low %v2880_v17, %v2888_v57  ;;  %v3108_v1 = vrot.slane %v11684_v28, %v11533_v30  ;;  %v3116_v4 = vrot.slane %v11684_v28, %v11536_v31  ;;  %v2952_v17 = vld [vmem:[#allocation6 + $0x1c78] sm:$0xff] }
 0x524   :  { %9416 = vmatpush1.bf16.msra.mxu0 %v10804_v59  ;;  %v3104_v59 = vrot.slane %v11684_v28, %v11525_v27 }
 0x525   :  { %9588 = vmatpush1.bf16.msra.mxu1 %v10806_v60  ;;  %9417 = vmatprep.subr.bf16.mxu0 %v10821_v61  ;;  %v2912_v60 = vld [vmem:[#allocation6 + $0x1b38] sm:$0xff] }
 0x526   :  { %9589 = vmatprep.subr.bf16.mxu1 %v10823_v0  ;;  %v2920_v61 = vld [vmem:[#allocation6 + $0x1b78] sm:$0xff]  ;;  %v3112_v0 = vrot.slane %v11684_v28, %v11530_v29 }
 0x527   :  { %v10934_v31 = vcombine.low %v2912_v60, %v2920_v61 }
 0x528   :  { %9418 = vmatpush1.bf16.msra.mxu0 %v10820_v6  ;;  %v10933_v6 = vcombine.high %v2911_v55, %v2919_v58  ;;  %v2960_v55 = vld [vmem:[#allocation6 + $0x1cb8] sm:$0xff] }
 0x529   :  { %9590 = vmatpush1.bf16.msra.mxu1 %v10822_v7  ;;  %9430 = vmatprep.subr.bf16.mxu0 %v10837_v8  ;;  %v2927_v7 = vld [vmem:[#allocation6 + $0x1bb0] sm:$0xff]  ;;  %v2968_v58 = vld [vmem:[#allocation6 + $0x1cf8] sm:$0xff] }
 0x52a   :  { %9602 = vmatprep.subr.bf16.mxu1 %v10839_v62  ;;  %v2935_v8 = vld [vmem:[#allocation6 + $0x1bf0] sm:$0xff]  ;;  %v10935_v62 = vcombine.high %v2912_v60, %v2920_v61  ;;  %v10966_v60 = vcombine.low %v2944_v46, %v2952_v17 }
 0x52b   :  { %9420 = vmatmul.mubr.bf16.vlgmr.msra.gmra.mrb[20].mxu0 %v11586_v15  ;;  %v10949_v22 = vcombine.high %v2927_v7, %v2935_v8 }
 0x52c   :  { %9592 = vmatmul.mubr.bf16.vlgmr.msra.gmra.mrb[20].mxu1 %v11586_v15  ;;  %9431 = vmatpush1.bf16.msra.mxu0 %v10836_v63  ;;  %v10870_v15 = vcombine.low %v2848_v25, %v2856_v34 }
 0x52d   :  { %9462 = vmatprep.mubr.bf16.mxu0 %v11592_v35  ;;  %9603 = vmatpush1.bf16.msra.mxu1 %v10838_v20 }
 0x52e   :  { %9634 = vmatprep.mubr.bf16.mxu1 %v11592_v35  ;;  %9432 = vmatprep.subr.bf16.mxu0 %v10853_v33  ;;  %v10884_v35 = vcombine.low %v2863_v39, %v2871_v40 }
 0x52f   :  { %9604 = vmatprep.subr.bf16.mxu1 %v10855_v24 }
 0x530   :  { %9433 = vmatpush1.bf16.msra.mxu0 %v10852_v36 }
 0x531   :  { %9605 = vmatpush1.bf16.msra.mxu1 %v10854_v37  ;;  %9434 = vmatprep.subr.bf16.mxu0 %v10869_v26  ;;  %v10951_v26 = vcombine.high %v2928_v9, %v2936_v11  ;;  %v2999_v9 = vld [vmem:[#allocation6 + $0x1df0] sm:$0xff]  ;;  %v2992_v11 = vld [vmem:[#allocation6 + $0x1db8] sm:$0xff] }
 0x532   :  { %9606 = vmatprep.subr.bf16.mxu1 %v10871_v38 }
 0x534   :  { %9435 = vmatpush1.bf16.msra.mxu0 %v10868_v43  ;;  %v2943_v43 = vld [vmem:[#allocation6 + $0x1c30] sm:$0xff] }
 0x535   :  { %9607 = vmatpush1.bf16.msra.mxu1 %v10870_v15  ;;  %9436 = vmatprep.subr.bf16.mxu0 %v10885_v10  ;;  %v2951_v15 = vld [vmem:[#allocation6 + $0x1c70] sm:$0xff] }
 0x536   :  { %9608 = vmatprep.subr.bf16.mxu1 %v10887_v44  ;;  %v10965_v51 = vcombine.high %v2943_v43, %v2951_v15 }
 0x538   :  { %9437 = vmatpush1.bf16.msra.mxu0 %v10884_v35 }
 0x539   :  { %9609 = vmatpush1.bf16.msra.mxu1 %v10886_v47  ;;  %9438 = vmatprep.subr.bf16.mxu0 %v10901_v56  ;;  %v10948_v56 = vcombine.low %v2927_v7, %v2935_v8  ;;  %v10982_v7 = vcombine.low %v2960_v55, %v2968_v58 }
 0x53a   :  { %9610 = vmatprep.subr.bf16.mxu1 %v10903_v48 }
 0x53c   :  { %9439 = vmatpush1.bf16.msra.mxu0 %v10900_v19  ;;  %v10967_v19 = vcombine.high %v2944_v46, %v2952_v17 }
 0x53d   :  { %9611 = vmatpush1.bf16.msra.mxu1 %v10902_v52  ;;  %9440 = vmatprep.subr.bf16.mxu0 %v10917_v53  ;;  %v2959_v52 = vld [vmem:[#allocation6 + $0x1cb0] sm:$0xff] }
 0x53e   :  { %v9120_v27 = vpop.f32.mrb[16].mxu0  ;;  %9612 = vmatprep.subr.bf16.mxu1 %v10919_v54  ;;  %v2967_v53 = vld [vmem:[#allocation6 + $0x1cf0] sm:$0xff] }
 0x53f   :  { %v11144_v63 = vadd.f32 %v9120_v27, %v3104_v59  ;;  %v9292_v29 = vpop.f32.mrb[16].mxu1  ;;  %v9122_v12 = vpop.f32.mrb[17].mxu0  ;;  %v10981_v61 = vcombine.high %v2959_v52, %v2967_v53 }
 0x540   :  { %v11148_v30 = vadd.f32 %v9292_v29, %v3112_v0  ;;  %v11145_v20 = vadd.f32 %v9122_v12, %v3108_v1  ;;  %v9294_v33 = vpop.f32.mrb[17].mxu1  ;;  %v9124_v21 = vpop.f32.mrb[18].mxu0  ;;  %9441 = vmatpush1.bf16.msra.mxu0 %v10916_v3  ;;  %v2983_v3 = vld [vmem:[#allocation6 + $0x1d70] sm:$0xff] }
 0x541   :  { %v9653_v24 = vmax.f32 %v11144_v63, 0.0  ;;  %v11149_v25 = vadd.f32 %v9294_v33, %v3116_v4  ;;  %v11146_v34 = vadd.f32 %v9124_v21, %v3104_v59  ;;  %v9296_v36 = vpop.f32.mrb[18].mxu1  ;;  %9613 = vmatpush1.bf16.msra.mxu1 %v10918_v5  ;;  %v9126_v37 = vpop.f32.mrb[19].mxu0  ;;  %9442 = vmatprep.subr.bf16.mxu0 %v10933_v6  ;;  %v10964_v59 = vcombine.low %v2943_v43, %v2951_v15  ;;  %v2984_v5 = vld [vmem:[#allocation6 + $0x1d78] sm:$0xff]  ;;  %v3015_v33 = vld [vmem:[#allocation6 + $0x1e70] sm:$0xff] }
 0x542   :  { %v9655_v38 = vmax.f32 %v11148_v30, 0.0  ;;  %v9654_v39 = vmax.f32 %v11145_v20, 0.0  ;;  %v11150_v40 = vadd.f32 %v9296_v36, %v3112_v0  ;;  %v11147_v41 = vadd.f32 %v9126_v37, %v3108_v1  ;;  %v9298_v42 = vpop.f32.mrb[19].mxu1  ;;  %9614 = vmatprep.subr.bf16.mxu1 %v10935_v62  ;;  %v2975_v1 = vld [vmem:[#allocation6 + $0x1d30] sm:$0xff]  ;;  %v3000_v63 = vld [vmem:[#allocation6 + $0x1df8] sm:$0xff] }
 0x543   :  { %v9656_v10 = vmax.f32 %v11149_v25, 0.0  ;;  %v9669_v44 = vmax.f32 %v11146_v34, 0.0  ;;  %v11151_v45 = vadd.f32 %v9298_v42, %v3116_v4  ;;  %v10983_v0 = vcombine.high %v2960_v55, %v2968_v58  ;;  %v2976_v4 = vld [vmem:[#allocation6 + $0x1d38] sm:$0xff]  ;;  %v2991_v62 = vld [vmem:[#allocation6 + $0x1db0] sm:$0xff] }
 0x544   :  { %v11100_v57 = vpack.c.bf16 %v9654_v39, %v9653_v24  ;;  %v9671_v35 = vmax.f32 %v11150_v40, 0.0  ;;  %v9670_v47 = vmax.f32 %v11147_v41, 0.0  ;;  %9443 = vmatpush1.bf16.msra.mxu0 %v10932_v13  ;;  %v10980_v6 = vcombine.low %v2959_v52, %v2967_v53  ;;  %v3007_v20 = vld [vmem:[#allocation6 + $0x1e30] sm:$0xff]  ;;  %v3008_v21 = vld [vmem:[#allocation6 + $0x1e38] sm:$0xff] }
 0x545   :  { %v11101_v48 = vpack.c.bf16 %v9656_v10, %v9655_v38  ;;  %v9672_v49 = vmax.f32 %v11151_v45, 0.0  ;;  %9615 = vmatpush1.bf16.msra.mxu1 %v10934_v31  ;;  %9444 = vmatprep.subr.bf16.mxu0 %v10949_v22  ;;  %v10997_v8 = vcombine.high %v2975_v1, %v2983_v3  ;;  %v10999_v27 = vcombine.high %v2976_v4, %v2984_v5  ;;  %v3016_v31 = vld [vmem:[#allocation6 + $0x1e78] sm:$0xff]  ;;  %v3023_v36 = vld [vmem:[#allocation6 + $0x1eb0] sm:$0xff] }
 0x546   :  { %9777 = vst [vmem:[%s11733_s5 + $0x20] sm:$0xff] %v11100_v57  ;;  %v11108_v2 = vpack.c.bf16 %v9670_v47, %v9669_v44  ;;  %9616 = vmatprep.subr.bf16.mxu1 %v10951_v26  ;;  %v10996_v29 = vcombine.low %v2975_v1, %v2983_v3  ;;  %v10998_v12 = vcombine.low %v2976_v4, %v2984_v5  ;;  %v3031_v37 = vld [vmem:[#allocation6 + $0x1ef0] sm:$0xff]  ;;  %v3024_v26 = vld [vmem:[#allocation6 + $0x1eb8] sm:$0xff] }
 0x547   :  { %9778 = vst [vmem:[%s11733_s5 + $0x28] sm:$0xff] %v11101_v48  ;;  %v11109_v54 = vpack.c.bf16 %v9672_v49, %v9671_v35  ;;  %v11013_v13 = vcombine.high %v2991_v62, %v2999_v9  ;;  %v11015_v30 = vcombine.high %v2992_v11, %v3000_v63  ;;  %v11012_v22 = vcombine.low %v2991_v62, %v2999_v9  ;;  %v3032_v38 = vld [vmem:[#allocation6 + $0x1ef8] sm:$0xff]  ;;  %v3039_v43 = vld [vmem:[#allocation6 + $0x1f30] sm:$0xff] }
 0x548   :  { %9785 = vst [vmem:[%s11733_s5 + $0x60] sm:$0xff] %v11108_v2  ;;  %9445 = vmatpush1.bf16.msra.mxu0 %v10948_v56  ;;  %v11014_v24 = vcombine.low %v2992_v11, %v3000_v63  ;;  %v11029_v25 = vcombine.high %v3007_v20, %v3015_v33  ;;  %v11031_v34 = vcombine.high %v3008_v21, %v3016_v31  ;;  %v3047_v15 = vld [vmem:[#allocation6 + $0x1f70] sm:$0xff]  ;;  %v3040_v10 = vld [vmem:[#allocation6 + $0x1f38] sm:$0xff] }
 0x549   :  { %9786 = vst [vmem:[%s11733_s5 + $0x68] sm:$0xff] %v11109_v54  ;;  %9617 = vmatpush1.bf16.msra.mxu1 %v10950_v50  ;;  %9446 = vmatprep.subr.bf16.mxu0 %v10965_v51  ;;  %v11028_v39 = vcombine.low %v3007_v20, %v3015_v33  ;;  %v11030_v40 = vcombine.low %v3008_v21, %v3016_v31  ;;  %v3048_v44 = vld [vmem:[#allocation6 + $0x1f78] sm:$0xff]  ;;  %v3055_v35 = vld [vmem:[#allocation6 + $0x1fb0] sm:$0xff] }
 0x54a   :  { %9618 = vmatprep.subr.bf16.mxu1 %v10967_v19  ;;  %v11045_v41 = vcombine.high %v3023_v36, %v3031_v37  ;;  %v11047_v42 = vcombine.high %v3024_v26, %v3032_v38  ;;  %v11044_v45 = vcombine.low %v3023_v36, %v3031_v37  ;;  %v11046_v46 = vcombine.low %v3024_v26, %v3032_v38  ;;  %v3063_v47 = vld [vmem:[#allocation6 + $0x1ff0] sm:$0xff]  ;;  %v3056_v56 = vld [vmem:[#allocation6 + $0x1fb8] sm:$0xff] }
 0x54b   :  { %v11061_v17 = vcombine.high %v3039_v43, %v3047_v15  ;;  %v11063_v57 = vcombine.high %v3040_v10, %v3048_v44  ;;  %v3064_v48 = vld [vmem:[#allocation6 + $0x1ff8] sm:$0xff]  ;;  %v11060_v49 = vcombine.low %v3039_v43, %v3047_v15  ;;  %v11062_v50 = vcombine.low %v3040_v10, %v3048_v44 }
 0x54c   :  { %9447 = vmatpush1.bf16.msra.mxu0 %v10964_v59  ;;  %v11077_v51 = vcombine.high %v3055_v35, %v3063_v47  ;;  %v11079_v2 = vcombine.high %v3056_v56, %v3064_v48  ;;  %v11076_v19 = vcombine.low %v3055_v35, %v3063_v47  ;;  %v11078_v52 = vcombine.low %v3056_v56, %v3064_v48 }
 0x54d   :  { %9619 = vmatpush1.bf16.msra.mxu1 %v10966_v60  ;;  %9448 = vmatprep.subr.bf16.mxu0 %v10981_v61  ;;  %v3120_v53 = vrot.slane %v11684_v28, %v11567_v14  ;;  %v3128_v54 = vrot.slane %v11684_v28, %v11570_v16  ;;  %v3124_v55 = vrot.slane %v11684_v28, %v11573_v18 }
 0x54e   :  { %9620 = vmatprep.subr.bf16.mxu1 %v10983_v0  ;;  %v3132_v58 = vrot.slane %v11684_v28, %v11576_v23 }
 0x550   :  { %9449 = vmatpush1.bf16.msra.mxu0 %v10980_v6 }
 0x551   :  { %9621 = vmatpush1.bf16.msra.mxu1 %v10982_v7  ;;  %9450 = vmatprep.subr.bf16.mxu0 %v10997_v8 }
 0x552   :  { %9622 = vmatprep.subr.bf16.mxu1 %v10999_v27 }
 0x554   :  { %9451 = vmatpush1.bf16.msra.mxu0 %v10996_v29 }
 0x555   :  { %9623 = vmatpush1.bf16.msra.mxu1 %v10998_v12  ;;  %9452 = vmatprep.subr.bf16.mxu0 %v11013_v13 }
 0x556   :  { %9624 = vmatprep.subr.bf16.mxu1 %v11015_v30 }
 0x558   :  { %9453 = vmatpush1.bf16.msra.mxu0 %v11012_v22 }
 0x559   :  { %9625 = vmatpush1.bf16.msra.mxu1 %v11014_v24  ;;  %9454 = vmatprep.subr.bf16.mxu0 %v11029_v25 }
 0x55a   :  { %9626 = vmatprep.subr.bf16.mxu1 %v11031_v34 }
 0x55c   :  { %9455 = vmatpush1.bf16.msra.mxu0 %v11028_v39 }
 0x55d   :  { %9627 = vmatpush1.bf16.msra.mxu1 %v11030_v40  ;;  %9456 = vmatprep.subr.bf16.mxu0 %v11045_v41 }
 0x55e   :  { %9628 = vmatprep.subr.bf16.mxu1 %v11047_v42 }
 0x560   :  { %9457 = vmatpush1.bf16.msra.mxu0 %v11044_v45 }
 0x561   :  { %9629 = vmatpush1.bf16.msra.mxu1 %v11046_v46  ;;  %9458 = vmatprep.subr.bf16.mxu0 %v11061_v17 }
 0x562   :  { %9630 = vmatprep.subr.bf16.mxu1 %v11063_v57 }
 0x564   :  { %9459 = vmatpush1.bf16.msra.mxu0 %v11060_v49 }
 0x565   :  { %9631 = vmatpush1.bf16.msra.mxu1 %v11062_v50  ;;  %9460 = vmatprep.subr.bf16.mxu0 %v11077_v51 }
 0x566   :  { %9632 = vmatprep.subr.bf16.mxu1 %v11079_v2 }
 0x568   :  { %9461 = vmatpush1.bf16.msra.mxu0 %v11076_v19 }
 0x569   :  { %9633 = vmatpush1.bf16.msra.mxu1 %v11078_v52 }
 0x56b   :  { %9463 = vmatmul.mubr.bf16.vlgmr.msra.gmra.mrb[20].mxu0 %v11588_v32 }
 0x56c   :  { %9635 = vmatmul.mubr.bf16.vlgmr.msra.gmra.mrb[20].mxu1 %v11588_v32 }
 0x63e   :  { %v9464_v59 = vpop.f32.mrb[20].mxu0 }
 0x63f   :  { %v11152_v60 = vadd.f32 %v9464_v59, %v3120_v53  ;;  %v9636_v61 = vpop.f32.mrb[20].mxu1  ;;  %v9466_v0 = vpop.f32.mrb[21].mxu0 }
 0x640   :  { %v11156_v1 = vadd.f32 %v9636_v61, %v3128_v54  ;;  %v11153_v3 = vadd.f32 %v9466_v0, %v3124_v55  ;;  %v9638_v4 = vpop.f32.mrb[21].mxu1  ;;  %v9468_v32 = vpop.f32.mrb[22].mxu0 }
 0x641   :  { %v9657_v5 = vmax.f32 %v11152_v60, 0.0  ;;  %v11157_v6 = vadd.f32 %v9638_v4, %v3132_v58  ;;  %v11154_v14 = vadd.f32 %v9468_v32, %v3120_v53  ;;  %v9640_v7 = vpop.f32.mrb[22].mxu1  ;;  %v9470_v8 = vpop.f32.mrb[23].mxu0 }
 0x642   :  { %v9659_v16 = vmax.f32 %v11156_v1, 0.0  ;;  %v9658_v27 = vmax.f32 %v11153_v3, 0.0  ;;  %v11158_v62 = vadd.f32 %v9640_v7, %v3128_v54  ;;  %v11155_v18 = vadd.f32 %v9470_v8, %v3124_v55  ;;  %v9642_v9 = vpop.f32.mrb[23].mxu1 }
 0x643   :  { %v9660_v11 = vmax.f32 %v11157_v6, 0.0  ;;  %v9673_v23 = vmax.f32 %v11154_v14, 0.0  ;;  %v11159_v28 = vadd.f32 %v9642_v9, %v3132_v58 }
 0x644   :  { %v11102_v63 = vpack.c.bf16 %v9658_v27, %v9657_v5  ;;  %v9675_v29 = vmax.f32 %v11158_v62, 0.0  ;;  %v9674_v12 = vmax.f32 %v11155_v18, 0.0 }
 0x645   :  { %v11103_v13 = vpack.c.bf16 %v9660_v11, %v9659_v16  ;;  %v9676_v30 = vmax.f32 %v11159_v28, 0.0 }
 0x646   :  { %9779 = vst [vmem:[%s11733_s5 + $0x30] sm:$0xff] %v11102_v63  ;;  %v11110_v20 = vpack.c.bf16 %v9674_v12, %v9673_v23 }
 0x647   :  { %9780 = vst [vmem:[%s11733_s5 + $0x38] sm:$0xff] %v11103_v13  ;;  %v11111_v33 = vpack.c.bf16 %v9676_v30, %v9675_v29 }
 0x648   :  { %9787 = vst [vmem:[%s11733_s5 + $0x70] sm:$0xff] %v11110_v20 }
 0x649   :  { %9788 = vst [vmem:[%s11733_s5 + $0x78] sm:$0xff] %v11111_v33 }
 0x64a   :  { %9793 = vsyncpa [#allocation3], 1 }
 0x64b   :  { %9794 = vsyncpa [#allocation5], 1 }
 0x64c   :  { %9795 = vsyncpa [#allocation8], 1 }

</bundles_post_ra>
